<compile_context>
chip_gen: v5e
topology: v5e:2x2
jax: 0.10.0
libtpu: 0.0.40
codegen_flags: <defaults>
</compile_context>

<pallas_src>
import math
import jax
import jax.numpy as jnp
import numpy as np
from jax.experimental import pallas as pl
from jax.experimental.pallas import tpu as pltpu

LANE = 128  # lane width; pooling halves are aligned to this


def net1d_kernel(xwin_ref, wa_ref, b1_ref, wc_ref, b2_ref,
                 wfc1_ref, bfc1_ref, wfc2_ref, bfc2_ref, wfc3_ref, bfc3_ref,
                 out_ref):
    """One grid step processes B_TILE samples.

    xwin_ref : (L2p, B_TILE, W*n0)  stride-4 input windows (host im2col)
    wa_ref   : (W*n0, 2*LANE)  fused conv1 weight; even conv1 positions in lanes
                               [0, (kern+1)*n1), odd positions in [LANE, LANE+...)
    wc_ref   : (LANE, 2*LANE)  fused conv2 weight; conv2 position 2p in lanes
                               [0, n2), position 2p+1 in [LANE, LANE+n2)
    wfc1_ref : (L2p, LANE, 120) fc1 weight, PyTorch channel-major flatten folded in,
                               rows padded n2->LANE with zeros
    out_ref  : (1, 1, B_TILE)  lane-dense output block
    """
    l2p, b_tile, wn0 = xwin_ref.shape
    lane = wa_ref.shape[1] // 2

    # conv1 + pool1 + conv2 + pool2 as two big-M matmuls (M = l2p * b_tile).
    x = xwin_ref[...].reshape(l2p * b_tile, wn0)           # free leading-dim merge
    a = jnp.dot(x, wa_ref[...], preferred_element_type=jnp.float32)   # (M, 2*LANE)
    # MaxPool1d(2,2) == max of the two lane-aligned halves; shared per-channel bias
    # and ReLU commute past the max (ReLU monotone, identical bias on both taps).
    u = jnp.maximum(jnp.maximum(a[:, :lane], a[:, lane:]) + b1_ref[...], 0.0)
    c = jnp.dot(u, wc_ref[...], preferred_element_type=jnp.float32)   # (M, 2*LANE)
    pooled = jnp.maximum(jnp.maximum(c[:, :lane], c[:, lane:]) + b2_ref[...], 0.0)

    # fc1 accumulated over pooled-2 positions (no concat; bounded live ranges).
    f1 = jnp.dot(pooled[0:b_tile, :], wfc1_ref[0],
                 preferred_element_type=jnp.float32)
    for l in range(1, l2p):
        f1 = f1 + jnp.dot(pooled[l * b_tile:(l + 1) * b_tile, :], wfc1_ref[l],
                          preferred_element_type=jnp.float32)
    f1 = jnp.maximum(f1 + bfc1_ref[...], 0.0)                         # (B_TILE, 120)

    f2 = jnp.maximum(jnp.dot(f1, wfc2_ref[...], preferred_element_type=jnp.float32)
                     + bfc2_ref[...], 0.0)                            # (B_TILE, 84)

    # fc3 padded to 8 output columns (column 0 is the real head output).
    f3 = jnp.maximum(jnp.dot(f2, wfc3_ref[...], preferred_element_type=jnp.float32)
                     + bfc3_ref[...], 0.0)                            # (B_TILE, 8)
    f3t = jnp.transpose(f3, (1, 0))                                   # (8, B_TILE)
    out_ref[...] = f3t[:1, :].reshape(1, 1, b_tile)                   # lane-dense store


def _fused_conv_weights(w1, b1, w2, b2):
    """Fused conv1(+pool) / conv2(+pool) weights with lane-aligned pooling halves.

    WA[m*n0 + c, j*n1 + o]          = w1[o, c, m - 2j]       (even conv1 positions)
    WA[m*n0 + c, LANE + j*n1 + o]   = w1[o, c, m - (2j+1)]   (odd conv1 positions)
    WC[j*n1 + o1, s*LANE + o2]      = w2[o2, o1, j - s],  s in {0, 1}
    (zero where the tap index is outside [0, kern); all other lanes zero-padded).
    """
    n1, n0, K = w1.shape
    n2 = w2.shape[0]
    P = K + 1                  # pooled-1 taps needed per pooled-2 output
    W = 3 * K + 1              # input window length per pooled-2 output
    half1 = P * n1

    w1_t = jnp.transpose(w1, (2, 1, 0)).reshape(K * n0, n1).astype(jnp.float32)
    wa = jnp.zeros((W * n0, 2 * LANE), jnp.float32)
    for j in range(P):
        q = 2 * j              # even conv1 position (relative to window start)
        wa = wa.at[q * n0:(q + K) * n0, j * n1:(j + 1) * n1].set(w1_t)
        q = 2 * j + 1          # odd conv1 position
        wa = wa.at[q * n0:(q + K) * n0,
                   LANE + j * n1:LANE + (j + 1) * n1].set(w1_t)
    b1p = jnp.zeros((1, LANE), jnp.float32).at[0, :half1].set(
        jnp.tile(b1.astype(jnp.float32), P))

    w2_t = jnp.transpose(w2, (2, 1, 0)).reshape(K * n1, n2).astype(jnp.float32)
    wc = jnp.zeros((LANE, 2 * LANE), jnp.float32)
    for s in range(2):
        wc = wc.at[s * n1:(s + K) * n1, s * LANE:s * LANE + n2].set(w2_t)
    b2p = jnp.zeros((1, LANE), jnp.float32).at[0, :n2].set(b2.astype(jnp.float32))
    return wa, b1p, wc, b2p


def net1d_forward(x_ncl, params, b_tile=128):
    """x_ncl: (B, n0, D_in) float32, PyTorch NCL layout. Returns (B, 1)."""
    (w1, b1, w2, b2, fc1_w, fc1_b, fc2_w, fc2_b, fc3_w, fc3_b) = params
    B, n0, D_in = x_ncl.shape
    n1, _, kern = w1.shape
    n2 = w2.shape[0]
    h1_dim = fc1_w.shape[0]
    h2_dim = fc2_w.shape[0]

    L1 = D_in - kern + 1
    L1p = L1 // 2
    L2 = L1p - kern + 1
    L2p = L2 // 2
    assert L2p >= 1, "input length too small for this architecture"
    assert b_tile % LANE == 0
    assert (kern + 1) * n1 <= LANE and n2 <= LANE, "lane-aligned fusion needs <=128 cols"

    W = 3 * kern + 1           # input window per pooled-2 output position
    num_blocks = int(pl.cdiv(B, b_tile))
    B_pad = num_blocks * b_tile

    # ---- host-side layout glue (plain XLA ops) ----
    x_lc = jnp.transpose(x_ncl.astype(jnp.float32), (0, 2, 1))        # (B, D_in, n0)
    if B_pad != B:
        x_lc = jnp.pad(x_lc, ((0, B_pad - B), (0, 0), (0, 0)))

    # Stride-4 im2col: pooled-2 position p depends on x[4p : 4p + 3*kern + 1].
    pos = 4 * jnp.arange(L2p)[:, None] + jnp.arange(W)[None, :]       # (L2p, W)
    xwin = x_lc[:, pos, :].reshape(B_pad, L2p, W * n0)
    xwin = jnp.transpose(xwin, (1, 0, 2))                             # (L2p, B_pad, W*n0)

    wa, b1p, wc, b2p = _fused_conv_weights(w1, b1, w2, b2)

    # fc1 weight with the PyTorch channel-major flatten (c*L2p + l) folded in;
    # per-position blocks, rows padded n2 -> LANE to match pooled's zero lanes.
    wfc1 = jnp.transpose(fc1_w.reshape(h1_dim, n2, L2p), (2, 1, 0)).astype(jnp.float32)
    wfc1p = jnp.zeros((L2p, LANE, h1_dim), jnp.float32).at[:, :n2, :].set(wfc1)
    bfc1 = fc1_b.reshape(1, h1_dim).astype(jnp.float32)
    wfc2 = fc2_w.T.astype(jnp.float32)                                # (120, 84)
    bfc2 = fc2_b.reshape(1, h2_dim).astype(jnp.float32)
    # fc3 padded to 8 output columns so the lane-dense transpose avoids a size-1 dim.
    wfc3p = jnp.zeros((h2_dim, 8), jnp.float32).at[:, 0:1].set(
        fc3_w.T.astype(jnp.float32))
    bfc3p = jnp.zeros((1, 8), jnp.float32).at[0, 0].set(
        fc3_b.astype(jnp.float32)[0])

    consts = (wa, b1p, wc, b2p, wfc1p, bfc1, wfc2, bfc2, wfc3p, bfc3p)

    def const_spec(a):
        # Constant index_map: stays resident across grid steps (no re-DMA).
        return pl.BlockSpec(a.shape, lambda i, _nd=a.ndim: (0,) * _nd)

    in_specs = [pl.BlockSpec((L2p, b_tile, W * n0), lambda i: (0, i, 0))] + \
               [const_spec(a) for a in consts]

    out = pl.pallas_call(
        net1d_kernel,
        out_shape=jax.ShapeDtypeStruct((num_blocks, 1, b_tile), jnp.float32),
        grid_spec=pltpu.PrefetchScalarGridSpec(
            num_scalar_prefetch=0,
            grid=(num_blocks,),
            in_specs=in_specs,
            out_specs=pl.BlockSpec((1, 1, b_tile), lambda i: (i, 0, 0)),
        ),
        compiler_params=pltpu.CompilerParams(
            dimension_semantics=("parallel",),
            vmem_limit_bytes=32 * 1024 * 1024),
    )(xwin, *consts)
    return out.reshape(B_pad, 1)[:B]


def net1d_reference(x_ncl, params):
    """Pure-JAX mirror of the PyTorch forward (NCL layout) for validation."""
    (w1, b1, w2, b2, fc1_w, fc1_b, fc2_w, fc2_b, fc3_w, fc3_b) = params
    B = x_ncl.shape[0]

    def conv1d(x, w, b):
        L = x.shape[2]
        K = w.shape[2]
        Lout = L - K + 1
        out = jnp.zeros((x.shape[0], w.shape[0], Lout), jnp.float32)
        for k in range(K):
            out = out + jnp.einsum('bil,oi->bol', x[:, :, k:k + Lout], w[:, :, k])
        return out + b[None, :, None]

    def maxpool2(x):
        L = x.shape[2]
        Lp = L // 2
        return x[:, :, :2 * Lp].reshape(x.shape[0], x.shape[1], Lp, 2).max(-1)

    y = maxpool2(jax.nn.relu(conv1d(x_ncl, w1, b1)))
    y = maxpool2(jax.nn.relu(conv1d(y, w2, b2)))
    y = y.reshape(B, -1)
    y = jax.nn.relu(y @ fc1_w.T + fc1_b)
    y = jax.nn.relu(y @ fc2_w.T + fc2_b)
    y = jax.nn.relu(y @ fc3_w.T + fc3_b)
    return y


if __name__ == "__main__":
    # Small shapes consistent with Net1D(n0, n1, n2, kern) and D_in.
    B, n0, n1, n2, kern, D_in = 200, 4, 8, 16, 5, 64

    # dim_x exactly as in the module's __init__.
    dim_x = math.floor((D_in - (kern - 1)) / 2)
    dim_x = math.floor((dim_x - (kern - 1)) / 2)
    dim_x = dim_x * n2

    key = jax.random.PRNGKey(0)
    ks = jax.random.split(key, 12)

    def init(k, shape, fan_in):
        return jax.random.normal(k, shape, jnp.float32) / jnp.sqrt(float(fan_in))

    params = (
        init(ks[0], (n1, n0, kern), n0 * kern),        # conv1.weight
        init(ks[1], (n1,), n0 * kern),                 # conv1.bias
        init(ks[2], (n2, n1, kern), n1 * kern),        # conv2.weight
        init(ks[3], (n2,), n1 * kern),                 # conv2.bias
        init(ks[4], (120, dim_x), dim_x),              # fc1.weight
        init(ks[5], (120,), dim_x),                    # fc1.bias
        init(ks[6], (84, 120), 120),                   # fc2.weight
        init(ks[7], (84,), 120),                       # fc2.bias
        init(ks[8], (1, 84), 84),                      # fc3.weight
        init(ks[9], (1,), 84) + 0.1,                   # fc3.bias (small offset)
    )

    x = jax.random.normal(ks[10], (B, n0, D_in), jnp.float32)   # PyTorch NCL input

    y_kernel = jax.block_until_ready(net1d_forward(x, params))
    y_ref = jax.block_until_ready(net1d_reference(x, params))

    if not np.allclose(np.asarray(y_kernel), np.asarray(y_ref), rtol=1e-3, atol=1e-3):
        err = np.max(np.abs(np.asarray(y_kernel) - np.asarray(y_ref)))
        raise AssertionError(f"Mismatch: max abs err = {err}")

    print("KERNEL_OK")
</pallas_src>

<mosaic_0001>
module attributes {stable_mosaic.version = 11 : i64} {
  func.func @net1d_kernel(%arg0: i32, %arg1: memref<13x128x64xf32, #tpu.memory_space<vmem>>, %arg2: memref<64x256xf32, #tpu.memory_space<vmem>>, %arg3: memref<1x128xf32, #tpu.memory_space<vmem>>, %arg4: memref<128x256xf32, #tpu.memory_space<vmem>>, %arg5: memref<1x128xf32, #tpu.memory_space<vmem>>, %arg6: memref<13x128x120xf32, #tpu.memory_space<vmem>>, %arg7: memref<1x120xf32, #tpu.memory_space<vmem>>, %arg8: memref<120x84xf32, #tpu.memory_space<vmem>>, %arg9: memref<1x84xf32, #tpu.memory_space<vmem>>, %arg10: memref<84x8xf32, #tpu.memory_space<vmem>>, %arg11: memref<1x8xf32, #tpu.memory_space<vmem>>, %arg12: memref<1x1x128xf32, #tpu.memory_space<vmem>>) attributes {dimension_semantics = [#tpu.dimension_semantics<parallel>], iteration_bounds = array<i64: 2>, scalar_prefetch = 0 : i64, scratch_operands = 0 : i64, tpu.core_type = #tpu.core_type<tc>, window_params = [{transform_indices = @transform_0, window_bounds = array<i64: 13, 128, 64>}, {pipeline_mode = #tpu.pipeline_mode<synchronous>, transform_indices = @transform_1, window_bounds = array<i64: 64, 256>}, {pipeline_mode = #tpu.pipeline_mode<synchronous>, transform_indices = @transform_2, window_bounds = array<i64: 1, 128>}, {pipeline_mode = #tpu.pipeline_mode<synchronous>, transform_indices = @transform_3, window_bounds = array<i64: 128, 256>}, {pipeline_mode = #tpu.pipeline_mode<synchronous>, transform_indices = @transform_4, window_bounds = array<i64: 1, 128>}, {pipeline_mode = #tpu.pipeline_mode<synchronous>, transform_indices = @transform_5, window_bounds = array<i64: 13, 128, 120>}, {pipeline_mode = #tpu.pipeline_mode<synchronous>, transform_indices = @transform_6, window_bounds = array<i64: 1, 120>}, {pipeline_mode = #tpu.pipeline_mode<synchronous>, transform_indices = @transform_7, window_bounds = array<i64: 120, 84>}, {pipeline_mode = #tpu.pipeline_mode<synchronous>, transform_indices = @transform_8, window_bounds = array<i64: 1, 84>}, {pipeline_mode = #tpu.pipeline_mode<synchronous>, transform_indices = @transform_9, window_bounds = array<i64: 84, 8>}, {pipeline_mode = #tpu.pipeline_mode<synchronous>, transform_indices = @transform_10, window_bounds = array<i64: 1, 8>}, {transform_indices = @transform_11, window_bounds = array<i64: 1, 1, 128>}]} {
    %c0 = arith.constant 0 : index
    %c0_0 = arith.constant 0 : index
    %c0_1 = arith.constant 0 : index
    %0 = vector.load %arg1[%c0, %c0_0, %c0_1] : memref<13x128x64xf32, #tpu.memory_space<vmem>>, vector<13x128x64xf32>
    %1 = vector.shape_cast %0 : vector<13x128x64xf32> to vector<1664x64xf32>
    %c0_2 = arith.constant 0 : index
    %c0_3 = arith.constant 0 : index
    %2 = vector.load %arg2[%c0_2, %c0_3] : memref<64x256xf32, #tpu.memory_space<vmem>>, vector<64x256xf32>
    %cst = arith.constant dense<0.000000e+00> : vector<1664x256xf32>
    %3 = tpu.matmul %1, %2, %cst {dimension_numbers = #tpu.dot_dimension_numbers<[1], [0], [0], [1], [0, 0, 1, 1], [], []>} : vector<1664x64xf32>, vector<64x256xf32>, vector<1664x256xf32> -> vector<1664x256xf32>
    %4 = vector.extract_strided_slice %3 {offsets = [0, 0], sizes = [1664, 128], strides = [1, 1]} : vector<1664x256xf32> to vector<1664x128xf32>
    %5 = vector.extract_strided_slice %3 {offsets = [0, 128], sizes = [1664, 128], strides = [1, 1]} : vector<1664x256xf32> to vector<1664x128xf32>
    %6 = arith.maximumf %4, %5 : vector<1664x128xf32>
    %c0_4 = arith.constant 0 : index
    %c0_5 = arith.constant 0 : index
    %7 = vector.load %arg3[%c0_4, %c0_5] : memref<1x128xf32, #tpu.memory_space<vmem>>, vector<1x128xf32>
    %8 = vector.broadcast %7 : vector<1x128xf32> to vector<1664x128xf32>
    %9 = arith.addf %6, %8 : vector<1664x128xf32>
    %cst_6 = arith.constant 0.000000e+00 : f32
    %10 = vector.broadcast %cst_6 : f32 to vector<1664x128xf32>
    %11 = arith.maximumf %9, %10 : vector<1664x128xf32>
    %c0_7 = arith.constant 0 : index
    %c0_8 = arith.constant 0 : index
    %12 = vector.load %arg4[%c0_7, %c0_8] : memref<128x256xf32, #tpu.memory_space<vmem>>, vector<128x256xf32>
    %cst_9 = arith.constant dense<0.000000e+00> : vector<1664x256xf32>
    %13 = tpu.matmul %11, %12, %cst_9 {dimension_numbers = #tpu.dot_dimension_numbers<[1], [0], [0], [1], [0, 0, 1, 1], [], []>} : vector<1664x128xf32>, vector<128x256xf32>, vector<1664x256xf32> -> vector<1664x256xf32>
    %14 = vector.extract_strided_slice %13 {offsets = [0, 0], sizes = [1664, 128], strides = [1, 1]} : vector<1664x256xf32> to vector<1664x128xf32>
    %15 = vector.extract_strided_slice %13 {offsets = [0, 128], sizes = [1664, 128], strides = [1, 1]} : vector<1664x256xf32> to vector<1664x128xf32>
    %16 = arith.maximumf %14, %15 : vector<1664x128xf32>
    %c0_10 = arith.constant 0 : index
    %c0_11 = arith.constant 0 : index
    %17 = vector.load %arg5[%c0_10, %c0_11] : memref<1x128xf32, #tpu.memory_space<vmem>>, vector<1x128xf32>
    %18 = vector.broadcast %17 : vector<1x128xf32> to vector<1664x128xf32>
    %19 = arith.addf %16, %18 : vector<1664x128xf32>
    %cst_12 = arith.constant 0.000000e+00 : f32
    %20 = vector.broadcast %cst_12 : f32 to vector<1664x128xf32>
    %21 = arith.maximumf %19, %20 : vector<1664x128xf32>
    %22 = vector.extract_strided_slice %21 {offsets = [0, 0], sizes = [128, 128], strides = [1, 1]} : vector<1664x128xf32> to vector<128x128xf32>
    %c0_13 = arith.constant 0 : index
    %c0_14 = arith.constant 0 : index
    %c0_15 = arith.constant 0 : index
    %23 = vector.load %arg6[%c0_13, %c0_14, %c0_15] : memref<13x128x120xf32, #tpu.memory_space<vmem>>, vector<1x128x120xf32>
    %24 = vector.shape_cast %23 : vector<1x128x120xf32> to vector<128x120xf32>
    %cst_16 = arith.constant dense<0.000000e+00> : vector<128x120xf32>
    %25 = tpu.matmul %22, %24, %cst_16 {dimension_numbers = #tpu.dot_dimension_numbers<[1], [0], [0], [1], [0, 0, 1, 1], [], []>} : vector<128x128xf32>, vector<128x120xf32>, vector<128x120xf32> -> vector<128x120xf32>
    %26 = vector.extract_strided_slice %21 {offsets = [128, 0], sizes = [128, 128], strides = [1, 1]} : vector<1664x128xf32> to vector<128x128xf32>
    %c1 = arith.constant 1 : index
    %c0_17 = arith.constant 0 : index
    %c0_18 = arith.constant 0 : index
    %27 = vector.load %arg6[%c1, %c0_17, %c0_18] : memref<13x128x120xf32, #tpu.memory_space<vmem>>, vector<1x128x120xf32>
    %28 = vector.shape_cast %27 : vector<1x128x120xf32> to vector<128x120xf32>
    %cst_19 = arith.constant dense<0.000000e+00> : vector<128x120xf32>
    %29 = tpu.matmul %26, %28, %cst_19 {dimension_numbers = #tpu.dot_dimension_numbers<[1], [0], [0], [1], [0, 0, 1, 1], [], []>} : vector<128x128xf32>, vector<128x120xf32>, vector<128x120xf32> -> vector<128x120xf32>
    %30 = arith.addf %25, %29 : vector<128x120xf32>
    %31 = vector.extract_strided_slice %21 {offsets = [256, 0], sizes = [128, 128], strides = [1, 1]} : vector<1664x128xf32> to vector<128x128xf32>
    %c2 = arith.constant 2 : index
    %c0_20 = arith.constant 0 : index
    %c0_21 = arith.constant 0 : index
    %32 = vector.load %arg6[%c2, %c0_20, %c0_21] : memref<13x128x120xf32, #tpu.memory_space<vmem>>, vector<1x128x120xf32>
    %33 = vector.shape_cast %32 : vector<1x128x120xf32> to vector<128x120xf32>
    %cst_22 = arith.constant dense<0.000000e+00> : vector<128x120xf32>
    %34 = tpu.matmul %31, %33, %cst_22 {dimension_numbers = #tpu.dot_dimension_numbers<[1], [0], [0], [1], [0, 0, 1, 1], [], []>} : vector<128x128xf32>, vector<128x120xf32>, vector<128x120xf32> -> vector<128x120xf32>
    %35 = arith.addf %30, %34 : vector<128x120xf32>
    %36 = vector.extract_strided_slice %21 {offsets = [384, 0], sizes = [128, 128], strides = [1, 1]} : vector<1664x128xf32> to vector<128x128xf32>
    %c3 = arith.constant 3 : index
    %c0_23 = arith.constant 0 : index
    %c0_24 = arith.constant 0 : index
    %37 = vector.load %arg6[%c3, %c0_23, %c0_24] : memref<13x128x120xf32, #tpu.memory_space<vmem>>, vector<1x128x120xf32>
    %38 = vector.shape_cast %37 : vector<1x128x120xf32> to vector<128x120xf32>
    %cst_25 = arith.constant dense<0.000000e+00> : vector<128x120xf32>
    %39 = tpu.matmul %36, %38, %cst_25 {dimension_numbers = #tpu.dot_dimension_numbers<[1], [0], [0], [1], [0, 0, 1, 1], [], []>} : vector<128x128xf32>, vector<128x120xf32>, vector<128x120xf32> -> vector<128x120xf32>
    %40 = arith.addf %35, %39 : vector<128x120xf32>
    %41 = vector.extract_strided_slice %21 {offsets = [512, 0], sizes = [128, 128], strides = [1, 1]} : vector<1664x128xf32> to vector<128x128xf32>
    %c4 = arith.constant 4 : index
    %c0_26 = arith.constant 0 : index
    %c0_27 = arith.constant 0 : index
    %42 = vector.load %arg6[%c4, %c0_26, %c0_27] : memref<13x128x120xf32, #tpu.memory_space<vmem>>, vector<1x128x120xf32>
    %43 = vector.shape_cast %42 : vector<1x128x120xf32> to vector<128x120xf32>
    %cst_28 = arith.constant dense<0.000000e+00> : vector<128x120xf32>
    %44 = tpu.matmul %41, %43, %cst_28 {dimension_numbers = #tpu.dot_dimension_numbers<[1], [0], [0], [1], [0, 0, 1, 1], [], []>} : vector<128x128xf32>, vector<128x120xf32>, vector<128x120xf32> -> vector<128x120xf32>
    %45 = arith.addf %40, %44 : vector<128x120xf32>
    %46 = vector.extract_strided_slice %21 {offsets = [640, 0], sizes = [128, 128], strides = [1, 1]} : vector<1664x128xf32> to vector<128x128xf32>
    %c5 = arith.constant 5 : index
    %c0_29 = arith.constant 0 : index
    %c0_30 = arith.constant 0 : index
    %47 = vector.load %arg6[%c5, %c0_29, %c0_30] : memref<13x128x120xf32, #tpu.memory_space<vmem>>, vector<1x128x120xf32>
    %48 = vector.shape_cast %47 : vector<1x128x120xf32> to vector<128x120xf32>
    %cst_31 = arith.constant dense<0.000000e+00> : vector<128x120xf32>
    %49 = tpu.matmul %46, %48, %cst_31 {dimension_numbers = #tpu.dot_dimension_numbers<[1], [0], [0], [1], [0, 0, 1, 1], [], []>} : vector<128x128xf32>, vector<128x120xf32>, vector<128x120xf32> -> vector<128x120xf32>
    %50 = arith.addf %45, %49 : vector<128x120xf32>
    %51 = vector.extract_strided_slice %21 {offsets = [768, 0], sizes = [128, 128], strides = [1, 1]} : vector<1664x128xf32> to vector<128x128xf32>
    %c6 = arith.constant 6 : index
    %c0_32 = arith.constant 0 : index
    %c0_33 = arith.constant 0 : index
    %52 = vector.load %arg6[%c6, %c0_32, %c0_33] : memref<13x128x120xf32, #tpu.memory_space<vmem>>, vector<1x128x120xf32>
    %53 = vector.shape_cast %52 : vector<1x128x120xf32> to vector<128x120xf32>
    %cst_34 = arith.constant dense<0.000000e+00> : vector<128x120xf32>
    %54 = tpu.matmul %51, %53, %cst_34 {dimension_numbers = #tpu.dot_dimension_numbers<[1], [0], [0], [1], [0, 0, 1, 1], [], []>} : vector<128x128xf32>, vector<128x120xf32>, vector<128x120xf32> -> vector<128x120xf32>
    %55 = arith.addf %50, %54 : vector<128x120xf32>
    %56 = vector.extract_strided_slice %21 {offsets = [896, 0], sizes = [128, 128], strides = [1, 1]} : vector<1664x128xf32> to vector<128x128xf32>
    %c7 = arith.constant 7 : index
    %c0_35 = arith.constant 0 : index
    %c0_36 = arith.constant 0 : index
    %57 = vector.load %arg6[%c7, %c0_35, %c0_36] : memref<13x128x120xf32, #tpu.memory_space<vmem>>, vector<1x128x120xf32>
    %58 = vector.shape_cast %57 : vector<1x128x120xf32> to vector<128x120xf32>
    %cst_37 = arith.constant dense<0.000000e+00> : vector<128x120xf32>
    %59 = tpu.matmul %56, %58, %cst_37 {dimension_numbers = #tpu.dot_dimension_numbers<[1], [0], [0], [1], [0, 0, 1, 1], [], []>} : vector<128x128xf32>, vector<128x120xf32>, vector<128x120xf32> -> vector<128x120xf32>
    %60 = arith.addf %55, %59 : vector<128x120xf32>
    %61 = vector.extract_strided_slice %21 {offsets = [1024, 0], sizes = [128, 128], strides = [1, 1]} : vector<1664x128xf32> to vector<128x128xf32>
    %c8 = arith.constant 8 : index
    %c0_38 = arith.constant 0 : index
    %c0_39 = arith.constant 0 : index
    %62 = vector.load %arg6[%c8, %c0_38, %c0_39] : memref<13x128x120xf32, #tpu.memory_space<vmem>>, vector<1x128x120xf32>
    %63 = vector.shape_cast %62 : vector<1x128x120xf32> to vector<128x120xf32>
    %cst_40 = arith.constant dense<0.000000e+00> : vector<128x120xf32>
    %64 = tpu.matmul %61, %63, %cst_40 {dimension_numbers = #tpu.dot_dimension_numbers<[1], [0], [0], [1], [0, 0, 1, 1], [], []>} : vector<128x128xf32>, vector<128x120xf32>, vector<128x120xf32> -> vector<128x120xf32>
    %65 = arith.addf %60, %64 : vector<128x120xf32>
    %66 = vector.extract_strided_slice %21 {offsets = [1152, 0], sizes = [128, 128], strides = [1, 1]} : vector<1664x128xf32> to vector<128x128xf32>
    %c9 = arith.constant 9 : index
    %c0_41 = arith.constant 0 : index
    %c0_42 = arith.constant 0 : index
    %67 = vector.load %arg6[%c9, %c0_41, %c0_42] : memref<13x128x120xf32, #tpu.memory_space<vmem>>, vector<1x128x120xf32>
    %68 = vector.shape_cast %67 : vector<1x128x120xf32> to vector<128x120xf32>
    %cst_43 = arith.constant dense<0.000000e+00> : vector<128x120xf32>
    %69 = tpu.matmul %66, %68, %cst_43 {dimension_numbers = #tpu.dot_dimension_numbers<[1], [0], [0], [1], [0, 0, 1, 1], [], []>} : vector<128x128xf32>, vector<128x120xf32>, vector<128x120xf32> -> vector<128x120xf32>
    %70 = arith.addf %65, %69 : vector<128x120xf32>
    %71 = vector.extract_strided_slice %21 {offsets = [1280, 0], sizes = [128, 128], strides = [1, 1]} : vector<1664x128xf32> to vector<128x128xf32>
    %c10 = arith.constant 10 : index
    %c0_44 = arith.constant 0 : index
    %c0_45 = arith.constant 0 : index
    %72 = vector.load %arg6[%c10, %c0_44, %c0_45] : memref<13x128x120xf32, #tpu.memory_space<vmem>>, vector<1x128x120xf32>
    %73 = vector.shape_cast %72 : vector<1x128x120xf32> to vector<128x120xf32>
    %cst_46 = arith.constant dense<0.000000e+00> : vector<128x120xf32>
    %74 = tpu.matmul %71, %73, %cst_46 {dimension_numbers = #tpu.dot_dimension_numbers<[1], [0], [0], [1], [0, 0, 1, 1], [], []>} : vector<128x128xf32>, vector<128x120xf32>, vector<128x120xf32> -> vector<128x120xf32>
    %75 = arith.addf %70, %74 : vector<128x120xf32>
    %76 = vector.extract_strided_slice %21 {offsets = [1408, 0], sizes = [128, 128], strides = [1, 1]} : vector<1664x128xf32> to vector<128x128xf32>
    %c11 = arith.constant 11 : index
    %c0_47 = arith.constant 0 : index
    %c0_48 = arith.constant 0 : index
    %77 = vector.load %arg6[%c11, %c0_47, %c0_48] : memref<13x128x120xf32, #tpu.memory_space<vmem>>, vector<1x128x120xf32>
    %78 = vector.shape_cast %77 : vector<1x128x120xf32> to vector<128x120xf32>
    %cst_49 = arith.constant dense<0.000000e+00> : vector<128x120xf32>
    %79 = tpu.matmul %76, %78, %cst_49 {dimension_numbers = #tpu.dot_dimension_numbers<[1], [0], [0], [1], [0, 0, 1, 1], [], []>} : vector<128x128xf32>, vector<128x120xf32>, vector<128x120xf32> -> vector<128x120xf32>
    %80 = arith.addf %75, %79 : vector<128x120xf32>
    %81 = vector.extract_strided_slice %21 {offsets = [1536, 0], sizes = [128, 128], strides = [1, 1]} : vector<1664x128xf32> to vector<128x128xf32>
    %c12 = arith.constant 12 : index
    %c0_50 = arith.constant 0 : index
    %c0_51 = arith.constant 0 : index
    %82 = vector.load %arg6[%c12, %c0_50, %c0_51] : memref<13x128x120xf32, #tpu.memory_space<vmem>>, vector<1x128x120xf32>
    %83 = vector.shape_cast %82 : vector<1x128x120xf32> to vector<128x120xf32>
    %cst_52 = arith.constant dense<0.000000e+00> : vector<128x120xf32>
    %84 = tpu.matmul %81, %83, %cst_52 {dimension_numbers = #tpu.dot_dimension_numbers<[1], [0], [0], [1], [0, 0, 1, 1], [], []>} : vector<128x128xf32>, vector<128x120xf32>, vector<128x120xf32> -> vector<128x120xf32>
    %85 = arith.addf %80, %84 : vector<128x120xf32>
    %c0_53 = arith.constant 0 : index
    %c0_54 = arith.constant 0 : index
    %86 = vector.load %arg7[%c0_53, %c0_54] : memref<1x120xf32, #tpu.memory_space<vmem>>, vector<1x120xf32>
    %87 = vector.broadcast %86 : vector<1x120xf32> to vector<128x120xf32>
    %88 = arith.addf %85, %87 : vector<128x120xf32>
    %cst_55 = arith.constant 0.000000e+00 : f32
    %89 = vector.broadcast %cst_55 : f32 to vector<128x120xf32>
    %90 = arith.maximumf %88, %89 : vector<128x120xf32>
    %c0_56 = arith.constant 0 : index
    %c0_57 = arith.constant 0 : index
    %91 = vector.load %arg8[%c0_56, %c0_57] : memref<120x84xf32, #tpu.memory_space<vmem>>, vector<120x84xf32>
    %cst_58 = arith.constant dense<0.000000e+00> : vector<128x84xf32>
    %92 = tpu.matmul %90, %91, %cst_58 {dimension_numbers = #tpu.dot_dimension_numbers<[1], [0], [0], [1], [0, 0, 1, 1], [], []>} : vector<128x120xf32>, vector<120x84xf32>, vector<128x84xf32> -> vector<128x84xf32>
    %c0_59 = arith.constant 0 : index
    %c0_60 = arith.constant 0 : index
    %93 = vector.load %arg9[%c0_59, %c0_60] : memref<1x84xf32, #tpu.memory_space<vmem>>, vector<1x84xf32>
    %94 = vector.broadcast %93 : vector<1x84xf32> to vector<128x84xf32>
    %95 = arith.addf %92, %94 : vector<128x84xf32>
    %cst_61 = arith.constant 0.000000e+00 : f32
    %96 = vector.broadcast %cst_61 : f32 to vector<128x84xf32>
    %97 = arith.maximumf %95, %96 : vector<128x84xf32>
    %c0_62 = arith.constant 0 : index
    %c0_63 = arith.constant 0 : index
    %98 = vector.load %arg10[%c0_62, %c0_63] : memref<84x8xf32, #tpu.memory_space<vmem>>, vector<84x8xf32>
    %cst_64 = arith.constant dense<0.000000e+00> : vector<128x8xf32>
    %99 = tpu.matmul %97, %98, %cst_64 {dimension_numbers = #tpu.dot_dimension_numbers<[1], [0], [0], [1], [0, 0, 1, 1], [], []>} : vector<128x84xf32>, vector<84x8xf32>, vector<128x8xf32> -> vector<128x8xf32>
    %c0_65 = arith.constant 0 : index
    %c0_66 = arith.constant 0 : index
    %100 = vector.load %arg11[%c0_65, %c0_66] : memref<1x8xf32, #tpu.memory_space<vmem>>, vector<1x8xf32>
    %101 = vector.broadcast %100 : vector<1x8xf32> to vector<128x8xf32>
    %102 = arith.addf %99, %101 : vector<128x8xf32>
    %cst_67 = arith.constant 0.000000e+00 : f32
    %103 = vector.broadcast %cst_67 : f32 to vector<128x8xf32>
    %104 = arith.maximumf %102, %103 : vector<128x8xf32>
    %105 = tpu.transpose %104, [1, 0] : vector<128x8xf32> -> vector<8x128xf32>
    %106 = vector.extract_strided_slice %105 {offsets = [0, 0], sizes = [1, 128], strides = [1, 1]} : vector<8x128xf32> to vector<1x128xf32>
    %107 = vector.shape_cast %106 : vector<1x128xf32> to vector<1x1x128xf32>
    %c0_68 = arith.constant 0 : index
    %c0_69 = arith.constant 0 : index
    %c0_70 = arith.constant 0 : index
    %108 = vector.load %arg12[%c0_68, %c0_69, %c0_70] : memref<1x1x128xf32, #tpu.memory_space<vmem>>, vector<1x1x128xf32>
    tpu.vector_store %arg12[%c0_68, %c0_69, %c0_70], %107 {strides = array<i32>} : memref<1x1x128xf32, #tpu.memory_space<vmem>>, vector<1x1x128xf32>,
    return
  }
  func.func @transform_0(%arg0: i32) -> (i32, i32, i32) {
    %c0_i32 = arith.constant 0 : i32
    %c0_i32_0 = arith.constant 0 : i32
    %c0_i32_1 = arith.constant 0 : i32
    return %c0_i32, %arg0, %c0_i32_0 : i32, i32, i32
  }
  func.func @transform_1(%arg0: i32) -> (i32, i32) {
    %c0_i32 = arith.constant 0 : i32
    %c0_i32_0 = arith.constant 0 : i32
    %c0_i32_1 = arith.constant 0 : i32
    return %c0_i32, %c0_i32_0 : i32, i32
  }
  func.func @transform_2(%arg0: i32) -> (i32, i32) {
    %c0_i32 = arith.constant 0 : i32
    %c0_i32_0 = arith.constant 0 : i32
    %c0_i32_1 = arith.constant 0 : i32
    return %c0_i32, %c0_i32_0 : i32, i32
  }
  func.func @transform_3(%arg0: i32) -> (i32, i32) {
    %c0_i32 = arith.constant 0 : i32
    %c0_i32_0 = arith.constant 0 : i32
    %c0_i32_1 = arith.constant 0 : i32
    return %c0_i32, %c0_i32_0 : i32, i32
  }
  func.func @transform_4(%arg0: i32) -> (i32, i32) {
    %c0_i32 = arith.constant 0 : i32
    %c0_i32_0 = arith.constant 0 : i32
    %c0_i32_1 = arith.constant 0 : i32
    return %c0_i32, %c0_i32_0 : i32, i32
  }
  func.func @transform_5(%arg0: i32) -> (i32, i32, i32) {
    %c0_i32 = arith.constant 0 : i32
    %c0_i32_0 = arith.constant 0 : i32
    %c0_i32_1 = arith.constant 0 : i32
    %c0_i32_2 = arith.constant 0 : i32
    return %c0_i32, %c0_i32_0, %c0_i32_1 : i32, i32, i32
  }
  func.func @transform_6(%arg0: i32) -> (i32, i32) {
    %c0_i32 = arith.constant 0 : i32
    %c0_i32_0 = arith.constant 0 : i32
    %c0_i32_1 = arith.constant 0 : i32
    return %c0_i32, %c0_i32_0 : i32, i32
  }
  func.func @transform_7(%arg0: i32) -> (i32, i32) {
    %c0_i32 = arith.constant 0 : i32
    %c0_i32_0 = arith.constant 0 : i32
    %c0_i32_1 = arith.constant 0 : i32
    return %c0_i32, %c0_i32_0 : i32, i32
  }
  func.func @transform_8(%arg0: i32) -> (i32, i32) {
    %c0_i32 = arith.constant 0 : i32
    %c0_i32_0 = arith.constant 0 : i32
    %c0_i32_1 = arith.constant 0 : i32
    return %c0_i32, %c0_i32_0 : i32, i32
  }
  func.func @transform_9(%arg0: i32) -> (i32, i32) {
    %c0_i32 = arith.constant 0 : i32
    %c0_i32_0 = arith.constant 0 : i32
    %c0_i32_1 = arith.constant 0 : i32
    return %c0_i32, %c0_i32_0 : i32, i32
  }
  func.func @transform_10(%arg0: i32) -> (i32, i32) {
    %c0_i32 = arith.constant 0 : i32
    %c0_i32_0 = arith.constant 0 : i32
    %c0_i32_1 = arith.constant 0 : i32
    return %c0_i32, %c0_i32_0 : i32, i32
  }
  func.func @transform_11(%arg0: i32) -> (i32, i32, i32) {
    %c0_i32 = arith.constant 0 : i32
    %c0_i32_0 = arith.constant 0 : i32
    %c0_i32_1 = arith.constant 0 : i32
    return %arg0, %c0_i32, %c0_i32_0 : i32, i32, i32
  }
}

</mosaic_0001>

<bundles_post_ra>
// kernel: tpu_custom_call.1
= control target key start
LH: loop header
LB: loop body
LE: loop exit
PB: predicated region body
PF: predicated region fallthrough
CT: control target
= control target key end

     0   :  { %s13754_s0 = inlined_call_operand.vmem [shape: f32[13,256,64], index: 0, kind: input, shape index: {}]   ;;  %s13755_s1 = inlined_call_operand.vmem [shape: f32[64,256], index: 1, kind: input, shape index: {}]   ;;  %s13756_s2 = inlined_call_operand.vmem [shape: f32[1,128], index: 2, kind: input, shape index: {}]   ;;  %s13757_s3 = inlined_call_operand.vmem [shape: f32[128,256], index: 3, kind: input, shape index: {}]   ;;  %s13758_s4 = inlined_call_operand.vmem [shape: f32[1,128], index: 4, kind: input, shape index: {}]   ;;  %s13759_s5 = inlined_call_operand.vmem [shape: f32[13,128,120], index: 5, kind: input, shape index: {}]   ;;  %s13760_s6 = inlined_call_operand.vmem [shape: f32[1,120], index: 6, kind: input, shape index: {}]   ;;  %s13761_s7 = inlined_call_operand.vmem [shape: f32[120,84], index: 7, kind: input, shape index: {}]   ;;  %s13762_s8 = inlined_call_operand.vmem [shape: f32[1,84], index: 8, kind: input, shape index: {}]   ;;  %s13763_s9 = inlined_call_operand.vmem [shape: f32[84,8], index: 9, kind: input, shape index: {}]   ;;  %s13764_s10 = inlined_call_operand.vmem [shape: f32[1,8], index: 10, kind: input, shape index: {}]   ;;  %s13765_s11 = inlined_call_operand.hbm [shape: f32[2,1,128], index: 11, kind: output, shape index: {}]  }
   0x1   :  { %14153 = sst [smem:[#allocation341_spill]] %s13754_s0 }
   0x2   :  { %14154 = sst [smem:[#allocation342_spill]] %s13755_s1 }
   0x3   :  { %16 = vsyncpa [#allocation4], 0 }
   0x4   :  { %18 = vsyncpa [#allocation4 + $0x1], 0  ;;  %s8505_s17 = smov 0   ;;  %s8507_s18 = smov 0  }
   0x5   :  { %s8509_s19 = smov 0   ;;  %s8511_s20 = smov 0  }
   0x6 LB: > { %s13766_s21 = sadd.s32 4294967295, %s8443_s20   ;;  %s7632_s22 = sadd.s32 4294967294, %s8443_s20   ;;  %s8443_s20 = sphi %s8511_s20, %s15275_s20   ;;  %s8439_s19 = sphi %s8509_s19, %s15274_s19   ;;  %s8435_s18 = sphi %s8507_s18, %s15273_s18   ;;  %s8431_s17 = sphi %s8505_s17, %s15272_s17  }
   0x7   : > { %s8528_s23 = sadd.s32 1, %s8443_s20   ;;  %s31_s24 = sadd.s32 1, %s8439_s19 }
   0x8   : > { %s28_s25 = ssub.s32 %s8443_s20, %s8528_s23  ;;  %p38_p0 = scmp.ne.s32.totalorder %s8439_s19, %s8435_s18 }
   0x9   : > { %p29_p1 = scmp.eq.s32.totalorder %s28_s25, 0  ;;  %p39_p2 = scmp.eq.s32.totalorder %s8443_s20, 0 }
   0xa   : > { %p278_p3 = scmp.eq.s32.totalorder %s13766_s21, 1  ;;  %p283_p4 = scmp.ne.s32.totalorder %s8435_s18, %s8431_s17 }
   0xb   : > { %s8541_s26 = scalar_select %p29_p1, %s8439_s19, %s31_s24  }
   0xc   : > { %p40_p5 = por %p39_p2, %p38_p0  ;;  %p8543_p6 = por %p278_p3, %p38_p0 }
   0xd   : > { %p284_p7 = scmp.eq.s32.totalorder %s7632_s22, 1  ;;  %p7634_p9 = scmp.ge.s32.totalorder %s8443_s20, 2 }
   0xf   : > { %p8547_p8 = por %p284_p7, %p283_p4  ;;  %330 = sbr.rel (%p7634_p9) target bundleno = 238 (0xee), region = 56 }
  0x14   : > { %333 = sbr.rel (!%p40_p5) target bundleno = 238 (0xee), region = 60  ;;  %s335_s29 = sand.u32 (%p40_p5), 1, %s8439_s19  }
  0x15   : > { %s8281_s30 = sshll.u32 (%p40_p5), %s8443_s20, 7  ;;  %s8329_s12 = smul.u32 (%p40_p5), 1664, %s335_s29 }
  0x16   : > { %s14157_s0 = sld [smem:[#allocation341_spill]] (%p40_p5) }
  0x17   : > { %s8564_s16 = scalar_lea.vmem (%p40_p5), [#allocation2], %s8329_s12 }
  0x1c   : > { %s8559_s15 = scalar_lea.vmem %s14157_s0, %s8281_s30 }
  0x1d   : > { %v783_v0 = vld [vmem:[%s8559_s15] sm:$0xff]  ;;  %v785_v1 = vld [vmem:[%s8559_s15 + $0x8] sm:$0xff]  ;;  %v787_v2 = vld [vmem:[%s8559_s15 + $0x10] sm:$0xff] }
  0x1e   : > { %784 = vst [vmem:[%s8564_s16] sm:$0xff] %v783_v0  ;;  %v789_v3 = vld [vmem:[%s8559_s15 + $0x18] sm:$0xff]  ;;  %v791_v4 = vld [vmem:[%s8559_s15 + $0x20] sm:$0xff]  ;;  %v793_v5 = vld [vmem:[%s8559_s15 + $0x28] sm:$0xff] }
  0x1f   : > { %786 = vst [vmem:[%s8564_s16 + $0x8] sm:$0xff] %v785_v1  ;;  %v795_v6 = vld [vmem:[%s8559_s15 + $0x30] sm:$0xff]  ;;  %v797_v7 = vld [vmem:[%s8559_s15 + $0x38] sm:$0xff]  ;;  %v799_v8 = vld [vmem:[%s8559_s15 + $0x40] sm:$0xff] }
  0x20   : > { %788 = vst [vmem:[%s8564_s16 + $0x10] sm:$0xff] %v787_v2  ;;  %v801_v9 = vld [vmem:[%s8559_s15 + $0x48] sm:$0xff]  ;;  %v803_v10 = vld [vmem:[%s8559_s15 + $0x50] sm:$0xff]  ;;  %v805_v11 = vld [vmem:[%s8559_s15 + $0x58] sm:$0xff] }
  0x21   : > { %790 = vst [vmem:[%s8564_s16 + $0x18] sm:$0xff] %v789_v3  ;;  %v807_v12 = vld [vmem:[%s8559_s15 + $0x60] sm:$0xff]  ;;  %v809_v13 = vld [vmem:[%s8559_s15 + $0x68] sm:$0xff]  ;;  %v811_v14 = vld [vmem:[%s8559_s15 + $0x70] sm:$0xff] }
  0x22   : > { %792 = vst [vmem:[%s8564_s16 + $0x20] sm:$0xff] %v791_v4  ;;  %v813_v15 = vld [vmem:[%s8559_s15 + $0x78] sm:$0xff]  ;;  %v815_v16 = vld [vmem:[%s8559_s15 + $0x100] sm:$0xff]  ;;  %v817_v17 = vld [vmem:[%s8559_s15 + $0x108] sm:$0xff] }
  0x23   : > { %794 = vst [vmem:[%s8564_s16 + $0x28] sm:$0xff] %v793_v5  ;;  %v819_v18 = vld [vmem:[%s8559_s15 + $0x110] sm:$0xff]  ;;  %v821_v19 = vld [vmem:[%s8559_s15 + $0x118] sm:$0xff]  ;;  %v823_v20 = vld [vmem:[%s8559_s15 + $0x120] sm:$0xff] }
  0x24   : > { %796 = vst [vmem:[%s8564_s16 + $0x30] sm:$0xff] %v795_v6  ;;  %v825_v21 = vld [vmem:[%s8559_s15 + $0x128] sm:$0xff]  ;;  %v827_v22 = vld [vmem:[%s8559_s15 + $0x130] sm:$0xff]  ;;  %v829_v23 = vld [vmem:[%s8559_s15 + $0x138] sm:$0xff] }
  0x25   : > { %798 = vst [vmem:[%s8564_s16 + $0x38] sm:$0xff] %v797_v7  ;;  %v831_v24 = vld [vmem:[%s8559_s15 + $0x140] sm:$0xff]  ;;  %v833_v25 = vld [vmem:[%s8559_s15 + $0x148] sm:$0xff]  ;;  %v835_v26 = vld [vmem:[%s8559_s15 + $0x150] sm:$0xff] }
  0x26   : > { %800 = vst [vmem:[%s8564_s16 + $0x40] sm:$0xff] %v799_v8  ;;  %v837_v27 = vld [vmem:[%s8559_s15 + $0x158] sm:$0xff]  ;;  %v839_v28 = vld [vmem:[%s8559_s15 + $0x160] sm:$0xff]  ;;  %v841_v29 = vld [vmem:[%s8559_s15 + $0x168] sm:$0xff] }
  0x27   : > { %802 = vst [vmem:[%s8564_s16 + $0x48] sm:$0xff] %v801_v9  ;;  %v843_v30 = vld [vmem:[%s8559_s15 + $0x170] sm:$0xff]  ;;  %v845_v31 = vld [vmem:[%s8559_s15 + $0x178] sm:$0xff]  ;;  %v847_v32 = vld [vmem:[%s8559_s15 + $0x200] sm:$0xff] }
  0x28   : > { %804 = vst [vmem:[%s8564_s16 + $0x50] sm:$0xff] %v803_v10  ;;  %v849_v33 = vld [vmem:[%s8559_s15 + $0x208] sm:$0xff]  ;;  %v851_v34 = vld [vmem:[%s8559_s15 + $0x210] sm:$0xff]  ;;  %v853_v35 = vld [vmem:[%s8559_s15 + $0x218] sm:$0xff] }
  0x29   : > { %806 = vst [vmem:[%s8564_s16 + $0x58] sm:$0xff] %v805_v11  ;;  %v855_v36 = vld [vmem:[%s8559_s15 + $0x220] sm:$0xff]  ;;  %v857_v37 = vld [vmem:[%s8559_s15 + $0x228] sm:$0xff]  ;;  %v859_v38 = vld [vmem:[%s8559_s15 + $0x230] sm:$0xff] }
  0x2a   : > { %808 = vst [vmem:[%s8564_s16 + $0x60] sm:$0xff] %v807_v12  ;;  %v861_v39 = vld [vmem:[%s8559_s15 + $0x238] sm:$0xff]  ;;  %v863_v40 = vld [vmem:[%s8559_s15 + $0x240] sm:$0xff]  ;;  %v865_v41 = vld [vmem:[%s8559_s15 + $0x248] sm:$0xff] }
  0x2b   : > { %810 = vst [vmem:[%s8564_s16 + $0x68] sm:$0xff] %v809_v13  ;;  %v867_v42 = vld [vmem:[%s8559_s15 + $0x250] sm:$0xff]  ;;  %v869_v43 = vld [vmem:[%s8559_s15 + $0x258] sm:$0xff]  ;;  %v871_v44 = vld [vmem:[%s8559_s15 + $0x260] sm:$0xff] }
  0x2c   : > { %812 = vst [vmem:[%s8564_s16 + $0x70] sm:$0xff] %v811_v14  ;;  %v873_v45 = vld [vmem:[%s8559_s15 + $0x268] sm:$0xff]  ;;  %v875_v46 = vld [vmem:[%s8559_s15 + $0x270] sm:$0xff]  ;;  %v877_v47 = vld [vmem:[%s8559_s15 + $0x278] sm:$0xff] }
  0x2d   : > { %814 = vst [vmem:[%s8564_s16 + $0x78] sm:$0xff] %v813_v15  ;;  %v879_v48 = vld [vmem:[%s8559_s15 + $0x300] sm:$0xff]  ;;  %v881_v49 = vld [vmem:[%s8559_s15 + $0x308] sm:$0xff]  ;;  %v883_v50 = vld [vmem:[%s8559_s15 + $0x310] sm:$0xff] }
  0x2e   : > { %816 = vst [vmem:[%s8564_s16 + $0x80] sm:$0xff] %v815_v16  ;;  %v885_v51 = vld [vmem:[%s8559_s15 + $0x318] sm:$0xff]  ;;  %v887_v52 = vld [vmem:[%s8559_s15 + $0x320] sm:$0xff]  ;;  %v889_v53 = vld [vmem:[%s8559_s15 + $0x328] sm:$0xff] }
  0x2f   : > { %818 = vst [vmem:[%s8564_s16 + $0x88] sm:$0xff] %v817_v17  ;;  %v891_v54 = vld [vmem:[%s8559_s15 + $0x330] sm:$0xff]  ;;  %v893_v55 = vld [vmem:[%s8559_s15 + $0x338] sm:$0xff]  ;;  %v895_v56 = vld [vmem:[%s8559_s15 + $0x340] sm:$0xff] }
  0x30   : > { %820 = vst [vmem:[%s8564_s16 + $0x90] sm:$0xff] %v819_v18  ;;  %v897_v57 = vld [vmem:[%s8559_s15 + $0x348] sm:$0xff]  ;;  %v899_v58 = vld [vmem:[%s8559_s15 + $0x350] sm:$0xff]  ;;  %v901_v59 = vld [vmem:[%s8559_s15 + $0x358] sm:$0xff] }
  0x31   : > { %822 = vst [vmem:[%s8564_s16 + $0x98] sm:$0xff] %v821_v19  ;;  %v903_v60 = vld [vmem:[%s8559_s15 + $0x360] sm:$0xff]  ;;  %v905_v61 = vld [vmem:[%s8559_s15 + $0x368] sm:$0xff]  ;;  %v907_v62 = vld [vmem:[%s8559_s15 + $0x370] sm:$0xff] }
  0x32   : > { %824 = vst [vmem:[%s8564_s16 + $0xa0] sm:$0xff] %v823_v20  ;;  %v909_v63 = vld [vmem:[%s8559_s15 + $0x378] sm:$0xff]  ;;  %v911_v0 = vld [vmem:[%s8559_s15 + $0x400] sm:$0xff]  ;;  %v913_v1 = vld [vmem:[%s8559_s15 + $0x408] sm:$0xff] }
  0x33   : > { %826 = vst [vmem:[%s8564_s16 + $0xa8] sm:$0xff] %v825_v21  ;;  %v915_v2 = vld [vmem:[%s8559_s15 + $0x410] sm:$0xff]  ;;  %v917_v3 = vld [vmem:[%s8559_s15 + $0x418] sm:$0xff]  ;;  %v919_v4 = vld [vmem:[%s8559_s15 + $0x420] sm:$0xff] }
  0x34   : > { %828 = vst [vmem:[%s8564_s16 + $0xb0] sm:$0xff] %v827_v22  ;;  %v921_v5 = vld [vmem:[%s8559_s15 + $0x428] sm:$0xff]  ;;  %v923_v6 = vld [vmem:[%s8559_s15 + $0x430] sm:$0xff]  ;;  %v925_v7 = vld [vmem:[%s8559_s15 + $0x438] sm:$0xff] }
  0x35   : > { %830 = vst [vmem:[%s8564_s16 + $0xb8] sm:$0xff] %v829_v23  ;;  %v927_v8 = vld [vmem:[%s8559_s15 + $0x440] sm:$0xff]  ;;  %v929_v9 = vld [vmem:[%s8559_s15 + $0x448] sm:$0xff]  ;;  %v931_v10 = vld [vmem:[%s8559_s15 + $0x450] sm:$0xff] }
  0x36   : > { %832 = vst [vmem:[%s8564_s16 + $0xc0] sm:$0xff] %v831_v24  ;;  %v933_v11 = vld [vmem:[%s8559_s15 + $0x458] sm:$0xff]  ;;  %v935_v12 = vld [vmem:[%s8559_s15 + $0x460] sm:$0xff]  ;;  %v937_v13 = vld [vmem:[%s8559_s15 + $0x468] sm:$0xff] }
  0x37   : > { %834 = vst [vmem:[%s8564_s16 + $0xc8] sm:$0xff] %v833_v25  ;;  %v939_v14 = vld [vmem:[%s8559_s15 + $0x470] sm:$0xff]  ;;  %v941_v15 = vld [vmem:[%s8559_s15 + $0x478] sm:$0xff]  ;;  %v943_v16 = vld [vmem:[%s8559_s15 + $0x500] sm:$0xff] }
  0x38   : > { %836 = vst [vmem:[%s8564_s16 + $0xd0] sm:$0xff] %v835_v26  ;;  %v945_v17 = vld [vmem:[%s8559_s15 + $0x508] sm:$0xff]  ;;  %v947_v18 = vld [vmem:[%s8559_s15 + $0x510] sm:$0xff]  ;;  %v949_v19 = vld [vmem:[%s8559_s15 + $0x518] sm:$0xff] }
  0x39   : > { %838 = vst [vmem:[%s8564_s16 + $0xd8] sm:$0xff] %v837_v27  ;;  %v951_v20 = vld [vmem:[%s8559_s15 + $0x520] sm:$0xff]  ;;  %v953_v21 = vld [vmem:[%s8559_s15 + $0x528] sm:$0xff]  ;;  %v955_v22 = vld [vmem:[%s8559_s15 + $0x530] sm:$0xff] }
  0x3a   : > { %840 = vst [vmem:[%s8564_s16 + $0xe0] sm:$0xff] %v839_v28  ;;  %v957_v23 = vld [vmem:[%s8559_s15 + $0x538] sm:$0xff]  ;;  %v959_v24 = vld [vmem:[%s8559_s15 + $0x540] sm:$0xff]  ;;  %v961_v25 = vld [vmem:[%s8559_s15 + $0x548] sm:$0xff] }
  0x3b   : > { %842 = vst [vmem:[%s8564_s16 + $0xe8] sm:$0xff] %v841_v29  ;;  %v963_v26 = vld [vmem:[%s8559_s15 + $0x550] sm:$0xff]  ;;  %v965_v27 = vld [vmem:[%s8559_s15 + $0x558] sm:$0xff]  ;;  %v967_v28 = vld [vmem:[%s8559_s15 + $0x560] sm:$0xff] }
  0x3c   : > { %844 = vst [vmem:[%s8564_s16 + $0xf0] sm:$0xff] %v843_v30  ;;  %v969_v29 = vld [vmem:[%s8559_s15 + $0x568] sm:$0xff]  ;;  %v971_v30 = vld [vmem:[%s8559_s15 + $0x570] sm:$0xff] }
  0x3d   : > { %846 = vst [vmem:[%s8564_s16 + $0xf8] sm:$0xff] %v845_v31  ;;  %v973_v31 = vld [vmem:[%s8559_s15 + $0x578] sm:$0xff] }
  0x3e   : > { %848 = vst [vmem:[%s8564_s16 + $0x100] sm:$0xff] %v847_v32  ;;  %v975_v32 = vld [vmem:[%s8559_s15 + $0x600] sm:$0xff] }
  0x3f   : > { %850 = vst [vmem:[%s8564_s16 + $0x108] sm:$0xff] %v849_v33  ;;  %v977_v33 = vld [vmem:[%s8559_s15 + $0x608] sm:$0xff] }
  0x40   : > { %852 = vst [vmem:[%s8564_s16 + $0x110] sm:$0xff] %v851_v34  ;;  %v979_v34 = vld [vmem:[%s8559_s15 + $0x610] sm:$0xff] }
  0x41   : > { %854 = vst [vmem:[%s8564_s16 + $0x118] sm:$0xff] %v853_v35  ;;  %v981_v35 = vld [vmem:[%s8559_s15 + $0x618] sm:$0xff] }
  0x42   : > { %856 = vst [vmem:[%s8564_s16 + $0x120] sm:$0xff] %v855_v36  ;;  %v983_v36 = vld [vmem:[%s8559_s15 + $0x620] sm:$0xff] }
  0x43   : > { %858 = vst [vmem:[%s8564_s16 + $0x128] sm:$0xff] %v857_v37  ;;  %v985_v37 = vld [vmem:[%s8559_s15 + $0x628] sm:$0xff] }
  0x44   : > { %860 = vst [vmem:[%s8564_s16 + $0x130] sm:$0xff] %v859_v38  ;;  %v987_v38 = vld [vmem:[%s8559_s15 + $0x630] sm:$0xff] }
  0x45   : > { %862 = vst [vmem:[%s8564_s16 + $0x138] sm:$0xff] %v861_v39  ;;  %v989_v39 = vld [vmem:[%s8559_s15 + $0x638] sm:$0xff] }
  0x46   : > { %864 = vst [vmem:[%s8564_s16 + $0x140] sm:$0xff] %v863_v40  ;;  %v991_v40 = vld [vmem:[%s8559_s15 + $0x640] sm:$0xff] }
  0x47   : > { %866 = vst [vmem:[%s8564_s16 + $0x148] sm:$0xff] %v865_v41  ;;  %v993_v41 = vld [vmem:[%s8559_s15 + $0x648] sm:$0xff] }
  0x48   : > { %868 = vst [vmem:[%s8564_s16 + $0x150] sm:$0xff] %v867_v42  ;;  %v995_v42 = vld [vmem:[%s8559_s15 + $0x650] sm:$0xff] }
  0x49   : > { %870 = vst [vmem:[%s8564_s16 + $0x158] sm:$0xff] %v869_v43  ;;  %v997_v43 = vld [vmem:[%s8559_s15 + $0x658] sm:$0xff] }
  0x4a   : > { %872 = vst [vmem:[%s8564_s16 + $0x160] sm:$0xff] %v871_v44  ;;  %v999_v44 = vld [vmem:[%s8559_s15 + $0x660] sm:$0xff] }
  0x4b   : > { %874 = vst [vmem:[%s8564_s16 + $0x168] sm:$0xff] %v873_v45  ;;  %v1001_v45 = vld [vmem:[%s8559_s15 + $0x668] sm:$0xff] }
  0x4c   : > { %876 = vst [vmem:[%s8564_s16 + $0x170] sm:$0xff] %v875_v46  ;;  %v1003_v46 = vld [vmem:[%s8559_s15 + $0x670] sm:$0xff] }
  0x4d   : > { %878 = vst [vmem:[%s8564_s16 + $0x178] sm:$0xff] %v877_v47  ;;  %v1005_v47 = vld [vmem:[%s8559_s15 + $0x678] sm:$0xff] }
  0x4e   : > { %880 = vst [vmem:[%s8564_s16 + $0x180] sm:$0xff] %v879_v48  ;;  %v1007_v48 = vld [vmem:[%s8559_s15 + $0x700] sm:$0xff] }
  0x4f   : > { %882 = vst [vmem:[%s8564_s16 + $0x188] sm:$0xff] %v881_v49  ;;  %v1009_v49 = vld [vmem:[%s8559_s15 + $0x708] sm:$0xff] }
  0x50   : > { %884 = vst [vmem:[%s8564_s16 + $0x190] sm:$0xff] %v883_v50  ;;  %v1011_v50 = vld [vmem:[%s8559_s15 + $0x710] sm:$0xff] }
  0x51   : > { %886 = vst [vmem:[%s8564_s16 + $0x198] sm:$0xff] %v885_v51  ;;  %v1013_v51 = vld [vmem:[%s8559_s15 + $0x718] sm:$0xff] }
  0x52   : > { %888 = vst [vmem:[%s8564_s16 + $0x1a0] sm:$0xff] %v887_v52  ;;  %v1015_v52 = vld [vmem:[%s8559_s15 + $0x720] sm:$0xff] }
  0x53   : > { %890 = vst [vmem:[%s8564_s16 + $0x1a8] sm:$0xff] %v889_v53  ;;  %v1017_v53 = vld [vmem:[%s8559_s15 + $0x728] sm:$0xff] }
  0x54   : > { %892 = vst [vmem:[%s8564_s16 + $0x1b0] sm:$0xff] %v891_v54  ;;  %v1019_v54 = vld [vmem:[%s8559_s15 + $0x730] sm:$0xff] }
  0x55   : > { %894 = vst [vmem:[%s8564_s16 + $0x1b8] sm:$0xff] %v893_v55  ;;  %v1021_v55 = vld [vmem:[%s8559_s15 + $0x738] sm:$0xff] }
  0x56   : > { %896 = vst [vmem:[%s8564_s16 + $0x1c0] sm:$0xff] %v895_v56  ;;  %v1023_v56 = vld [vmem:[%s8559_s15 + $0x740] sm:$0xff] }
  0x57   : > { %898 = vst [vmem:[%s8564_s16 + $0x1c8] sm:$0xff] %v897_v57  ;;  %v1025_v57 = vld [vmem:[%s8559_s15 + $0x748] sm:$0xff] }
  0x58   : > { %900 = vst [vmem:[%s8564_s16 + $0x1d0] sm:$0xff] %v899_v58  ;;  %v1027_v58 = vld [vmem:[%s8559_s15 + $0x750] sm:$0xff] }
  0x59   : > { %902 = vst [vmem:[%s8564_s16 + $0x1d8] sm:$0xff] %v901_v59  ;;  %v1029_v59 = vld [vmem:[%s8559_s15 + $0x758] sm:$0xff] }
  0x5a   : > { %904 = vst [vmem:[%s8564_s16 + $0x1e0] sm:$0xff] %v903_v60  ;;  %v1031_v60 = vld [vmem:[%s8559_s15 + $0x760] sm:$0xff] }
  0x5b   : > { %906 = vst [vmem:[%s8564_s16 + $0x1e8] sm:$0xff] %v905_v61  ;;  %v1033_v61 = vld [vmem:[%s8559_s15 + $0x768] sm:$0xff] }
  0x5c   : > { %908 = vst [vmem:[%s8564_s16 + $0x1f0] sm:$0xff] %v907_v62  ;;  %v1035_v62 = vld [vmem:[%s8559_s15 + $0x770] sm:$0xff] }
  0x5d   : > { %910 = vst [vmem:[%s8564_s16 + $0x1f8] sm:$0xff] %v909_v63  ;;  %v1037_v63 = vld [vmem:[%s8559_s15 + $0x778] sm:$0xff] }
  0x5e   : > { %912 = vst [vmem:[%s8564_s16 + $0x200] sm:$0xff] %v911_v0  ;;  %v1039_v0 = vld [vmem:[%s8559_s15 + $0x800] sm:$0xff] }
  0x5f   : > { %914 = vst [vmem:[%s8564_s16 + $0x208] sm:$0xff] %v913_v1  ;;  %v1041_v1 = vld [vmem:[%s8559_s15 + $0x808] sm:$0xff] }
  0x60   : > { %916 = vst [vmem:[%s8564_s16 + $0x210] sm:$0xff] %v915_v2  ;;  %v1043_v2 = vld [vmem:[%s8559_s15 + $0x810] sm:$0xff] }
  0x61   : > { %918 = vst [vmem:[%s8564_s16 + $0x218] sm:$0xff] %v917_v3  ;;  %v1045_v3 = vld [vmem:[%s8559_s15 + $0x818] sm:$0xff] }
  0x62   : > { %920 = vst [vmem:[%s8564_s16 + $0x220] sm:$0xff] %v919_v4  ;;  %v1047_v4 = vld [vmem:[%s8559_s15 + $0x820] sm:$0xff] }
  0x63   : > { %922 = vst [vmem:[%s8564_s16 + $0x228] sm:$0xff] %v921_v5  ;;  %v1049_v5 = vld [vmem:[%s8559_s15 + $0x828] sm:$0xff] }
  0x64   : > { %924 = vst [vmem:[%s8564_s16 + $0x230] sm:$0xff] %v923_v6  ;;  %v1051_v6 = vld [vmem:[%s8559_s15 + $0x830] sm:$0xff] }
  0x65   : > { %926 = vst [vmem:[%s8564_s16 + $0x238] sm:$0xff] %v925_v7  ;;  %v1053_v7 = vld [vmem:[%s8559_s15 + $0x838] sm:$0xff] }
  0x66   : > { %928 = vst [vmem:[%s8564_s16 + $0x240] sm:$0xff] %v927_v8  ;;  %v1055_v8 = vld [vmem:[%s8559_s15 + $0x840] sm:$0xff] }
  0x67   : > { %930 = vst [vmem:[%s8564_s16 + $0x248] sm:$0xff] %v929_v9  ;;  %v1057_v9 = vld [vmem:[%s8559_s15 + $0x848] sm:$0xff] }
  0x68   : > { %932 = vst [vmem:[%s8564_s16 + $0x250] sm:$0xff] %v931_v10  ;;  %v1059_v10 = vld [vmem:[%s8559_s15 + $0x850] sm:$0xff] }
  0x69   : > { %934 = vst [vmem:[%s8564_s16 + $0x258] sm:$0xff] %v933_v11  ;;  %v1061_v11 = vld [vmem:[%s8559_s15 + $0x858] sm:$0xff] }
  0x6a   : > { %936 = vst [vmem:[%s8564_s16 + $0x260] sm:$0xff] %v935_v12  ;;  %v1063_v12 = vld [vmem:[%s8559_s15 + $0x860] sm:$0xff] }
  0x6b   : > { %938 = vst [vmem:[%s8564_s16 + $0x268] sm:$0xff] %v937_v13  ;;  %v1065_v13 = vld [vmem:[%s8559_s15 + $0x868] sm:$0xff] }
  0x6c   : > { %940 = vst [vmem:[%s8564_s16 + $0x270] sm:$0xff] %v939_v14  ;;  %v1067_v14 = vld [vmem:[%s8559_s15 + $0x870] sm:$0xff] }
  0x6d   : > { %942 = vst [vmem:[%s8564_s16 + $0x278] sm:$0xff] %v941_v15  ;;  %v1069_v15 = vld [vmem:[%s8559_s15 + $0x878] sm:$0xff] }
  0x6e   : > { %944 = vst [vmem:[%s8564_s16 + $0x280] sm:$0xff] %v943_v16  ;;  %v1071_v16 = vld [vmem:[%s8559_s15 + $0x900] sm:$0xff] }
  0x6f   : > { %946 = vst [vmem:[%s8564_s16 + $0x288] sm:$0xff] %v945_v17  ;;  %v1073_v17 = vld [vmem:[%s8559_s15 + $0x908] sm:$0xff] }
  0x70   : > { %948 = vst [vmem:[%s8564_s16 + $0x290] sm:$0xff] %v947_v18  ;;  %v1075_v18 = vld [vmem:[%s8559_s15 + $0x910] sm:$0xff] }
  0x71   : > { %950 = vst [vmem:[%s8564_s16 + $0x298] sm:$0xff] %v949_v19  ;;  %v1077_v19 = vld [vmem:[%s8559_s15 + $0x918] sm:$0xff] }
  0x72   : > { %952 = vst [vmem:[%s8564_s16 + $0x2a0] sm:$0xff] %v951_v20  ;;  %v1079_v20 = vld [vmem:[%s8559_s15 + $0x920] sm:$0xff] }
  0x73   : > { %954 = vst [vmem:[%s8564_s16 + $0x2a8] sm:$0xff] %v953_v21  ;;  %v1081_v21 = vld [vmem:[%s8559_s15 + $0x928] sm:$0xff] }
  0x74   : > { %956 = vst [vmem:[%s8564_s16 + $0x2b0] sm:$0xff] %v955_v22  ;;  %v1083_v22 = vld [vmem:[%s8559_s15 + $0x930] sm:$0xff] }
  0x75   : > { %958 = vst [vmem:[%s8564_s16 + $0x2b8] sm:$0xff] %v957_v23  ;;  %v1085_v23 = vld [vmem:[%s8559_s15 + $0x938] sm:$0xff] }
  0x76   : > { %960 = vst [vmem:[%s8564_s16 + $0x2c0] sm:$0xff] %v959_v24  ;;  %v1087_v24 = vld [vmem:[%s8559_s15 + $0x940] sm:$0xff] }
  0x77   : > { %962 = vst [vmem:[%s8564_s16 + $0x2c8] sm:$0xff] %v961_v25  ;;  %v1089_v25 = vld [vmem:[%s8559_s15 + $0x948] sm:$0xff] }
  0x78   : > { %964 = vst [vmem:[%s8564_s16 + $0x2d0] sm:$0xff] %v963_v26  ;;  %v1091_v26 = vld [vmem:[%s8559_s15 + $0x950] sm:$0xff] }
  0x79   : > { %966 = vst [vmem:[%s8564_s16 + $0x2d8] sm:$0xff] %v965_v27  ;;  %v1093_v27 = vld [vmem:[%s8559_s15 + $0x958] sm:$0xff] }
  0x7a   : > { %968 = vst [vmem:[%s8564_s16 + $0x2e0] sm:$0xff] %v967_v28  ;;  %v1095_v28 = vld [vmem:[%s8559_s15 + $0x960] sm:$0xff] }
  0x7b   : > { %970 = vst [vmem:[%s8564_s16 + $0x2e8] sm:$0xff] %v969_v29  ;;  %v1097_v29 = vld [vmem:[%s8559_s15 + $0x968] sm:$0xff] }
  0x7c   : > { %972 = vst [vmem:[%s8564_s16 + $0x2f0] sm:$0xff] %v971_v30  ;;  %v1099_v30 = vld [vmem:[%s8559_s15 + $0x970] sm:$0xff] }
  0x7d   : > { %974 = vst [vmem:[%s8564_s16 + $0x2f8] sm:$0xff] %v973_v31  ;;  %v1101_v31 = vld [vmem:[%s8559_s15 + $0x978] sm:$0xff] }
  0x7e   : > { %976 = vst [vmem:[%s8564_s16 + $0x300] sm:$0xff] %v975_v32  ;;  %v1103_v32 = vld [vmem:[%s8559_s15 + $0xa00] sm:$0xff] }
  0x7f   : > { %978 = vst [vmem:[%s8564_s16 + $0x308] sm:$0xff] %v977_v33  ;;  %v1105_v33 = vld [vmem:[%s8559_s15 + $0xa08] sm:$0xff] }
  0x80   : > { %980 = vst [vmem:[%s8564_s16 + $0x310] sm:$0xff] %v979_v34  ;;  %v1107_v34 = vld [vmem:[%s8559_s15 + $0xa10] sm:$0xff] }
  0x81   : > { %982 = vst [vmem:[%s8564_s16 + $0x318] sm:$0xff] %v981_v35  ;;  %v1109_v35 = vld [vmem:[%s8559_s15 + $0xa18] sm:$0xff] }
  0x82   : > { %984 = vst [vmem:[%s8564_s16 + $0x320] sm:$0xff] %v983_v36  ;;  %v1111_v36 = vld [vmem:[%s8559_s15 + $0xa20] sm:$0xff] }
  0x83   : > { %986 = vst [vmem:[%s8564_s16 + $0x328] sm:$0xff] %v985_v37  ;;  %v1113_v37 = vld [vmem:[%s8559_s15 + $0xa28] sm:$0xff] }
  0x84   : > { %988 = vst [vmem:[%s8564_s16 + $0x330] sm:$0xff] %v987_v38  ;;  %v1115_v38 = vld [vmem:[%s8559_s15 + $0xa30] sm:$0xff] }
  0x85   : > { %990 = vst [vmem:[%s8564_s16 + $0x338] sm:$0xff] %v989_v39  ;;  %v1117_v39 = vld [vmem:[%s8559_s15 + $0xa38] sm:$0xff] }
  0x86   : > { %992 = vst [vmem:[%s8564_s16 + $0x340] sm:$0xff] %v991_v40  ;;  %v1119_v40 = vld [vmem:[%s8559_s15 + $0xa40] sm:$0xff] }
  0x87   : > { %994 = vst [vmem:[%s8564_s16 + $0x348] sm:$0xff] %v993_v41  ;;  %v1121_v41 = vld [vmem:[%s8559_s15 + $0xa48] sm:$0xff] }
  0x88   : > { %996 = vst [vmem:[%s8564_s16 + $0x350] sm:$0xff] %v995_v42  ;;  %v1123_v42 = vld [vmem:[%s8559_s15 + $0xa50] sm:$0xff] }
  0x89   : > { %998 = vst [vmem:[%s8564_s16 + $0x358] sm:$0xff] %v997_v43  ;;  %v1125_v43 = vld [vmem:[%s8559_s15 + $0xa58] sm:$0xff] }
  0x8a   : > { %1000 = vst [vmem:[%s8564_s16 + $0x360] sm:$0xff] %v999_v44  ;;  %v1127_v44 = vld [vmem:[%s8559_s15 + $0xa60] sm:$0xff] }
  0x8b   : > { %1002 = vst [vmem:[%s8564_s16 + $0x368] sm:$0xff] %v1001_v45  ;;  %v1129_v45 = vld [vmem:[%s8559_s15 + $0xa68] sm:$0xff] }
  0x8c   : > { %1004 = vst [vmem:[%s8564_s16 + $0x370] sm:$0xff] %v1003_v46  ;;  %v1131_v46 = vld [vmem:[%s8559_s15 + $0xa70] sm:$0xff] }
  0x8d   : > { %1006 = vst [vmem:[%s8564_s16 + $0x378] sm:$0xff] %v1005_v47  ;;  %v1133_v47 = vld [vmem:[%s8559_s15 + $0xa78] sm:$0xff] }
  0x8e   : > { %1008 = vst [vmem:[%s8564_s16 + $0x380] sm:$0xff] %v1007_v48  ;;  %v1135_v48 = vld [vmem:[%s8559_s15 + $0xb00] sm:$0xff] }
  0x8f   : > { %1010 = vst [vmem:[%s8564_s16 + $0x388] sm:$0xff] %v1009_v49  ;;  %v1137_v49 = vld [vmem:[%s8559_s15 + $0xb08] sm:$0xff] }
  0x90   : > { %1012 = vst [vmem:[%s8564_s16 + $0x390] sm:$0xff] %v1011_v50  ;;  %v1139_v50 = vld [vmem:[%s8559_s15 + $0xb10] sm:$0xff] }
  0x91   : > { %1014 = vst [vmem:[%s8564_s16 + $0x398] sm:$0xff] %v1013_v51  ;;  %v1141_v51 = vld [vmem:[%s8559_s15 + $0xb18] sm:$0xff] }
  0x92   : > { %1016 = vst [vmem:[%s8564_s16 + $0x3a0] sm:$0xff] %v1015_v52  ;;  %v1143_v52 = vld [vmem:[%s8559_s15 + $0xb20] sm:$0xff] }
  0x93   : > { %1018 = vst [vmem:[%s8564_s16 + $0x3a8] sm:$0xff] %v1017_v53  ;;  %v1145_v53 = vld [vmem:[%s8559_s15 + $0xb28] sm:$0xff] }
  0x94   : > { %1020 = vst [vmem:[%s8564_s16 + $0x3b0] sm:$0xff] %v1019_v54  ;;  %v1147_v54 = vld [vmem:[%s8559_s15 + $0xb30] sm:$0xff] }
  0x95   : > { %1022 = vst [vmem:[%s8564_s16 + $0x3b8] sm:$0xff] %v1021_v55  ;;  %v1149_v55 = vld [vmem:[%s8559_s15 + $0xb38] sm:$0xff] }
  0x96   : > { %1024 = vst [vmem:[%s8564_s16 + $0x3c0] sm:$0xff] %v1023_v56  ;;  %v1151_v56 = vld [vmem:[%s8559_s15 + $0xb40] sm:$0xff] }
  0x97   : > { %1026 = vst [vmem:[%s8564_s16 + $0x3c8] sm:$0xff] %v1025_v57  ;;  %v1153_v57 = vld [vmem:[%s8559_s15 + $0xb48] sm:$0xff] }
  0x98   : > { %1028 = vst [vmem:[%s8564_s16 + $0x3d0] sm:$0xff] %v1027_v58  ;;  %v1155_v58 = vld [vmem:[%s8559_s15 + $0xb50] sm:$0xff] }
  0x99   : > { %1030 = vst [vmem:[%s8564_s16 + $0x3d8] sm:$0xff] %v1029_v59  ;;  %v1157_v59 = vld [vmem:[%s8559_s15 + $0xb58] sm:$0xff] }
  0x9a   : > { %1032 = vst [vmem:[%s8564_s16 + $0x3e0] sm:$0xff] %v1031_v60  ;;  %v1159_v60 = vld [vmem:[%s8559_s15 + $0xb60] sm:$0xff] }
  0x9b   : > { %1034 = vst [vmem:[%s8564_s16 + $0x3e8] sm:$0xff] %v1033_v61  ;;  %v1161_v61 = vld [vmem:[%s8559_s15 + $0xb68] sm:$0xff] }
  0x9c   : > { %1036 = vst [vmem:[%s8564_s16 + $0x3f0] sm:$0xff] %v1035_v62  ;;  %v1163_v62 = vld [vmem:[%s8559_s15 + $0xb70] sm:$0xff] }
  0x9d   : > { %1038 = vst [vmem:[%s8564_s16 + $0x3f8] sm:$0xff] %v1037_v63  ;;  %v1165_v63 = vld [vmem:[%s8559_s15 + $0xb78] sm:$0xff] }
  0x9e   : > { %1040 = vst [vmem:[%s8564_s16 + $0x400] sm:$0xff] %v1039_v0  ;;  %v1167_v0 = vld [vmem:[%s8559_s15 + $0xc00] sm:$0xff] }
  0x9f   : > { %1042 = vst [vmem:[%s8564_s16 + $0x408] sm:$0xff] %v1041_v1  ;;  %v1169_v1 = vld [vmem:[%s8559_s15 + $0xc08] sm:$0xff] }
  0xa0   : > { %1044 = vst [vmem:[%s8564_s16 + $0x410] sm:$0xff] %v1043_v2  ;;  %v1171_v2 = vld [vmem:[%s8559_s15 + $0xc10] sm:$0xff] }
  0xa1   : > { %1046 = vst [vmem:[%s8564_s16 + $0x418] sm:$0xff] %v1045_v3  ;;  %v1173_v3 = vld [vmem:[%s8559_s15 + $0xc18] sm:$0xff] }
  0xa2   : > { %1048 = vst [vmem:[%s8564_s16 + $0x420] sm:$0xff] %v1047_v4  ;;  %v1175_v4 = vld [vmem:[%s8559_s15 + $0xc20] sm:$0xff] }
  0xa3   : > { %1050 = vst [vmem:[%s8564_s16 + $0x428] sm:$0xff] %v1049_v5  ;;  %v1177_v5 = vld [vmem:[%s8559_s15 + $0xc28] sm:$0xff] }
  0xa4   : > { %1052 = vst [vmem:[%s8564_s16 + $0x430] sm:$0xff] %v1051_v6  ;;  %v1179_v6 = vld [vmem:[%s8559_s15 + $0xc30] sm:$0xff] }
  0xa5   : > { %1054 = vst [vmem:[%s8564_s16 + $0x438] sm:$0xff] %v1053_v7  ;;  %v1181_v7 = vld [vmem:[%s8559_s15 + $0xc38] sm:$0xff] }
  0xa6   : > { %1056 = vst [vmem:[%s8564_s16 + $0x440] sm:$0xff] %v1055_v8  ;;  %v1183_v8 = vld [vmem:[%s8559_s15 + $0xc40] sm:$0xff] }
  0xa7   : > { %1058 = vst [vmem:[%s8564_s16 + $0x448] sm:$0xff] %v1057_v9  ;;  %v1185_v9 = vld [vmem:[%s8559_s15 + $0xc48] sm:$0xff] }
  0xa8   : > { %1060 = vst [vmem:[%s8564_s16 + $0x450] sm:$0xff] %v1059_v10  ;;  %v1187_v10 = vld [vmem:[%s8559_s15 + $0xc50] sm:$0xff] }
  0xa9   : > { %1062 = vst [vmem:[%s8564_s16 + $0x458] sm:$0xff] %v1061_v11  ;;  %v1189_v11 = vld [vmem:[%s8559_s15 + $0xc58] sm:$0xff] }
  0xaa   : > { %1064 = vst [vmem:[%s8564_s16 + $0x460] sm:$0xff] %v1063_v12  ;;  %v1191_v12 = vld [vmem:[%s8559_s15 + $0xc60] sm:$0xff] }
  0xab   : > { %1066 = vst [vmem:[%s8564_s16 + $0x468] sm:$0xff] %v1065_v13  ;;  %v1193_v13 = vld [vmem:[%s8559_s15 + $0xc68] sm:$0xff] }
  0xac   : > { %1068 = vst [vmem:[%s8564_s16 + $0x470] sm:$0xff] %v1067_v14  ;;  %v1195_v14 = vld [vmem:[%s8559_s15 + $0xc70] sm:$0xff] }
  0xad   : > { %1070 = vst [vmem:[%s8564_s16 + $0x478] sm:$0xff] %v1069_v15  ;;  %v1197_v15 = vld [vmem:[%s8559_s15 + $0xc78] sm:$0xff] }
  0xae   : > { %1072 = vst [vmem:[%s8564_s16 + $0x480] sm:$0xff] %v1071_v16 }
  0xaf   : > { %1074 = vst [vmem:[%s8564_s16 + $0x488] sm:$0xff] %v1073_v17 }
  0xb0   : > { %1076 = vst [vmem:[%s8564_s16 + $0x490] sm:$0xff] %v1075_v18 }
  0xb1   : > { %1078 = vst [vmem:[%s8564_s16 + $0x498] sm:$0xff] %v1077_v19 }
  0xb2   : > { %1080 = vst [vmem:[%s8564_s16 + $0x4a0] sm:$0xff] %v1079_v20 }
  0xb3   : > { %1082 = vst [vmem:[%s8564_s16 + $0x4a8] sm:$0xff] %v1081_v21 }
  0xb4   : > { %1084 = vst [vmem:[%s8564_s16 + $0x4b0] sm:$0xff] %v1083_v22 }
  0xb5   : > { %1086 = vst [vmem:[%s8564_s16 + $0x4b8] sm:$0xff] %v1085_v23 }
  0xb6   : > { %1088 = vst [vmem:[%s8564_s16 + $0x4c0] sm:$0xff] %v1087_v24 }
  0xb7   : > { %1090 = vst [vmem:[%s8564_s16 + $0x4c8] sm:$0xff] %v1089_v25 }
  0xb8   : > { %1092 = vst [vmem:[%s8564_s16 + $0x4d0] sm:$0xff] %v1091_v26 }
  0xb9   : > { %1094 = vst [vmem:[%s8564_s16 + $0x4d8] sm:$0xff] %v1093_v27 }
  0xba   : > { %1096 = vst [vmem:[%s8564_s16 + $0x4e0] sm:$0xff] %v1095_v28 }
  0xbb   : > { %1098 = vst [vmem:[%s8564_s16 + $0x4e8] sm:$0xff] %v1097_v29 }
  0xbc   : > { %1100 = vst [vmem:[%s8564_s16 + $0x4f0] sm:$0xff] %v1099_v30 }
  0xbd   : > { %1102 = vst [vmem:[%s8564_s16 + $0x4f8] sm:$0xff] %v1101_v31 }
  0xbe   : > { %1104 = vst [vmem:[%s8564_s16 + $0x500] sm:$0xff] %v1103_v32 }
  0xbf   : > { %1106 = vst [vmem:[%s8564_s16 + $0x508] sm:$0xff] %v1105_v33 }
  0xc0   : > { %1108 = vst [vmem:[%s8564_s16 + $0x510] sm:$0xff] %v1107_v34 }
  0xc1   : > { %1110 = vst [vmem:[%s8564_s16 + $0x518] sm:$0xff] %v1109_v35 }
  0xc2   : > { %1112 = vst [vmem:[%s8564_s16 + $0x520] sm:$0xff] %v1111_v36 }
  0xc3   : > { %1114 = vst [vmem:[%s8564_s16 + $0x528] sm:$0xff] %v1113_v37 }
  0xc4   : > { %1116 = vst [vmem:[%s8564_s16 + $0x530] sm:$0xff] %v1115_v38 }
  0xc5   : > { %1118 = vst [vmem:[%s8564_s16 + $0x538] sm:$0xff] %v1117_v39 }
  0xc6   : > { %1120 = vst [vmem:[%s8564_s16 + $0x540] sm:$0xff] %v1119_v40 }
  0xc7   : > { %1122 = vst [vmem:[%s8564_s16 + $0x548] sm:$0xff] %v1121_v41 }
  0xc8   : > { %1124 = vst [vmem:[%s8564_s16 + $0x550] sm:$0xff] %v1123_v42 }
  0xc9   : > { %1126 = vst [vmem:[%s8564_s16 + $0x558] sm:$0xff] %v1125_v43 }
  0xca   : > { %1128 = vst [vmem:[%s8564_s16 + $0x560] sm:$0xff] %v1127_v44 }
  0xcb   : > { %1130 = vst [vmem:[%s8564_s16 + $0x568] sm:$0xff] %v1129_v45 }
  0xcc   : > { %1132 = vst [vmem:[%s8564_s16 + $0x570] sm:$0xff] %v1131_v46 }
  0xcd   : > { %1134 = vst [vmem:[%s8564_s16 + $0x578] sm:$0xff] %v1133_v47 }
  0xce   : > { %1136 = vst [vmem:[%s8564_s16 + $0x580] sm:$0xff] %v1135_v48 }
  0xcf   : > { %1138 = vst [vmem:[%s8564_s16 + $0x588] sm:$0xff] %v1137_v49 }
  0xd0   : > { %1140 = vst [vmem:[%s8564_s16 + $0x590] sm:$0xff] %v1139_v50 }
  0xd1   : > { %1142 = vst [vmem:[%s8564_s16 + $0x598] sm:$0xff] %v1141_v51 }
  0xd2   : > { %1144 = vst [vmem:[%s8564_s16 + $0x5a0] sm:$0xff] %v1143_v52 }
  0xd3   : > { %1146 = vst [vmem:[%s8564_s16 + $0x5a8] sm:$0xff] %v1145_v53 }
  0xd4   : > { %1148 = vst [vmem:[%s8564_s16 + $0x5b0] sm:$0xff] %v1147_v54 }
  0xd5   : > { %1150 = vst [vmem:[%s8564_s16 + $0x5b8] sm:$0xff] %v1149_v55 }
  0xd6   : > { %1152 = vst [vmem:[%s8564_s16 + $0x5c0] sm:$0xff] %v1151_v56 }
  0xd7   : > { %1154 = vst [vmem:[%s8564_s16 + $0x5c8] sm:$0xff] %v1153_v57 }
  0xd8   : > { %1156 = vst [vmem:[%s8564_s16 + $0x5d0] sm:$0xff] %v1155_v58 }
  0xd9   : > { %1158 = vst [vmem:[%s8564_s16 + $0x5d8] sm:$0xff] %v1157_v59 }
  0xda   : > { %1160 = vst [vmem:[%s8564_s16 + $0x5e0] sm:$0xff] %v1159_v60 }
  0xdb   : > { %1162 = vst [vmem:[%s8564_s16 + $0x5e8] sm:$0xff] %v1161_v61 }
  0xdc   : > { %1164 = vst [vmem:[%s8564_s16 + $0x5f0] sm:$0xff] %v1163_v62 }
  0xdd   : > { %1166 = vst [vmem:[%s8564_s16 + $0x5f8] sm:$0xff] %v1165_v63 }
  0xde   : > { %1168 = vst [vmem:[%s8564_s16 + $0x600] sm:$0xff] %v1167_v0 }
  0xdf   : > { %1170 = vst [vmem:[%s8564_s16 + $0x608] sm:$0xff] %v1169_v1 }
  0xe0   : > { %1172 = vst [vmem:[%s8564_s16 + $0x610] sm:$0xff] %v1171_v2 }
  0xe1   : > { %1174 = vst [vmem:[%s8564_s16 + $0x618] sm:$0xff] %v1173_v3 }
  0xe2   : > { %1176 = vst [vmem:[%s8564_s16 + $0x620] sm:$0xff] %v1175_v4 }
  0xe3   : > { %1178 = vst [vmem:[%s8564_s16 + $0x628] sm:$0xff] %v1177_v5 }
  0xe4   : > { %1180 = vst [vmem:[%s8564_s16 + $0x630] sm:$0xff] %v1179_v6 }
  0xe5   : > { %1182 = vst [vmem:[%s8564_s16 + $0x638] sm:$0xff] %v1181_v7 }
  0xe6   : > { %1184 = vst [vmem:[%s8564_s16 + $0x640] sm:$0xff] %v1183_v8 }
  0xe7   : > { %1186 = vst [vmem:[%s8564_s16 + $0x648] sm:$0xff] %v1185_v9 }
  0xe8   : > { %1188 = vst [vmem:[%s8564_s16 + $0x650] sm:$0xff] %v1187_v10 }
  0xe9   : > { %1190 = vst [vmem:[%s8564_s16 + $0x658] sm:$0xff] %v1189_v11 }
  0xea   : > { %1192 = vst [vmem:[%s8564_s16 + $0x660] sm:$0xff] %v1191_v12 }
  0xeb   : > { %1194 = vst [vmem:[%s8564_s16 + $0x668] sm:$0xff] %v1193_v13 }
  0xec   : > { %1196 = vst [vmem:[%s8564_s16 + $0x670] sm:$0xff] %v1195_v14 }
  0xed   : > { %1198 = vst [vmem:[%s8564_s16 + $0x678] sm:$0xff] %v1197_v15 }
  0xee PF: > { %p7637_p10 = scmp.ge.s32.totalorder %s8443_s20, 1  ;;  %p1203_p11 = scmp.lt.s32.totalorder %s8443_s20, 3 }
  0xf0   : > { %p1204_p12 = pnand %p7637_p10, %p1203_p11 }
  0xf2   : > { %1207 = sbr.rel (%p1204_p12) target bundleno = 4587 (0x11eb), region = 98 }
  0xf7   : > { %s14158_s1 = sld [smem:[#allocation342_spill]]  ;;  %s9000_s25 = sand.u32 1, %s8435_s18   ;;  %vm1473_vm0 = vcmask 523264   ;;  %v4038_v41 = vld [vmem:[%s13757_s3 + $0xf0] sm:$0xff]  ;;  %v4036_v42 = vld [vmem:[%s13757_s3 + $0xe0] sm:$0xff]  ;;  %vm7246_vm1 = vcmask 982016  }
  0xf8   : > { %s8330_s24 = smul.u32 1664, %s9000_s25  ;;  %4040 = vmatpush.msra.mxu2 %v4038_v41  ;;  %8282 = vmatpush.msra.mxu3 %v4038_v41  ;;  %v4034_v44 = vld [vmem:[%s13757_s3 + $0xd0] sm:$0xff]  ;;  %v4032_v45 = vld [vmem:[%s13757_s3 + $0xc0] sm:$0xff]  ;;  %vm7440_vm2 = vcmask 1043456   ;;  %vm7391_vm3 = vcmask 687104   ;;  %s15271_s22 = sadd.s32 4294967295, %s8443_s20  }
  0xf9   : > { %v4030_v46 = vld [vmem:[%s13757_s3 + $0xb0] sm:$0xff]  ;;  %v4028_v47 = vld [vmem:[%s13757_s3 + $0xa0] sm:$0xff]  ;;  %s1247_s0 = scalar_lea.vmem [#allocation3], %s9000_s25  ;;  %s7559_s13 = scalar_lea.sflag [#allocation4], %s9000_s25 }
  0xfa   : > { %s9033_s21 = scalar_lea.vmem [#allocation2], %s8330_s24  ;;  %4041 = vmatpush.msra.mxu2 %v4036_v42  ;;  %8283 = vmatpush.msra.mxu3 %v4036_v42  ;;  %v4026_v49 = vld [vmem:[%s13757_s3 + $0x90] sm:$0xff]  ;;  %v4024_v50 = vld [vmem:[%s13757_s3 + $0x80] sm:$0xff]  ;;  %s7569_s24 = sshll.u32 %s1247_s0, 4  ;;  %s7570_s24 = int_to_ptr.vmem [resolvable:$true] %s7569_s24 }
  0xfb   : > { %v1249_v32 = vld [vmem:[%s9033_s21] sm:$0xff]  ;;  %v1250_v33 = vld [vmem:[%s9033_s21 + $0x8] sm:$0xff]  ;;  %v1251_v34 = vld [vmem:[%s9033_s21 + $0x10] sm:$0xff]  ;;  %s8401_s29 = scalar_lea.hbm %s13765_s11, 2 }
  0xfc   : > { %v1252_v35 = vld [vmem:[%s9033_s21 + $0x18] sm:$0xff]  ;;  %v1253_v36 = vld [vmem:[%s9033_s21 + $0x20] sm:$0xff]  ;;  %v1254_v37 = vld [vmem:[%s9033_s21 + $0x28] sm:$0xff]  ;;  %4042 = vmatpush.msra.mxu2 %v4034_v44  ;;  %8284 = vmatpush.msra.mxu3 %v4034_v44 }
  0xfd   : > { %v1471_v16 = vld [vmem:[%s14158_s1 + $0x70] sm:$0xff]  ;;  %v1472_v17 = vld [vmem:[%s14158_s1 + $0x78] sm:$0xff]  ;;  %v1469_v18 = vld [vmem:[%s14158_s1 + $0x60] sm:$0xff] }
  0xfe   : > { %2106 = vmatpush.msra.mxu0 %v1471_v16  ;;  %2747 = vmatpush.msra.mxu1 %v1472_v17  ;;  %v1470_v19 = vld [vmem:[%s14158_s1 + $0x68] sm:$0xff]  ;;  %v1467_v20 = vld [vmem:[%s14158_s1 + $0x50] sm:$0xff]  ;;  %v1468_v21 = vld [vmem:[%s14158_s1 + $0x58] sm:$0xff] }
  0xff   : > { %v1465_v22 = vld [vmem:[%s14158_s1 + $0x40] sm:$0xff]  ;;  %v1466_v23 = vld [vmem:[%s14158_s1 + $0x48] sm:$0xff]  ;;  %v1463_v24 = vld [vmem:[%s14158_s1 + $0x30] sm:$0xff]  ;;  %4043 = vmatpush.msra.mxu2 %v4032_v45  ;;  %8285 = vmatpush.msra.mxu3 %v4032_v45 }
 0x100   : > { %2107 = vmatpush.msra.mxu0 %v1469_v18  ;;  %2748 = vmatpush.msra.mxu1 %v1470_v19  ;;  %v1464_v25 = vld [vmem:[%s14158_s1 + $0x38] sm:$0xff]  ;;  %v1461_v26 = vld [vmem:[%s14158_s1 + $0x20] sm:$0xff]  ;;  %v1462_v27 = vld [vmem:[%s14158_s1 + $0x28] sm:$0xff] }
 0x101   : > { %v1459_v28 = vld [vmem:[%s14158_s1 + $0x10] sm:$0xff]  ;;  %v1460_v29 = vld [vmem:[%s14158_s1 + $0x18] sm:$0xff]  ;;  %v1457_v30 = vld [vmem:[%s14158_s1] sm:$0xff]  ;;  %4044 = vmatpush.msra.mxu2 %v4030_v46  ;;  %8286 = vmatpush.msra.mxu3 %v4030_v46 }
 0x102   : > { %2108 = vmatpush.msra.mxu0 %v1467_v20  ;;  %2749 = vmatpush.msra.mxu1 %v1468_v21  ;;  %v1458_v31 = vld [vmem:[%s14158_s1 + $0x8] sm:$0xff]  ;;  %v1255_v38 = vld [vmem:[%s9033_s21 + $0x30] sm:$0xff]  ;;  %v1256_v39 = vld [vmem:[%s9033_s21 + $0x38] sm:$0xff] }
 0x103   : > { %v1257_v40 = vld [vmem:[%s9033_s21 + $0x40] sm:$0xff]  ;;  %v1258_v43 = vld [vmem:[%s9033_s21 + $0x48] sm:$0xff]  ;;  %v1259_v48 = vld [vmem:[%s9033_s21 + $0x50] sm:$0xff]  ;;  %4045 = vmatpush.msra.mxu2 %v4028_v47  ;;  %8287 = vmatpush.msra.mxu3 %v4028_v47 }
 0x104   : > { %2109 = vmatpush.msra.mxu0 %v1465_v22  ;;  %2750 = vmatpush.msra.mxu1 %v1466_v23  ;;  %v4022_v51 = vld [vmem:[%s13757_s3 + $0x70] sm:$0xff]  ;;  %v4020_v52 = vld [vmem:[%s13757_s3 + $0x60] sm:$0xff]  ;;  %v1260_v53 = vld [vmem:[%s9033_s21 + $0x58] sm:$0xff] }
 0x105   : > { %4046 = vmatpush.msra.mxu2 %v4026_v49  ;;  %8288 = vmatpush.msra.mxu3 %v4026_v49  ;;  %v4018_v54 = vld [vmem:[%s13757_s3 + $0x50] sm:$0xff]  ;;  %v4016_v55 = vld [vmem:[%s13757_s3 + $0x40] sm:$0xff]  ;;  %v1262_v61 = vld [vmem:[%s9033_s21 + $0x68] sm:$0xff] }
 0x106   : > { %2110 = vmatpush.msra.mxu0 %v1463_v24  ;;  %2751 = vmatpush.msra.mxu1 %v1464_v25  ;;  %v4014_v56 = vld [vmem:[%s13757_s3 + $0x30] sm:$0xff]  ;;  %v1261_v57 = vld [vmem:[%s9033_s21 + $0x60] sm:$0xff]  ;;  %v1264_v63 = vld [vmem:[%s9033_s21 + $0x78] sm:$0xff] }
 0x107   : > { %4047 = vmatpush.msra.mxu2 %v4024_v50  ;;  %8289 = vmatpush.msra.mxu3 %v4024_v50  ;;  %v4012_v58 = vld [vmem:[%s13757_s3 + $0x20] sm:$0xff]  ;;  %v4010_v59 = vld [vmem:[%s13757_s3 + $0x10] sm:$0xff]  ;;  %v1266_v9 = vld [vmem:[%s9033_s21 + $0x88] sm:$0xff] }
 0x108   : > { %2111 = vmatpush.msra.mxu0 %v1461_v26  ;;  %2752 = vmatpush.msra.mxu1 %v1462_v27  ;;  %v4008_v60 = vld [vmem:[%s13757_s3] sm:$0xff]  ;;  %v1263_v62 = vld [vmem:[%s9033_s21 + $0x70] sm:$0xff]  ;;  %v1268_v21 = vld [vmem:[%s9033_s21 + $0x98] sm:$0xff] }
 0x109   : > { %4048 = vmatpush.msra.mxu2 %v4022_v51  ;;  %8290 = vmatpush.msra.mxu3 %v4022_v51  ;;  %v9134_v0 = vld [vmem:[%s13756_s2] ss:$0 sm:$0xff]  ;;  %v1267_v15 = vld [vmem:[%s9033_s21 + $0x90] sm:$0xff]  ;;  %v1272_v45 = vld [vmem:[%s9033_s21 + $0xb8] sm:$0xff] }
 0x10a   : > { %2112 = vmatpush.msra.mxu0 %v1459_v28  ;;  %2753 = vmatpush.msra.mxu1 %v1460_v29  ;;  %v1265_v3 = vld [vmem:[%s9033_s21 + $0x80] sm:$0xff] }
 0x10b   : > { %4049 = vmatpush.msra.mxu2 %v4020_v52  ;;  %8291 = vmatpush.msra.mxu3 %v4020_v52  ;;  %v1269_v27 = vld [vmem:[%s9033_s21 + $0xa0] sm:$0xff] }
 0x10c   : > { %2113 = vmatpush.msra.mxu0 %v1457_v30  ;;  %2754 = vmatpush.msra.mxu1 %v1458_v31  ;;  %v1273_v51 = vld [vmem:[%s9033_s21 + $0xc0] sm:$0xff] }
 0x10d   : > { %7638 = vmatmul.msk.f32.vlgmr.msra.gmra.mxu0 %vm1473_vm0, %v1249_v32  ;;  %7846 = vmatmul.msk.f32.vlgmr.msra.gmra.mxu1 %vm1473_vm0, %v1249_v32 }
 0x10e   : > { %4050 = vmatpush.msra.mxu2 %v4018_v54  ;;  %8292 = vmatpush.msra.mxu3 %v4018_v54 }
 0x110   : > { %4051 = vmatpush.msra.mxu2 %v4016_v55  ;;  %8293 = vmatpush.msra.mxu3 %v4016_v55 }
 0x112   : > { %4052 = vmatpush.msra.mxu2 %v4014_v56  ;;  %8294 = vmatpush.msra.mxu3 %v4014_v56 }
 0x114   : > { %4053 = vmatpush.msra.mxu2 %v4012_v58  ;;  %8295 = vmatpush.msra.mxu3 %v4012_v58 }
 0x115   : > { %7639 = vmatmul.msk.f32.gmra.mxu0 %vm1473_vm0, %v1250_v33  ;;  %7847 = vmatmul.msk.f32.gmra.mxu1 %vm1473_vm0, %v1250_v33  ;;  %v1270_v33 = vld [vmem:[%s9033_s21 + $0xa8] sm:$0xff] }
 0x116   : > { %4054 = vmatpush.msra.mxu2 %v4010_v59  ;;  %8296 = vmatpush.msra.mxu3 %v4010_v59 }
 0x118   : > { %4055 = vmatpush.msra.mxu2 %v4008_v60  ;;  %8297 = vmatpush.msra.mxu3 %v4008_v60 }
 0x11d   : > { %7640 = vmatmul.msk.f32.gmra.mxu0 %vm1473_vm0, %v1251_v34  ;;  %7848 = vmatmul.msk.f32.gmra.mxu1 %vm1473_vm0, %v1251_v34 }
 0x125   : > { %7641 = vmatmul.msk.f32.gmra.mxu0 %vm1473_vm0, %v1252_v35  ;;  %7849 = vmatmul.msk.f32.gmra.mxu1 %vm1473_vm0, %v1252_v35 }
 0x12d   : > { %7642 = vmatmul.msk.f32.gmra.mxu0 %vm1473_vm0, %v1253_v36  ;;  %7850 = vmatmul.msk.f32.gmra.mxu1 %vm1473_vm0, %v1253_v36 }
 0x135   : > { %7643 = vmatmul.msk.f32.gmra.mxu0 %vm1473_vm0, %v1254_v37  ;;  %7851 = vmatmul.msk.f32.gmra.mxu1 %vm1473_vm0, %v1254_v37 }
 0x13d   : > { %7644 = vmatmul.msk.f32.gmra.mxu0 %vm1473_vm0, %v1255_v38  ;;  %7852 = vmatmul.msk.f32.gmra.mxu1 %vm1473_vm0, %v1255_v38 }
 0x145   : > { %7645 = vmatmul.msk.f32.gmra.mxu0 %vm1473_vm0, %v1256_v39  ;;  %7853 = vmatmul.msk.f32.gmra.mxu1 %vm1473_vm0, %v1256_v39  ;;  %v1271_v39 = vld [vmem:[%s9033_s21 + $0xb0] sm:$0xff] }
 0x14d   : > { %7646 = vmatmul.msk.f32.gmra.mxu0 %vm1473_vm0, %v1257_v40  ;;  %7854 = vmatmul.msk.f32.gmra.mxu1 %vm1473_vm0, %v1257_v40 }
 0x155   : > { %7647 = vmatmul.msk.f32.gmra.mxu0 %vm1473_vm0, %v1258_v43  ;;  %7855 = vmatmul.msk.f32.gmra.mxu1 %vm1473_vm0, %v1258_v43 }
 0x15d   : > { %7648 = vmatmul.msk.f32.gmra.mxu0 %vm1473_vm0, %v1259_v48  ;;  %7856 = vmatmul.msk.f32.gmra.mxu1 %vm1473_vm0, %v1259_v48 }
 0x165   : > { %7649 = vmatmul.msk.f32.gmra.mxu0 %vm1473_vm0, %v1260_v53  ;;  %7857 = vmatmul.msk.f32.gmra.mxu1 %vm1473_vm0, %v1260_v53 }
 0x16d   : > { %7650 = vmatmul.msk.f32.gmra.mxu0 %vm1473_vm0, %v1261_v57  ;;  %7858 = vmatmul.msk.f32.gmra.mxu1 %vm1473_vm0, %v1261_v57  ;;  %v1274_v57 = vld [vmem:[%s9033_s21 + $0xc8] sm:$0xff] }
 0x175   : > { %7651 = vmatmul.msk.f32.gmra.mxu0 %vm1473_vm0, %v1262_v61  ;;  %7859 = vmatmul.msk.f32.gmra.mxu1 %vm1473_vm0, %v1262_v61 }
 0x17d   : > { %7652 = vmatmul.msk.f32.gmra.mxu0 %vm1473_vm0, %v1263_v62  ;;  %7860 = vmatmul.msk.f32.gmra.mxu1 %vm1473_vm0, %v1263_v62 }
 0x185   : > { %7653 = vmatmul.msk.f32.gmra.mxu0 %vm1473_vm0, %v1264_v63  ;;  %7861 = vmatmul.msk.f32.gmra.mxu1 %vm1473_vm0, %v1264_v63  ;;  %v1275_v63 = vld [vmem:[%s9033_s21 + $0xd0] sm:$0xff] }
 0x18a   : > { %v2115_v1 = vpop.f32.mrf.mxu0  ;;  %v2756_v2 = vpop.f32.mrf.mxu1 }
 0x18b   : > { %v3380_v4 = vmax.f32 %v2115_v1, %v2756_v2 }
 0x18d   : > { %7654 = vmatmul.msk.f32.gmra.mxu0 %vm1473_vm0, %v1265_v3  ;;  %7862 = vmatmul.msk.f32.gmra.mxu1 %vm1473_vm0, %v1265_v3  ;;  %v9140_v5 = vadd.f32 %v9134_v0, %v3380_v4 }
 0x18f   : > { %v13801_v6 = vmax.f32 %v9140_v5, 0.0 }
 0x191   : > { %4056 = vmatmul.f32.vlgmr.msra.gmra.mxu2 %v13801_v6  ;;  %v1301_v6 = vld [vmem:[%s9033_s21 + $0x1a0] sm:$0xff] }
 0x192   : > { %v2118_v7 = vpop.f32.mrf.mxu0  ;;  %v2759_v8 = vpop.f32.mrf.mxu1 }
 0x193   : > { %v3381_v10 = vmax.f32 %v2118_v7, %v2759_v8  ;;  %v1276_v8 = vld [vmem:[%s9033_s21 + $0xd8] sm:$0xff] }
 0x195   : > { %7655 = vmatmul.msk.f32.gmra.mxu0 %vm1473_vm0, %v1266_v9  ;;  %7863 = vmatmul.msk.f32.gmra.mxu1 %vm1473_vm0, %v1266_v9  ;;  %v9149_v11 = vadd.f32 %v9134_v0, %v3381_v10 }
 0x197   : > { %v13799_v12 = vmax.f32 %v9149_v11, 0.0 }
 0x199   : > { %4059 = vmatmul.f32.gmra.mxu2 %v13799_v12 }
 0x19a   : > { %v2121_v13 = vpop.f32.mrf.mxu0  ;;  %v2762_v14 = vpop.f32.mrf.mxu1 }
 0x19b   : > { %v3382_v16 = vmax.f32 %v2121_v13, %v2762_v14 }
 0x19d   : > { %7656 = vmatmul.msk.f32.gmra.mxu0 %vm1473_vm0, %v1267_v15  ;;  %7864 = vmatmul.msk.f32.gmra.mxu1 %vm1473_vm0, %v1267_v15  ;;  %v9158_v17 = vadd.f32 %v9134_v0, %v3382_v16  ;;  %v1277_v16 = vld [vmem:[%s9033_s21 + $0xe0] sm:$0xff] }
 0x19f   : > { %v13798_v18 = vmax.f32 %v9158_v17, 0.0 }
 0x1a1   : > { %4062 = vmatmul.f32.gmra.mxu2 %v13798_v18  ;;  %v1300_v18 = vld [vmem:[%s9033_s21 + $0x198] sm:$0xff] }
 0x1a2   : > { %v2124_v19 = vpop.f32.mrf.mxu0  ;;  %v2765_v20 = vpop.f32.mrf.mxu1 }
 0x1a3   : > { %v3383_v22 = vmax.f32 %v2124_v19, %v2765_v20 }
 0x1a5   : > { %7657 = vmatmul.msk.f32.gmra.mxu0 %vm1473_vm0, %v1268_v21  ;;  %7865 = vmatmul.msk.f32.gmra.mxu1 %vm1473_vm0, %v1268_v21  ;;  %v9167_v23 = vadd.f32 %v9134_v0, %v3383_v22 }
 0x1a7   : > { %v13796_v24 = vmax.f32 %v9167_v23, 0.0 }
 0x1a9   : > { %4065 = vmatmul.f32.gmra.mxu2 %v13796_v24 }
 0x1aa   : > { %v2127_v25 = vpop.f32.mrf.mxu0  ;;  %v2768_v26 = vpop.f32.mrf.mxu1 }
 0x1ab   : > { %v3384_v28 = vmax.f32 %v2127_v25, %v2768_v26  ;;  %v1278_v26 = vld [vmem:[%s9033_s21 + $0xe8] sm:$0xff] }
 0x1ad   : > { %7658 = vmatmul.msk.f32.gmra.mxu0 %vm1473_vm0, %v1269_v27  ;;  %7866 = vmatmul.msk.f32.gmra.mxu1 %vm1473_vm0, %v1269_v27  ;;  %v9176_v29 = vadd.f32 %v9134_v0, %v3384_v28 }
 0x1af   : > { %v13795_v30 = vmax.f32 %v9176_v29, 0.0 }
 0x1b1   : > { %4068 = vmatmul.f32.gmra.mxu2 %v13795_v30  ;;  %v1299_v30 = vld [vmem:[%s9033_s21 + $0x190] sm:$0xff] }
 0x1b2   : > { %v2130_v31 = vpop.f32.mrf.mxu0  ;;  %v2771_v32 = vpop.f32.mrf.mxu1 }
 0x1b3   : > { %v3385_v34 = vmax.f32 %v2130_v31, %v2771_v32 }
 0x1b5   : > { %7659 = vmatmul.msk.f32.gmra.mxu0 %vm1473_vm0, %v1270_v33  ;;  %7867 = vmatmul.msk.f32.gmra.mxu1 %vm1473_vm0, %v1270_v33  ;;  %v9185_v35 = vadd.f32 %v9134_v0, %v3385_v34  ;;  %v1279_v34 = vld [vmem:[%s9033_s21 + $0xf0] sm:$0xff] }
 0x1b7   : > { %v13793_v36 = vmax.f32 %v9185_v35, 0.0 }
 0x1b9   : > { %4071 = vmatmul.f32.gmra.mxu2 %v13793_v36 }
 0x1ba   : > { %v2133_v37 = vpop.f32.mrf.mxu0  ;;  %v2774_v38 = vpop.f32.mrf.mxu1 }
 0x1bb   : > { %v3386_v40 = vmax.f32 %v2133_v37, %v2774_v38 }
 0x1bd   : > { %7660 = vmatmul.msk.f32.gmra.mxu0 %vm1473_vm0, %v1271_v39  ;;  %7868 = vmatmul.msk.f32.gmra.mxu1 %vm1473_vm0, %v1271_v39  ;;  %v9194_v41 = vadd.f32 %v9134_v0, %v3386_v40 }
 0x1bf   : > { %v13792_v42 = vmax.f32 %v9194_v41, 0.0 }
 0x1c1   : > { %4074 = vmatmul.f32.gmra.mxu2 %v13792_v42  ;;  %v1298_v42 = vld [vmem:[%s9033_s21 + $0x188] sm:$0xff] }
 0x1c2   : > { %v2136_v43 = vpop.f32.mrf.mxu0  ;;  %v2777_v44 = vpop.f32.mrf.mxu1 }
 0x1c3   : > { %v3387_v46 = vmax.f32 %v2136_v43, %v2777_v44  ;;  %v1280_v44 = vld [vmem:[%s9033_s21 + $0xf8] sm:$0xff] }
 0x1c5   : > { %7661 = vmatmul.msk.f32.gmra.mxu0 %vm1473_vm0, %v1272_v45  ;;  %7869 = vmatmul.msk.f32.gmra.mxu1 %vm1473_vm0, %v1272_v45  ;;  %v9203_v47 = vadd.f32 %v9134_v0, %v3387_v46 }
 0x1c7   : > { %v13790_v48 = vmax.f32 %v9203_v47, 0.0 }
 0x1c9   : > { %4077 = vmatmul.f32.gmra.mxu2 %v13790_v48 }
 0x1ca   : > { %v2139_v49 = vpop.f32.mrf.mxu0  ;;  %v2780_v50 = vpop.f32.mrf.mxu1 }
 0x1cb   : > { %v3388_v52 = vmax.f32 %v2139_v49, %v2780_v50 }
 0x1cd   : > { %7662 = vmatmul.msk.f32.gmra.mxu0 %vm1473_vm0, %v1273_v51  ;;  %7870 = vmatmul.msk.f32.gmra.mxu1 %vm1473_vm0, %v1273_v51  ;;  %v9212_v53 = vadd.f32 %v9134_v0, %v3388_v52  ;;  %v1281_v52 = vld [vmem:[%s9033_s21 + $0x100] sm:$0xff] }
 0x1cf   : > { %v13789_v54 = vmax.f32 %v9212_v53, 0.0 }
 0x1d1   : > { %4080 = vmatmul.f32.gmra.mxu2 %v13789_v54  ;;  %v1297_v54 = vld [vmem:[%s9033_s21 + $0x180] sm:$0xff] }
 0x1d2   : > { %v2142_v55 = vpop.f32.mrf.mxu0  ;;  %v2783_v56 = vpop.f32.mrf.mxu1 }
 0x1d3   : > { %v3389_v58 = vmax.f32 %v2142_v55, %v2783_v56 }
 0x1d5   : > { %7663 = vmatmul.msk.f32.gmra.mxu0 %vm1473_vm0, %v1274_v57  ;;  %7871 = vmatmul.msk.f32.gmra.mxu1 %vm1473_vm0, %v1274_v57  ;;  %v9221_v59 = vadd.f32 %v9134_v0, %v3389_v58 }
 0x1d7   : > { %v13787_v60 = vmax.f32 %v9221_v59, 0.0 }
 0x1d9   : > { %4083 = vmatmul.f32.gmra.mxu2 %v13787_v60 }
 0x1da   : > { %v2145_v61 = vpop.f32.mrf.mxu0  ;;  %v2786_v62 = vpop.f32.mrf.mxu1 }
 0x1db   : > { %v3390_v1 = vmax.f32 %v2145_v61, %v2786_v62  ;;  %v1282_v62 = vld [vmem:[%s9033_s21 + $0x108] sm:$0xff] }
 0x1dd   : > { %7664 = vmatmul.msk.f32.gmra.mxu0 %vm1473_vm0, %v1275_v63  ;;  %7872 = vmatmul.msk.f32.gmra.mxu1 %vm1473_vm0, %v1275_v63  ;;  %v9230_v2 = vadd.f32 %v9134_v0, %v3390_v1 }
 0x1df   : > { %v13786_v3 = vmax.f32 %v9230_v2, 0.0 }
 0x1e1   : > { %4086 = vmatmul.f32.gmra.mxu2 %v13786_v3  ;;  %v1296_v3 = vld [vmem:[%s9033_s21 + $0x178] sm:$0xff] }
 0x1e2   : > { %v2148_v4 = vpop.f32.mrf.mxu0  ;;  %v2789_v7 = vpop.f32.mrf.mxu1 }
 0x1e3   : > { %v3391_v9 = vmax.f32 %v2148_v4, %v2789_v7 }
 0x1e5   : > { %7665 = vmatmul.msk.f32.gmra.mxu0 %vm1473_vm0, %v1276_v8  ;;  %7873 = vmatmul.msk.f32.gmra.mxu1 %vm1473_vm0, %v1276_v8  ;;  %v9239_v10 = vadd.f32 %v9134_v0, %v3391_v9 }
 0x1e7   : > { %v13784_v13 = vmax.f32 %v9239_v10, 0.0 }
 0x1e9   : > { %4089 = vmatmul.f32.gmra.mxu2 %v13784_v13 }
 0x1ea   : > { %v2151_v14 = vpop.f32.mrf.mxu0  ;;  %v2792_v15 = vpop.f32.mrf.mxu1 }
 0x1eb   : > { %v3392_v19 = vmax.f32 %v2151_v14, %v2792_v15  ;;  %v1283_v14 = vld [vmem:[%s9033_s21 + $0x110] sm:$0xff] }
 0x1ed   : > { %7666 = vmatmul.msk.f32.gmra.mxu0 %vm1473_vm0, %v1277_v16  ;;  %7874 = vmatmul.msk.f32.gmra.mxu1 %vm1473_vm0, %v1277_v16  ;;  %v9248_v20 = vadd.f32 %v9134_v0, %v3392_v19 }
 0x1ef   : > { %v13783_v21 = vmax.f32 %v9248_v20, 0.0 }
 0x1f1   : > { %4092 = vmatmul.f32.gmra.mxu2 %v13783_v21  ;;  %v1295_v21 = vld [vmem:[%s9033_s21 + $0x170] sm:$0xff] }
 0x1f2   : > { %v2154_v22 = vpop.f32.mrf.mxu0  ;;  %v2795_v25 = vpop.f32.mrf.mxu1 }
 0x1f3   : > { %v3393_v27 = vmax.f32 %v2154_v22, %v2795_v25 }
 0x1f5   : > { %7667 = vmatmul.msk.f32.gmra.mxu0 %vm1473_vm0, %v1278_v26  ;;  %7875 = vmatmul.msk.f32.gmra.mxu1 %vm1473_vm0, %v1278_v26  ;;  %v9257_v28 = vadd.f32 %v9134_v0, %v3393_v27  ;;  %v1284_v27 = vld [vmem:[%s9033_s21 + $0x118] sm:$0xff] }
 0x1f7   : > { %v13781_v31 = vmax.f32 %v9257_v28, 0.0 }
 0x1f9   : > { %4095 = vmatmul.f32.gmra.mxu2 %v13781_v31 }
 0x1fa   : > { %v2157_v32 = vpop.f32.mrf.mxu0  ;;  %v2798_v33 = vpop.f32.mrf.mxu1 }
 0x1fb   : > { %v3394_v37 = vmax.f32 %v2157_v32, %v2798_v33 }
 0x1fd   : > { %7668 = vmatmul.msk.f32.gmra.mxu0 %vm1473_vm0, %v1279_v34  ;;  %7876 = vmatmul.msk.f32.gmra.mxu1 %vm1473_vm0, %v1279_v34  ;;  %v9266_v38 = vadd.f32 %v9134_v0, %v3394_v37 }
 0x1ff   : > { %v13780_v39 = vmax.f32 %v9266_v38, 0.0 }
 0x201   : > { %4098 = vmatmul.f32.gmra.mxu2 %v13780_v39  ;;  %v1294_v39 = vld [vmem:[%s9033_s21 + $0x168] sm:$0xff] }
 0x202   : > { %v2160_v40 = vpop.f32.mrf.mxu0  ;;  %v2801_v43 = vpop.f32.mrf.mxu1 }
 0x203   : > { %v3395_v45 = vmax.f32 %v2160_v40, %v2801_v43 }
 0x205   : > { %7669 = vmatmul.msk.f32.gmra.mxu0 %vm1473_vm0, %v1280_v44  ;;  %7877 = vmatmul.msk.f32.gmra.mxu1 %vm1473_vm0, %v1280_v44  ;;  %v9275_v46 = vadd.f32 %v9134_v0, %v3395_v45  ;;  %v1285_v44 = vld [vmem:[%s9033_s21 + $0x120] sm:$0xff] }
 0x207   : > { %v13778_v49 = vmax.f32 %v9275_v46, 0.0 }
 0x209   : > { %4101 = vmatmul.f32.gmra.mxu2 %v13778_v49 }
 0x20a   : > { %v2163_v50 = vpop.f32.mrf.mxu0  ;;  %v2804_v51 = vpop.f32.mrf.mxu1 }
 0x20b   : > { %v3396_v55 = vmax.f32 %v2163_v50, %v2804_v51 }
 0x20d   : > { %7670 = vmatmul.msk.f32.gmra.mxu0 %vm1473_vm0, %v1281_v52  ;;  %7878 = vmatmul.msk.f32.gmra.mxu1 %vm1473_vm0, %v1281_v52  ;;  %v9284_v56 = vadd.f32 %v9134_v0, %v3396_v55 }
 0x20f   : > { %v13777_v57 = vmax.f32 %v9284_v56, 0.0 }
 0x211   : > { %4104 = vmatmul.f32.gmra.mxu2 %v13777_v57  ;;  %v1293_v57 = vld [vmem:[%s9033_s21 + $0x160] sm:$0xff] }
 0x212   : > { %v2166_v58 = vpop.f32.mrf.mxu0  ;;  %v2807_v61 = vpop.f32.mrf.mxu1 }
 0x213   : > { %v3397_v63 = vmax.f32 %v2166_v58, %v2807_v61  ;;  %v1286_v61 = vld [vmem:[%s9033_s21 + $0x128] sm:$0xff] }
 0x214   : > { %v9290_v1 = vpop.f32.mrf.mxu2 }
 0x215   : > { %7671 = vmatmul.msk.f32.gmra.mxu0 %vm1473_vm0, %v1282_v62  ;;  %7879 = vmatmul.msk.f32.gmra.mxu1 %vm1473_vm0, %v1282_v62  ;;  %v9295_v4 = vadd.f32 %v9134_v0, %v3397_v63 }
 0x217   : > { %v13775_v7 = vmax.f32 %v9295_v4, 0.0 }
 0x219   : > { %4107 = vmatmul.f32.gmra.mxu2 %v13775_v7 }
 0x21a   : > { %v2169_v8 = vpop.f32.mrf.mxu0  ;;  %v2810_v9 = vpop.f32.mrf.mxu1 }
 0x21b   : > { %v3398_v15 = vmax.f32 %v2169_v8, %v2810_v9 }
 0x21c   : > { %v9301_v16 = vpop.f32.mrf.mxu2 }
 0x21d   : > { %7672 = vmatmul.msk.f32.gmra.mxu0 %vm1473_vm0, %v1283_v14  ;;  %7880 = vmatmul.msk.f32.gmra.mxu1 %vm1473_vm0, %v1283_v14  ;;  %v9306_v19 = vadd.f32 %v9134_v0, %v3398_v15 }
 0x21f   : > { %v13774_v22 = vmax.f32 %v9306_v19, 0.0 }
 0x221   : > { %4110 = vmatmul.f32.gmra.mxu2 %v13774_v22  ;;  %v1292_v22 = vld [vmem:[%s9033_s21 + $0x158] sm:$0xff] }
 0x222   : > { %v2172_v25 = vpop.f32.mrf.mxu0  ;;  %v2813_v26 = vpop.f32.mrf.mxu1 }
 0x223   : > { %v3399_v32 = vmax.f32 %v2172_v25, %v2813_v26  ;;  %v1287_v25 = vld [vmem:[%s9033_s21 + $0x130] sm:$0xff] }
 0x224   : > { %v9312_v33 = vpop.f32.mrf.mxu2 }
 0x225   : > { %7673 = vmatmul.msk.f32.gmra.mxu0 %vm1473_vm0, %v1284_v27  ;;  %7881 = vmatmul.msk.f32.gmra.mxu1 %vm1473_vm0, %v1284_v27  ;;  %v9317_v34 = vadd.f32 %v9134_v0, %v3399_v32 }
 0x227   : > { %v13772_v37 = vmax.f32 %v9317_v34, 0.0 }
 0x229   : > { %4113 = vmatmul.f32.gmra.mxu2 %v13772_v37 }
 0x22a   : > { %v2175_v40 = vpop.f32.mrf.mxu0  ;;  %v2816_v43 = vpop.f32.mrf.mxu1 }
 0x22b   : > { %v3400_v45 = vmax.f32 %v2175_v40, %v2816_v43 }
 0x22c   : > { %v9323_v50 = vpop.f32.mrf.mxu2 }
 0x22d   : > { %7674 = vmatmul.msk.f32.gmra.mxu0 %vm1473_vm0, %v1285_v44  ;;  %7882 = vmatmul.msk.f32.gmra.mxu1 %vm1473_vm0, %v1285_v44  ;;  %v9328_v51 = vadd.f32 %v9134_v0, %v3400_v45  ;;  %v1288_v45 = vld [vmem:[%s9033_s21 + $0x138] sm:$0xff] }
 0x22f   : > { %v13771_v52 = vmax.f32 %v9328_v51, 0.0 }
 0x231   : > { %4116 = vmatmul.f32.gmra.mxu2 %v13771_v52  ;;  %v1291_v52 = vld [vmem:[%s9033_s21 + $0x150] sm:$0xff] }
 0x232   : > { %v2178_v55 = vpop.f32.mrf.mxu0  ;;  %v2819_v58 = vpop.f32.mrf.mxu1 }
 0x233   : > { %v3401_v62 = vmax.f32 %v2178_v55, %v2819_v58 }
 0x234   : > { %v9334_v63 = vpop.f32.mrf.mxu2 }
 0x235   : > { %7675 = vmatmul.msk.f32.gmra.mxu0 %vm1473_vm0, %v1286_v61  ;;  %7883 = vmatmul.msk.f32.gmra.mxu1 %vm1473_vm0, %v1286_v61  ;;  %v9339_v8 = vadd.f32 %v9134_v0, %v3401_v62 }
 0x237   : > { %v13769_v9 = vmax.f32 %v9339_v8, 0.0 }
 0x239   : > { %4119 = vmatmul.f32.gmra.mxu2 %v13769_v9 }
 0x23a   : > { %v2181_v14 = vpop.f32.mrf.mxu0  ;;  %v2822_v15 = vpop.f32.mrf.mxu1 }
 0x23b   : > { %v3402_v26 = vmax.f32 %v2181_v14, %v2822_v15 }
 0x23c   : > { %v9345_v27 = vpop.f32.mrf.mxu2 }
 0x23d   : > { %7676 = vmatmul.msk.f32.gmra.mxu0 %vm1473_vm0, %v1287_v25  ;;  %7884 = vmatmul.msk.f32.gmra.mxu1 %vm1473_vm0, %v1287_v25  ;;  %v9350_v32 = vadd.f32 %v9134_v0, %v3402_v26  ;;  %v1289_v25 = vld [vmem:[%s9033_s21 + $0x140] sm:$0xff] }
 0x23f   : > { %v13768_v40 = vmax.f32 %v9350_v32, 0.0 }
 0x241   : > { %4122 = vmatmul.f32.gmra.mxu2 %v13768_v40  ;;  %v1290_v40 = vld [vmem:[%s9033_s21 + $0x148] sm:$0xff] }
 0x242   : > { %v2184_v43 = vpop.f32.mrf.mxu0  ;;  %v2825_v44 = vpop.f32.mrf.mxu1 }
 0x243   : > { %v3403_v55 = vmax.f32 %v2184_v43, %v2825_v44 }
 0x244   : > { %v9356_v58 = vpop.f32.mrf.mxu2 }
 0x245   : > { %7677 = vmatmul.msk.f32.gmra.mxu0 %vm1473_vm0, %v1288_v45  ;;  %7885 = vmatmul.msk.f32.gmra.mxu1 %vm1473_vm0, %v1288_v45  ;;  %v9361_v61 = vadd.f32 %v9134_v0, %v3403_v55 }
 0x247   : > { %v13767_v62 = vmax.f32 %v9361_v61, 0.0 }
 0x249   : > { %4125 = vmatmul.f32.gmra.mxu2 %v13767_v62 }
 0x24a   : > { %v2187_v14 = vpop.f32.mrf.mxu0  ;;  %v2828_v15 = vpop.f32.mrf.mxu1 }
 0x24b   : > { %v3404_v26 = vmax.f32 %v2187_v14, %v2828_v15 }
 0x24c   : > { %v9367_v43 = vpop.f32.mrf.mxu2 }
 0x24d   : > { %v9370_v44 = vadd.f32 %v9134_v0, %v3404_v26  ;;  %7678 = vmatmul.msk.f32.gmra.mxu0 %vm1473_vm0, %v1289_v25  ;;  %7886 = vmatmul.msk.f32.gmra.mxu1 %vm1473_vm0, %v1289_v25 }
 0x24f   : > { %v13770_v45 = vmax.f32 %v9370_v44, 0.0 }
 0x251   : > { %4128 = vmatmul.f32.gmra.mxu2 %v13770_v45 }
 0x252   : > { %v2190_v55 = vpop.f32.mrf.mxu0  ;;  %v2831_v62 = vpop.f32.mrf.mxu1 }
 0x253   : > { %v3405_v9 = vmax.f32 %v2190_v55, %v2831_v62 }
 0x254   : > { %v9378_v14 = vpop.f32.mrf.mxu2 }
 0x255   : > { %v9381_v15 = vadd.f32 %v9134_v0, %v3405_v9  ;;  %7679 = vmatmul.msk.f32.gmra.mxu0 %vm1473_vm0, %v1290_v40  ;;  %7887 = vmatmul.msk.f32.gmra.mxu1 %vm1473_vm0, %v1290_v40 }
 0x257   : > { %v13773_v25 = vmax.f32 %v9381_v15, 0.0 }
 0x259   : > { %4131 = vmatmul.f32.gmra.mxu2 %v13773_v25 }
 0x25a   : > { %v2193_v26 = vpop.f32.mrf.mxu0  ;;  %v2834_v45 = vpop.f32.mrf.mxu1 }
 0x25b   : > { %v3406_v37 = vmax.f32 %v2193_v26, %v2834_v45 }
 0x25c   : > { %v9389_v62 = vpop.f32.mrf.mxu2 }
 0x25d   : > { %v9392_v55 = vadd.f32 %v9134_v0, %v3406_v37  ;;  %7680 = vmatmul.msk.f32.gmra.mxu0 %vm1473_vm0, %v1291_v52  ;;  %7888 = vmatmul.msk.f32.gmra.mxu1 %vm1473_vm0, %v1291_v52 }
 0x25f   : > { %v13776_v9 = vmax.f32 %v9392_v55, 0.0 }
 0x261   : > { %4134 = vmatmul.f32.gmra.mxu2 %v13776_v9 }
 0x262   : > { %v2196_v40 = vpop.f32.mrf.mxu0  ;;  %v2837_v25 = vpop.f32.mrf.mxu1 }
 0x263   : > { %v3407_v7 = vmax.f32 %v2196_v40, %v2837_v25 }
 0x264   : > { %v9400_v45 = vpop.f32.mrf.mxu2 }
 0x265   : > { %v9403_v26 = vadd.f32 %v9134_v0, %v3407_v7  ;;  %7681 = vmatmul.msk.f32.gmra.mxu0 %vm1473_vm0, %v1292_v22  ;;  %7889 = vmatmul.msk.f32.gmra.mxu1 %vm1473_vm0, %v1292_v22 }
 0x267   : > { %v13779_v37 = vmax.f32 %v9403_v26, 0.0 }
 0x269   : > { %4137 = vmatmul.f32.gmra.mxu2 %v13779_v37 }
 0x26a   : > { %v2199_v52 = vpop.f32.mrf.mxu0  ;;  %v2840_v9 = vpop.f32.mrf.mxu1 }
 0x26b   : > { %v3408_v49 = vmax.f32 %v2199_v52, %v2840_v9 }
 0x26c   : > { %v9411_v25 = vpop.f32.mrf.mxu2 }
 0x26d   : > { %v9414_v40 = vadd.f32 %v9134_v0, %v3408_v49  ;;  %7682 = vmatmul.msk.f32.gmra.mxu0 %vm1473_vm0, %v1293_v57  ;;  %7890 = vmatmul.msk.f32.gmra.mxu1 %vm1473_vm0, %v1293_v57 }
 0x26f   : > { %v13782_v7 = vmax.f32 %v9414_v40, 0.0 }
 0x271   : > { %4140 = vmatmul.f32.gmra.mxu2 %v13782_v7 }
 0x272   : > { %v2202_v22 = vpop.f32.mrf.mxu0  ;;  %v2843_v37 = vpop.f32.mrf.mxu1 }
 0x273   : > { %v3409_v31 = vmax.f32 %v2202_v22, %v2843_v37 }
 0x274   : > { %v9422_v9 = vpop.f32.mrf.mxu2 }
 0x275   : > { %v9425_v52 = vadd.f32 %v9134_v0, %v3409_v31  ;;  %7683 = vmatmul.msk.f32.gmra.mxu0 %vm1473_vm0, %v1294_v39  ;;  %7891 = vmatmul.msk.f32.gmra.mxu1 %vm1473_vm0, %v1294_v39 }
 0x277   : > { %v13785_v49 = vmax.f32 %v9425_v52, 0.0 }
 0x279   : > { %4143 = vmatmul.f32.gmra.mxu2 %v13785_v49 }
 0x27a   : > { %v2205_v57 = vpop.f32.mrf.mxu0  ;;  %v2846_v7 = vpop.f32.mrf.mxu1 }
 0x27b   : > { %v3410_v13 = vmax.f32 %v2205_v57, %v2846_v7 }
 0x27c   : > { %v9433_v37 = vpop.f32.mrf.mxu2 }
 0x27d   : > { %v9436_v22 = vadd.f32 %v9134_v0, %v3410_v13  ;;  %7684 = vmatmul.msk.f32.gmra.mxu0 %vm1473_vm0, %v1295_v21  ;;  %7892 = vmatmul.msk.f32.gmra.mxu1 %vm1473_vm0, %v1295_v21 }
 0x27f   : > { %v13788_v31 = vmax.f32 %v9436_v22, 0.0 }
 0x281   : > { %4146 = vmatmul.f32.gmra.mxu2 %v13788_v31 }
 0x282   : > { %v2208_v39 = vpop.f32.mrf.mxu0  ;;  %v2849_v49 = vpop.f32.mrf.mxu1 }
 0x283   : > { %v3411_v60 = vmax.f32 %v2208_v39, %v2849_v49 }
 0x284   : > { %v9444_v7 = vpop.f32.mrf.mxu2 }
 0x285   : > { %v9447_v57 = vadd.f32 %v9134_v0, %v3411_v60  ;;  %7685 = vmatmul.msk.f32.gmra.mxu0 %vm1473_vm0, %v1296_v3  ;;  %7893 = vmatmul.msk.f32.gmra.mxu1 %vm1473_vm0, %v1296_v3 }
 0x287   : > { %v13791_v13 = vmax.f32 %v9447_v57, 0.0 }
 0x289   : > { %4149 = vmatmul.f32.gmra.mxu2 %v13791_v13 }
 0x28a   : > { %v2211_v21 = vpop.f32.mrf.mxu0  ;;  %v2852_v31 = vpop.f32.mrf.mxu1 }
 0x28b   : > { %v3412_v48 = vmax.f32 %v2211_v21, %v2852_v31 }
 0x28c   : > { %v9455_v49 = vpop.f32.mrf.mxu2 }
 0x28d   : > { %v9458_v39 = vadd.f32 %v9134_v0, %v3412_v48  ;;  %7686 = vmatmul.msk.f32.gmra.mxu0 %vm1473_vm0, %v1297_v54  ;;  %7894 = vmatmul.msk.f32.gmra.mxu1 %vm1473_vm0, %v1297_v54 }
 0x28f   : > { %v13794_v60 = vmax.f32 %v9458_v39, 0.0 }
 0x291   : > { %4152 = vmatmul.f32.gmra.mxu2 %v13794_v60 }
 0x292   : > { %v2214_v3 = vpop.f32.mrf.mxu0  ;;  %v2855_v13 = vpop.f32.mrf.mxu1 }
 0x293   : > { %v3413_v36 = vmax.f32 %v2214_v3, %v2855_v13 }
 0x294   : > { %v9466_v31 = vpop.f32.mrf.mxu2 }
 0x295   : > { %v9469_v21 = vadd.f32 %v9134_v0, %v3413_v36  ;;  %7687 = vmatmul.msk.f32.gmra.mxu0 %vm1473_vm0, %v1298_v42  ;;  %7895 = vmatmul.msk.f32.gmra.mxu1 %vm1473_vm0, %v1298_v42 }
 0x297   : > { %v13797_v48 = vmax.f32 %v9469_v21, 0.0 }
 0x299   : > { %4155 = vmatmul.f32.gmra.mxu2 %v13797_v48 }
 0x29a   : > { %v2217_v54 = vpop.f32.mrf.mxu0  ;;  %v2858_v60 = vpop.f32.mrf.mxu1 }
 0x29b   : > { %v3414_v24 = vmax.f32 %v2217_v54, %v2858_v60 }
 0x29c   : > { %v9477_v13 = vpop.f32.mrf.mxu2 }
 0x29d   : > { %14159 = vst [vmem:[#allocation6_spill] sm:$0xff] %v9477_v13  ;;  %v9480_v3 = vadd.f32 %v9134_v0, %v3414_v24  ;;  %7688 = vmatmul.msk.f32.gmra.mxu0 %vm1473_vm0, %v1299_v30  ;;  %7896 = vmatmul.msk.f32.gmra.mxu1 %vm1473_vm0, %v1299_v30 }
 0x29f   : > { %14160 = vst [vmem:[#allocation7_spill] sm:$0xff] %v9480_v3  ;;  %v13800_v36 = vmax.f32 %v9480_v3, 0.0 }
 0x2a1   : > { %4158 = vmatmul.f32.gmra.mxu2 %v13800_v36 }
 0x2a2   : > { %v2220_v42 = vpop.f32.mrf.mxu0  ;;  %v2861_v48 = vpop.f32.mrf.mxu1 }
 0x2a3   : > { %v3415_v12 = vmax.f32 %v2220_v42, %v2861_v48 }
 0x2a4   : > { %v9488_v60 = vpop.f32.mrf.mxu2 }
 0x2a5   : > { %14161 = vst [vmem:[#allocation8_spill] sm:$0xff] %v9488_v60  ;;  %v9491_v54 = vadd.f32 %v9134_v0, %v3415_v12  ;;  %7689 = vmatmul.msk.f32.gmra.mxu0 %vm1473_vm0, %v1300_v18  ;;  %7897 = vmatmul.msk.f32.gmra.mxu1 %vm1473_vm0, %v1300_v18 }
 0x2a7   : > { %14162 = vst [vmem:[#allocation9_spill] sm:$0xff] %v9491_v54  ;;  %v13803_v24 = vmax.f32 %v9491_v54, 0.0  ;;  %v1302_v54 = vld [vmem:[%s9033_s21 + $0x1a8] sm:$0xff] }
 0x2a9   : > { %4161 = vmatmul.f32.gmra.mxu2 %v13803_v24 }
 0x2aa   : > { %v2223_v30 = vpop.f32.mrf.mxu0  ;;  %v2864_v36 = vpop.f32.mrf.mxu1 }
 0x2ab   : > { %v3416_v3 = vmax.f32 %v2223_v30, %v2864_v36 }
 0x2ac   : > { %v9499_v48 = vpop.f32.mrf.mxu2 }
 0x2ad   : > { %14163 = vst [vmem:[#allocation10_spill] sm:$0xff] %v9499_v48  ;;  %v9502_v42 = vadd.f32 %v9134_v0, %v3416_v3  ;;  %7690 = vmatmul.msk.f32.gmra.mxu0 %vm1473_vm0, %v1301_v6  ;;  %7898 = vmatmul.msk.f32.gmra.mxu1 %vm1473_vm0, %v1301_v6 }
 0x2af   : > { %14164 = vst [vmem:[#allocation11_spill] sm:$0xff] %v9502_v42  ;;  %v13805_v12 = vmax.f32 %v9502_v42, 0.0  ;;  %v1303_v42 = vld [vmem:[%s9033_s21 + $0x1b0] sm:$0xff] }
 0x2b1   : > { %4164 = vmatmul.f32.gmra.mxu2 %v13805_v12 }
 0x2b2   : > { %v2226_v18 = vpop.f32.mrf.mxu0  ;;  %v2867_v24 = vpop.f32.mrf.mxu1 }
 0x2b3   : > { %v3417_v60 = vmax.f32 %v2226_v18, %v2867_v24 }
 0x2b4   : > { %v9510_v36 = vpop.f32.mrf.mxu2 }
 0x2b5   : > { %14165 = vst [vmem:[#allocation12_spill] sm:$0xff] %v9510_v36  ;;  %v9513_v30 = vadd.f32 %v9134_v0, %v3417_v60  ;;  %7691 = vmatmul.msk.f32.gmra.mxu0 %vm1473_vm0, %v1302_v54  ;;  %7899 = vmatmul.msk.f32.gmra.mxu1 %vm1473_vm0, %v1302_v54 }
 0x2b7   : > { %14166 = vst [vmem:[#allocation13_spill] sm:$0xff] %v9513_v30  ;;  %v13807_v6 = vmax.f32 %v9513_v30, 0.0  ;;  %v1304_v30 = vld [vmem:[%s9033_s21 + $0x1b8] sm:$0xff] }
 0x2b9   : > { %4167 = vmatmul.f32.gmra.mxu2 %v13807_v6 }
 0x2ba   : > { %v2229_v3 = vpop.f32.mrf.mxu0  ;;  %v2870_v12 = vpop.f32.mrf.mxu1 }
 0x2bb   : > { %v3418_v48 = vmax.f32 %v2229_v3, %v2870_v12 }
 0x2bc   : > { %v9521_v24 = vpop.f32.mrf.mxu2 }
 0x2bd   : > { %14167 = vst [vmem:[#allocation14_spill] sm:$0xff] %v9521_v24  ;;  %v9524_v18 = vadd.f32 %v9134_v0, %v3418_v48  ;;  %7692 = vmatmul.msk.f32.gmra.mxu0 %vm1473_vm0, %v1303_v42  ;;  %7900 = vmatmul.msk.f32.gmra.mxu1 %vm1473_vm0, %v1303_v42 }
 0x2bf   : > { %14168 = vst [vmem:[#allocation15_spill] sm:$0xff] %v9524_v18  ;;  %v13809_v60 = vmax.f32 %v9524_v18, 0.0  ;;  %v1305_v18 = vld [vmem:[%s9033_s21 + $0x1c0] sm:$0xff] }
 0x2c1   : > { %4170 = vmatmul.f32.gmra.mxu2 %v13809_v60 }
 0x2c2   : > { %v2232_v54 = vpop.f32.mrf.mxu0  ;;  %v2873_v6 = vpop.f32.mrf.mxu1 }
 0x2c3   : > { %v3419_v36 = vmax.f32 %v2232_v54, %v2873_v6 }
 0x2c4   : > { %v9532_v12 = vpop.f32.mrf.mxu2 }
 0x2c5   : > { %14169 = vst [vmem:[#allocation16_spill] sm:$0xff] %v9532_v12  ;;  %v9535_v3 = vadd.f32 %v9134_v0, %v3419_v36  ;;  %7693 = vmatmul.msk.f32.gmra.mxu0 %vm1473_vm0, %v1304_v30  ;;  %7901 = vmatmul.msk.f32.gmra.mxu1 %vm1473_vm0, %v1304_v30 }
 0x2c7   : > { %14170 = vst [vmem:[#allocation17_spill] sm:$0xff] %v9535_v3  ;;  %v13811_v48 = vmax.f32 %v9535_v3, 0.0  ;;  %v1306_v3 = vld [vmem:[%s9033_s21 + $0x1c8] sm:$0xff] }
 0x2c9   : > { %4173 = vmatmul.f32.gmra.mxu2 %v13811_v48 }
 0x2ca   : > { %v2235_v42 = vpop.f32.mrf.mxu0  ;;  %v2876_v60 = vpop.f32.mrf.mxu1 }
 0x2cb   : > { %v3420_v24 = vmax.f32 %v2235_v42, %v2876_v60 }
 0x2cc   : > { %v9543_v6 = vpop.f32.mrf.mxu2 }
 0x2cd   : > { %14171 = vst [vmem:[#allocation18_spill] sm:$0xff] %v9543_v6  ;;  %v9546_v54 = vadd.f32 %v9134_v0, %v3420_v24  ;;  %7694 = vmatmul.msk.f32.gmra.mxu0 %vm1473_vm0, %v1305_v18  ;;  %7902 = vmatmul.msk.f32.gmra.mxu1 %vm1473_vm0, %v1305_v18 }
 0x2cf   : > { %14172 = vst [vmem:[#allocation19_spill] sm:$0xff] %v9546_v54  ;;  %v13813_v36 = vmax.f32 %v9546_v54, 0.0  ;;  %v1307_v54 = vld [vmem:[%s9033_s21 + $0x1d0] sm:$0xff] }
 0x2d1   : > { %4176 = vmatmul.f32.gmra.mxu2 %v13813_v36 }
 0x2d2   : > { %v2238_v30 = vpop.f32.mrf.mxu0  ;;  %v2879_v48 = vpop.f32.mrf.mxu1 }
 0x2d3   : > { %v3421_v12 = vmax.f32 %v2238_v30, %v2879_v48 }
 0x2d4   : > { %v9554_v60 = vpop.f32.mrf.mxu2 }
 0x2d5   : > { %14173 = vst [vmem:[#allocation20_spill] sm:$0xff] %v9554_v60  ;;  %v9557_v42 = vadd.f32 %v9134_v0, %v3421_v12  ;;  %7695 = vmatmul.msk.f32.gmra.mxu0 %vm1473_vm0, %v1306_v3  ;;  %7903 = vmatmul.msk.f32.gmra.mxu1 %vm1473_vm0, %v1306_v3 }
 0x2d7   : > { %14174 = vst [vmem:[#allocation21_spill] sm:$0xff] %v9557_v42  ;;  %v13815_v24 = vmax.f32 %v9557_v42, 0.0  ;;  %v1308_v42 = vld [vmem:[%s9033_s21 + $0x1d8] sm:$0xff] }
 0x2d9   : > { %4179 = vmatmul.f32.gmra.mxu2 %v13815_v24 }
 0x2da   : > { %v2241_v18 = vpop.f32.mrf.mxu0  ;;  %v2882_v36 = vpop.f32.mrf.mxu1 }
 0x2db   : > { %v3422_v6 = vmax.f32 %v2241_v18, %v2882_v36 }
 0x2dc   : > { %v9565_v48 = vpop.f32.mrf.mxu2 }
 0x2dd   : > { %14175 = vst [vmem:[#allocation22_spill] sm:$0xff] %v9565_v48  ;;  %v9568_v30 = vadd.f32 %v9134_v0, %v3422_v6  ;;  %7696 = vmatmul.msk.f32.gmra.mxu0 %vm1473_vm0, %v1307_v54  ;;  %7904 = vmatmul.msk.f32.gmra.mxu1 %vm1473_vm0, %v1307_v54 }
 0x2df   : > { %14176 = vst [vmem:[#allocation23_spill] sm:$0xff] %v9568_v30  ;;  %v13817_v12 = vmax.f32 %v9568_v30, 0.0  ;;  %v1309_v30 = vld [vmem:[%s9033_s21 + $0x1e0] sm:$0xff] }
 0x2e1   : > { %4182 = vmatmul.f32.gmra.mxu2 %v13817_v12 }
 0x2e2   : > { %v2244_v3 = vpop.f32.mrf.mxu0  ;;  %v2885_v24 = vpop.f32.mrf.mxu1 }
 0x2e3   : > { %v3423_v60 = vmax.f32 %v2244_v3, %v2885_v24 }
 0x2e4   : > { %v9576_v36 = vpop.f32.mrf.mxu2 }
 0x2e5   : > { %14177 = vst [vmem:[#allocation24_spill] sm:$0xff] %v9576_v36  ;;  %v9579_v18 = vadd.f32 %v9134_v0, %v3423_v60  ;;  %7697 = vmatmul.msk.f32.gmra.mxu0 %vm1473_vm0, %v1308_v42  ;;  %7905 = vmatmul.msk.f32.gmra.mxu1 %vm1473_vm0, %v1308_v42 }
 0x2e7   : > { %14178 = vst [vmem:[#allocation25_spill] sm:$0xff] %v9579_v18  ;;  %v13819_v6 = vmax.f32 %v9579_v18, 0.0  ;;  %v1310_v18 = vld [vmem:[%s9033_s21 + $0x1e8] sm:$0xff] }
 0x2e9   : > { %4185 = vmatmul.f32.gmra.mxu2 %v13819_v6 }
 0x2ea   : > { %v2247_v54 = vpop.f32.mrf.mxu0  ;;  %v2888_v12 = vpop.f32.mrf.mxu1 }
 0x2eb   : > { %v3424_v48 = vmax.f32 %v2247_v54, %v2888_v12 }
 0x2ec   : > { %v9587_v24 = vpop.f32.mrf.mxu2 }
 0x2ed   : > { %14179 = vst [vmem:[#allocation26_spill] sm:$0xff] %v9587_v24  ;;  %v9590_v3 = vadd.f32 %v9134_v0, %v3424_v48  ;;  %7698 = vmatmul.msk.f32.gmra.mxu0 %vm1473_vm0, %v1309_v30  ;;  %7906 = vmatmul.msk.f32.gmra.mxu1 %vm1473_vm0, %v1309_v30 }
 0x2ef   : > { %14180 = vst [vmem:[#allocation27_spill] sm:$0xff] %v9590_v3  ;;  %v13821_v60 = vmax.f32 %v9590_v3, 0.0  ;;  %v1311_v3 = vld [vmem:[%s9033_s21 + $0x1f0] sm:$0xff] }
 0x2f1   : > { %4188 = vmatmul.f32.gmra.mxu2 %v13821_v60 }
 0x2f2   : > { %v2250_v42 = vpop.f32.mrf.mxu0  ;;  %v2891_v6 = vpop.f32.mrf.mxu1 }
 0x2f3   : > { %v3425_v36 = vmax.f32 %v2250_v42, %v2891_v6 }
 0x2f4   : > { %v9598_v12 = vpop.f32.mrf.mxu2 }
 0x2f5   : > { %14181 = vst [vmem:[#allocation28_spill] sm:$0xff] %v9598_v12  ;;  %v9601_v54 = vadd.f32 %v9134_v0, %v3425_v36  ;;  %7699 = vmatmul.msk.f32.gmra.mxu0 %vm1473_vm0, %v1310_v18  ;;  %7907 = vmatmul.msk.f32.gmra.mxu1 %vm1473_vm0, %v1310_v18 }
 0x2f7   : > { %14182 = vst [vmem:[#allocation29_spill] sm:$0xff] %v9601_v54  ;;  %v13823_v48 = vmax.f32 %v9601_v54, 0.0  ;;  %v1312_v54 = vld [vmem:[%s9033_s21 + $0x1f8] sm:$0xff] }
 0x2f9   : > { %4191 = vmatmul.f32.gmra.mxu2 %v13823_v48 }
 0x2fa   : > { %v2253_v30 = vpop.f32.mrf.mxu0  ;;  %v2894_v60 = vpop.f32.mrf.mxu1 }
 0x2fb   : > { %v3426_v24 = vmax.f32 %v2253_v30, %v2894_v60 }
 0x2fc   : > { %v9609_v6 = vpop.f32.mrf.mxu2 }
 0x2fd   : > { %14183 = vst [vmem:[#allocation30_spill] sm:$0xff] %v9609_v6  ;;  %v9612_v42 = vadd.f32 %v9134_v0, %v3426_v24  ;;  %7700 = vmatmul.msk.f32.gmra.mxu0 %vm1473_vm0, %v1311_v3  ;;  %7908 = vmatmul.msk.f32.gmra.mxu1 %vm1473_vm0, %v1311_v3 }
 0x2ff   : > { %14184 = vst [vmem:[#allocation31_spill] sm:$0xff] %v9612_v42  ;;  %v13825_v36 = vmax.f32 %v9612_v42, 0.0  ;;  %v1313_v42 = vld [vmem:[%s9033_s21 + $0x200] sm:$0xff] }
 0x301   : > { %4194 = vmatmul.f32.gmra.mxu2 %v13825_v36 }
 0x302   : > { %v2256_v18 = vpop.f32.mrf.mxu0  ;;  %v2897_v48 = vpop.f32.mrf.mxu1 }
 0x303   : > { %v3427_v12 = vmax.f32 %v2256_v18, %v2897_v48 }
 0x304   : > { %v9620_v60 = vpop.f32.mrf.mxu2 }
 0x305   : > { %14185 = vst [vmem:[#allocation32_spill] sm:$0xff] %v9620_v60  ;;  %v9623_v30 = vadd.f32 %v9134_v0, %v3427_v12  ;;  %7701 = vmatmul.msk.f32.gmra.mxu0 %vm1473_vm0, %v1312_v54  ;;  %7909 = vmatmul.msk.f32.gmra.mxu1 %vm1473_vm0, %v1312_v54 }
 0x307   : > { %14186 = vst [vmem:[#allocation33_spill] sm:$0xff] %v9623_v30  ;;  %v13827_v24 = vmax.f32 %v9623_v30, 0.0  ;;  %v1314_v30 = vld [vmem:[%s9033_s21 + $0x208] sm:$0xff] }
 0x309   : > { %4197 = vmatmul.f32.gmra.mxu2 %v13827_v24 }
 0x30a   : > { %v2259_v3 = vpop.f32.mrf.mxu0  ;;  %v2900_v36 = vpop.f32.mrf.mxu1 }
 0x30b   : > { %v3428_v6 = vmax.f32 %v2259_v3, %v2900_v36 }
 0x30c   : > { %v9631_v48 = vpop.f32.mrf.mxu2 }
 0x30d   : > { %14187 = vst [vmem:[#allocation34_spill] sm:$0xff] %v9631_v48  ;;  %v9634_v18 = vadd.f32 %v9134_v0, %v3428_v6  ;;  %7702 = vmatmul.msk.f32.gmra.mxu0 %vm1473_vm0, %v1313_v42  ;;  %7910 = vmatmul.msk.f32.gmra.mxu1 %vm1473_vm0, %v1313_v42 }
 0x30f   : > { %14188 = vst [vmem:[#allocation35_spill] sm:$0xff] %v9634_v18  ;;  %v13829_v12 = vmax.f32 %v9634_v18, 0.0  ;;  %v1315_v18 = vld [vmem:[%s9033_s21 + $0x210] sm:$0xff] }
 0x311   : > { %4200 = vmatmul.f32.gmra.mxu2 %v13829_v12 }
 0x312   : > { %v2262_v54 = vpop.f32.mrf.mxu0  ;;  %v2903_v24 = vpop.f32.mrf.mxu1 }
 0x313   : > { %v3429_v60 = vmax.f32 %v2262_v54, %v2903_v24 }
 0x314   : > { %v9642_v36 = vpop.f32.mrf.mxu2 }
 0x315   : > { %14189 = vst [vmem:[#allocation36_spill] sm:$0xff] %v9642_v36  ;;  %v9645_v3 = vadd.f32 %v9134_v0, %v3429_v60  ;;  %7703 = vmatmul.msk.f32.gmra.mxu0 %vm1473_vm0, %v1314_v30  ;;  %7911 = vmatmul.msk.f32.gmra.mxu1 %vm1473_vm0, %v1314_v30 }
 0x317   : > { %14190 = vst [vmem:[#allocation37_spill] sm:$0xff] %v9645_v3  ;;  %v13831_v6 = vmax.f32 %v9645_v3, 0.0  ;;  %v1316_v3 = vld [vmem:[%s9033_s21 + $0x218] sm:$0xff] }
 0x319   : > { %4203 = vmatmul.f32.gmra.mxu2 %v13831_v6 }
 0x31a   : > { %v2265_v42 = vpop.f32.mrf.mxu0  ;;  %v2906_v12 = vpop.f32.mrf.mxu1 }
 0x31b   : > { %v3430_v48 = vmax.f32 %v2265_v42, %v2906_v12 }
 0x31c   : > { %v9653_v24 = vpop.f32.mrf.mxu2 }
 0x31d   : > { %14191 = vst [vmem:[#allocation38_spill] sm:$0xff] %v9653_v24  ;;  %v9656_v54 = vadd.f32 %v9134_v0, %v3430_v48  ;;  %7704 = vmatmul.msk.f32.gmra.mxu0 %vm1473_vm0, %v1315_v18  ;;  %7912 = vmatmul.msk.f32.gmra.mxu1 %vm1473_vm0, %v1315_v18 }
 0x31f   : > { %14192 = vst [vmem:[#allocation39_spill] sm:$0xff] %v9656_v54  ;;  %v13833_v60 = vmax.f32 %v9656_v54, 0.0  ;;  %v1317_v54 = vld [vmem:[%s9033_s21 + $0x220] sm:$0xff] }
 0x321   : > { %4206 = vmatmul.f32.gmra.mxu2 %v13833_v60 }
 0x322   : > { %v2268_v30 = vpop.f32.mrf.mxu0  ;;  %v2909_v6 = vpop.f32.mrf.mxu1 }
 0x323   : > { %v3431_v36 = vmax.f32 %v2268_v30, %v2909_v6 }
 0x324   : > { %v9664_v12 = vpop.f32.mrf.mxu2 }
 0x325   : > { %14193 = vst [vmem:[#allocation40_spill] sm:$0xff] %v9664_v12  ;;  %v9667_v42 = vadd.f32 %v9134_v0, %v3431_v36  ;;  %7705 = vmatmul.msk.f32.gmra.mxu0 %vm1473_vm0, %v1316_v3  ;;  %7913 = vmatmul.msk.f32.gmra.mxu1 %vm1473_vm0, %v1316_v3 }
 0x327   : > { %14194 = vst [vmem:[#allocation41_spill] sm:$0xff] %v9667_v42  ;;  %v13835_v48 = vmax.f32 %v9667_v42, 0.0  ;;  %v1318_v42 = vld [vmem:[%s9033_s21 + $0x228] sm:$0xff] }
 0x329   : > { %4209 = vmatmul.f32.gmra.mxu2 %v13835_v48 }
 0x32a   : > { %v2271_v18 = vpop.f32.mrf.mxu0  ;;  %v2912_v60 = vpop.f32.mrf.mxu1 }
 0x32b   : > { %v3432_v24 = vmax.f32 %v2271_v18, %v2912_v60 }
 0x32c   : > { %v9675_v6 = vpop.f32.mrf.mxu2 }
 0x32d   : > { %14195 = vst [vmem:[#allocation42_spill] sm:$0xff] %v9675_v6  ;;  %v9678_v30 = vadd.f32 %v9134_v0, %v3432_v24  ;;  %7706 = vmatmul.msk.f32.gmra.mxu0 %vm1473_vm0, %v1317_v54  ;;  %7914 = vmatmul.msk.f32.gmra.mxu1 %vm1473_vm0, %v1317_v54  ;;  %v9691_v0 = vld [vmem:[%s13756_s2] ss:$0 sm:$0xff] }
 0x32f   : > { %14196 = vst [vmem:[#allocation43_spill] sm:$0xff] %v9678_v30  ;;  %v13837_v36 = vmax.f32 %v9678_v30, 0.0 }
 0x331   : > { %4212 = vmatmul.f32.gmra.mxu2 %v13837_v36 }
 0x332   : > { %v2274_v3 = vpop.f32.mrf.mxu0  ;;  %v2915_v48 = vpop.f32.mrf.mxu1 }
 0x333   : > { %v3433_v12 = vmax.f32 %v2274_v3, %v2915_v48  ;;  %v1319_v3 = vld [vmem:[%s9033_s21 + $0x230] sm:$0xff] }
 0x334   : > { %v9686_v60 = vpop.f32.mrf.mxu2 }
 0x335   : > { %14197 = vst [vmem:[#allocation44_spill] sm:$0xff] %v9686_v60  ;;  %v9694_v24 = vadd.f32 %v9691_v0, %v3433_v12  ;;  %7707 = vmatmul.msk.f32.gmra.mxu0 %vm1473_vm0, %v1318_v42  ;;  %7915 = vmatmul.msk.f32.gmra.mxu1 %vm1473_vm0, %v1318_v42 }
 0x337   : > { %14198 = vst [vmem:[#allocation45_spill] sm:$0xff] %v9694_v24  ;;  %v13839_v54 = vmax.f32 %v9694_v24, 0.0  ;;  %v1320_v24 = vld [vmem:[%s9033_s21 + $0x238] sm:$0xff] }
 0x339   : > { %4215 = vmatmul.f32.gmra.mxu2 %v13839_v54 }
 0x33a   : > { %v2277_v48 = vpop.f32.mrf.mxu0  ;;  %v2918_v18 = vpop.f32.mrf.mxu1 }
 0x33b   : > { %v3434_v36 = vmax.f32 %v2277_v48, %v2918_v18 }
 0x33c   : > { %v9702_v60 = vpop.f32.mrf.mxu2 }
 0x33d   : > { %14199 = vst [vmem:[#allocation46_spill] sm:$0xff] %v9702_v60  ;;  %v9705_v30 = vadd.f32 %v9691_v0, %v3434_v36  ;;  %7708 = vmatmul.msk.f32.gmra.mxu0 %vm1473_vm0, %v1319_v3  ;;  %7916 = vmatmul.msk.f32.gmra.mxu1 %vm1473_vm0, %v1319_v3 }
 0x33f   : > { %14200 = vst [vmem:[#allocation47_spill] sm:$0xff] %v9705_v30  ;;  %v13841_v12 = vmax.f32 %v9705_v30, 0.0  ;;  %v1321_v30 = vld [vmem:[%s9033_s21 + $0x240] sm:$0xff] }
 0x341   : > { %4218 = vmatmul.f32.gmra.mxu2 %v13841_v12 }
 0x342   : > { %v2280_v42 = vpop.f32.mrf.mxu0  ;;  %v2921_v54 = vpop.f32.mrf.mxu1 }
 0x343   : > { %v3435_v6 = vmax.f32 %v2280_v42, %v2921_v54 }
 0x344   : > { %v9713_v48 = vpop.f32.mrf.mxu2 }
 0x345   : > { %14201 = vst [vmem:[#allocation48_spill] sm:$0xff] %v9713_v48  ;;  %v9716_v18 = vadd.f32 %v9691_v0, %v3435_v6  ;;  %7709 = vmatmul.msk.f32.gmra.mxu0 %vm1473_vm0, %v1320_v24  ;;  %7917 = vmatmul.msk.f32.gmra.mxu1 %vm1473_vm0, %v1320_v24 }
 0x347   : > { %14202 = vst [vmem:[#allocation49_spill] sm:$0xff] %v9716_v18  ;;  %v13843_v36 = vmax.f32 %v9716_v18, 0.0  ;;  %v1322_v18 = vld [vmem:[%s9033_s21 + $0x248] sm:$0xff] }
 0x349   : > { %4221 = vmatmul.f32.gmra.mxu2 %v13843_v36 }
 0x34a   : > { %v2283_v3 = vpop.f32.mrf.mxu0  ;;  %v2924_v12 = vpop.f32.mrf.mxu1 }
 0x34b   : > { %v3436_v60 = vmax.f32 %v2283_v3, %v2924_v12 }
 0x34c   : > { %v9724_v54 = vpop.f32.mrf.mxu2 }
 0x34d   : > { %14203 = vst [vmem:[#allocation50_spill] sm:$0xff] %v9724_v54  ;;  %v9727_v42 = vadd.f32 %v9691_v0, %v3436_v60  ;;  %7710 = vmatmul.msk.f32.gmra.mxu0 %vm1473_vm0, %v1321_v30  ;;  %7918 = vmatmul.msk.f32.gmra.mxu1 %vm1473_vm0, %v1321_v30 }
 0x34f   : > { %14204 = vst [vmem:[#allocation51_spill] sm:$0xff] %v9727_v42  ;;  %v13845_v6 = vmax.f32 %v9727_v42, 0.0  ;;  %v1323_v42 = vld [vmem:[%s9033_s21 + $0x250] sm:$0xff] }
 0x351   : > { %4224 = vmatmul.f32.gmra.mxu2 %v13845_v6 }
 0x352   : > { %v2286_v24 = vpop.f32.mrf.mxu0  ;;  %v2927_v36 = vpop.f32.mrf.mxu1 }
 0x353   : > { %v3437_v48 = vmax.f32 %v2286_v24, %v2927_v36 }
 0x354   : > { %v9735_v12 = vpop.f32.mrf.mxu2 }
 0x355   : > { %14205 = vst [vmem:[#allocation52_spill] sm:$0xff] %v9735_v12  ;;  %v9738_v3 = vadd.f32 %v9691_v0, %v3437_v48  ;;  %7711 = vmatmul.msk.f32.gmra.mxu0 %vm1473_vm0, %v1322_v18  ;;  %7919 = vmatmul.msk.f32.gmra.mxu1 %vm1473_vm0, %v1322_v18 }
 0x357   : > { %14206 = vst [vmem:[#allocation53_spill] sm:$0xff] %v9738_v3  ;;  %v13847_v30 = vmax.f32 %v9738_v3, 0.0  ;;  %v1324_v3 = vld [vmem:[%s9033_s21 + $0x258] sm:$0xff] }
 0x359   : > { %4227 = vmatmul.f32.gmra.mxu2 %v13847_v30 }
 0x35a   : > { %v2289_v60 = vpop.f32.mrf.mxu0  ;;  %v2930_v6 = vpop.f32.mrf.mxu1 }
 0x35b   : > { %v3438_v54 = vmax.f32 %v2289_v60, %v2930_v6 }
 0x35c   : > { %v9746_v36 = vpop.f32.mrf.mxu2 }
 0x35d   : > { %14207 = vst [vmem:[#allocation54_spill] sm:$0xff] %v9746_v36  ;;  %v9749_v24 = vadd.f32 %v9691_v0, %v3438_v54  ;;  %7712 = vmatmul.msk.f32.gmra.mxu0 %vm1473_vm0, %v1323_v42  ;;  %7920 = vmatmul.msk.f32.gmra.mxu1 %vm1473_vm0, %v1323_v42 }
 0x35f   : > { %14208 = vst [vmem:[#allocation55_spill] sm:$0xff] %v9749_v24  ;;  %v13849_v48 = vmax.f32 %v9749_v24, 0.0  ;;  %v1325_v24 = vld [vmem:[%s9033_s21 + $0x260] sm:$0xff] }
 0x361   : > { %4230 = vmatmul.f32.gmra.mxu2 %v13849_v48 }
 0x362   : > { %v2292_v18 = vpop.f32.mrf.mxu0  ;;  %v2933_v30 = vpop.f32.mrf.mxu1 }
 0x363   : > { %v3439_v12 = vmax.f32 %v2292_v18, %v2933_v30 }
 0x364   : > { %v9757_v6 = vpop.f32.mrf.mxu2 }
 0x365   : > { %14209 = vst [vmem:[#allocation56_spill] sm:$0xff] %v9757_v6  ;;  %v9760_v60 = vadd.f32 %v9691_v0, %v3439_v12  ;;  %7713 = vmatmul.msk.f32.gmra.mxu0 %vm1473_vm0, %v1324_v3  ;;  %7921 = vmatmul.msk.f32.gmra.mxu1 %vm1473_vm0, %v1324_v3 }
 0x367   : > { %14210 = vst [vmem:[#allocation57_spill] sm:$0xff] %v9760_v60  ;;  %v13851_v54 = vmax.f32 %v9760_v60, 0.0  ;;  %v1326_v60 = vld [vmem:[%s9033_s21 + $0x268] sm:$0xff] }
 0x369   : > { %4233 = vmatmul.f32.gmra.mxu2 %v13851_v54 }
 0x36a   : > { %v2295_v42 = vpop.f32.mrf.mxu0  ;;  %v2936_v48 = vpop.f32.mrf.mxu1 }
 0x36b   : > { %v3440_v36 = vmax.f32 %v2295_v42, %v2936_v48 }
 0x36c   : > { %v9768_v30 = vpop.f32.mrf.mxu2 }
 0x36d   : > { %14211 = vst [vmem:[#allocation58_spill] sm:$0xff] %v9768_v30  ;;  %v9771_v18 = vadd.f32 %v9691_v0, %v3440_v36  ;;  %7714 = vmatmul.msk.f32.gmra.mxu0 %vm1473_vm0, %v1325_v24  ;;  %7922 = vmatmul.msk.f32.gmra.mxu1 %vm1473_vm0, %v1325_v24 }
 0x36f   : > { %14212 = vst [vmem:[#allocation59_spill] sm:$0xff] %v9771_v18  ;;  %v13853_v12 = vmax.f32 %v9771_v18, 0.0  ;;  %v1327_v18 = vld [vmem:[%s9033_s21 + $0x270] sm:$0xff] }
 0x371   : > { %4236 = vmatmul.f32.gmra.mxu2 %v13853_v12 }
 0x372   : > { %v2298_v3 = vpop.f32.mrf.mxu0  ;;  %v2939_v54 = vpop.f32.mrf.mxu1 }
 0x373   : > { %v3441_v6 = vmax.f32 %v2298_v3, %v2939_v54 }
 0x374   : > { %v9779_v48 = vpop.f32.mrf.mxu2 }
 0x375   : > { %14213 = vst [vmem:[#allocation60_spill] sm:$0xff] %v9779_v48  ;;  %v9782_v42 = vadd.f32 %v9691_v0, %v3441_v6  ;;  %7715 = vmatmul.msk.f32.gmra.mxu0 %vm1473_vm0, %v1326_v60  ;;  %7923 = vmatmul.msk.f32.gmra.mxu1 %vm1473_vm0, %v1326_v60 }
 0x377   : > { %14214 = vst [vmem:[#allocation61_spill] sm:$0xff] %v9782_v42  ;;  %v13855_v36 = vmax.f32 %v9782_v42, 0.0  ;;  %v1328_v42 = vld [vmem:[%s9033_s21 + $0x278] sm:$0xff] }
 0x379   : > { %4239 = vmatmul.f32.gmra.mxu2 %v13855_v36 }
 0x37a   : > { %v2301_v24 = vpop.f32.mrf.mxu0  ;;  %v2942_v12 = vpop.f32.mrf.mxu1 }
 0x37b   : > { %v3442_v30 = vmax.f32 %v2301_v24, %v2942_v12 }
 0x37c   : > { %v9790_v54 = vpop.f32.mrf.mxu2 }
 0x37d   : > { %14215 = vst [vmem:[#allocation62_spill] sm:$0xff] %v9790_v54  ;;  %v9793_v3 = vadd.f32 %v9691_v0, %v3442_v30  ;;  %7716 = vmatmul.msk.f32.gmra.mxu0 %vm1473_vm0, %v1327_v18  ;;  %7924 = vmatmul.msk.f32.gmra.mxu1 %vm1473_vm0, %v1327_v18 }
 0x37f   : > { %14216 = vst [vmem:[#allocation63_spill] sm:$0xff] %v9793_v3  ;;  %v13857_v6 = vmax.f32 %v9793_v3, 0.0  ;;  %v1329_v3 = vld [vmem:[%s9033_s21 + $0x280] sm:$0xff] }
 0x381   : > { %4242 = vmatmul.f32.gmra.mxu2 %v13857_v6 }
 0x382   : > { %v2304_v60 = vpop.f32.mrf.mxu0  ;;  %v2945_v36 = vpop.f32.mrf.mxu1 }
 0x383   : > { %v3443_v48 = vmax.f32 %v2304_v60, %v2945_v36 }
 0x384   : > { %v9801_v12 = vpop.f32.mrf.mxu2 }
 0x385   : > { %14217 = vst [vmem:[#allocation64_spill] sm:$0xff] %v9801_v12  ;;  %v9804_v24 = vadd.f32 %v9691_v0, %v3443_v48  ;;  %7717 = vmatmul.msk.f32.gmra.mxu0 %vm1473_vm0, %v1328_v42  ;;  %7925 = vmatmul.msk.f32.gmra.mxu1 %vm1473_vm0, %v1328_v42 }
 0x387   : > { %14218 = vst [vmem:[#allocation65_spill] sm:$0xff] %v9804_v24  ;;  %v13859_v30 = vmax.f32 %v9804_v24, 0.0  ;;  %v1330_v24 = vld [vmem:[%s9033_s21 + $0x288] sm:$0xff] }
 0x389   : > { %4245 = vmatmul.f32.gmra.mxu2 %v13859_v30 }
 0x38a   : > { %v2307_v18 = vpop.f32.mrf.mxu0  ;;  %v2948_v6 = vpop.f32.mrf.mxu1 }
 0x38b   : > { %v3444_v54 = vmax.f32 %v2307_v18, %v2948_v6 }
 0x38c   : > { %v9812_v36 = vpop.f32.mrf.mxu2 }
 0x38d   : > { %14219 = vst [vmem:[#allocation66_spill] sm:$0xff] %v9812_v36  ;;  %v9815_v60 = vadd.f32 %v9691_v0, %v3444_v54  ;;  %7718 = vmatmul.msk.f32.gmra.mxu0 %vm1473_vm0, %v1329_v3  ;;  %7926 = vmatmul.msk.f32.gmra.mxu1 %vm1473_vm0, %v1329_v3 }
 0x38f   : > { %14220 = vst [vmem:[#allocation67_spill] sm:$0xff] %v9815_v60  ;;  %v13861_v48 = vmax.f32 %v9815_v60, 0.0  ;;  %v1331_v60 = vld [vmem:[%s9033_s21 + $0x290] sm:$0xff] }
 0x391   : > { %4248 = vmatmul.f32.gmra.mxu2 %v13861_v48 }
 0x392   : > { %v2310_v42 = vpop.f32.mrf.mxu0  ;;  %v2951_v30 = vpop.f32.mrf.mxu1 }
 0x393   : > { %v3445_v12 = vmax.f32 %v2310_v42, %v2951_v30 }
 0x394   : > { %v9823_v6 = vpop.f32.mrf.mxu2 }
 0x395   : > { %14221 = vst [vmem:[#allocation68_spill] sm:$0xff] %v9823_v6  ;;  %v9826_v18 = vadd.f32 %v9691_v0, %v3445_v12  ;;  %7719 = vmatmul.msk.f32.gmra.mxu0 %vm1473_vm0, %v1330_v24  ;;  %7927 = vmatmul.msk.f32.gmra.mxu1 %vm1473_vm0, %v1330_v24  ;;  %v1332_v6 = vld [vmem:[%s9033_s21 + $0x298] sm:$0xff] }
 0x397   : > { %14222 = vst [vmem:[#allocation69_spill] sm:$0xff] %v9826_v18  ;;  %v13863_v54 = vmax.f32 %v9826_v18, 0.0 }
 0x399   : > { %4251 = vmatmul.f32.gmra.mxu2 %v13863_v54 }
 0x39a   : > { %v2313_v3 = vpop.f32.mrf.mxu0  ;;  %v2954_v48 = vpop.f32.mrf.mxu1 }
 0x39b   : > { %v3446_v36 = vmax.f32 %v2313_v3, %v2954_v48 }
 0x39c   : > { %v9834_v30 = vpop.f32.mrf.mxu2 }
 0x39d   : > { %14223 = vst [vmem:[#allocation70_spill] sm:$0xff] %v9834_v30  ;;  %v9837_v42 = vadd.f32 %v9691_v0, %v3446_v36  ;;  %7720 = vmatmul.msk.f32.gmra.mxu0 %vm1473_vm0, %v1331_v60  ;;  %7928 = vmatmul.msk.f32.gmra.mxu1 %vm1473_vm0, %v1331_v60  ;;  %v1333_v30 = vld [vmem:[%s9033_s21 + $0x2a0] sm:$0xff] }
 0x39f   : > { %14224 = vst [vmem:[#allocation71_spill] sm:$0xff] %v9837_v42  ;;  %v13865_v12 = vmax.f32 %v9837_v42, 0.0 }
 0x3a1   : > { %4254 = vmatmul.f32.gmra.mxu2 %v13865_v12 }
 0x3a2   : > { %v2316_v24 = vpop.f32.mrf.mxu0  ;;  %v2957_v54 = vpop.f32.mrf.mxu1 }
 0x3a3   : > { %v3447_v18 = vmax.f32 %v2316_v24, %v2957_v54 }
 0x3a4   : > { %v9845_v48 = vpop.f32.mrf.mxu2 }
 0x3a5   : > { %14225 = vst [vmem:[#allocation72_spill] sm:$0xff] %v9845_v48  ;;  %v9848_v3 = vadd.f32 %v9691_v0, %v3447_v18  ;;  %7721 = vmatmul.msk.f32.gmra.mxu0 %vm1473_vm0, %v1332_v6  ;;  %7929 = vmatmul.msk.f32.gmra.mxu1 %vm1473_vm0, %v1332_v6  ;;  %v1334_v48 = vld [vmem:[%s9033_s21 + $0x2a8] sm:$0xff] }
 0x3a7   : > { %14226 = vst [vmem:[#allocation73_spill] sm:$0xff] %v9848_v3  ;;  %v13867_v36 = vmax.f32 %v9848_v3, 0.0 }
 0x3a9   : > { %4257 = vmatmul.f32.gmra.mxu2 %v13867_v36 }
 0x3aa   : > { %v2319_v60 = vpop.f32.mrf.mxu0  ;;  %v2960_v12 = vpop.f32.mrf.mxu1 }
 0x3ab   : > { %v3448_v42 = vmax.f32 %v2319_v60, %v2960_v12 }
 0x3ac   : > { %v9856_v54 = vpop.f32.mrf.mxu2 }
 0x3ad   : > { %14227 = vst [vmem:[#allocation74_spill] sm:$0xff] %v9856_v54  ;;  %v9859_v24 = vadd.f32 %v9691_v0, %v3448_v42  ;;  %7722 = vmatmul.msk.f32.gmra.mxu0 %vm1473_vm0, %v1333_v30  ;;  %7930 = vmatmul.msk.f32.gmra.mxu1 %vm1473_vm0, %v1333_v30  ;;  %v1335_v54 = vld [vmem:[%s9033_s21 + $0x2b0] sm:$0xff] }
 0x3af   : > { %14228 = vst [vmem:[#allocation75_spill] sm:$0xff] %v9859_v24  ;;  %v13869_v6 = vmax.f32 %v9859_v24, 0.0 }
 0x3b1   : > { %4260 = vmatmul.f32.gmra.mxu2 %v13869_v6 }
 0x3b2   : > { %v2322_v18 = vpop.f32.mrf.mxu0  ;;  %v2963_v36 = vpop.f32.mrf.mxu1 }
 0x3b3   : > { %v3449_v3 = vmax.f32 %v2322_v18, %v2963_v36 }
 0x3b4   : > { %v9867_v12 = vpop.f32.mrf.mxu2 }
 0x3b5   : > { %14229 = vst [vmem:[#allocation76_spill] sm:$0xff] %v9867_v12  ;;  %v9870_v60 = vadd.f32 %v9691_v0, %v3449_v3  ;;  %7723 = vmatmul.msk.f32.gmra.mxu0 %vm1473_vm0, %v1334_v48  ;;  %7931 = vmatmul.msk.f32.gmra.mxu1 %vm1473_vm0, %v1334_v48  ;;  %v1336_v12 = vld [vmem:[%s9033_s21 + $0x2b8] sm:$0xff] }
 0x3b7   : > { %14230 = vst [vmem:[#allocation77_spill] sm:$0xff] %v9870_v60  ;;  %v13871_v30 = vmax.f32 %v9870_v60, 0.0 }
 0x3b9   : > { %4263 = vmatmul.f32.gmra.mxu2 %v13871_v30 }
 0x3ba   : > { %v2325_v42 = vpop.f32.mrf.mxu0  ;;  %v2966_v6 = vpop.f32.mrf.mxu1 }
 0x3bb   : > { %v3450_v24 = vmax.f32 %v2325_v42, %v2966_v6 }
 0x3bc   : > { %v9878_v36 = vpop.f32.mrf.mxu2 }
 0x3bd   : > { %14231 = vst [vmem:[#allocation78_spill] sm:$0xff] %v9878_v36  ;;  %v9881_v18 = vadd.f32 %v9691_v0, %v3450_v24  ;;  %7724 = vmatmul.msk.f32.gmra.mxu0 %vm1473_vm0, %v1335_v54  ;;  %7932 = vmatmul.msk.f32.gmra.mxu1 %vm1473_vm0, %v1335_v54  ;;  %v1337_v36 = vld [vmem:[%s9033_s21 + $0x2c0] sm:$0xff] }
 0x3bf   : > { %14232 = vst [vmem:[#allocation79_spill] sm:$0xff] %v9881_v18  ;;  %v13873_v48 = vmax.f32 %v9881_v18, 0.0 }
 0x3c1   : > { %4266 = vmatmul.f32.gmra.mxu2 %v13873_v48 }
 0x3c2   : > { %v2328_v3 = vpop.f32.mrf.mxu0  ;;  %v2969_v30 = vpop.f32.mrf.mxu1 }
 0x3c3   : > { %v3451_v60 = vmax.f32 %v2328_v3, %v2969_v30 }
 0x3c4   : > { %v9889_v6 = vpop.f32.mrf.mxu2 }
 0x3c5   : > { %14233 = vst [vmem:[#allocation80_spill] sm:$0xff] %v9889_v6  ;;  %v9892_v42 = vadd.f32 %v9691_v0, %v3451_v60  ;;  %7725 = vmatmul.msk.f32.gmra.mxu0 %vm1473_vm0, %v1336_v12  ;;  %7933 = vmatmul.msk.f32.gmra.mxu1 %vm1473_vm0, %v1336_v12  ;;  %v1338_v6 = vld [vmem:[%s9033_s21 + $0x2c8] sm:$0xff] }
 0x3c7   : > { %14234 = vst [vmem:[#allocation81_spill] sm:$0xff] %v9892_v42  ;;  %v13875_v54 = vmax.f32 %v9892_v42, 0.0 }
 0x3c9   : > { %4269 = vmatmul.f32.gmra.mxu2 %v13875_v54 }
 0x3ca   : > { %v2331_v24 = vpop.f32.mrf.mxu0  ;;  %v2972_v48 = vpop.f32.mrf.mxu1 }
 0x3cb   : > { %v3452_v18 = vmax.f32 %v2331_v24, %v2972_v48 }
 0x3cc   : > { %v9900_v30 = vpop.f32.mrf.mxu2 }
 0x3cd   : > { %14235 = vst [vmem:[#allocation82_spill] sm:$0xff] %v9900_v30  ;;  %v9903_v3 = vadd.f32 %v9691_v0, %v3452_v18  ;;  %7726 = vmatmul.msk.f32.gmra.mxu0 %vm1473_vm0, %v1337_v36  ;;  %7934 = vmatmul.msk.f32.gmra.mxu1 %vm1473_vm0, %v1337_v36  ;;  %v1339_v30 = vld [vmem:[%s9033_s21 + $0x2d0] sm:$0xff] }
 0x3cf   : > { %14236 = vst [vmem:[#allocation83_spill] sm:$0xff] %v9903_v3  ;;  %v13877_v12 = vmax.f32 %v9903_v3, 0.0 }
 0x3d1   : > { %4272 = vmatmul.f32.gmra.mxu2 %v13877_v12 }
 0x3d2   : > { %v2334_v60 = vpop.f32.mrf.mxu0  ;;  %v2975_v54 = vpop.f32.mrf.mxu1 }
 0x3d3   : > { %v3453_v42 = vmax.f32 %v2334_v60, %v2975_v54 }
 0x3d4   : > { %v9911_v48 = vpop.f32.mrf.mxu2 }
 0x3d5   : > { %14237 = vst [vmem:[#allocation84_spill] sm:$0xff] %v9911_v48  ;;  %v9914_v24 = vadd.f32 %v9691_v0, %v3453_v42  ;;  %7727 = vmatmul.msk.f32.gmra.mxu0 %vm1473_vm0, %v1338_v6  ;;  %7935 = vmatmul.msk.f32.gmra.mxu1 %vm1473_vm0, %v1338_v6  ;;  %v1340_v48 = vld [vmem:[%s9033_s21 + $0x2d8] sm:$0xff] }
 0x3d7   : > { %14238 = vst [vmem:[#allocation85_spill] sm:$0xff] %v9914_v24  ;;  %v13879_v36 = vmax.f32 %v9914_v24, 0.0 }
 0x3d9   : > { %4275 = vmatmul.f32.gmra.mxu2 %v13879_v36 }
 0x3da   : > { %v2337_v18 = vpop.f32.mrf.mxu0  ;;  %v2978_v12 = vpop.f32.mrf.mxu1 }
 0x3db   : > { %v3454_v3 = vmax.f32 %v2337_v18, %v2978_v12 }
 0x3dc   : > { %v9922_v54 = vpop.f32.mrf.mxu2 }
 0x3dd   : > { %14239 = vst [vmem:[#allocation86_spill] sm:$0xff] %v9922_v54  ;;  %v9925_v60 = vadd.f32 %v9691_v0, %v3454_v3  ;;  %7728 = vmatmul.msk.f32.gmra.mxu0 %vm1473_vm0, %v1339_v30  ;;  %7936 = vmatmul.msk.f32.gmra.mxu1 %vm1473_vm0, %v1339_v30  ;;  %v1341_v54 = vld [vmem:[%s9033_s21 + $0x2e0] sm:$0xff] }
 0x3df   : > { %14240 = vst [vmem:[#allocation87_spill] sm:$0xff] %v9925_v60  ;;  %v13881_v6 = vmax.f32 %v9925_v60, 0.0 }
 0x3e1   : > { %4278 = vmatmul.f32.gmra.mxu2 %v13881_v6 }
 0x3e2   : > { %v2340_v42 = vpop.f32.mrf.mxu0  ;;  %v2981_v36 = vpop.f32.mrf.mxu1 }
 0x3e3   : > { %v3455_v24 = vmax.f32 %v2340_v42, %v2981_v36 }
 0x3e4   : > { %v9933_v12 = vpop.f32.mrf.mxu2 }
 0x3e5   : > { %14241 = vst [vmem:[#allocation88_spill] sm:$0xff] %v9933_v12  ;;  %v9936_v18 = vadd.f32 %v9691_v0, %v3455_v24  ;;  %7729 = vmatmul.msk.f32.gmra.mxu0 %vm1473_vm0, %v1340_v48  ;;  %7937 = vmatmul.msk.f32.gmra.mxu1 %vm1473_vm0, %v1340_v48  ;;  %v1342_v12 = vld [vmem:[%s9033_s21 + $0x2e8] sm:$0xff] }
 0x3e7   : > { %14242 = vst [vmem:[#allocation89_spill] sm:$0xff] %v9936_v18  ;;  %v13883_v30 = vmax.f32 %v9936_v18, 0.0 }
 0x3e9   : > { %4281 = vmatmul.f32.gmra.mxu2 %v13883_v30 }
 0x3ea   : > { %v2343_v3 = vpop.f32.mrf.mxu0  ;;  %v2984_v6 = vpop.f32.mrf.mxu1 }
 0x3eb   : > { %v3456_v60 = vmax.f32 %v2343_v3, %v2984_v6 }
 0x3ec   : > { %v9944_v36 = vpop.f32.mrf.mxu2 }
 0x3ed   : > { %14243 = vst [vmem:[#allocation90_spill] sm:$0xff] %v9944_v36  ;;  %v9947_v42 = vadd.f32 %v9691_v0, %v3456_v60  ;;  %7730 = vmatmul.msk.f32.gmra.mxu0 %vm1473_vm0, %v1341_v54  ;;  %7938 = vmatmul.msk.f32.gmra.mxu1 %vm1473_vm0, %v1341_v54  ;;  %v1343_v36 = vld [vmem:[%s9033_s21 + $0x2f0] sm:$0xff] }
 0x3ef   : > { %14244 = vst [vmem:[#allocation91_spill] sm:$0xff] %v9947_v42  ;;  %v13885_v48 = vmax.f32 %v9947_v42, 0.0 }
 0x3f1   : > { %4284 = vmatmul.f32.gmra.mxu2 %v13885_v48 }
 0x3f2   : > { %v2346_v24 = vpop.f32.mrf.mxu0  ;;  %v2987_v30 = vpop.f32.mrf.mxu1 }
 0x3f3   : > { %v3457_v18 = vmax.f32 %v2346_v24, %v2987_v30 }
 0x3f4   : > { %v9955_v6 = vpop.f32.mrf.mxu2 }
 0x3f5   : > { %14245 = vst [vmem:[#allocation92_spill] sm:$0xff] %v9955_v6  ;;  %v9958_v3 = vadd.f32 %v9691_v0, %v3457_v18  ;;  %7731 = vmatmul.msk.f32.gmra.mxu0 %vm1473_vm0, %v1342_v12  ;;  %7939 = vmatmul.msk.f32.gmra.mxu1 %vm1473_vm0, %v1342_v12  ;;  %v1344_v6 = vld [vmem:[%s9033_s21 + $0x2f8] sm:$0xff] }
 0x3f7   : > { %14246 = vst [vmem:[#allocation93_spill] sm:$0xff] %v9958_v3  ;;  %v13887_v54 = vmax.f32 %v9958_v3, 0.0 }
 0x3f9   : > { %4287 = vmatmul.f32.gmra.mxu2 %v13887_v54 }
 0x3fa   : > { %v2349_v60 = vpop.f32.mrf.mxu0  ;;  %v2990_v48 = vpop.f32.mrf.mxu1 }
 0x3fb   : > { %v3458_v42 = vmax.f32 %v2349_v60, %v2990_v48 }
 0x3fc   : > { %v9966_v30 = vpop.f32.mrf.mxu2 }
 0x3fd   : > { %14247 = vst [vmem:[#allocation94_spill] sm:$0xff] %v9966_v30  ;;  %v9969_v24 = vadd.f32 %v9691_v0, %v3458_v42  ;;  %7732 = vmatmul.msk.f32.gmra.mxu0 %vm1473_vm0, %v1343_v36  ;;  %7940 = vmatmul.msk.f32.gmra.mxu1 %vm1473_vm0, %v1343_v36  ;;  %v1345_v30 = vld [vmem:[%s9033_s21 + $0x300] sm:$0xff] }
 0x3ff   : > { %14248 = vst [vmem:[#allocation95_spill] sm:$0xff] %v9969_v24  ;;  %v13889_v12 = vmax.f32 %v9969_v24, 0.0 }
 0x401   : > { %4290 = vmatmul.f32.gmra.mxu2 %v13889_v12 }
 0x402   : > { %v2352_v18 = vpop.f32.mrf.mxu0  ;;  %v2993_v54 = vpop.f32.mrf.mxu1 }
 0x403   : > { %v3459_v3 = vmax.f32 %v2352_v18, %v2993_v54 }
 0x404   : > { %v9977_v48 = vpop.f32.mrf.mxu2 }
 0x405   : > { %14249 = vst [vmem:[#allocation96_spill] sm:$0xff] %v9977_v48  ;;  %v9980_v60 = vadd.f32 %v9691_v0, %v3459_v3  ;;  %7733 = vmatmul.msk.f32.gmra.mxu0 %vm1473_vm0, %v1344_v6  ;;  %7941 = vmatmul.msk.f32.gmra.mxu1 %vm1473_vm0, %v1344_v6  ;;  %v1346_v48 = vld [vmem:[%s9033_s21 + $0x308] sm:$0xff] }
 0x407   : > { %14250 = vst [vmem:[#allocation97_spill] sm:$0xff] %v9980_v60  ;;  %v13891_v36 = vmax.f32 %v9980_v60, 0.0 }
 0x409   : > { %4293 = vmatmul.f32.gmra.mxu2 %v13891_v36 }
 0x40a   : > { %v2355_v42 = vpop.f32.mrf.mxu0  ;;  %v2996_v12 = vpop.f32.mrf.mxu1 }
 0x40b   : > { %v3460_v24 = vmax.f32 %v2355_v42, %v2996_v12 }
 0x40c   : > { %v9988_v54 = vpop.f32.mrf.mxu2 }
 0x40d   : > { %14251 = vst [vmem:[#allocation98_spill] sm:$0xff] %v9988_v54  ;;  %v9991_v18 = vadd.f32 %v9691_v0, %v3460_v24  ;;  %7734 = vmatmul.msk.f32.gmra.mxu0 %vm1473_vm0, %v1345_v30  ;;  %7942 = vmatmul.msk.f32.gmra.mxu1 %vm1473_vm0, %v1345_v30  ;;  %v1347_v54 = vld [vmem:[%s9033_s21 + $0x310] sm:$0xff] }
 0x40f   : > { %14252 = vst [vmem:[#allocation99_spill] sm:$0xff] %v9991_v18  ;;  %v13893_v6 = vmax.f32 %v9991_v18, 0.0 }
 0x411   : > { %4296 = vmatmul.f32.gmra.mxu2 %v13893_v6 }
 0x412   : > { %v2358_v3 = vpop.f32.mrf.mxu0  ;;  %v2999_v36 = vpop.f32.mrf.mxu1 }
 0x413   : > { %v3461_v60 = vmax.f32 %v2358_v3, %v2999_v36 }
 0x414   : > { %v9999_v12 = vpop.f32.mrf.mxu2 }
 0x415   : > { %14253 = vst [vmem:[#allocation100_spill] sm:$0xff] %v9999_v12  ;;  %v10002_v42 = vadd.f32 %v9691_v0, %v3461_v60  ;;  %7735 = vmatmul.msk.f32.gmra.mxu0 %vm1473_vm0, %v1346_v48  ;;  %7943 = vmatmul.msk.f32.gmra.mxu1 %vm1473_vm0, %v1346_v48 }
 0x417   : > { %14254 = vst [vmem:[#allocation101_spill] sm:$0xff] %v10002_v42  ;;  %v13895_v30 = vmax.f32 %v10002_v42, 0.0  ;;  %v1348_v42 = vld [vmem:[%s9033_s21 + $0x318] sm:$0xff] }
 0x419   : > { %4299 = vmatmul.f32.gmra.mxu2 %v13895_v30 }
 0x41a   : > { %v2361_v24 = vpop.f32.mrf.mxu0  ;;  %v3002_v6 = vpop.f32.mrf.mxu1 }
 0x41b   : > { %v3462_v18 = vmax.f32 %v2361_v24, %v3002_v6 }
 0x41c   : > { %v10010_v36 = vpop.f32.mrf.mxu2 }
 0x41d   : > { %14255 = vst [vmem:[#allocation102_spill] sm:$0xff] %v10010_v36  ;;  %v10013_v3 = vadd.f32 %v9691_v0, %v3462_v18  ;;  %7736 = vmatmul.msk.f32.gmra.mxu0 %vm1473_vm0, %v1347_v54  ;;  %7944 = vmatmul.msk.f32.gmra.mxu1 %vm1473_vm0, %v1347_v54 }
 0x41f   : > { %14256 = vst [vmem:[#allocation103_spill] sm:$0xff] %v10013_v3  ;;  %v13897_v48 = vmax.f32 %v10013_v3, 0.0  ;;  %v1349_v3 = vld [vmem:[%s9033_s21 + $0x320] sm:$0xff] }
 0x421   : > { %4302 = vmatmul.f32.gmra.mxu2 %v13897_v48 }
 0x422   : > { %v2364_v60 = vpop.f32.mrf.mxu0  ;;  %v3005_v30 = vpop.f32.mrf.mxu1 }
 0x423   : > { %v3463_v12 = vmax.f32 %v2364_v60, %v3005_v30 }
 0x424   : > { %v10021_v6 = vpop.f32.mrf.mxu2 }
 0x425   : > { %14257 = vst [vmem:[#allocation104_spill] sm:$0xff] %v10021_v6  ;;  %v10024_v24 = vadd.f32 %v9691_v0, %v3463_v12  ;;  %7737 = vmatmul.msk.f32.gmra.mxu0 %vm1473_vm0, %v1348_v42  ;;  %7945 = vmatmul.msk.f32.gmra.mxu1 %vm1473_vm0, %v1348_v42 }
 0x427   : > { %14258 = vst [vmem:[#allocation105_spill] sm:$0xff] %v10024_v24  ;;  %v13899_v54 = vmax.f32 %v10024_v24, 0.0  ;;  %v1350_v24 = vld [vmem:[%s9033_s21 + $0x328] sm:$0xff] }
 0x429   : > { %4305 = vmatmul.f32.gmra.mxu2 %v13899_v54 }
 0x42a   : > { %v2367_v18 = vpop.f32.mrf.mxu0  ;;  %v3008_v48 = vpop.f32.mrf.mxu1 }
 0x42b   : > { %v3464_v36 = vmax.f32 %v2367_v18, %v3008_v48 }
 0x42c   : > { %v10032_v30 = vpop.f32.mrf.mxu2 }
 0x42d   : > { %14259 = vst [vmem:[#allocation106_spill] sm:$0xff] %v10032_v30  ;;  %v10035_v60 = vadd.f32 %v9691_v0, %v3464_v36  ;;  %7738 = vmatmul.msk.f32.gmra.mxu0 %vm1473_vm0, %v1349_v3  ;;  %7946 = vmatmul.msk.f32.gmra.mxu1 %vm1473_vm0, %v1349_v3 }
 0x42f   : > { %14260 = vst [vmem:[#allocation107_spill] sm:$0xff] %v10035_v60  ;;  %v13901_v12 = vmax.f32 %v10035_v60, 0.0  ;;  %v1351_v60 = vld [vmem:[%s9033_s21 + $0x330] sm:$0xff] }
 0x431   : > { %4308 = vmatmul.f32.gmra.mxu2 %v13901_v12 }
 0x432   : > { %v2370_v42 = vpop.f32.mrf.mxu0  ;;  %v3011_v54 = vpop.f32.mrf.mxu1 }
 0x433   : > { %v3465_v6 = vmax.f32 %v2370_v42, %v3011_v54 }
 0x434   : > { %v10043_v48 = vpop.f32.mrf.mxu2 }
 0x435   : > { %14261 = vst [vmem:[#allocation108_spill] sm:$0xff] %v10043_v48  ;;  %v10046_v18 = vadd.f32 %v9691_v0, %v3465_v6  ;;  %7739 = vmatmul.msk.f32.gmra.mxu0 %vm1473_vm0, %v1350_v24  ;;  %7947 = vmatmul.msk.f32.gmra.mxu1 %vm1473_vm0, %v1350_v24 }
 0x437   : > { %14262 = vst [vmem:[#allocation109_spill] sm:$0xff] %v10046_v18  ;;  %v13903_v36 = vmax.f32 %v10046_v18, 0.0  ;;  %v1352_v18 = vld [vmem:[%s9033_s21 + $0x338] sm:$0xff] }
 0x439   : > { %4311 = vmatmul.f32.gmra.mxu2 %v13903_v36 }
 0x43a   : > { %v2373_v3 = vpop.f32.mrf.mxu0  ;;  %v3014_v12 = vpop.f32.mrf.mxu1 }
 0x43b   : > { %v3466_v30 = vmax.f32 %v2373_v3, %v3014_v12 }
 0x43c   : > { %v10054_v54 = vpop.f32.mrf.mxu2 }
 0x43d   : > { %14263 = vst [vmem:[#allocation110_spill] sm:$0xff] %v10054_v54  ;;  %v10057_v42 = vadd.f32 %v9691_v0, %v3466_v30  ;;  %7740 = vmatmul.msk.f32.gmra.mxu0 %vm1473_vm0, %v1351_v60  ;;  %7948 = vmatmul.msk.f32.gmra.mxu1 %vm1473_vm0, %v1351_v60 }
 0x43f   : > { %14264 = vst [vmem:[#allocation111_spill] sm:$0xff] %v10057_v42  ;;  %v13905_v6 = vmax.f32 %v10057_v42, 0.0  ;;  %v1353_v42 = vld [vmem:[%s9033_s21 + $0x340] sm:$0xff] }
 0x441   : > { %4314 = vmatmul.f32.gmra.mxu2 %v13905_v6 }
 0x442   : > { %v2376_v24 = vpop.f32.mrf.mxu0  ;;  %v3017_v36 = vpop.f32.mrf.mxu1 }
 0x443   : > { %v3467_v48 = vmax.f32 %v2376_v24, %v3017_v36 }
 0x444   : > { %v10065_v12 = vpop.f32.mrf.mxu2 }
 0x445   : > { %14265 = vst [vmem:[#allocation112_spill] sm:$0xff] %v10065_v12  ;;  %v10068_v3 = vadd.f32 %v9691_v0, %v3467_v48  ;;  %7741 = vmatmul.msk.f32.gmra.mxu0 %vm1473_vm0, %v1352_v18  ;;  %7949 = vmatmul.msk.f32.gmra.mxu1 %vm1473_vm0, %v1352_v18 }
 0x447   : > { %14266 = vst [vmem:[#allocation113_spill] sm:$0xff] %v10068_v3  ;;  %v13907_v30 = vmax.f32 %v10068_v3, 0.0  ;;  %v1354_v3 = vld [vmem:[%s9033_s21 + $0x348] sm:$0xff] }
 0x449   : > { %4317 = vmatmul.f32.gmra.mxu2 %v13907_v30 }
 0x44a   : > { %v2379_v60 = vpop.f32.mrf.mxu0  ;;  %v3020_v6 = vpop.f32.mrf.mxu1 }
 0x44b   : > { %v3468_v54 = vmax.f32 %v2379_v60, %v3020_v6 }
 0x44c   : > { %v10076_v36 = vpop.f32.mrf.mxu2 }
 0x44d   : > { %14267 = vst [vmem:[#allocation114_spill] sm:$0xff] %v10076_v36  ;;  %v10079_v24 = vadd.f32 %v9691_v0, %v3468_v54  ;;  %7742 = vmatmul.msk.f32.gmra.mxu0 %vm1473_vm0, %v1353_v42  ;;  %7950 = vmatmul.msk.f32.gmra.mxu1 %vm1473_vm0, %v1353_v42 }
 0x44f   : > { %14268 = vst [vmem:[#allocation115_spill] sm:$0xff] %v10079_v24  ;;  %v13909_v48 = vmax.f32 %v10079_v24, 0.0  ;;  %v1355_v24 = vld [vmem:[%s9033_s21 + $0x350] sm:$0xff] }
 0x451   : > { %4320 = vmatmul.f32.gmra.mxu2 %v13909_v48 }
 0x452   : > { %v2382_v18 = vpop.f32.mrf.mxu0  ;;  %v3023_v30 = vpop.f32.mrf.mxu1 }
 0x453   : > { %v3469_v12 = vmax.f32 %v2382_v18, %v3023_v30 }
 0x454   : > { %v10087_v6 = vpop.f32.mrf.mxu2 }
 0x455   : > { %14269 = vst [vmem:[#allocation116_spill] sm:$0xff] %v10087_v6  ;;  %v10090_v60 = vadd.f32 %v9691_v0, %v3469_v12  ;;  %7743 = vmatmul.msk.f32.gmra.mxu0 %vm1473_vm0, %v1354_v3  ;;  %7951 = vmatmul.msk.f32.gmra.mxu1 %vm1473_vm0, %v1354_v3 }
 0x457   : > { %14270 = vst [vmem:[#allocation117_spill] sm:$0xff] %v10090_v60  ;;  %v13911_v54 = vmax.f32 %v10090_v60, 0.0  ;;  %v1356_v60 = vld [vmem:[%s9033_s21 + $0x358] sm:$0xff] }
 0x459   : > { %4323 = vmatmul.f32.gmra.mxu2 %v13911_v54 }
 0x45a   : > { %v2385_v42 = vpop.f32.mrf.mxu0  ;;  %v3026_v48 = vpop.f32.mrf.mxu1 }
 0x45b   : > { %v3470_v36 = vmax.f32 %v2385_v42, %v3026_v48 }
 0x45c   : > { %v10098_v30 = vpop.f32.mrf.mxu2 }
 0x45d   : > { %14271 = vst [vmem:[#allocation118_spill] sm:$0xff] %v10098_v30  ;;  %v10101_v18 = vadd.f32 %v9691_v0, %v3470_v36  ;;  %7744 = vmatmul.msk.f32.gmra.mxu0 %vm1473_vm0, %v1355_v24  ;;  %7952 = vmatmul.msk.f32.gmra.mxu1 %vm1473_vm0, %v1355_v24 }
 0x45f   : > { %14272 = vst [vmem:[#allocation119_spill] sm:$0xff] %v10101_v18  ;;  %v13913_v12 = vmax.f32 %v10101_v18, 0.0  ;;  %v1357_v18 = vld [vmem:[%s9033_s21 + $0x360] sm:$0xff] }
 0x461   : > { %4326 = vmatmul.f32.gmra.mxu2 %v13913_v12 }
 0x462   : > { %v2388_v3 = vpop.f32.mrf.mxu0  ;;  %v3029_v54 = vpop.f32.mrf.mxu1 }
 0x463   : > { %v3471_v6 = vmax.f32 %v2388_v3, %v3029_v54 }
 0x464   : > { %v10109_v48 = vpop.f32.mrf.mxu2 }
 0x465   : > { %14273 = vst [vmem:[#allocation120_spill] sm:$0xff] %v10109_v48  ;;  %v10112_v42 = vadd.f32 %v9691_v0, %v3471_v6  ;;  %7745 = vmatmul.msk.f32.gmra.mxu0 %vm1473_vm0, %v1356_v60  ;;  %7953 = vmatmul.msk.f32.gmra.mxu1 %vm1473_vm0, %v1356_v60 }
 0x467   : > { %14274 = vst [vmem:[#allocation121_spill] sm:$0xff] %v10112_v42  ;;  %v13915_v36 = vmax.f32 %v10112_v42, 0.0  ;;  %v1358_v42 = vld [vmem:[%s9033_s21 + $0x368] sm:$0xff] }
 0x469   : > { %4329 = vmatmul.f32.gmra.mxu2 %v13915_v36 }
 0x46a   : > { %v2391_v24 = vpop.f32.mrf.mxu0  ;;  %v3032_v12 = vpop.f32.mrf.mxu1 }
 0x46b   : > { %v3472_v30 = vmax.f32 %v2391_v24, %v3032_v12 }
 0x46c   : > { %v10120_v54 = vpop.f32.mrf.mxu2 }
 0x46d   : > { %14275 = vst [vmem:[#allocation122_spill] sm:$0xff] %v10120_v54  ;;  %v10123_v3 = vadd.f32 %v9691_v0, %v3472_v30  ;;  %7746 = vmatmul.msk.f32.gmra.mxu0 %vm1473_vm0, %v1357_v18  ;;  %7954 = vmatmul.msk.f32.gmra.mxu1 %vm1473_vm0, %v1357_v18 }
 0x46f   : > { %14276 = vst [vmem:[#allocation123_spill] sm:$0xff] %v10123_v3  ;;  %v13917_v6 = vmax.f32 %v10123_v3, 0.0  ;;  %v1359_v3 = vld [vmem:[%s9033_s21 + $0x370] sm:$0xff] }
 0x471   : > { %4332 = vmatmul.f32.gmra.mxu2 %v13917_v6 }
 0x472   : > { %v2394_v60 = vpop.f32.mrf.mxu0  ;;  %v3035_v36 = vpop.f32.mrf.mxu1 }
 0x473   : > { %v3473_v48 = vmax.f32 %v2394_v60, %v3035_v36 }
 0x474   : > { %v10131_v12 = vpop.f32.mrf.mxu2 }
 0x475   : > { %14277 = vst [vmem:[#allocation124_spill] sm:$0xff] %v10131_v12  ;;  %v10134_v24 = vadd.f32 %v9691_v0, %v3473_v48  ;;  %7747 = vmatmul.msk.f32.gmra.mxu0 %vm1473_vm0, %v1358_v42  ;;  %7955 = vmatmul.msk.f32.gmra.mxu1 %vm1473_vm0, %v1358_v42 }
 0x477   : > { %14278 = vst [vmem:[#allocation125_spill] sm:$0xff] %v10134_v24  ;;  %v13919_v30 = vmax.f32 %v10134_v24, 0.0  ;;  %v1360_v24 = vld [vmem:[%s9033_s21 + $0x378] sm:$0xff] }
 0x479   : > { %4335 = vmatmul.f32.gmra.mxu2 %v13919_v30 }
 0x47a   : > { %v2397_v18 = vpop.f32.mrf.mxu0  ;;  %v3038_v6 = vpop.f32.mrf.mxu1 }
 0x47b   : > { %v3474_v54 = vmax.f32 %v2397_v18, %v3038_v6 }
 0x47c   : > { %v10142_v36 = vpop.f32.mrf.mxu2 }
 0x47d   : > { %14279 = vst [vmem:[#allocation126_spill] sm:$0xff] %v10142_v36  ;;  %v10145_v60 = vadd.f32 %v9691_v0, %v3474_v54  ;;  %7748 = vmatmul.msk.f32.gmra.mxu0 %vm1473_vm0, %v1359_v3  ;;  %7956 = vmatmul.msk.f32.gmra.mxu1 %vm1473_vm0, %v1359_v3 }
 0x47f   : > { %14280 = vst [vmem:[#allocation127_spill] sm:$0xff] %v10145_v60  ;;  %v13921_v48 = vmax.f32 %v10145_v60, 0.0  ;;  %v1361_v60 = vld [vmem:[%s9033_s21 + $0x380] sm:$0xff] }
 0x481   : > { %4338 = vmatmul.f32.gmra.mxu2 %v13921_v48 }
 0x482   : > { %v2400_v42 = vpop.f32.mrf.mxu0  ;;  %v3041_v30 = vpop.f32.mrf.mxu1 }
 0x483   : > { %v3475_v12 = vmax.f32 %v2400_v42, %v3041_v30 }
 0x484   : > { %v10153_v6 = vpop.f32.mrf.mxu2 }
 0x485   : > { %14281 = vst [vmem:[#allocation128_spill] sm:$0xff] %v10153_v6  ;;  %v10156_v18 = vadd.f32 %v9691_v0, %v3475_v12  ;;  %7749 = vmatmul.msk.f32.gmra.mxu0 %vm1473_vm0, %v1360_v24  ;;  %7957 = vmatmul.msk.f32.gmra.mxu1 %vm1473_vm0, %v1360_v24 }
 0x487   : > { %14282 = vst [vmem:[#allocation129_spill] sm:$0xff] %v10156_v18  ;;  %v13923_v54 = vmax.f32 %v10156_v18, 0.0  ;;  %v1362_v18 = vld [vmem:[%s9033_s21 + $0x388] sm:$0xff] }
 0x489   : > { %4341 = vmatmul.f32.gmra.mxu2 %v13923_v54 }
 0x48a   : > { %v2403_v3 = vpop.f32.mrf.mxu0  ;;  %v3044_v48 = vpop.f32.mrf.mxu1 }
 0x48b   : > { %v3476_v36 = vmax.f32 %v2403_v3, %v3044_v48 }
 0x48c   : > { %v10164_v30 = vpop.f32.mrf.mxu2 }
 0x48d   : > { %14283 = vst [vmem:[#allocation130_spill] sm:$0xff] %v10164_v30  ;;  %v10167_v42 = vadd.f32 %v9691_v0, %v3476_v36  ;;  %7750 = vmatmul.msk.f32.gmra.mxu0 %vm1473_vm0, %v1361_v60  ;;  %7958 = vmatmul.msk.f32.gmra.mxu1 %vm1473_vm0, %v1361_v60 }
 0x48f   : > { %14284 = vst [vmem:[#allocation131_spill] sm:$0xff] %v10167_v42  ;;  %v13925_v12 = vmax.f32 %v10167_v42, 0.0  ;;  %v1363_v42 = vld [vmem:[%s9033_s21 + $0x390] sm:$0xff] }
 0x491   : > { %4344 = vmatmul.f32.gmra.mxu2 %v13925_v12 }
 0x492   : > { %v2406_v24 = vpop.f32.mrf.mxu0  ;;  %v3047_v54 = vpop.f32.mrf.mxu1 }
 0x493   : > { %v3477_v6 = vmax.f32 %v2406_v24, %v3047_v54 }
 0x494   : > { %v10175_v48 = vpop.f32.mrf.mxu2 }
 0x495   : > { %14285 = vst [vmem:[#allocation132_spill] sm:$0xff] %v10175_v48  ;;  %v10178_v3 = vadd.f32 %v9691_v0, %v3477_v6  ;;  %7751 = vmatmul.msk.f32.gmra.mxu0 %vm1473_vm0, %v1362_v18  ;;  %7959 = vmatmul.msk.f32.gmra.mxu1 %vm1473_vm0, %v1362_v18 }
 0x497   : > { %14286 = vst [vmem:[#allocation133_spill] sm:$0xff] %v10178_v3  ;;  %v13927_v36 = vmax.f32 %v10178_v3, 0.0  ;;  %v1364_v3 = vld [vmem:[%s9033_s21 + $0x398] sm:$0xff] }
 0x499   : > { %4347 = vmatmul.f32.gmra.mxu2 %v13927_v36 }
 0x49a   : > { %v2409_v60 = vpop.f32.mrf.mxu0  ;;  %v3050_v12 = vpop.f32.mrf.mxu1 }
 0x49b   : > { %v3478_v30 = vmax.f32 %v2409_v60, %v3050_v12 }
 0x49c   : > { %v10186_v54 = vpop.f32.mrf.mxu2 }
 0x49d   : > { %14287 = vst [vmem:[#allocation134_spill] sm:$0xff] %v10186_v54  ;;  %v10189_v24 = vadd.f32 %v9691_v0, %v3478_v30  ;;  %7752 = vmatmul.msk.f32.gmra.mxu0 %vm1473_vm0, %v1363_v42  ;;  %7960 = vmatmul.msk.f32.gmra.mxu1 %vm1473_vm0, %v1363_v42 }
 0x49f   : > { %14288 = vst [vmem:[#allocation135_spill] sm:$0xff] %v10189_v24  ;;  %v13929_v6 = vmax.f32 %v10189_v24, 0.0  ;;  %v1365_v24 = vld [vmem:[%s9033_s21 + $0x3a0] sm:$0xff] }
 0x4a1   : > { %4350 = vmatmul.f32.gmra.mxu2 %v13929_v6 }
 0x4a2   : > { %v2412_v18 = vpop.f32.mrf.mxu0  ;;  %v3053_v36 = vpop.f32.mrf.mxu1 }
 0x4a3   : > { %v3479_v48 = vmax.f32 %v2412_v18, %v3053_v36 }
 0x4a4   : > { %v10197_v12 = vpop.f32.mrf.mxu2 }
 0x4a5   : > { %14289 = vst [vmem:[#allocation136_spill] sm:$0xff] %v10197_v12  ;;  %v10200_v60 = vadd.f32 %v9691_v0, %v3479_v48  ;;  %7753 = vmatmul.msk.f32.gmra.mxu0 %vm1473_vm0, %v1364_v3  ;;  %7961 = vmatmul.msk.f32.gmra.mxu1 %vm1473_vm0, %v1364_v3 }
 0x4a7   : > { %14290 = vst [vmem:[#allocation137_spill] sm:$0xff] %v10200_v60  ;;  %v13931_v30 = vmax.f32 %v10200_v60, 0.0  ;;  %v1366_v60 = vld [vmem:[%s9033_s21 + $0x3a8] sm:$0xff] }
 0x4a9   : > { %4353 = vmatmul.f32.gmra.mxu2 %v13931_v30 }
 0x4aa   : > { %v2415_v42 = vpop.f32.mrf.mxu0  ;;  %v3056_v6 = vpop.f32.mrf.mxu1 }
 0x4ab   : > { %v3480_v54 = vmax.f32 %v2415_v42, %v3056_v6 }
 0x4ac   : > { %v10208_v36 = vpop.f32.mrf.mxu2 }
 0x4ad   : > { %14291 = vst [vmem:[#allocation138_spill] sm:$0xff] %v10208_v36  ;;  %v10211_v18 = vadd.f32 %v9691_v0, %v3480_v54  ;;  %7754 = vmatmul.msk.f32.gmra.mxu0 %vm1473_vm0, %v1365_v24  ;;  %7962 = vmatmul.msk.f32.gmra.mxu1 %vm1473_vm0, %v1365_v24 }
 0x4af   : > { %14292 = vst [vmem:[#allocation139_spill] sm:$0xff] %v10211_v18  ;;  %v13933_v48 = vmax.f32 %v10211_v18, 0.0  ;;  %v1367_v18 = vld [vmem:[%s9033_s21 + $0x3b0] sm:$0xff] }
 0x4b1   : > { %4356 = vmatmul.f32.gmra.mxu2 %v13933_v48 }
 0x4b2   : > { %v2418_v3 = vpop.f32.mrf.mxu0  ;;  %v3059_v30 = vpop.f32.mrf.mxu1 }
 0x4b3   : > { %v3481_v12 = vmax.f32 %v2418_v3, %v3059_v30 }
 0x4b4   : > { %v10219_v6 = vpop.f32.mrf.mxu2 }
 0x4b5   : > { %14293 = vst [vmem:[#allocation140_spill] sm:$0xff] %v10219_v6  ;;  %v10222_v42 = vadd.f32 %v9691_v0, %v3481_v12  ;;  %7755 = vmatmul.msk.f32.gmra.mxu0 %vm1473_vm0, %v1366_v60  ;;  %7963 = vmatmul.msk.f32.gmra.mxu1 %vm1473_vm0, %v1366_v60 }
 0x4b7   : > { %14294 = vst [vmem:[#allocation141_spill] sm:$0xff] %v10222_v42  ;;  %v13935_v54 = vmax.f32 %v10222_v42, 0.0  ;;  %v1368_v42 = vld [vmem:[%s9033_s21 + $0x3b8] sm:$0xff] }
 0x4b9   : > { %4359 = vmatmul.f32.gmra.mxu2 %v13935_v54 }
 0x4ba   : > { %v2421_v24 = vpop.f32.mrf.mxu0  ;;  %v3062_v48 = vpop.f32.mrf.mxu1 }
 0x4bb   : > { %v3482_v36 = vmax.f32 %v2421_v24, %v3062_v48 }
 0x4bc   : > { %v10230_v30 = vpop.f32.mrf.mxu2 }
 0x4bd   : > { %14295 = vst [vmem:[#allocation142_spill] sm:$0xff] %v10230_v30  ;;  %v10233_v3 = vadd.f32 %v9691_v0, %v3482_v36  ;;  %7756 = vmatmul.msk.f32.gmra.mxu0 %vm1473_vm0, %v1367_v18  ;;  %7964 = vmatmul.msk.f32.gmra.mxu1 %vm1473_vm0, %v1367_v18 }
 0x4bf   : > { %14296 = vst [vmem:[#allocation143_spill] sm:$0xff] %v10233_v3  ;;  %v13937_v12 = vmax.f32 %v10233_v3, 0.0  ;;  %v1369_v3 = vld [vmem:[%s9033_s21 + $0x3c0] sm:$0xff] }
 0x4c1   : > { %4362 = vmatmul.f32.gmra.mxu2 %v13937_v12 }
 0x4c2   : > { %v2424_v60 = vpop.f32.mrf.mxu0  ;;  %v3065_v54 = vpop.f32.mrf.mxu1 }
 0x4c3   : > { %v3483_v6 = vmax.f32 %v2424_v60, %v3065_v54 }
 0x4c4   : > { %v10241_v48 = vpop.f32.mrf.mxu2 }
 0x4c5   : > { %14297 = vst [vmem:[#allocation144_spill] sm:$0xff] %v10241_v48  ;;  %v10244_v24 = vadd.f32 %v9691_v0, %v3483_v6  ;;  %7757 = vmatmul.msk.f32.gmra.mxu0 %vm1473_vm0, %v1368_v42  ;;  %7965 = vmatmul.msk.f32.gmra.mxu1 %vm1473_vm0, %v1368_v42 }
 0x4c7   : > { %14298 = vst [vmem:[#allocation145_spill] sm:$0xff] %v10244_v24  ;;  %v13939_v36 = vmax.f32 %v10244_v24, 0.0  ;;  %v1370_v24 = vld [vmem:[%s9033_s21 + $0x3c8] sm:$0xff] }
 0x4c9   : > { %4365 = vmatmul.f32.gmra.mxu2 %v13939_v36 }
 0x4ca   : > { %v2427_v18 = vpop.f32.mrf.mxu0  ;;  %v3068_v12 = vpop.f32.mrf.mxu1 }
 0x4cb   : > { %v3484_v30 = vmax.f32 %v2427_v18, %v3068_v12 }
 0x4cc   : > { %v10252_v54 = vpop.f32.mrf.mxu2 }
 0x4cd   : > { %14299 = vst [vmem:[#allocation146_spill] sm:$0xff] %v10252_v54  ;;  %v10255_v60 = vadd.f32 %v9691_v0, %v3484_v30  ;;  %7758 = vmatmul.msk.f32.gmra.mxu0 %vm1473_vm0, %v1369_v3  ;;  %7966 = vmatmul.msk.f32.gmra.mxu1 %vm1473_vm0, %v1369_v3  ;;  %v10268_v0 = vld [vmem:[%s13756_s2] ss:$0 sm:$0xff] }
 0x4cf   : > { %14300 = vst [vmem:[#allocation147_spill] sm:$0xff] %v10255_v60  ;;  %v13941_v6 = vmax.f32 %v10255_v60, 0.0 }
 0x4d1   : > { %4368 = vmatmul.f32.gmra.mxu2 %v13941_v6 }
 0x4d2   : > { %v2430_v42 = vpop.f32.mrf.mxu0  ;;  %v3071_v36 = vpop.f32.mrf.mxu1 }
 0x4d3   : > { %v3485_v48 = vmax.f32 %v2430_v42, %v3071_v36  ;;  %v1371_v42 = vld [vmem:[%s9033_s21 + $0x3d0] sm:$0xff] }
 0x4d4   : > { %v10263_v12 = vpop.f32.mrf.mxu2 }
 0x4d5   : > { %14301 = vst [vmem:[#allocation148_spill] sm:$0xff] %v10263_v12  ;;  %v10271_v30 = vadd.f32 %v10268_v0, %v3485_v48  ;;  %7759 = vmatmul.msk.f32.gmra.mxu0 %vm1473_vm0, %v1370_v24  ;;  %7967 = vmatmul.msk.f32.gmra.mxu1 %vm1473_vm0, %v1370_v24 }
 0x4d7   : > { %14302 = vst [vmem:[#allocation149_spill] sm:$0xff] %v10271_v30  ;;  %v13943_v3 = vmax.f32 %v10271_v30, 0.0  ;;  %v1372_v30 = vld [vmem:[%s9033_s21 + $0x3d8] sm:$0xff] }
 0x4d9   : > { %4371 = vmatmul.f32.gmra.mxu2 %v13943_v3 }
 0x4da   : > { %v2433_v36 = vpop.f32.mrf.mxu0  ;;  %v3074_v18 = vpop.f32.mrf.mxu1 }
 0x4db   : > { %v3486_v6 = vmax.f32 %v2433_v36, %v3074_v18 }
 0x4dc   : > { %v10279_v12 = vpop.f32.mrf.mxu2 }
 0x4dd   : > { %14303 = vst [vmem:[#allocation150_spill] sm:$0xff] %v10279_v12  ;;  %v10282_v60 = vadd.f32 %v10268_v0, %v3486_v6  ;;  %7760 = vmatmul.msk.f32.gmra.mxu0 %vm1473_vm0, %v1371_v42  ;;  %7968 = vmatmul.msk.f32.gmra.mxu1 %vm1473_vm0, %v1371_v42 }
 0x4df   : > { %14304 = vst [vmem:[#allocation151_spill] sm:$0xff] %v10282_v60  ;;  %v13945_v48 = vmax.f32 %v10282_v60, 0.0  ;;  %v1373_v60 = vld [vmem:[%s9033_s21 + $0x3e0] sm:$0xff] }
 0x4e1   : > { %4374 = vmatmul.f32.gmra.mxu2 %v13945_v48 }
 0x4e2   : > { %v2436_v24 = vpop.f32.mrf.mxu0  ;;  %v3077_v3 = vpop.f32.mrf.mxu1 }
 0x4e3   : > { %v3487_v54 = vmax.f32 %v2436_v24, %v3077_v3 }
 0x4e4   : > { %v10290_v36 = vpop.f32.mrf.mxu2 }
 0x4e5   : > { %14305 = vst [vmem:[#allocation152_spill] sm:$0xff] %v10290_v36  ;;  %v10293_v18 = vadd.f32 %v10268_v0, %v3487_v54  ;;  %7761 = vmatmul.msk.f32.gmra.mxu0 %vm1473_vm0, %v1372_v30  ;;  %7969 = vmatmul.msk.f32.gmra.mxu1 %vm1473_vm0, %v1372_v30 }
 0x4e7   : > { %14306 = vst [vmem:[#allocation153_spill] sm:$0xff] %v10293_v18  ;;  %v13947_v6 = vmax.f32 %v10293_v18, 0.0  ;;  %v1374_v18 = vld [vmem:[%s9033_s21 + $0x3e8] sm:$0xff] }
 0x4e9   : > { %4377 = vmatmul.f32.gmra.mxu2 %v13947_v6 }
 0x4ea   : > { %v2439_v42 = vpop.f32.mrf.mxu0  ;;  %v3080_v48 = vpop.f32.mrf.mxu1 }
 0x4eb   : > { %v3488_v12 = vmax.f32 %v2439_v42, %v3080_v48 }
 0x4ec   : > { %v10301_v3 = vpop.f32.mrf.mxu2 }
 0x4ed   : > { %14307 = vst [vmem:[#allocation154_spill] sm:$0xff] %v10301_v3  ;;  %v10304_v24 = vadd.f32 %v10268_v0, %v3488_v12  ;;  %7762 = vmatmul.msk.f32.gmra.mxu0 %vm1473_vm0, %v1373_v60  ;;  %7970 = vmatmul.msk.f32.gmra.mxu1 %vm1473_vm0, %v1373_v60 }
 0x4ef   : > { %14308 = vst [vmem:[#allocation155_spill] sm:$0xff] %v10304_v24  ;;  %v13949_v54 = vmax.f32 %v10304_v24, 0.0  ;;  %v1375_v24 = vld [vmem:[%s9033_s21 + $0x3f0] sm:$0xff] }
 0x4f1   : > { %4380 = vmatmul.f32.gmra.mxu2 %v13949_v54 }
 0x4f2   : > { %v2442_v30 = vpop.f32.mrf.mxu0  ;;  %v3083_v6 = vpop.f32.mrf.mxu1 }
 0x4f3   : > { %v3489_v36 = vmax.f32 %v2442_v30, %v3083_v6 }
 0x4f4   : > { %v10312_v48 = vpop.f32.mrf.mxu2 }
 0x4f5   : > { %14309 = vst [vmem:[#allocation156_spill] sm:$0xff] %v10312_v48  ;;  %v10315_v42 = vadd.f32 %v10268_v0, %v3489_v36  ;;  %7763 = vmatmul.msk.f32.gmra.mxu0 %vm1473_vm0, %v1374_v18  ;;  %7971 = vmatmul.msk.f32.gmra.mxu1 %vm1473_vm0, %v1374_v18 }
 0x4f7   : > { %14310 = vst [vmem:[#allocation157_spill] sm:$0xff] %v10315_v42  ;;  %v13951_v60 = vmax.f32 %v10315_v42, 0.0  ;;  %v1376_v42 = vld [vmem:[%s9033_s21 + $0x3f8] sm:$0xff] }
 0x4f9   : > { %4383 = vmatmul.f32.gmra.mxu2 %v13951_v60 }
 0x4fa   : > { %v2445_v12 = vpop.f32.mrf.mxu0  ;;  %v3086_v54 = vpop.f32.mrf.mxu1 }
 0x4fb   : > { %v3490_v3 = vmax.f32 %v2445_v12, %v3086_v54 }
 0x4fc   : > { %v10323_v6 = vpop.f32.mrf.mxu2 }
 0x4fd   : > { %14311 = vst [vmem:[#allocation158_spill] sm:$0xff] %v10323_v6  ;;  %v10326_v30 = vadd.f32 %v10268_v0, %v3490_v3  ;;  %7764 = vmatmul.msk.f32.gmra.mxu0 %vm1473_vm0, %v1375_v24  ;;  %7972 = vmatmul.msk.f32.gmra.mxu1 %vm1473_vm0, %v1375_v24 }
 0x4ff   : > { %14312 = vst [vmem:[#allocation159_spill] sm:$0xff] %v10326_v30  ;;  %v13953_v36 = vmax.f32 %v10326_v30, 0.0  ;;  %v1377_v30 = vld [vmem:[%s9033_s21 + $0x400] sm:$0xff] }
 0x501   : > { %4386 = vmatmul.f32.gmra.mxu2 %v13953_v36 }
 0x502   : > { %v2448_v18 = vpop.f32.mrf.mxu0  ;;  %v3089_v60 = vpop.f32.mrf.mxu1 }
 0x503   : > { %v3491_v48 = vmax.f32 %v2448_v18, %v3089_v60 }
 0x504   : > { %v10334_v54 = vpop.f32.mrf.mxu2 }
 0x505   : > { %14313 = vst [vmem:[#allocation160_spill] sm:$0xff] %v10334_v54  ;;  %v10337_v12 = vadd.f32 %v10268_v0, %v3491_v48  ;;  %7765 = vmatmul.msk.f32.gmra.mxu0 %vm1473_vm0, %v1376_v42  ;;  %7973 = vmatmul.msk.f32.gmra.mxu1 %vm1473_vm0, %v1376_v42 }
 0x507   : > { %14314 = vst [vmem:[#allocation161_spill] sm:$0xff] %v10337_v12  ;;  %v13955_v3 = vmax.f32 %v10337_v12, 0.0  ;;  %v1378_v12 = vld [vmem:[%s9033_s21 + $0x408] sm:$0xff] }
 0x509   : > { %4389 = vmatmul.f32.gmra.mxu2 %v13955_v3 }
 0x50a   : > { %v2451_v24 = vpop.f32.mrf.mxu0  ;;  %v3092_v36 = vpop.f32.mrf.mxu1 }
 0x50b   : > { %v3492_v6 = vmax.f32 %v2451_v24, %v3092_v36 }
 0x50c   : > { %v10345_v60 = vpop.f32.mrf.mxu2 }
 0x50d   : > { %14315 = vst [vmem:[#allocation162_spill] sm:$0xff] %v10345_v60  ;;  %v10348_v18 = vadd.f32 %v10268_v0, %v3492_v6  ;;  %7766 = vmatmul.msk.f32.gmra.mxu0 %vm1473_vm0, %v1377_v30  ;;  %7974 = vmatmul.msk.f32.gmra.mxu1 %vm1473_vm0, %v1377_v30 }
 0x50f   : > { %14316 = vst [vmem:[#allocation163_spill] sm:$0xff] %v10348_v18  ;;  %v13957_v48 = vmax.f32 %v10348_v18, 0.0  ;;  %v1379_v18 = vld [vmem:[%s9033_s21 + $0x410] sm:$0xff] }
 0x511   : > { %4392 = vmatmul.f32.gmra.mxu2 %v13957_v48 }
 0x512   : > { %v2454_v42 = vpop.f32.mrf.mxu0  ;;  %v3095_v3 = vpop.f32.mrf.mxu1 }
 0x513   : > { %v3493_v54 = vmax.f32 %v2454_v42, %v3095_v3 }
 0x514   : > { %v10356_v36 = vpop.f32.mrf.mxu2 }
 0x515   : > { %14317 = vst [vmem:[#allocation164_spill] sm:$0xff] %v10356_v36  ;;  %v10359_v24 = vadd.f32 %v10268_v0, %v3493_v54  ;;  %7767 = vmatmul.msk.f32.gmra.mxu0 %vm1473_vm0, %v1378_v12  ;;  %7975 = vmatmul.msk.f32.gmra.mxu1 %vm1473_vm0, %v1378_v12 }
 0x517   : > { %14318 = vst [vmem:[#allocation165_spill] sm:$0xff] %v10359_v24  ;;  %v13959_v6 = vmax.f32 %v10359_v24, 0.0  ;;  %v1380_v24 = vld [vmem:[%s9033_s21 + $0x418] sm:$0xff] }
 0x519   : > { %4395 = vmatmul.f32.gmra.mxu2 %v13959_v6 }
 0x51a   : > { %v2457_v30 = vpop.f32.mrf.mxu0  ;;  %v3098_v48 = vpop.f32.mrf.mxu1 }
 0x51b   : > { %v3494_v60 = vmax.f32 %v2457_v30, %v3098_v48 }
 0x51c   : > { %v10367_v3 = vpop.f32.mrf.mxu2 }
 0x51d   : > { %14319 = vst [vmem:[#allocation166_spill] sm:$0xff] %v10367_v3  ;;  %v10370_v42 = vadd.f32 %v10268_v0, %v3494_v60  ;;  %7768 = vmatmul.msk.f32.gmra.mxu0 %vm1473_vm0, %v1379_v18  ;;  %7976 = vmatmul.msk.f32.gmra.mxu1 %vm1473_vm0, %v1379_v18 }
 0x51f   : > { %14320 = vst [vmem:[#allocation167_spill] sm:$0xff] %v10370_v42  ;;  %v13961_v54 = vmax.f32 %v10370_v42, 0.0  ;;  %v1381_v42 = vld [vmem:[%s9033_s21 + $0x420] sm:$0xff] }
 0x521   : > { %4398 = vmatmul.f32.gmra.mxu2 %v13961_v54 }
 0x522   : > { %v2460_v12 = vpop.f32.mrf.mxu0  ;;  %v3101_v6 = vpop.f32.mrf.mxu1 }
 0x523   : > { %v3495_v36 = vmax.f32 %v2460_v12, %v3101_v6 }
 0x524   : > { %v10378_v48 = vpop.f32.mrf.mxu2 }
 0x525   : > { %14321 = vst [vmem:[#allocation168_spill] sm:$0xff] %v10378_v48  ;;  %v10381_v30 = vadd.f32 %v10268_v0, %v3495_v36  ;;  %7769 = vmatmul.msk.f32.gmra.mxu0 %vm1473_vm0, %v1380_v24  ;;  %7977 = vmatmul.msk.f32.gmra.mxu1 %vm1473_vm0, %v1380_v24 }
 0x527   : > { %14322 = vst [vmem:[#allocation169_spill] sm:$0xff] %v10381_v30  ;;  %v13963_v60 = vmax.f32 %v10381_v30, 0.0  ;;  %v1382_v30 = vld [vmem:[%s9033_s21 + $0x428] sm:$0xff] }
 0x529   : > { %4401 = vmatmul.f32.gmra.mxu2 %v13963_v60 }
 0x52a   : > { %v2463_v18 = vpop.f32.mrf.mxu0  ;;  %v3104_v54 = vpop.f32.mrf.mxu1 }
 0x52b   : > { %v3496_v3 = vmax.f32 %v2463_v18, %v3104_v54 }
 0x52c   : > { %v10389_v6 = vpop.f32.mrf.mxu2 }
 0x52d   : > { %14323 = vst [vmem:[#allocation170_spill] sm:$0xff] %v10389_v6  ;;  %v10392_v12 = vadd.f32 %v10268_v0, %v3496_v3  ;;  %7770 = vmatmul.msk.f32.gmra.mxu0 %vm1473_vm0, %v1381_v42  ;;  %7978 = vmatmul.msk.f32.gmra.mxu1 %vm1473_vm0, %v1381_v42 }
 0x52f   : > { %14324 = vst [vmem:[#allocation171_spill] sm:$0xff] %v10392_v12  ;;  %v13965_v36 = vmax.f32 %v10392_v12, 0.0  ;;  %v1383_v12 = vld [vmem:[%s9033_s21 + $0x430] sm:$0xff] }
 0x531   : > { %4404 = vmatmul.f32.gmra.mxu2 %v13965_v36 }
 0x532   : > { %v2466_v24 = vpop.f32.mrf.mxu0  ;;  %v3107_v60 = vpop.f32.mrf.mxu1 }
 0x533   : > { %v3497_v48 = vmax.f32 %v2466_v24, %v3107_v60 }
 0x534   : > { %v10400_v54 = vpop.f32.mrf.mxu2 }
 0x535   : > { %14325 = vst [vmem:[#allocation172_spill] sm:$0xff] %v10400_v54  ;;  %v10403_v18 = vadd.f32 %v10268_v0, %v3497_v48  ;;  %7771 = vmatmul.msk.f32.gmra.mxu0 %vm1473_vm0, %v1382_v30  ;;  %7979 = vmatmul.msk.f32.gmra.mxu1 %vm1473_vm0, %v1382_v30 }
 0x537   : > { %14326 = vst [vmem:[#allocation173_spill] sm:$0xff] %v10403_v18  ;;  %v13967_v3 = vmax.f32 %v10403_v18, 0.0  ;;  %v1384_v18 = vld [vmem:[%s9033_s21 + $0x438] sm:$0xff] }
 0x539   : > { %4407 = vmatmul.f32.gmra.mxu2 %v13967_v3 }
 0x53a   : > { %v2469_v42 = vpop.f32.mrf.mxu0  ;;  %v3110_v36 = vpop.f32.mrf.mxu1 }
 0x53b   : > { %v3498_v6 = vmax.f32 %v2469_v42, %v3110_v36 }
 0x53c   : > { %v10411_v60 = vpop.f32.mrf.mxu2 }
 0x53d   : > { %14327 = vst [vmem:[#allocation174_spill] sm:$0xff] %v10411_v60  ;;  %v10414_v24 = vadd.f32 %v10268_v0, %v3498_v6  ;;  %7772 = vmatmul.msk.f32.gmra.mxu0 %vm1473_vm0, %v1383_v12  ;;  %7980 = vmatmul.msk.f32.gmra.mxu1 %vm1473_vm0, %v1383_v12 }
 0x53f   : > { %14328 = vst [vmem:[#allocation175_spill] sm:$0xff] %v10414_v24  ;;  %v13969_v48 = vmax.f32 %v10414_v24, 0.0  ;;  %v1385_v24 = vld [vmem:[%s9033_s21 + $0x440] sm:$0xff] }
 0x541   : > { %4410 = vmatmul.f32.gmra.mxu2 %v13969_v48 }
 0x542   : > { %v2472_v30 = vpop.f32.mrf.mxu0  ;;  %v3113_v3 = vpop.f32.mrf.mxu1 }
 0x543   : > { %v3499_v54 = vmax.f32 %v2472_v30, %v3113_v3 }
 0x544   : > { %v10422_v36 = vpop.f32.mrf.mxu2 }
 0x545   : > { %14329 = vst [vmem:[#allocation176_spill] sm:$0xff] %v10422_v36  ;;  %v10425_v42 = vadd.f32 %v10268_v0, %v3499_v54  ;;  %7773 = vmatmul.msk.f32.gmra.mxu0 %vm1473_vm0, %v1384_v18  ;;  %7981 = vmatmul.msk.f32.gmra.mxu1 %vm1473_vm0, %v1384_v18 }
 0x547   : > { %14330 = vst [vmem:[#allocation177_spill] sm:$0xff] %v10425_v42  ;;  %v13971_v6 = vmax.f32 %v10425_v42, 0.0  ;;  %v1386_v42 = vld [vmem:[%s9033_s21 + $0x448] sm:$0xff] }
 0x549   : > { %4413 = vmatmul.f32.gmra.mxu2 %v13971_v6 }
 0x54a   : > { %v2475_v12 = vpop.f32.mrf.mxu0  ;;  %v3116_v48 = vpop.f32.mrf.mxu1 }
 0x54b   : > { %v3500_v60 = vmax.f32 %v2475_v12, %v3116_v48 }
 0x54c   : > { %v10433_v3 = vpop.f32.mrf.mxu2 }
 0x54d   : > { %14331 = vst [vmem:[#allocation178_spill] sm:$0xff] %v10433_v3  ;;  %v10436_v30 = vadd.f32 %v10268_v0, %v3500_v60  ;;  %7774 = vmatmul.msk.f32.gmra.mxu0 %vm1473_vm0, %v1385_v24  ;;  %7982 = vmatmul.msk.f32.gmra.mxu1 %vm1473_vm0, %v1385_v24 }
 0x54f   : > { %14332 = vst [vmem:[#allocation179_spill] sm:$0xff] %v10436_v30  ;;  %v13973_v54 = vmax.f32 %v10436_v30, 0.0  ;;  %v1387_v30 = vld [vmem:[%s9033_s21 + $0x450] sm:$0xff] }
 0x551   : > { %4416 = vmatmul.f32.gmra.mxu2 %v13973_v54 }
 0x552   : > { %v2478_v18 = vpop.f32.mrf.mxu0  ;;  %v3119_v6 = vpop.f32.mrf.mxu1 }
 0x553   : > { %v3501_v36 = vmax.f32 %v2478_v18, %v3119_v6 }
 0x554   : > { %v10444_v48 = vpop.f32.mrf.mxu2 }
 0x555   : > { %14333 = vst [vmem:[#allocation180_spill] sm:$0xff] %v10444_v48  ;;  %v10447_v12 = vadd.f32 %v10268_v0, %v3501_v36  ;;  %7775 = vmatmul.msk.f32.gmra.mxu0 %vm1473_vm0, %v1386_v42  ;;  %7983 = vmatmul.msk.f32.gmra.mxu1 %vm1473_vm0, %v1386_v42 }
 0x557   : > { %14334 = vst [vmem:[#allocation181_spill] sm:$0xff] %v10447_v12  ;;  %v13975_v60 = vmax.f32 %v10447_v12, 0.0  ;;  %v1388_v12 = vld [vmem:[%s9033_s21 + $0x458] sm:$0xff] }
 0x559   : > { %4419 = vmatmul.f32.gmra.mxu2 %v13975_v60 }
 0x55a   : > { %v2481_v24 = vpop.f32.mrf.mxu0  ;;  %v3122_v54 = vpop.f32.mrf.mxu1 }
 0x55b   : > { %v3502_v3 = vmax.f32 %v2481_v24, %v3122_v54 }
 0x55c   : > { %v10455_v6 = vpop.f32.mrf.mxu2 }
 0x55d   : > { %14335 = vst [vmem:[#allocation182_spill] sm:$0xff] %v10455_v6  ;;  %v10458_v18 = vadd.f32 %v10268_v0, %v3502_v3  ;;  %7776 = vmatmul.msk.f32.gmra.mxu0 %vm1473_vm0, %v1387_v30  ;;  %7984 = vmatmul.msk.f32.gmra.mxu1 %vm1473_vm0, %v1387_v30 }
 0x55f   : > { %14336 = vst [vmem:[#allocation183_spill] sm:$0xff] %v10458_v18  ;;  %v13977_v36 = vmax.f32 %v10458_v18, 0.0  ;;  %v1389_v18 = vld [vmem:[%s9033_s21 + $0x460] sm:$0xff] }
 0x561   : > { %4422 = vmatmul.f32.gmra.mxu2 %v13977_v36 }
 0x562   : > { %v2484_v42 = vpop.f32.mrf.mxu0  ;;  %v3125_v60 = vpop.f32.mrf.mxu1 }
 0x563   : > { %v3503_v48 = vmax.f32 %v2484_v42, %v3125_v60 }
 0x564   : > { %v10466_v54 = vpop.f32.mrf.mxu2 }
 0x565   : > { %14337 = vst [vmem:[#allocation184_spill] sm:$0xff] %v10466_v54  ;;  %v10469_v24 = vadd.f32 %v10268_v0, %v3503_v48  ;;  %7777 = vmatmul.msk.f32.gmra.mxu0 %vm1473_vm0, %v1388_v12  ;;  %7985 = vmatmul.msk.f32.gmra.mxu1 %vm1473_vm0, %v1388_v12 }
 0x567   : > { %14338 = vst [vmem:[#allocation185_spill] sm:$0xff] %v10469_v24  ;;  %v13979_v3 = vmax.f32 %v10469_v24, 0.0  ;;  %v1390_v24 = vld [vmem:[%s9033_s21 + $0x468] sm:$0xff] }
 0x569   : > { %4425 = vmatmul.f32.gmra.mxu2 %v13979_v3 }
 0x56a   : > { %v2487_v30 = vpop.f32.mrf.mxu0  ;;  %v3128_v36 = vpop.f32.mrf.mxu1 }
 0x56b   : > { %v3504_v6 = vmax.f32 %v2487_v30, %v3128_v36 }
 0x56c   : > { %v10477_v60 = vpop.f32.mrf.mxu2 }
 0x56d   : > { %14339 = vst [vmem:[#allocation186_spill] sm:$0xff] %v10477_v60  ;;  %v10480_v42 = vadd.f32 %v10268_v0, %v3504_v6  ;;  %7778 = vmatmul.msk.f32.gmra.mxu0 %vm1473_vm0, %v1389_v18  ;;  %7986 = vmatmul.msk.f32.gmra.mxu1 %vm1473_vm0, %v1389_v18 }
 0x56f   : > { %14340 = vst [vmem:[#allocation187_spill] sm:$0xff] %v10480_v42  ;;  %v13981_v48 = vmax.f32 %v10480_v42, 0.0  ;;  %v1391_v42 = vld [vmem:[%s9033_s21 + $0x470] sm:$0xff] }
 0x571   : > { %4428 = vmatmul.f32.gmra.mxu2 %v13981_v48 }
 0x572   : > { %v2490_v12 = vpop.f32.mrf.mxu0  ;;  %v3131_v3 = vpop.f32.mrf.mxu1 }
 0x573   : > { %v3505_v54 = vmax.f32 %v2490_v12, %v3131_v3 }
 0x574   : > { %v10488_v36 = vpop.f32.mrf.mxu2 }
 0x575   : > { %14341 = vst [vmem:[#allocation188_spill] sm:$0xff] %v10488_v36  ;;  %v10491_v30 = vadd.f32 %v10268_v0, %v3505_v54  ;;  %7779 = vmatmul.msk.f32.gmra.mxu0 %vm1473_vm0, %v1390_v24  ;;  %7987 = vmatmul.msk.f32.gmra.mxu1 %vm1473_vm0, %v1390_v24 }
 0x577   : > { %14342 = vst [vmem:[#allocation189_spill] sm:$0xff] %v10491_v30  ;;  %v13983_v6 = vmax.f32 %v10491_v30, 0.0  ;;  %v1392_v30 = vld [vmem:[%s9033_s21 + $0x478] sm:$0xff] }
 0x579   : > { %4431 = vmatmul.f32.gmra.mxu2 %v13983_v6 }
 0x57a   : > { %v2493_v18 = vpop.f32.mrf.mxu0  ;;  %v3134_v48 = vpop.f32.mrf.mxu1 }
 0x57b   : > { %v3506_v60 = vmax.f32 %v2493_v18, %v3134_v48 }
 0x57c   : > { %v10499_v3 = vpop.f32.mrf.mxu2 }
 0x57d   : > { %14343 = vst [vmem:[#allocation190_spill] sm:$0xff] %v10499_v3  ;;  %v10502_v12 = vadd.f32 %v10268_v0, %v3506_v60  ;;  %7780 = vmatmul.msk.f32.gmra.mxu0 %vm1473_vm0, %v1391_v42  ;;  %7988 = vmatmul.msk.f32.gmra.mxu1 %vm1473_vm0, %v1391_v42 }
 0x57f   : > { %14344 = vst [vmem:[#allocation191_spill] sm:$0xff] %v10502_v12  ;;  %v13985_v54 = vmax.f32 %v10502_v12, 0.0  ;;  %v1393_v12 = vld [vmem:[%s9033_s21 + $0x480] sm:$0xff] }
 0x581   : > { %4434 = vmatmul.f32.gmra.mxu2 %v13985_v54 }
 0x582   : > { %v2496_v24 = vpop.f32.mrf.mxu0  ;;  %v3137_v6 = vpop.f32.mrf.mxu1 }
 0x583   : > { %v3507_v36 = vmax.f32 %v2496_v24, %v3137_v6 }
 0x584   : > { %v10510_v48 = vpop.f32.mrf.mxu2 }
 0x585   : > { %14345 = vst [vmem:[#allocation192_spill] sm:$0xff] %v10510_v48  ;;  %v10513_v18 = vadd.f32 %v10268_v0, %v3507_v36  ;;  %7781 = vmatmul.msk.f32.gmra.mxu0 %vm1473_vm0, %v1392_v30  ;;  %7989 = vmatmul.msk.f32.gmra.mxu1 %vm1473_vm0, %v1392_v30 }
 0x587   : > { %14346 = vst [vmem:[#allocation193_spill] sm:$0xff] %v10513_v18  ;;  %v13987_v60 = vmax.f32 %v10513_v18, 0.0  ;;  %v1394_v18 = vld [vmem:[%s9033_s21 + $0x488] sm:$0xff] }
 0x589   : > { %4437 = vmatmul.f32.gmra.mxu2 %v13987_v60 }
 0x58a   : > { %v2499_v42 = vpop.f32.mrf.mxu0  ;;  %v3140_v54 = vpop.f32.mrf.mxu1 }
 0x58b   : > { %v3508_v3 = vmax.f32 %v2499_v42, %v3140_v54 }
 0x58c   : > { %v10521_v6 = vpop.f32.mrf.mxu2 }
 0x58d   : > { %14347 = vst [vmem:[#allocation194_spill] sm:$0xff] %v10521_v6  ;;  %v10524_v24 = vadd.f32 %v10268_v0, %v3508_v3  ;;  %7782 = vmatmul.msk.f32.gmra.mxu0 %vm1473_vm0, %v1393_v12  ;;  %7990 = vmatmul.msk.f32.gmra.mxu1 %vm1473_vm0, %v1393_v12 }
 0x58f   : > { %14348 = vst [vmem:[#allocation195_spill] sm:$0xff] %v10524_v24  ;;  %v13989_v36 = vmax.f32 %v10524_v24, 0.0  ;;  %v1395_v24 = vld [vmem:[%s9033_s21 + $0x490] sm:$0xff] }
 0x591   : > { %4440 = vmatmul.f32.gmra.mxu2 %v13989_v36 }
 0x592   : > { %v2502_v30 = vpop.f32.mrf.mxu0  ;;  %v3143_v60 = vpop.f32.mrf.mxu1 }
 0x593   : > { %v3509_v48 = vmax.f32 %v2502_v30, %v3143_v60 }
 0x594   : > { %v10532_v54 = vpop.f32.mrf.mxu2 }
 0x595   : > { %14349 = vst [vmem:[#allocation196_spill] sm:$0xff] %v10532_v54  ;;  %v10535_v42 = vadd.f32 %v10268_v0, %v3509_v48  ;;  %7783 = vmatmul.msk.f32.gmra.mxu0 %vm1473_vm0, %v1394_v18  ;;  %7991 = vmatmul.msk.f32.gmra.mxu1 %vm1473_vm0, %v1394_v18  ;;  %v1396_v54 = vld [vmem:[%s9033_s21 + $0x498] sm:$0xff] }
 0x597   : > { %14350 = vst [vmem:[#allocation197_spill] sm:$0xff] %v10535_v42  ;;  %v13991_v3 = vmax.f32 %v10535_v42, 0.0 }
 0x599   : > { %4443 = vmatmul.f32.gmra.mxu2 %v13991_v3 }
 0x59a   : > { %v2505_v12 = vpop.f32.mrf.mxu0  ;;  %v3146_v36 = vpop.f32.mrf.mxu1 }
 0x59b   : > { %v3510_v6 = vmax.f32 %v2505_v12, %v3146_v36 }
 0x59c   : > { %v10543_v60 = vpop.f32.mrf.mxu2 }
 0x59d   : > { %14351 = vst [vmem:[#allocation198_spill] sm:$0xff] %v10543_v60  ;;  %v10546_v30 = vadd.f32 %v10268_v0, %v3510_v6  ;;  %7784 = vmatmul.msk.f32.gmra.mxu0 %vm1473_vm0, %v1395_v24  ;;  %7992 = vmatmul.msk.f32.gmra.mxu1 %vm1473_vm0, %v1395_v24  ;;  %v1397_v60 = vld [vmem:[%s9033_s21 + $0x4a0] sm:$0xff] }
 0x59f   : > { %14352 = vst [vmem:[#allocation199_spill] sm:$0xff] %v10546_v30  ;;  %v13993_v48 = vmax.f32 %v10546_v30, 0.0 }
 0x5a1   : > { %4446 = vmatmul.f32.gmra.mxu2 %v13993_v48 }
 0x5a2   : > { %v2508_v18 = vpop.f32.mrf.mxu0  ;;  %v3149_v3 = vpop.f32.mrf.mxu1 }
 0x5a3   : > { %v3511_v42 = vmax.f32 %v2508_v18, %v3149_v3 }
 0x5a4   : > { %v10554_v36 = vpop.f32.mrf.mxu2 }
 0x5a5   : > { %14353 = vst [vmem:[#allocation200_spill] sm:$0xff] %v10554_v36  ;;  %v10557_v12 = vadd.f32 %v10268_v0, %v3511_v42  ;;  %7785 = vmatmul.msk.f32.gmra.mxu0 %vm1473_vm0, %v1396_v54  ;;  %7993 = vmatmul.msk.f32.gmra.mxu1 %vm1473_vm0, %v1396_v54  ;;  %v1398_v36 = vld [vmem:[%s9033_s21 + $0x4a8] sm:$0xff] }
 0x5a7   : > { %14354 = vst [vmem:[#allocation201_spill] sm:$0xff] %v10557_v12  ;;  %v13995_v6 = vmax.f32 %v10557_v12, 0.0 }
 0x5a9   : > { %4449 = vmatmul.f32.gmra.mxu2 %v13995_v6 }
 0x5aa   : > { %v2511_v24 = vpop.f32.mrf.mxu0  ;;  %v3152_v48 = vpop.f32.mrf.mxu1 }
 0x5ab   : > { %v3512_v30 = vmax.f32 %v2511_v24, %v3152_v48 }
 0x5ac   : > { %v10565_v3 = vpop.f32.mrf.mxu2 }
 0x5ad   : > { %14355 = vst [vmem:[#allocation202_spill] sm:$0xff] %v10565_v3  ;;  %v10568_v18 = vadd.f32 %v10268_v0, %v3512_v30  ;;  %7786 = vmatmul.msk.f32.gmra.mxu0 %vm1473_vm0, %v1397_v60  ;;  %7994 = vmatmul.msk.f32.gmra.mxu1 %vm1473_vm0, %v1397_v60  ;;  %v1399_v3 = vld [vmem:[%s9033_s21 + $0x4b0] sm:$0xff] }
 0x5af   : > { %14356 = vst [vmem:[#allocation203_spill] sm:$0xff] %v10568_v18  ;;  %v13997_v54 = vmax.f32 %v10568_v18, 0.0 }
 0x5b1   : > { %4452 = vmatmul.f32.gmra.mxu2 %v13997_v54 }
 0x5b2   : > { %v2514_v42 = vpop.f32.mrf.mxu0  ;;  %v3155_v6 = vpop.f32.mrf.mxu1 }
 0x5b3   : > { %v3513_v12 = vmax.f32 %v2514_v42, %v3155_v6 }
 0x5b4   : > { %v10576_v48 = vpop.f32.mrf.mxu2 }
 0x5b5   : > { %14357 = vst [vmem:[#allocation204_spill] sm:$0xff] %v10576_v48  ;;  %v10579_v24 = vadd.f32 %v10268_v0, %v3513_v12  ;;  %7787 = vmatmul.msk.f32.gmra.mxu0 %vm1473_vm0, %v1398_v36  ;;  %7995 = vmatmul.msk.f32.gmra.mxu1 %vm1473_vm0, %v1398_v36  ;;  %v1400_v48 = vld [vmem:[%s9033_s21 + $0x4b8] sm:$0xff] }
 0x5b7   : > { %14358 = vst [vmem:[#allocation205_spill] sm:$0xff] %v10579_v24  ;;  %v13999_v60 = vmax.f32 %v10579_v24, 0.0 }
 0x5b9   : > { %4455 = vmatmul.f32.gmra.mxu2 %v13999_v60 }
 0x5ba   : > { %v2517_v30 = vpop.f32.mrf.mxu0  ;;  %v3158_v54 = vpop.f32.mrf.mxu1 }
 0x5bb   : > { %v3514_v18 = vmax.f32 %v2517_v30, %v3158_v54 }
 0x5bc   : > { %v10587_v6 = vpop.f32.mrf.mxu2 }
 0x5bd   : > { %14359 = vst [vmem:[#allocation206_spill] sm:$0xff] %v10587_v6  ;;  %v10590_v42 = vadd.f32 %v10268_v0, %v3514_v18  ;;  %7788 = vmatmul.msk.f32.gmra.mxu0 %vm1473_vm0, %v1399_v3  ;;  %7996 = vmatmul.msk.f32.gmra.mxu1 %vm1473_vm0, %v1399_v3  ;;  %v1401_v6 = vld [vmem:[%s9033_s21 + $0x4c0] sm:$0xff] }
 0x5bf   : > { %14360 = vst [vmem:[#allocation207_spill] sm:$0xff] %v10590_v42  ;;  %v14001_v36 = vmax.f32 %v10590_v42, 0.0 }
 0x5c1   : > { %4458 = vmatmul.f32.gmra.mxu2 %v14001_v36 }
 0x5c2   : > { %v2520_v12 = vpop.f32.mrf.mxu0  ;;  %v3161_v60 = vpop.f32.mrf.mxu1 }
 0x5c3   : > { %v3515_v24 = vmax.f32 %v2520_v12, %v3161_v60 }
 0x5c4   : > { %v10598_v54 = vpop.f32.mrf.mxu2 }
 0x5c5   : > { %14361 = vst [vmem:[#allocation208_spill] sm:$0xff] %v10598_v54  ;;  %v10601_v30 = vadd.f32 %v10268_v0, %v3515_v24  ;;  %7789 = vmatmul.msk.f32.gmra.mxu0 %vm1473_vm0, %v1400_v48  ;;  %7997 = vmatmul.msk.f32.gmra.mxu1 %vm1473_vm0, %v1400_v48  ;;  %v1402_v54 = vld [vmem:[%s9033_s21 + $0x4c8] sm:$0xff] }
 0x5c7   : > { %14362 = vst [vmem:[#allocation209_spill] sm:$0xff] %v10601_v30  ;;  %v14003_v3 = vmax.f32 %v10601_v30, 0.0 }
 0x5c9   : > { %4461 = vmatmul.f32.gmra.mxu2 %v14003_v3 }
 0x5ca   : > { %v2523_v18 = vpop.f32.mrf.mxu0  ;;  %v3164_v36 = vpop.f32.mrf.mxu1 }
 0x5cb   : > { %v3516_v42 = vmax.f32 %v2523_v18, %v3164_v36 }
 0x5cc   : > { %v10609_v60 = vpop.f32.mrf.mxu2 }
 0x5cd   : > { %14363 = vst [vmem:[#allocation210_spill] sm:$0xff] %v10609_v60  ;;  %v10612_v12 = vadd.f32 %v10268_v0, %v3516_v42  ;;  %7790 = vmatmul.msk.f32.gmra.mxu0 %vm1473_vm0, %v1401_v6  ;;  %7998 = vmatmul.msk.f32.gmra.mxu1 %vm1473_vm0, %v1401_v6  ;;  %v1403_v60 = vld [vmem:[%s9033_s21 + $0x4d0] sm:$0xff] }
 0x5cf   : > { %14364 = vst [vmem:[#allocation211_spill] sm:$0xff] %v10612_v12  ;;  %v14005_v48 = vmax.f32 %v10612_v12, 0.0 }
 0x5d1   : > { %4464 = vmatmul.f32.gmra.mxu2 %v14005_v48 }
 0x5d2   : > { %v2526_v24 = vpop.f32.mrf.mxu0  ;;  %v3167_v3 = vpop.f32.mrf.mxu1 }
 0x5d3   : > { %v3517_v30 = vmax.f32 %v2526_v24, %v3167_v3 }
 0x5d4   : > { %v10620_v36 = vpop.f32.mrf.mxu2 }
 0x5d5   : > { %14365 = vst [vmem:[#allocation212_spill] sm:$0xff] %v10620_v36  ;;  %v10623_v18 = vadd.f32 %v10268_v0, %v3517_v30  ;;  %7791 = vmatmul.msk.f32.gmra.mxu0 %vm1473_vm0, %v1402_v54  ;;  %7999 = vmatmul.msk.f32.gmra.mxu1 %vm1473_vm0, %v1402_v54  ;;  %v1404_v36 = vld [vmem:[%s9033_s21 + $0x4d8] sm:$0xff] }
 0x5d7   : > { %14366 = vst [vmem:[#allocation213_spill] sm:$0xff] %v10623_v18  ;;  %v14007_v6 = vmax.f32 %v10623_v18, 0.0 }
 0x5d9   : > { %4467 = vmatmul.f32.gmra.mxu2 %v14007_v6 }
 0x5da   : > { %v2529_v42 = vpop.f32.mrf.mxu0  ;;  %v3170_v48 = vpop.f32.mrf.mxu1 }
 0x5db   : > { %v3518_v12 = vmax.f32 %v2529_v42, %v3170_v48 }
 0x5dc   : > { %v10631_v3 = vpop.f32.mrf.mxu2 }
 0x5dd   : > { %14367 = vst [vmem:[#allocation214_spill] sm:$0xff] %v10631_v3  ;;  %v10634_v24 = vadd.f32 %v10268_v0, %v3518_v12  ;;  %7792 = vmatmul.msk.f32.gmra.mxu0 %vm1473_vm0, %v1403_v60  ;;  %8000 = vmatmul.msk.f32.gmra.mxu1 %vm1473_vm0, %v1403_v60  ;;  %v1405_v3 = vld [vmem:[%s9033_s21 + $0x4e0] sm:$0xff] }
 0x5df   : > { %14368 = vst [vmem:[#allocation215_spill] sm:$0xff] %v10634_v24  ;;  %v14009_v54 = vmax.f32 %v10634_v24, 0.0 }
 0x5e1   : > { %4470 = vmatmul.f32.gmra.mxu2 %v14009_v54 }
 0x5e2   : > { %v2532_v30 = vpop.f32.mrf.mxu0  ;;  %v3173_v6 = vpop.f32.mrf.mxu1 }
 0x5e3   : > { %v3519_v18 = vmax.f32 %v2532_v30, %v3173_v6 }
 0x5e4   : > { %v10642_v48 = vpop.f32.mrf.mxu2 }
 0x5e5   : > { %14369 = vst [vmem:[#allocation216_spill] sm:$0xff] %v10642_v48  ;;  %v10645_v42 = vadd.f32 %v10268_v0, %v3519_v18  ;;  %7793 = vmatmul.msk.f32.gmra.mxu0 %vm1473_vm0, %v1404_v36  ;;  %8001 = vmatmul.msk.f32.gmra.mxu1 %vm1473_vm0, %v1404_v36  ;;  %v1406_v48 = vld [vmem:[%s9033_s21 + $0x4e8] sm:$0xff] }
 0x5e7   : > { %14370 = vst [vmem:[#allocation217_spill] sm:$0xff] %v10645_v42  ;;  %v14011_v60 = vmax.f32 %v10645_v42, 0.0 }
 0x5e9   : > { %4473 = vmatmul.f32.gmra.mxu2 %v14011_v60 }
 0x5ea   : > { %v2535_v12 = vpop.f32.mrf.mxu0  ;;  %v3176_v54 = vpop.f32.mrf.mxu1 }
 0x5eb   : > { %v3520_v24 = vmax.f32 %v2535_v12, %v3176_v54 }
 0x5ec   : > { %v10653_v6 = vpop.f32.mrf.mxu2 }
 0x5ed   : > { %14371 = vst [vmem:[#allocation218_spill] sm:$0xff] %v10653_v6  ;;  %v10656_v30 = vadd.f32 %v10268_v0, %v3520_v24  ;;  %7794 = vmatmul.msk.f32.gmra.mxu0 %vm1473_vm0, %v1405_v3  ;;  %8002 = vmatmul.msk.f32.gmra.mxu1 %vm1473_vm0, %v1405_v3  ;;  %v1407_v6 = vld [vmem:[%s9033_s21 + $0x4f0] sm:$0xff] }
 0x5ef   : > { %14372 = vst [vmem:[#allocation219_spill] sm:$0xff] %v10656_v30  ;;  %v14013_v36 = vmax.f32 %v10656_v30, 0.0 }
 0x5f1   : > { %4476 = vmatmul.f32.gmra.mxu2 %v14013_v36 }
 0x5f2   : > { %v2538_v18 = vpop.f32.mrf.mxu0  ;;  %v3179_v60 = vpop.f32.mrf.mxu1 }
 0x5f3   : > { %v3521_v42 = vmax.f32 %v2538_v18, %v3179_v60 }
 0x5f4   : > { %v10664_v54 = vpop.f32.mrf.mxu2 }
 0x5f5   : > { %14373 = vst [vmem:[#allocation220_spill] sm:$0xff] %v10664_v54  ;;  %v10667_v12 = vadd.f32 %v10268_v0, %v3521_v42  ;;  %7795 = vmatmul.msk.f32.gmra.mxu0 %vm1473_vm0, %v1406_v48  ;;  %8003 = vmatmul.msk.f32.gmra.mxu1 %vm1473_vm0, %v1406_v48  ;;  %v1408_v54 = vld [vmem:[%s9033_s21 + $0x4f8] sm:$0xff] }
 0x5f7   : > { %14374 = vst [vmem:[#allocation221_spill] sm:$0xff] %v10667_v12  ;;  %v14015_v3 = vmax.f32 %v10667_v12, 0.0 }
 0x5f9   : > { %4479 = vmatmul.f32.gmra.mxu2 %v14015_v3 }
 0x5fa   : > { %v2541_v24 = vpop.f32.mrf.mxu0  ;;  %v3182_v36 = vpop.f32.mrf.mxu1 }
 0x5fb   : > { %v3522_v30 = vmax.f32 %v2541_v24, %v3182_v36 }
 0x5fc   : > { %v10675_v60 = vpop.f32.mrf.mxu2 }
 0x5fd   : > { %14375 = vst [vmem:[#allocation222_spill] sm:$0xff] %v10675_v60  ;;  %v10678_v18 = vadd.f32 %v10268_v0, %v3522_v30  ;;  %7796 = vmatmul.msk.f32.gmra.mxu0 %vm1473_vm0, %v1407_v6  ;;  %8004 = vmatmul.msk.f32.gmra.mxu1 %vm1473_vm0, %v1407_v6  ;;  %v1409_v60 = vld [vmem:[%s9033_s21 + $0x500] sm:$0xff] }
 0x5ff   : > { %14376 = vst [vmem:[#allocation223_spill] sm:$0xff] %v10678_v18  ;;  %v14017_v48 = vmax.f32 %v10678_v18, 0.0 }
 0x601   : > { %4482 = vmatmul.f32.gmra.mxu2 %v14017_v48 }
 0x602   : > { %v2544_v42 = vpop.f32.mrf.mxu0  ;;  %v3185_v3 = vpop.f32.mrf.mxu1 }
 0x603   : > { %v3523_v12 = vmax.f32 %v2544_v42, %v3185_v3 }
 0x604   : > { %v10686_v36 = vpop.f32.mrf.mxu2 }
 0x605   : > { %14377 = vst [vmem:[#allocation224_spill] sm:$0xff] %v10686_v36  ;;  %v10689_v24 = vadd.f32 %v10268_v0, %v3523_v12  ;;  %7797 = vmatmul.msk.f32.gmra.mxu0 %vm1473_vm0, %v1408_v54  ;;  %8005 = vmatmul.msk.f32.gmra.mxu1 %vm1473_vm0, %v1408_v54  ;;  %v1410_v36 = vld [vmem:[%s9033_s21 + $0x508] sm:$0xff] }
 0x607   : > { %14378 = vst [vmem:[#allocation225_spill] sm:$0xff] %v10689_v24  ;;  %v14019_v6 = vmax.f32 %v10689_v24, 0.0 }
 0x609   : > { %4485 = vmatmul.f32.gmra.mxu2 %v14019_v6 }
 0x60a   : > { %v2547_v30 = vpop.f32.mrf.mxu0  ;;  %v3188_v48 = vpop.f32.mrf.mxu1 }
 0x60b   : > { %v3524_v18 = vmax.f32 %v2547_v30, %v3188_v48 }
 0x60c   : > { %v10697_v3 = vpop.f32.mrf.mxu2 }
 0x60d   : > { %14379 = vst [vmem:[#allocation226_spill] sm:$0xff] %v10697_v3  ;;  %v10700_v42 = vadd.f32 %v10268_v0, %v3524_v18  ;;  %7798 = vmatmul.msk.f32.gmra.mxu0 %vm1473_vm0, %v1409_v60  ;;  %8006 = vmatmul.msk.f32.gmra.mxu1 %vm1473_vm0, %v1409_v60  ;;  %v1411_v3 = vld [vmem:[%s9033_s21 + $0x510] sm:$0xff] }
 0x60f   : > { %14380 = vst [vmem:[#allocation227_spill] sm:$0xff] %v10700_v42  ;;  %v14021_v54 = vmax.f32 %v10700_v42, 0.0 }
 0x611   : > { %4488 = vmatmul.f32.gmra.mxu2 %v14021_v54 }
 0x612   : > { %v2550_v12 = vpop.f32.mrf.mxu0  ;;  %v3191_v6 = vpop.f32.mrf.mxu1 }
 0x613   : > { %v3525_v24 = vmax.f32 %v2550_v12, %v3191_v6 }
 0x614   : > { %v10708_v48 = vpop.f32.mrf.mxu2 }
 0x615   : > { %14381 = vst [vmem:[#allocation228_spill] sm:$0xff] %v10708_v48  ;;  %v10711_v30 = vadd.f32 %v10268_v0, %v3525_v24  ;;  %7799 = vmatmul.msk.f32.gmra.mxu0 %vm1473_vm0, %v1410_v36  ;;  %8007 = vmatmul.msk.f32.gmra.mxu1 %vm1473_vm0, %v1410_v36 }
 0x617   : > { %14382 = vst [vmem:[#allocation229_spill] sm:$0xff] %v10711_v30  ;;  %v14023_v60 = vmax.f32 %v10711_v30, 0.0  ;;  %v1412_v30 = vld [vmem:[%s9033_s21 + $0x518] sm:$0xff] }
 0x619   : > { %4491 = vmatmul.f32.gmra.mxu2 %v14023_v60 }
 0x61a   : > { %v2553_v18 = vpop.f32.mrf.mxu0  ;;  %v3194_v54 = vpop.f32.mrf.mxu1 }
 0x61b   : > { %v3526_v42 = vmax.f32 %v2553_v18, %v3194_v54 }
 0x61c   : > { %v10719_v6 = vpop.f32.mrf.mxu2 }
 0x61d   : > { %14383 = vst [vmem:[#allocation230_spill] sm:$0xff] %v10719_v6  ;;  %v10722_v12 = vadd.f32 %v10268_v0, %v3526_v42  ;;  %7800 = vmatmul.msk.f32.gmra.mxu0 %vm1473_vm0, %v1411_v3  ;;  %8008 = vmatmul.msk.f32.gmra.mxu1 %vm1473_vm0, %v1411_v3 }
 0x61f   : > { %14384 = vst [vmem:[#allocation231_spill] sm:$0xff] %v10722_v12  ;;  %v14025_v36 = vmax.f32 %v10722_v12, 0.0  ;;  %v1413_v12 = vld [vmem:[%s9033_s21 + $0x520] sm:$0xff] }
 0x621   : > { %4494 = vmatmul.f32.gmra.mxu2 %v14025_v36 }
 0x622   : > { %v2556_v24 = vpop.f32.mrf.mxu0  ;;  %v3197_v60 = vpop.f32.mrf.mxu1 }
 0x623   : > { %v3527_v48 = vmax.f32 %v2556_v24, %v3197_v60 }
 0x624   : > { %v10730_v54 = vpop.f32.mrf.mxu2 }
 0x625   : > { %14385 = vst [vmem:[#allocation232_spill] sm:$0xff] %v10730_v54  ;;  %v10733_v18 = vadd.f32 %v10268_v0, %v3527_v48  ;;  %7801 = vmatmul.msk.f32.gmra.mxu0 %vm1473_vm0, %v1412_v30  ;;  %8009 = vmatmul.msk.f32.gmra.mxu1 %vm1473_vm0, %v1412_v30 }
 0x627   : > { %14386 = vst [vmem:[#allocation233_spill] sm:$0xff] %v10733_v18  ;;  %v14027_v3 = vmax.f32 %v10733_v18, 0.0  ;;  %v1414_v18 = vld [vmem:[%s9033_s21 + $0x528] sm:$0xff] }
 0x629   : > { %4497 = vmatmul.f32.gmra.mxu2 %v14027_v3 }
 0x62a   : > { %v2559_v42 = vpop.f32.mrf.mxu0  ;;  %v3200_v36 = vpop.f32.mrf.mxu1 }
 0x62b   : > { %v3528_v6 = vmax.f32 %v2559_v42, %v3200_v36 }
 0x62c   : > { %v10741_v60 = vpop.f32.mrf.mxu2 }
 0x62d   : > { %14387 = vst [vmem:[#allocation234_spill] sm:$0xff] %v10741_v60  ;;  %v10744_v24 = vadd.f32 %v10268_v0, %v3528_v6  ;;  %7802 = vmatmul.msk.f32.gmra.mxu0 %vm1473_vm0, %v1413_v12  ;;  %8010 = vmatmul.msk.f32.gmra.mxu1 %vm1473_vm0, %v1413_v12 }
 0x62f   : > { %14388 = vst [vmem:[#allocation235_spill] sm:$0xff] %v10744_v24  ;;  %v14029_v48 = vmax.f32 %v10744_v24, 0.0  ;;  %v1415_v24 = vld [vmem:[%s9033_s21 + $0x530] sm:$0xff] }
 0x631   : > { %4500 = vmatmul.f32.gmra.mxu2 %v14029_v48 }
 0x632   : > { %v2562_v30 = vpop.f32.mrf.mxu0  ;;  %v3203_v3 = vpop.f32.mrf.mxu1 }
 0x633   : > { %v3529_v54 = vmax.f32 %v2562_v30, %v3203_v3 }
 0x634   : > { %v10752_v36 = vpop.f32.mrf.mxu2 }
 0x635   : > { %14389 = vst [vmem:[#allocation236_spill] sm:$0xff] %v10752_v36  ;;  %v10755_v42 = vadd.f32 %v10268_v0, %v3529_v54  ;;  %7803 = vmatmul.msk.f32.gmra.mxu0 %vm1473_vm0, %v1414_v18  ;;  %8011 = vmatmul.msk.f32.gmra.mxu1 %vm1473_vm0, %v1414_v18 }
 0x637   : > { %14390 = vst [vmem:[#allocation237_spill] sm:$0xff] %v10755_v42  ;;  %v14031_v6 = vmax.f32 %v10755_v42, 0.0  ;;  %v1416_v42 = vld [vmem:[%s9033_s21 + $0x538] sm:$0xff] }
 0x639   : > { %4503 = vmatmul.f32.gmra.mxu2 %v14031_v6 }
 0x63a   : > { %v2565_v12 = vpop.f32.mrf.mxu0  ;;  %v3206_v48 = vpop.f32.mrf.mxu1 }
 0x63b   : > { %v3530_v60 = vmax.f32 %v2565_v12, %v3206_v48 }
 0x63c   : > { %v10763_v3 = vpop.f32.mrf.mxu2 }
 0x63d   : > { %14391 = vst [vmem:[#allocation238_spill] sm:$0xff] %v10763_v3  ;;  %v10766_v30 = vadd.f32 %v10268_v0, %v3530_v60  ;;  %7804 = vmatmul.msk.f32.gmra.mxu0 %vm1473_vm0, %v1415_v24  ;;  %8012 = vmatmul.msk.f32.gmra.mxu1 %vm1473_vm0, %v1415_v24 }
 0x63f   : > { %14392 = vst [vmem:[#allocation239_spill] sm:$0xff] %v10766_v30  ;;  %v14033_v54 = vmax.f32 %v10766_v30, 0.0  ;;  %v1417_v30 = vld [vmem:[%s9033_s21 + $0x540] sm:$0xff] }
 0x641   : > { %4506 = vmatmul.f32.gmra.mxu2 %v14033_v54 }
 0x642   : > { %v2568_v18 = vpop.f32.mrf.mxu0  ;;  %v3209_v6 = vpop.f32.mrf.mxu1 }
 0x643   : > { %v3531_v36 = vmax.f32 %v2568_v18, %v3209_v6 }
 0x644   : > { %v10774_v48 = vpop.f32.mrf.mxu2 }
 0x645   : > { %14393 = vst [vmem:[#allocation240_spill] sm:$0xff] %v10774_v48  ;;  %v10777_v12 = vadd.f32 %v10268_v0, %v3531_v36  ;;  %7805 = vmatmul.msk.f32.gmra.mxu0 %vm1473_vm0, %v1416_v42  ;;  %8013 = vmatmul.msk.f32.gmra.mxu1 %vm1473_vm0, %v1416_v42 }
 0x647   : > { %14394 = vst [vmem:[#allocation241_spill] sm:$0xff] %v10777_v12  ;;  %v14035_v60 = vmax.f32 %v10777_v12, 0.0  ;;  %v1418_v12 = vld [vmem:[%s9033_s21 + $0x548] sm:$0xff] }
 0x649   : > { %4509 = vmatmul.f32.gmra.mxu2 %v14035_v60 }
 0x64a   : > { %v2571_v24 = vpop.f32.mrf.mxu0  ;;  %v3212_v54 = vpop.f32.mrf.mxu1 }
 0x64b   : > { %v3532_v3 = vmax.f32 %v2571_v24, %v3212_v54 }
 0x64c   : > { %v10785_v6 = vpop.f32.mrf.mxu2 }
 0x64d   : > { %14395 = vst [vmem:[#allocation242_spill] sm:$0xff] %v10785_v6  ;;  %v10788_v18 = vadd.f32 %v10268_v0, %v3532_v3  ;;  %7806 = vmatmul.msk.f32.gmra.mxu0 %vm1473_vm0, %v1417_v30  ;;  %8014 = vmatmul.msk.f32.gmra.mxu1 %vm1473_vm0, %v1417_v30 }
 0x64f   : > { %14396 = vst [vmem:[#allocation243_spill] sm:$0xff] %v10788_v18  ;;  %v14037_v36 = vmax.f32 %v10788_v18, 0.0  ;;  %v1419_v18 = vld [vmem:[%s9033_s21 + $0x550] sm:$0xff] }
 0x651   : > { %4512 = vmatmul.f32.gmra.mxu2 %v14037_v36 }
 0x652   : > { %v2574_v42 = vpop.f32.mrf.mxu0  ;;  %v3215_v60 = vpop.f32.mrf.mxu1 }
 0x653   : > { %v3533_v48 = vmax.f32 %v2574_v42, %v3215_v60 }
 0x654   : > { %v10796_v54 = vpop.f32.mrf.mxu2 }
 0x655   : > { %14397 = vst [vmem:[#allocation244_spill] sm:$0xff] %v10796_v54  ;;  %v10799_v24 = vadd.f32 %v10268_v0, %v3533_v48  ;;  %7807 = vmatmul.msk.f32.gmra.mxu0 %vm1473_vm0, %v1418_v12  ;;  %8015 = vmatmul.msk.f32.gmra.mxu1 %vm1473_vm0, %v1418_v12 }
 0x657   : > { %14398 = vst [vmem:[#allocation245_spill] sm:$0xff] %v10799_v24  ;;  %v14039_v3 = vmax.f32 %v10799_v24, 0.0  ;;  %v1420_v24 = vld [vmem:[%s9033_s21 + $0x558] sm:$0xff] }
 0x659   : > { %4515 = vmatmul.f32.gmra.mxu2 %v14039_v3 }
 0x65a   : > { %v2577_v30 = vpop.f32.mrf.mxu0  ;;  %v3218_v36 = vpop.f32.mrf.mxu1 }
 0x65b   : > { %v3534_v6 = vmax.f32 %v2577_v30, %v3218_v36 }
 0x65c   : > { %v10807_v60 = vpop.f32.mrf.mxu2 }
 0x65d   : > { %14399 = vst [vmem:[#allocation246_spill] sm:$0xff] %v10807_v60  ;;  %v10810_v42 = vadd.f32 %v10268_v0, %v3534_v6  ;;  %7808 = vmatmul.msk.f32.gmra.mxu0 %vm1473_vm0, %v1419_v18  ;;  %8016 = vmatmul.msk.f32.gmra.mxu1 %vm1473_vm0, %v1419_v18 }
 0x65f   : > { %14400 = vst [vmem:[#allocation247_spill] sm:$0xff] %v10810_v42  ;;  %v14041_v48 = vmax.f32 %v10810_v42, 0.0  ;;  %v1421_v42 = vld [vmem:[%s9033_s21 + $0x560] sm:$0xff] }
 0x661   : > { %4518 = vmatmul.f32.gmra.mxu2 %v14041_v48 }
 0x662   : > { %v2580_v12 = vpop.f32.mrf.mxu0  ;;  %v3221_v3 = vpop.f32.mrf.mxu1 }
 0x663   : > { %v3535_v54 = vmax.f32 %v2580_v12, %v3221_v3 }
 0x664   : > { %v10818_v36 = vpop.f32.mrf.mxu2 }
 0x665   : > { %14401 = vst [vmem:[#allocation248_spill] sm:$0xff] %v10818_v36  ;;  %v10821_v30 = vadd.f32 %v10268_v0, %v3535_v54  ;;  %7809 = vmatmul.msk.f32.gmra.mxu0 %vm1473_vm0, %v1420_v24  ;;  %8017 = vmatmul.msk.f32.gmra.mxu1 %vm1473_vm0, %v1420_v24 }
 0x667   : > { %14402 = vst [vmem:[#allocation249_spill] sm:$0xff] %v10821_v30  ;;  %v14043_v6 = vmax.f32 %v10821_v30, 0.0  ;;  %v1422_v30 = vld [vmem:[%s9033_s21 + $0x568] sm:$0xff] }
 0x669   : > { %4521 = vmatmul.f32.gmra.mxu2 %v14043_v6 }
 0x66a   : > { %v2583_v18 = vpop.f32.mrf.mxu0  ;;  %v3224_v48 = vpop.f32.mrf.mxu1 }
 0x66b   : > { %v3536_v60 = vmax.f32 %v2583_v18, %v3224_v48 }
 0x66c   : > { %v10829_v3 = vpop.f32.mrf.mxu2 }
 0x66d   : > { %14403 = vst [vmem:[#allocation250_spill] sm:$0xff] %v10829_v3  ;;  %v10832_v12 = vadd.f32 %v10268_v0, %v3536_v60  ;;  %7810 = vmatmul.msk.f32.gmra.mxu0 %vm1473_vm0, %v1421_v42  ;;  %8018 = vmatmul.msk.f32.gmra.mxu1 %vm1473_vm0, %v1421_v42  ;;  %v10845_v0 = vld [vmem:[%s13756_s2] ss:$0 sm:$0xff] }
 0x66f   : > { %14404 = vst [vmem:[#allocation251_spill] sm:$0xff] %v10832_v12  ;;  %v14045_v54 = vmax.f32 %v10832_v12, 0.0 }
 0x671   : > { %4524 = vmatmul.f32.gmra.mxu2 %v14045_v54 }
 0x672   : > { %v2586_v24 = vpop.f32.mrf.mxu0  ;;  %v3227_v6 = vpop.f32.mrf.mxu1 }
 0x673   : > { %v3537_v36 = vmax.f32 %v2586_v24, %v3227_v6  ;;  %v1423_v24 = vld [vmem:[%s9033_s21 + $0x570] sm:$0xff] }
 0x674   : > { %v10840_v48 = vpop.f32.mrf.mxu2 }
 0x675   : > { %14405 = vst [vmem:[#allocation252_spill] sm:$0xff] %v10840_v48  ;;  %v10848_v60 = vadd.f32 %v10845_v0, %v3537_v36  ;;  %7811 = vmatmul.msk.f32.gmra.mxu0 %vm1473_vm0, %v1422_v30  ;;  %8019 = vmatmul.msk.f32.gmra.mxu1 %vm1473_vm0, %v1422_v30 }
 0x677   : > { %14406 = vst [vmem:[#allocation253_spill] sm:$0xff] %v10848_v60  ;;  %v14047_v42 = vmax.f32 %v10848_v60, 0.0  ;;  %v1424_v60 = vld [vmem:[%s9033_s21 + $0x578] sm:$0xff] }
 0x679   : > { %4527 = vmatmul.f32.gmra.mxu2 %v14047_v42 }
 0x67a   : > { %v2589_v6 = vpop.f32.mrf.mxu0  ;;  %v3230_v18 = vpop.f32.mrf.mxu1 }
 0x67b   : > { %v3538_v54 = vmax.f32 %v2589_v6, %v3230_v18 }
 0x67c   : > { %v10856_v48 = vpop.f32.mrf.mxu2 }
 0x67d   : > { %14407 = vst [vmem:[#allocation254_spill] sm:$0xff] %v10856_v48  ;;  %v10859_v12 = vadd.f32 %v10845_v0, %v3538_v54  ;;  %7812 = vmatmul.msk.f32.gmra.mxu0 %vm1473_vm0, %v1423_v24  ;;  %8020 = vmatmul.msk.f32.gmra.mxu1 %vm1473_vm0, %v1423_v24 }
 0x67f   : > { %14408 = vst [vmem:[#allocation255_spill] sm:$0xff] %v10859_v12  ;;  %v14049_v36 = vmax.f32 %v10859_v12, 0.0  ;;  %v1425_v12 = vld [vmem:[%s9033_s21 + $0x580] sm:$0xff] }
 0x681   : > { %4530 = vmatmul.f32.gmra.mxu2 %v14049_v36 }
 0x682   : > { %v2592_v30 = vpop.f32.mrf.mxu0  ;;  %v3233_v42 = vpop.f32.mrf.mxu1 }
 0x683   : > { %v3539_v3 = vmax.f32 %v2592_v30, %v3233_v42 }
 0x684   : > { %v10867_v6 = vpop.f32.mrf.mxu2 }
 0x685   : > { %14409 = vst [vmem:[#allocation256_spill] sm:$0xff] %v10867_v6  ;;  %v10870_v18 = vadd.f32 %v10845_v0, %v3539_v3  ;;  %7813 = vmatmul.msk.f32.gmra.mxu0 %vm1473_vm0, %v1424_v60  ;;  %8021 = vmatmul.msk.f32.gmra.mxu1 %vm1473_vm0, %v1424_v60 }
 0x687   : > { %14410 = vst [vmem:[#allocation257_spill] sm:$0xff] %v10870_v18  ;;  %v14051_v54 = vmax.f32 %v10870_v18, 0.0  ;;  %v1426_v18 = vld [vmem:[%s9033_s21 + $0x588] sm:$0xff] }
 0x689   : > { %4533 = vmatmul.f32.gmra.mxu2 %v14051_v54 }
 0x68a   : > { %v2595_v24 = vpop.f32.mrf.mxu0  ;;  %v3236_v36 = vpop.f32.mrf.mxu1 }
 0x68b   : > { %v3540_v48 = vmax.f32 %v2595_v24, %v3236_v36 }
 0x68c   : > { %v10878_v42 = vpop.f32.mrf.mxu2 }
 0x68d   : > { %14411 = vst [vmem:[#allocation258_spill] sm:$0xff] %v10878_v42  ;;  %v10881_v30 = vadd.f32 %v10845_v0, %v3540_v48  ;;  %7814 = vmatmul.msk.f32.gmra.mxu0 %vm1473_vm0, %v1425_v12  ;;  %8022 = vmatmul.msk.f32.gmra.mxu1 %vm1473_vm0, %v1425_v12 }
 0x68f   : > { %14412 = vst [vmem:[#allocation259_spill] sm:$0xff] %v10881_v30  ;;  %v14053_v3 = vmax.f32 %v10881_v30, 0.0  ;;  %v1427_v30 = vld [vmem:[%s9033_s21 + $0x590] sm:$0xff] }
 0x691   : > { %4536 = vmatmul.f32.gmra.mxu2 %v14053_v3 }
 0x692   : > { %v2598_v60 = vpop.f32.mrf.mxu0  ;;  %v3239_v54 = vpop.f32.mrf.mxu1 }
 0x693   : > { %v3541_v6 = vmax.f32 %v2598_v60, %v3239_v54 }
 0x694   : > { %v10889_v36 = vpop.f32.mrf.mxu2 }
 0x695   : > { %14413 = vst [vmem:[#allocation260_spill] sm:$0xff] %v10889_v36  ;;  %v10892_v24 = vadd.f32 %v10845_v0, %v3541_v6  ;;  %7815 = vmatmul.msk.f32.gmra.mxu0 %vm1473_vm0, %v1426_v18  ;;  %8023 = vmatmul.msk.f32.gmra.mxu1 %vm1473_vm0, %v1426_v18 }
 0x697   : > { %14414 = vst [vmem:[#allocation261_spill] sm:$0xff] %v10892_v24  ;;  %v14055_v12 = vmax.f32 %v10892_v24, 0.0  ;;  %v1428_v24 = vld [vmem:[%s9033_s21 + $0x598] sm:$0xff] }
 0x699   : > { %4539 = vmatmul.f32.gmra.mxu2 %v14055_v12 }
 0x69a   : > { %v2601_v48 = vpop.f32.mrf.mxu0  ;;  %v3242_v3 = vpop.f32.mrf.mxu1 }
 0x69b   : > { %v3542_v42 = vmax.f32 %v2601_v48, %v3242_v3 }
 0x69c   : > { %v10900_v54 = vpop.f32.mrf.mxu2 }
 0x69d   : > { %14415 = vst [vmem:[#allocation262_spill] sm:$0xff] %v10900_v54  ;;  %v10903_v60 = vadd.f32 %v10845_v0, %v3542_v42  ;;  %7816 = vmatmul.msk.f32.gmra.mxu0 %vm1473_vm0, %v1427_v30  ;;  %8024 = vmatmul.msk.f32.gmra.mxu1 %vm1473_vm0, %v1427_v30 }
 0x69f   : > { %14416 = vst [vmem:[#allocation263_spill] sm:$0xff] %v10903_v60  ;;  %v14057_v6 = vmax.f32 %v10903_v60, 0.0  ;;  %v1429_v60 = vld [vmem:[%s9033_s21 + $0x5a0] sm:$0xff] }
 0x6a1   : > { %4542 = vmatmul.f32.gmra.mxu2 %v14057_v6 }
 0x6a2   : > { %v2604_v18 = vpop.f32.mrf.mxu0  ;;  %v3245_v12 = vpop.f32.mrf.mxu1 }
 0x6a3   : > { %v3543_v36 = vmax.f32 %v2604_v18, %v3245_v12 }
 0x6a4   : > { %v10911_v3 = vpop.f32.mrf.mxu2 }
 0x6a5   : > { %14417 = vst [vmem:[#allocation264_spill] sm:$0xff] %v10911_v3  ;;  %v10914_v48 = vadd.f32 %v10845_v0, %v3543_v36  ;;  %7817 = vmatmul.msk.f32.gmra.mxu0 %vm1473_vm0, %v1428_v24  ;;  %8025 = vmatmul.msk.f32.gmra.mxu1 %vm1473_vm0, %v1428_v24 }
 0x6a7   : > { %14418 = vst [vmem:[#allocation265_spill] sm:$0xff] %v10914_v48  ;;  %v14059_v42 = vmax.f32 %v10914_v48, 0.0  ;;  %v1430_v48 = vld [vmem:[%s9033_s21 + $0x5a8] sm:$0xff] }
 0x6a9   : > { %4545 = vmatmul.f32.gmra.mxu2 %v14059_v42 }
 0x6aa   : > { %v2607_v30 = vpop.f32.mrf.mxu0  ;;  %v3248_v6 = vpop.f32.mrf.mxu1 }
 0x6ab   : > { %v3544_v54 = vmax.f32 %v2607_v30, %v3248_v6 }
 0x6ac   : > { %v10922_v12 = vpop.f32.mrf.mxu2 }
 0x6ad   : > { %14419 = vst [vmem:[#allocation266_spill] sm:$0xff] %v10922_v12  ;;  %v10925_v18 = vadd.f32 %v10845_v0, %v3544_v54  ;;  %7818 = vmatmul.msk.f32.gmra.mxu0 %vm1473_vm0, %v1429_v60  ;;  %8026 = vmatmul.msk.f32.gmra.mxu1 %vm1473_vm0, %v1429_v60 }
 0x6af   : > { %14420 = vst [vmem:[#allocation267_spill] sm:$0xff] %v10925_v18  ;;  %v14061_v36 = vmax.f32 %v10925_v18, 0.0  ;;  %v1431_v18 = vld [vmem:[%s9033_s21 + $0x5b0] sm:$0xff] }
 0x6b1   : > { %4548 = vmatmul.f32.gmra.mxu2 %v14061_v36 }
 0x6b2   : > { %v2610_v24 = vpop.f32.mrf.mxu0  ;;  %v3251_v42 = vpop.f32.mrf.mxu1 }
 0x6b3   : > { %v3545_v3 = vmax.f32 %v2610_v24, %v3251_v42 }
 0x6b4   : > { %v10936_v30 = vpop.f32.mrf.mxu2 }
 0x6b5   : > { %v10934_v6 = vadd.f32 %v10845_v0, %v3545_v3  ;;  %14422 = vst [vmem:[#allocation269_spill] sm:$0xff] %v10936_v30  ;;  %7819 = vmatmul.msk.f32.gmra.mxu0 %vm1473_vm0, %v1430_v48  ;;  %8027 = vmatmul.msk.f32.gmra.mxu1 %vm1473_vm0, %v1430_v48 }
 0x6b7   : > { %14421 = vst [vmem:[#allocation268_spill] sm:$0xff] %v10934_v6  ;;  %v14063_v54 = vmax.f32 %v10934_v6, 0.0  ;;  %v1432_v6 = vld [vmem:[%s9033_s21 + $0x5b8] sm:$0xff] }
 0x6b9   : > { %4551 = vmatmul.f32.gmra.mxu2 %v14063_v54 }
 0x6ba   : > { %v2613_v60 = vpop.f32.mrf.mxu0  ;;  %v3254_v36 = vpop.f32.mrf.mxu1 }
 0x6bb   : > { %v3546_v12 = vmax.f32 %v2613_v60, %v3254_v36 }
 0x6bc   : > { %v10949_v3 = vpop.f32.mrf.mxu2 }
 0x6bd   : > { %v10945_v42 = vadd.f32 %v10845_v0, %v3546_v12  ;;  %7820 = vmatmul.msk.f32.gmra.mxu0 %vm1473_vm0, %v1431_v18  ;;  %8028 = vmatmul.msk.f32.gmra.mxu1 %vm1473_vm0, %v1431_v18  ;;  %14424 = vst [vmem:[#allocation271_spill] sm:$0xff] %v10949_v3 }
 0x6bf   : > { %14423 = vst [vmem:[#allocation270_spill] sm:$0xff] %v10945_v42  ;;  %v14065_v48 = vmax.f32 %v10945_v42, 0.0  ;;  %v1433_v42 = vld [vmem:[%s9033_s21 + $0x5c0] sm:$0xff] }
 0x6c1   : > { %4554 = vmatmul.f32.gmra.mxu2 %v14065_v48 }
 0x6c2   : > { %v2616_v24 = vpop.f32.mrf.mxu0  ;;  %v3257_v54 = vpop.f32.mrf.mxu1 }
 0x6c3   : > { %v3547_v30 = vmax.f32 %v2616_v24, %v3257_v54 }
 0x6c4   : > { %v10961_v18 = vpop.f32.mrf.mxu2 }
 0x6c5   : > { %v10956_v36 = vadd.f32 %v10845_v0, %v3547_v30  ;;  %7821 = vmatmul.msk.f32.gmra.mxu0 %vm1473_vm0, %v1432_v6  ;;  %8029 = vmatmul.msk.f32.gmra.mxu1 %vm1473_vm0, %v1432_v6  ;;  %14426 = vst [vmem:[#allocation273_spill] sm:$0xff] %v10961_v18 }
 0x6c7   : > { %14425 = vst [vmem:[#allocation272_spill] sm:$0xff] %v10956_v36  ;;  %v14067_v12 = vmax.f32 %v10956_v36, 0.0 }
 0x6c9   : > { %4557 = vmatmul.f32.gmra.mxu2 %v14067_v12  ;;  %v1434_v12 = vld [vmem:[%s9033_s21 + $0x5c8] sm:$0xff] }
 0x6ca   : > { %v2619_v60 = vpop.f32.mrf.mxu0  ;;  %v3260_v48 = vpop.f32.mrf.mxu1 }
 0x6cb   : > { %v3548_v3 = vmax.f32 %v2619_v60, %v3260_v48 }
 0x6cc   : > { %v10975_v36 = vpop.f32.mrf.mxu2 }
 0x6cd   : > { %v10967_v54 = vadd.f32 %v10845_v0, %v3548_v3  ;;  %7822 = vmatmul.msk.f32.gmra.mxu0 %vm1473_vm0, %v1433_v42  ;;  %8030 = vmatmul.msk.f32.gmra.mxu1 %vm1473_vm0, %v1433_v42  ;;  %14428 = vst [vmem:[#allocation275_spill] sm:$0xff] %v10975_v36 }
 0x6cf   : > { %14427 = vst [vmem:[#allocation274_spill] sm:$0xff] %v10967_v54  ;;  %v14069_v6 = vmax.f32 %v10967_v54, 0.0 }
 0x6d1   : > { %4560 = vmatmul.f32.gmra.mxu2 %v14069_v6  ;;  %v1435_v6 = vld [vmem:[%s9033_s21 + $0x5d0] sm:$0xff] }
 0x6d2   : > { %v2622_v30 = vpop.f32.mrf.mxu0  ;;  %v3263_v24 = vpop.f32.mrf.mxu1 }
 0x6d3   : > { %v3549_v18 = vmax.f32 %v2622_v30, %v3263_v24 }
 0x6d4   : > { %v10986_v13 = vpop.f32.mrf.mxu2 }
 0x6d5   : > { %v10978_v48 = vadd.f32 %v10845_v0, %v3549_v18  ;;  %7823 = vmatmul.msk.f32.gmra.mxu0 %vm1473_vm0, %v1434_v12  ;;  %8031 = vmatmul.msk.f32.gmra.mxu1 %vm1473_vm0, %v1434_v12  ;;  %14430 = vst [vmem:[#allocation277_spill] sm:$0xff] %v10986_v13 }
 0x6d7   : > { %14429 = vst [vmem:[#allocation276_spill] sm:$0xff] %v10978_v48  ;;  %v14071_v42 = vmax.f32 %v10978_v48, 0.0 }
 0x6d9   : > { %4563 = vmatmul.f32.gmra.mxu2 %v14071_v42  ;;  %v1436_v42 = vld [vmem:[%s9033_s21 + $0x5d8] sm:$0xff] }
 0x6da   : > { %v2625_v3 = vpop.f32.mrf.mxu0  ;;  %v3266_v60 = vpop.f32.mrf.mxu1 }
 0x6db   : > { %v3550_v54 = vmax.f32 %v2625_v3, %v3266_v60 }
 0x6dd   : > { %v10989_v30 = vadd.f32 %v10845_v0, %v3550_v54  ;;  %7824 = vmatmul.msk.f32.gmra.mxu0 %vm1473_vm0, %v1435_v6  ;;  %8032 = vmatmul.msk.f32.gmra.mxu1 %vm1473_vm0, %v1435_v6  ;;  %v11002_v54 = vpop.f32.mrf.mxu2 }
 0x6de   : > { %14433 = vst [vmem:[#allocation280_spill] sm:$0xff] %v11002_v54 }
 0x6df   : > { %14431 = vst [vmem:[#allocation278_spill] sm:$0xff] %v10989_v30  ;;  %v14073_v12 = vmax.f32 %v10989_v30, 0.0  ;;  %v1437_v30 = vld [vmem:[%s9033_s21 + $0x5e0] sm:$0xff] }
 0x6e1   : > { %4566 = vmatmul.f32.gmra.mxu2 %v14073_v12 }
 0x6e2   : > { %v2628_v18 = vpop.f32.mrf.mxu0  ;;  %v3269_v24 = vpop.f32.mrf.mxu1 }
 0x6e3   : > { %v3551_v48 = vmax.f32 %v2628_v18, %v3269_v24 }
 0x6e5   : > { %v10998_v3 = vadd.f32 %v10845_v0, %v3551_v48  ;;  %7825 = vmatmul.msk.f32.gmra.mxu0 %vm1473_vm0, %v1436_v42  ;;  %8033 = vmatmul.msk.f32.gmra.mxu1 %vm1473_vm0, %v1436_v42  ;;  %v11014_v42 = vpop.f32.mrf.mxu2 }
 0x6e6   : > { %14435 = vst [vmem:[#allocation282_spill] sm:$0xff] %v11014_v42 }
 0x6e7   : > { %14432 = vst [vmem:[#allocation279_spill] sm:$0xff] %v10998_v3  ;;  %v14075_v6 = vmax.f32 %v10998_v3, 0.0  ;;  %v1438_v3 = vld [vmem:[%s9033_s21 + $0x5e8] sm:$0xff] }
 0x6e9   : > { %4569 = vmatmul.f32.gmra.mxu2 %v14075_v6 }
 0x6ea   : > { %v2631_v60 = vpop.f32.mrf.mxu0  ;;  %v3272_v12 = vpop.f32.mrf.mxu1 }
 0x6eb   : > { %v3552_v13 = vmax.f32 %v2631_v60, %v3272_v12 }
 0x6ed   : > { %v11009_v18 = vadd.f32 %v10845_v0, %v3552_v13  ;;  %7826 = vmatmul.msk.f32.gmra.mxu0 %vm1473_vm0, %v1437_v30  ;;  %8034 = vmatmul.msk.f32.gmra.mxu1 %vm1473_vm0, %v1437_v30 }
 0x6ef   : > { %14434 = vst [vmem:[#allocation281_spill] sm:$0xff] %v11009_v18  ;;  %v14077_v48 = vmax.f32 %v11009_v18, 0.0  ;;  %v11028_v18 = vpop.f32.mrf.mxu2 }
 0x6f0   : > { %14437 = vst [vmem:[#allocation284_spill] sm:$0xff] %v11028_v18 }
 0x6f1   : > { %4572 = vmatmul.f32.gmra.mxu2 %v14077_v48  ;;  %v1439_v48 = vld [vmem:[%s9033_s21 + $0x5f0] sm:$0xff] }
 0x6f2   : > { %v2634_v24 = vpop.f32.mrf.mxu0  ;;  %v3275_v6 = vpop.f32.mrf.mxu1 }
 0x6f3   : > { %v3553_v54 = vmax.f32 %v2634_v24, %v3275_v6 }
 0x6f5   : > { %v11020_v12 = vadd.f32 %v10845_v0, %v3553_v54  ;;  %7827 = vmatmul.msk.f32.gmra.mxu0 %vm1473_vm0, %v1438_v3  ;;  %8035 = vmatmul.msk.f32.gmra.mxu1 %vm1473_vm0, %v1438_v3 }
 0x6f7   : > { %14436 = vst [vmem:[#allocation283_spill] sm:$0xff] %v11020_v12  ;;  %v14079_v13 = vmax.f32 %v11020_v12, 0.0  ;;  %v11039_v36 = vpop.f32.mrf.mxu2 }
 0x6f8   : > { %14439 = vst [vmem:[#allocation286_spill] sm:$0xff] %v11039_v36 }
 0x6f9   : > { %4575 = vmatmul.f32.gmra.mxu2 %v14079_v13  ;;  %v1440_v13 = vld [vmem:[%s9033_s21 + $0x5f8] sm:$0xff] }
 0x6fa   : > { %v2637_v30 = vpop.f32.mrf.mxu0  ;;  %v3278_v60 = vpop.f32.mrf.mxu1 }
 0x6fb   : > { %v3554_v42 = vmax.f32 %v2637_v30, %v3278_v60 }
 0x6fd   : > { %v11031_v6 = vadd.f32 %v10845_v0, %v3554_v42  ;;  %7828 = vmatmul.msk.f32.gmra.mxu0 %vm1473_vm0, %v1439_v48  ;;  %8036 = vmatmul.msk.f32.gmra.mxu1 %vm1473_vm0, %v1439_v48 }
 0x6ff   : > { %14438 = vst [vmem:[#allocation285_spill] sm:$0xff] %v11031_v6  ;;  %v14081_v3 = vmax.f32 %v11031_v6, 0.0 }
 0x701   : > { %4578 = vmatmul.f32.gmra.mxu2 %v14081_v3  ;;  %v1441_v3 = vld [vmem:[%s9033_s21 + $0x600] sm:$0xff] }
 0x702   : > { %v2640_v54 = vpop.f32.mrf.mxu0  ;;  %v3281_v24 = vpop.f32.mrf.mxu1 }
 0x703   : > { %v3555_v12 = vmax.f32 %v2640_v54, %v3281_v24 }
 0x705   : > { %v11042_v30 = vadd.f32 %v10845_v0, %v3555_v12  ;;  %7829 = vmatmul.msk.f32.gmra.mxu0 %vm1473_vm0, %v1440_v13  ;;  %8037 = vmatmul.msk.f32.gmra.mxu1 %vm1473_vm0, %v1440_v13  ;;  %v11055_v12 = vpop.f32.mrf.mxu2 }
 0x706   : > { %14442 = vst [vmem:[#allocation289_spill] sm:$0xff] %v11055_v12 }
 0x707   : > { %14440 = vst [vmem:[#allocation287_spill] sm:$0xff] %v11042_v30  ;;  %v14083_v48 = vmax.f32 %v11042_v30, 0.0  ;;  %v1442_v30 = vld [vmem:[%s9033_s21 + $0x608] sm:$0xff] }
 0x709   : > { %4581 = vmatmul.f32.gmra.mxu2 %v14083_v48 }
 0x70a   : > { %v2643_v42 = vpop.f32.mrf.mxu0  ;;  %v3284_v60 = vpop.f32.mrf.mxu1 }
 0x70b   : > { %v3556_v6 = vmax.f32 %v2643_v42, %v3284_v60 }
 0x70d   : > { %v11051_v54 = vadd.f32 %v10845_v0, %v3556_v6  ;;  %7830 = vmatmul.msk.f32.gmra.mxu0 %vm1473_vm0, %v1441_v3  ;;  %8038 = vmatmul.msk.f32.gmra.mxu1 %vm1473_vm0, %v1441_v3  ;;  %v11067_v3 = vpop.f32.mrf.mxu2 }
 0x70e   : > { %14444 = vst [vmem:[#allocation291_spill] sm:$0xff] %v11067_v3 }
 0x70f   : > { %14441 = vst [vmem:[#allocation288_spill] sm:$0xff] %v11051_v54  ;;  %v14085_v13 = vmax.f32 %v11051_v54, 0.0  ;;  %v1443_v54 = vld [vmem:[%s9033_s21 + $0x610] sm:$0xff] }
 0x711   : > { %4584 = vmatmul.f32.gmra.mxu2 %v14085_v13 }
 0x712   : > { %v2646_v24 = vpop.f32.mrf.mxu0  ;;  %v3287_v48 = vpop.f32.mrf.mxu1 }
 0x713   : > { %v3557_v36 = vmax.f32 %v2646_v24, %v3287_v48 }
 0x715   : > { %v11062_v42 = vadd.f32 %v10845_v0, %v3557_v36  ;;  %7831 = vmatmul.msk.f32.gmra.mxu0 %vm1473_vm0, %v1442_v30  ;;  %8039 = vmatmul.msk.f32.gmra.mxu1 %vm1473_vm0, %v1442_v30 }
 0x717   : > { %14443 = vst [vmem:[#allocation290_spill] sm:$0xff] %v11062_v42  ;;  %v14087_v6 = vmax.f32 %v11062_v42, 0.0  ;;  %v11081_v42 = vpop.f32.mrf.mxu2 }
 0x718   : > { %14446 = vst [vmem:[#allocation293_spill] sm:$0xff] %v11081_v42 }
 0x719   : > { %4587 = vmatmul.f32.gmra.mxu2 %v14087_v6  ;;  %v1444_v6 = vld [vmem:[%s9033_s21 + $0x618] sm:$0xff] }
 0x71a   : > { %v2649_v60 = vpop.f32.mrf.mxu0  ;;  %v3290_v13 = vpop.f32.mrf.mxu1 }
 0x71b   : > { %v3558_v12 = vmax.f32 %v2649_v60, %v3290_v13 }
 0x71d   : > { %v11073_v48 = vadd.f32 %v10845_v0, %v3558_v12  ;;  %7832 = vmatmul.msk.f32.gmra.mxu0 %vm1473_vm0, %v1443_v54  ;;  %8040 = vmatmul.msk.f32.gmra.mxu1 %vm1473_vm0, %v1443_v54 }
 0x71f   : > { %14445 = vst [vmem:[#allocation292_spill] sm:$0xff] %v11073_v48  ;;  %v14089_v36 = vmax.f32 %v11073_v48, 0.0  ;;  %v11092_v18 = vpop.f32.mrf.mxu2 }
 0x720   : > { %14448 = vst [vmem:[#allocation295_spill] sm:$0xff] %v11092_v18 }
 0x721   : > { %4590 = vmatmul.f32.gmra.mxu2 %v14089_v36  ;;  %v1445_v36 = vld [vmem:[%s9033_s21 + $0x620] sm:$0xff] }
 0x722   : > { %v2652_v30 = vpop.f32.mrf.mxu0  ;;  %v3293_v24 = vpop.f32.mrf.mxu1 }
 0x723   : > { %v3559_v3 = vmax.f32 %v2652_v30, %v3293_v24 }
 0x725   : > { %v11084_v13 = vadd.f32 %v10845_v0, %v3559_v3  ;;  %7833 = vmatmul.msk.f32.gmra.mxu0 %vm1473_vm0, %v1444_v6  ;;  %8041 = vmatmul.msk.f32.gmra.mxu1 %vm1473_vm0, %v1444_v6 }
 0x727   : > { %14447 = vst [vmem:[#allocation294_spill] sm:$0xff] %v11084_v13  ;;  %v14091_v54 = vmax.f32 %v11084_v13, 0.0 }
 0x729   : > { %4593 = vmatmul.f32.gmra.mxu2 %v14091_v54  ;;  %v1446_v54 = vld [vmem:[%s9033_s21 + $0x628] sm:$0xff] }
 0x72a   : > { %v2655_v12 = vpop.f32.mrf.mxu0  ;;  %v3296_v60 = vpop.f32.mrf.mxu1 }
 0x72b   : > { %v3560_v48 = vmax.f32 %v2655_v12, %v3296_v60 }
 0x72d   : > { %v11095_v30 = vadd.f32 %v10845_v0, %v3560_v48  ;;  %7834 = vmatmul.msk.f32.gmra.mxu0 %vm1473_vm0, %v1445_v36  ;;  %8042 = vmatmul.msk.f32.gmra.mxu1 %vm1473_vm0, %v1445_v36  ;;  %v11108_v48 = vpop.f32.mrf.mxu2 }
 0x72e   : > { %14451 = vst [vmem:[#allocation298_spill] sm:$0xff] %v11108_v48 }
 0x72f   : > { %14449 = vst [vmem:[#allocation296_spill] sm:$0xff] %v11095_v30  ;;  %v14093_v6 = vmax.f32 %v11095_v30, 0.0  ;;  %v1447_v30 = vld [vmem:[%s9033_s21 + $0x630] sm:$0xff] }
 0x731   : > { %4596 = vmatmul.f32.gmra.mxu2 %v14093_v6 }
 0x732   : > { %v2658_v3 = vpop.f32.mrf.mxu0  ;;  %v3299_v24 = vpop.f32.mrf.mxu1 }
 0x733   : > { %v3561_v13 = vmax.f32 %v2658_v3, %v3299_v24 }
 0x735   : > { %v11104_v12 = vadd.f32 %v10845_v0, %v3561_v13  ;;  %7835 = vmatmul.msk.f32.gmra.mxu0 %vm1473_vm0, %v1446_v54  ;;  %8043 = vmatmul.msk.f32.gmra.mxu1 %vm1473_vm0, %v1446_v54  ;;  %v11120_v54 = vpop.f32.mrf.mxu2 }
 0x736   : > { %14453 = vst [vmem:[#allocation300_spill] sm:$0xff] %v11120_v54 }
 0x737   : > { %14450 = vst [vmem:[#allocation297_spill] sm:$0xff] %v11104_v12  ;;  %v14095_v36 = vmax.f32 %v11104_v12, 0.0  ;;  %v1448_v12 = vld [vmem:[%s9033_s21 + $0x638] sm:$0xff] }
 0x739   : > { %4599 = vmatmul.f32.gmra.mxu2 %v14095_v36 }
 0x73a   : > { %v2661_v60 = vpop.f32.mrf.mxu0  ;;  %v3302_v6 = vpop.f32.mrf.mxu1 }
 0x73b   : > { %v3562_v18 = vmax.f32 %v2661_v60, %v3302_v6 }
 0x73d   : > { %v11115_v3 = vadd.f32 %v10845_v0, %v3562_v18  ;;  %7836 = vmatmul.msk.f32.gmra.mxu0 %vm1473_vm0, %v1447_v30  ;;  %8044 = vmatmul.msk.f32.gmra.mxu1 %vm1473_vm0, %v1447_v30 }
 0x73f   : > { %14452 = vst [vmem:[#allocation299_spill] sm:$0xff] %v11115_v3  ;;  %v14097_v13 = vmax.f32 %v11115_v3, 0.0  ;;  %v11134_v3 = vpop.f32.mrf.mxu2 }
 0x740   : > { %14455 = vst [vmem:[#allocation302_spill] sm:$0xff] %v11134_v3 }
 0x741   : > { %4602 = vmatmul.f32.gmra.mxu2 %v14097_v13  ;;  %v1449_v13 = vld [vmem:[%s9033_s21 + $0x640] sm:$0xff] }
 0x742   : > { %v2664_v24 = vpop.f32.mrf.mxu0  ;;  %v3305_v36 = vpop.f32.mrf.mxu1 }
 0x743   : > { %v3563_v48 = vmax.f32 %v2664_v24, %v3305_v36 }
 0x745   : > { %v11126_v6 = vadd.f32 %v10845_v0, %v3563_v48  ;;  %7837 = vmatmul.msk.f32.gmra.mxu0 %vm1473_vm0, %v1448_v12  ;;  %8045 = vmatmul.msk.f32.gmra.mxu1 %vm1473_vm0, %v1448_v12 }
 0x747   : > { %14454 = vst [vmem:[#allocation301_spill] sm:$0xff] %v11126_v6  ;;  %v14099_v18 = vmax.f32 %v11126_v6, 0.0  ;;  %v11145_v42 = vpop.f32.mrf.mxu2 }
 0x748   : > { %14457 = vst [vmem:[#allocation304_spill] sm:$0xff] %v11145_v42 }
 0x749   : > { %4605 = vmatmul.f32.gmra.mxu2 %v14099_v18  ;;  %v1450_v18 = vld [vmem:[%s9033_s21 + $0x648] sm:$0xff] }
 0x74a   : > { %v2667_v30 = vpop.f32.mrf.mxu0  ;;  %v3308_v60 = vpop.f32.mrf.mxu1 }
 0x74b   : > { %v3564_v54 = vmax.f32 %v2667_v30, %v3308_v60 }
 0x74d   : > { %v11137_v36 = vadd.f32 %v10845_v0, %v3564_v54  ;;  %7838 = vmatmul.msk.f32.gmra.mxu0 %vm1473_vm0, %v1449_v13  ;;  %8046 = vmatmul.msk.f32.gmra.mxu1 %vm1473_vm0, %v1449_v13 }
 0x74f   : > { %14456 = vst [vmem:[#allocation303_spill] sm:$0xff] %v11137_v36  ;;  %v14101_v12 = vmax.f32 %v11137_v36, 0.0 }
 0x751   : > { %4608 = vmatmul.f32.gmra.mxu2 %v14101_v12  ;;  %v1451_v12 = vld [vmem:[%s9033_s21 + $0x650] sm:$0xff] }
 0x752   : > { %v2670_v48 = vpop.f32.mrf.mxu0  ;;  %v3311_v24 = vpop.f32.mrf.mxu1 }
 0x753   : > { %v3565_v6 = vmax.f32 %v2670_v48, %v3311_v24 }
 0x755   : > { %v11148_v30 = vadd.f32 %v10845_v0, %v3565_v6  ;;  %7839 = vmatmul.msk.f32.gmra.mxu0 %vm1473_vm0, %v1450_v18  ;;  %8047 = vmatmul.msk.f32.gmra.mxu1 %vm1473_vm0, %v1450_v18  ;;  %v11161_v6 = vpop.f32.mrf.mxu2 }
 0x756   : > { %14460 = vst [vmem:[#allocation307_spill] sm:$0xff] %v11161_v6 }
 0x757   : > { %14458 = vst [vmem:[#allocation305_spill] sm:$0xff] %v11148_v30  ;;  %v14103_v13 = vmax.f32 %v11148_v30, 0.0  ;;  %v1452_v30 = vld [vmem:[%s9033_s21 + $0x658] sm:$0xff] }
 0x759   : > { %4611 = vmatmul.f32.gmra.mxu2 %v14103_v13 }
 0x75a   : > { %v2673_v54 = vpop.f32.mrf.mxu0  ;;  %v3314_v60 = vpop.f32.mrf.mxu1 }
 0x75b   : > { %v3566_v36 = vmax.f32 %v2673_v54, %v3314_v60 }
 0x75d   : > { %v11157_v48 = vadd.f32 %v10845_v0, %v3566_v36  ;;  %7840 = vmatmul.msk.f32.gmra.mxu0 %vm1473_vm0, %v1451_v12  ;;  %8048 = vmatmul.msk.f32.gmra.mxu1 %vm1473_vm0, %v1451_v12  ;;  %v11173_v12 = vpop.f32.mrf.mxu2 }
 0x75e   : > { %14462 = vst [vmem:[#allocation309_spill] sm:$0xff] %v11173_v12 }
 0x75f   : > { %14459 = vst [vmem:[#allocation306_spill] sm:$0xff] %v11157_v48  ;;  %v14105_v18 = vmax.f32 %v11157_v48, 0.0  ;;  %v1453_v48 = vld [vmem:[%s9033_s21 + $0x660] sm:$0xff] }
 0x761   : > { %4614 = vmatmul.f32.gmra.mxu2 %v14105_v18 }
 0x762   : > { %v2676_v24 = vpop.f32.mrf.mxu0  ;;  %v3317_v13 = vpop.f32.mrf.mxu1 }
 0x763   : > { %v3567_v42 = vmax.f32 %v2676_v24, %v3317_v13 }
 0x765   : > { %v11168_v54 = vadd.f32 %v10845_v0, %v3567_v42  ;;  %7841 = vmatmul.msk.f32.gmra.mxu0 %vm1473_vm0, %v1452_v30  ;;  %8049 = vmatmul.msk.f32.gmra.mxu1 %vm1473_vm0, %v1452_v30 }
 0x767   : > { %14461 = vst [vmem:[#allocation308_spill] sm:$0xff] %v11168_v54  ;;  %v14107_v36 = vmax.f32 %v11168_v54, 0.0  ;;  %v11187_v54 = vpop.f32.mrf.mxu2 }
 0x768   : > { %14464 = vst [vmem:[#allocation311_spill] sm:$0xff] %v11187_v54 }
 0x769   : > { %4617 = vmatmul.f32.gmra.mxu2 %v14107_v36  ;;  %v1454_v36 = vld [vmem:[%s9033_s21 + $0x668] sm:$0xff] }
 0x76a   : > { %v2679_v60 = vpop.f32.mrf.mxu0  ;;  %v3320_v18 = vpop.f32.mrf.mxu1 }
 0x76b   : > { %v3568_v6 = vmax.f32 %v2679_v60, %v3320_v18 }
 0x76d   : > { %v11179_v13 = vadd.f32 %v10845_v0, %v3568_v6  ;;  %7842 = vmatmul.msk.f32.gmra.mxu0 %vm1473_vm0, %v1453_v48  ;;  %8050 = vmatmul.msk.f32.gmra.mxu1 %vm1473_vm0, %v1453_v48 }
 0x76f   : > { %14463 = vst [vmem:[#allocation310_spill] sm:$0xff] %v11179_v13  ;;  %v14109_v42 = vmax.f32 %v11179_v13, 0.0  ;;  %v11198_v3 = vpop.f32.mrf.mxu2 }
 0x770   : > { %14466 = vst [vmem:[#allocation313_spill] sm:$0xff] %v11198_v3 }
 0x771   : > { %4620 = vmatmul.f32.gmra.mxu2 %v14109_v42  ;;  %v1455_v42 = vld [vmem:[%s9033_s21 + $0x670] sm:$0xff] }
 0x772   : > { %v2682_v30 = vpop.f32.mrf.mxu0  ;;  %v3323_v24 = vpop.f32.mrf.mxu1 }
 0x773   : > { %v3569_v12 = vmax.f32 %v2682_v30, %v3323_v24 }
 0x775   : > { %v11190_v18 = vadd.f32 %v10845_v0, %v3569_v12  ;;  %7843 = vmatmul.msk.f32.gmra.mxu0 %vm1473_vm0, %v1454_v36  ;;  %8051 = vmatmul.msk.f32.gmra.mxu1 %vm1473_vm0, %v1454_v36 }
 0x777   : > { %14465 = vst [vmem:[#allocation312_spill] sm:$0xff] %v11190_v18  ;;  %v14111_v48 = vmax.f32 %v11190_v18, 0.0 }
 0x779   : > { %4623 = vmatmul.f32.gmra.mxu2 %v14111_v48  ;;  %v1456_v48 = vld [vmem:[%s9033_s21 + $0x678] sm:$0xff]  ;;  %s7567_s21 = scalar_lea.hbm %s13765_s11, %s15271_s22 }
 0x77a   : > { %v2685_v6 = vpop.f32.mrf.mxu0  ;;  %v3326_v60 = vpop.f32.mrf.mxu1  ;;  %s7571_s12 = sshll.u32 %s7567_s21, 4  ;;  %s7572_s12 = int_to_ptr.hbm [resolvable:$true] %s7571_s12 }
 0x77b   : > { %v3570_v13 = vmax.f32 %v2685_v6, %v3326_v60  ;;  %s8395_s14 = sshra.s32 %s7572_s12, 4  ;;  %s8396_s14 = int_to_ptr.hbm [resolvable:$true] %s8395_s14 }
 0x77c   : > { %s8397_s15 = scalar_lea.hbm %s8396_s14, 1  ;;  %p8402_p2 = scmp.lt.s32.totalorder %s8396_s14, %s13765_s11 }
 0x77d   : > { %v11201_v30 = vadd.f32 %v10845_v0, %v3570_v13  ;;  %7844 = vmatmul.msk.f32.gmra.mxu0 %vm1473_vm0, %v1455_v42  ;;  %8052 = vmatmul.msk.f32.gmra.mxu1 %vm1473_vm0, %v1455_v42  ;;  %v11214_v13 = vpop.f32.mrf.mxu2  ;;  %p8398_p13 = scmp.ne.s32.totalorder %s8396_s14, %s8397_s15  ;;  %p8403_p3 = scmp.lt.s32.totalorder %s8401_s29, %s8397_s15 }
 0x77e   : > { %14469 = vst [vmem:[#allocation316_spill] sm:$0xff] %v11214_v13 }
 0x77f   : > { %14467 = vst [vmem:[#allocation314_spill] sm:$0xff] %v11201_v30  ;;  %v14113_v36 = vmax.f32 %v11201_v30, 0.0  ;;  %p8399_p0 = pnand %p8398_p13, %p8543_p6  ;;  %p8404_p4 = por %p8403_p3, %p8402_p2 }
 0x781   : > { %4626 = vmatmul.f32.gmra.mxu2 %v14113_v36  ;;  %p8400_p1 = pneg %p8399_p0 }
 0x782   : > { %v2688_v12 = vpop.f32.mrf.mxu0  ;;  %v3329_v24 = vpop.f32.mrf.mxu1 }
 0x783   : > { %v3571_v18 = vmax.f32 %v2688_v12, %v3329_v24  ;;  %p8405_p5 = pnand %p8404_p4, %p8400_p1 }
 0x785   : > { %v11210_v6 = vadd.f32 %v10845_v0, %v3571_v18  ;;  %7845 = vmatmul.msk.f32.gmra.mxu0 %vm1473_vm0, %v1456_v48  ;;  %8053 = vmatmul.msk.f32.gmra.mxu1 %vm1473_vm0, %v1456_v48  ;;  %v11223_v12 = vpop.f32.mrf.mxu2 }
 0x786   : > { %14471 = vst [vmem:[#allocation318_spill] sm:$0xff] %v11223_v12 }
 0x787   : > { %14468 = vst [vmem:[#allocation315_spill] sm:$0xff] %v11210_v6  ;;  %v14115_v42 = vmax.f32 %v11210_v6, 0.0 }
 0x789   : > { %4629 = vmatmul.f32.gmra.mxu2 %v14115_v42 }
 0x78a   : > { %v2691_v60 = vpop.f32.mrf.mxu0  ;;  %v3332_v36 = vpop.f32.mrf.mxu1 }
 0x78b   : > { %v3572_v30 = vmax.f32 %v2691_v60, %v3332_v36  ;;  %v8069_v36 = vld [vmem:[%s13759_s5 + $0xf8] sm:$0xff] }
 0x78c   : > { %5983 = vmatpush.msrb.mxu0 %v8069_v36 }
 0x78d   : > { %v11220_v3 = vadd.f32 %v10845_v0, %v3572_v30 }
 0x78f   : > { %14470 = vst [vmem:[#allocation317_spill] sm:$0xff] %v11220_v3  ;;  %v14117_v18 = vmax.f32 %v11220_v3, 0.0  ;;  %v11236_v3 = vpop.f32.mrf.mxu2 }
 0x790   : > { %14473 = vst [vmem:[#allocation320_spill] sm:$0xff] %v11236_v3 }
 0x791   : > { %4632 = vmatmul.f32.gmra.mxu2 %v14117_v18 }
 0x792   : > { %v2694_v48 = vpop.f32.mrf.mxu0  ;;  %v3335_v24 = vpop.f32.mrf.mxu1 }
 0x793   : > { %v3573_v13 = vmax.f32 %v2694_v48, %v3335_v24 }
 0x795   : > { %v11228_v54 = vadd.f32 %v10845_v0, %v3573_v13 }
 0x797   : > { %14472 = vst [vmem:[#allocation319_spill] sm:$0xff] %v11228_v54  ;;  %v14119_v30 = vmax.f32 %v11228_v54, 0.0  ;;  %v11244_v12 = vpop.f32.mrf.mxu2 }
 0x798   : > { %14475 = vst [vmem:[#allocation322_spill] sm:$0xff] %v11244_v12 }
 0x799   : > { %4635 = vmatmul.f32.gmra.mxu2 %v14119_v30 }
 0x79a   : > { %v2697_v60 = vpop.f32.mrf.mxu0  ;;  %v3338_v42 = vpop.f32.mrf.mxu1 }
 0x79b   : > { %v3574_v18 = vmax.f32 %v2697_v60, %v3338_v42 }
 0x79d   : > { %v11239_v48 = vadd.f32 %v10845_v0, %v3574_v18 }
 0x79f   : > { %14474 = vst [vmem:[#allocation321_spill] sm:$0xff] %v11239_v48  ;;  %v14121_v13 = vmax.f32 %v11239_v48, 0.0 }
 0x7a1   : > { %4638 = vmatmul.f32.gmra.mxu2 %v14121_v13  ;;  %v11255_v13 = vpop.f32.mrf.mxu2 }
 0x7a2   : > { %v2700_v24 = vpop.f32.mrf.mxu0  ;;  %v3341_v36 = vpop.f32.mrf.mxu1  ;;  %14478 = vst [vmem:[#allocation325_spill] sm:$0xff] %v11255_v13 }
 0x7a3   : > { %v3575_v6 = vmax.f32 %v2700_v24, %v3341_v36 }
 0x7a5   : > { %v11247_v30 = vadd.f32 %v10845_v0, %v3575_v6 }
 0x7a7   : > { %14476 = vst [vmem:[#allocation323_spill] sm:$0xff] %v11247_v30  ;;  %v14123_v54 = vmax.f32 %v11247_v30, 0.0 }
 0x7a9   : > { %4641 = vmatmul.f32.gmra.mxu2 %v14123_v54  ;;  %v11264_v30 = vpop.f32.mrf.mxu2 }
 0x7aa   : > { %v2703_v42 = vpop.f32.mrf.mxu0  ;;  %v3344_v18 = vpop.f32.mrf.mxu1  ;;  %14480 = vst [vmem:[#allocation327_spill] sm:$0xff] %v11264_v30 }
 0x7ab   : > { %v3576_v60 = vmax.f32 %v2703_v42, %v3344_v18 }
 0x7ad   : > { %v11253_v3 = vadd.f32 %v10845_v0, %v3576_v60 }
 0x7af   : > { %14477 = vst [vmem:[#allocation324_spill] sm:$0xff] %v11253_v3  ;;  %v14125_v24 = vmax.f32 %v11253_v3, 0.0 }
 0x7b1   : > { %4644 = vmatmul.f32.gmra.mxu2 %v14125_v24 }
 0x7b2   : > { %v2706_v6 = vpop.f32.mrf.mxu0  ;;  %v3347_v36 = vpop.f32.mrf.mxu1 }
 0x7b3   : > { %v3577_v48 = vmax.f32 %v2706_v6, %v3347_v36  ;;  %v11274_v36 = vpop.f32.mrf.mxu2 }
 0x7b5   : > { %v11261_v12 = vadd.f32 %v10845_v0, %v3577_v48 }
 0x7b7   : > { %14479 = vst [vmem:[#allocation326_spill] sm:$0xff] %v11261_v12  ;;  %v14127_v54 = vmax.f32 %v11261_v12, 0.0 }
 0x7b9   : > { %4647 = vmatmul.f32.gmra.mxu2 %v14127_v54 }
 0x7ba   : > { %v2709_v42 = vpop.f32.mrf.mxu0  ;;  %v3350_v18 = vpop.f32.mrf.mxu1 }
 0x7bb   : > { %v3578_v60 = vmax.f32 %v2709_v42, %v3350_v18  ;;  %v4039_v42 = vld [vmem:[%s13757_s3 + $0xf8] sm:$0xff] }
 0x7bc   : > { %4681 = vmatpush.msrb.mxu3 %v4039_v42  ;;  %v4033_v42 = vld [vmem:[%s13757_s3 + $0xc8] sm:$0xff] }
 0x7bd   : > { %v11269_v13 = vadd.f32 %v10845_v0, %v3578_v60 }
 0x7bf   : > { %14481 = vst [vmem:[#allocation328_spill] sm:$0xff] %v11269_v13  ;;  %v14128_v24 = vmax.f32 %v11269_v13, 0.0 }
 0x7c1   : > { %4650 = vmatmul.f32.gmra.mxu2 %v14128_v24 }
 0x7c2   : > { %v2712_v48 = vpop.f32.mrf.mxu0  ;;  %v3353_v6 = vpop.f32.mrf.mxu1 }
 0x7c3   : > { %v3579_v3 = vmax.f32 %v2712_v48, %v3353_v6  ;;  %v4037_v48 = vld [vmem:[%s13757_s3 + $0xe8] sm:$0xff]  ;;  %v11291_v6 = vpop.f32.mrf.mxu2 }
 0x7c4   : > { %14483 = vst [vmem:[#allocation330_spill] sm:$0xff] %v11291_v6  ;;  %4682 = vmatpush.msrb.mxu3 %v4037_v48  ;;  %v4029_v48 = vld [vmem:[%s13757_s3 + $0xa8] sm:$0xff] }
 0x7c5   : > { %v11277_v30 = vadd.f32 %v10845_v0, %v3579_v3  ;;  %v4035_v3 = vld [vmem:[%s13757_s3 + $0xd8] sm:$0xff] }
 0x7c6   : > { %4683 = vmatpush.msrb.mxu3 %v4035_v3 }
 0x7c7   : > { %14482 = vst [vmem:[#allocation329_spill] sm:$0xff] %v11277_v30  ;;  %v14129_v54 = vmax.f32 %v11277_v30, 0.0 }
 0x7c8   : > { %4684 = vmatpush.msrb.mxu3 %v4033_v42 }
 0x7c9   : > { %4653 = vmatmul.f32.gmra.mxu2 %v14129_v54 }
 0x7ca   : > { %v2715_v18 = vpop.f32.mrf.mxu0  ;;  %v3356_v60 = vpop.f32.mrf.mxu1 }
 0x7cb   : > { %v3580_v24 = vmax.f32 %v2715_v18, %v3356_v60  ;;  %v11314_v6 = vpop.f32.mrf.mxu2 }
 0x7cc   : > { %14486 = vst [vmem:[#allocation333_spill] sm:$0xff] %v11314_v6 }
 0x7cd   : > { %v11294_v54 = vadd.f32 %v10845_v0, %v3580_v24  ;;  %v4031_v24 = vld [vmem:[%s13757_s3 + $0xb8] sm:$0xff] }
 0x7ce   : > { %4685 = vmatpush.msrb.mxu3 %v4031_v24 }
 0x7cf   : > { %14484 = vst [vmem:[#allocation331_spill] sm:$0xff] %v11294_v54  ;;  %v14132_v30 = vmax.f32 %v11294_v54, 0.0 }
 0x7d0   : > { %4686 = vmatpush.msrb.mxu3 %v4029_v48  ;;  %v4023_v48 = vld [vmem:[%s13757_s3 + $0x78] sm:$0xff] }
 0x7d1   : > { %4656 = vmatmul.f32.gmra.mxu2 %v14132_v30  ;;  %v4027_v30 = vld [vmem:[%s13757_s3 + $0x98] sm:$0xff] }
 0x7d2   : > { %v2718_v18 = vpop.f32.mrf.mxu0  ;;  %v3359_v60 = vpop.f32.mrf.mxu1  ;;  %4687 = vmatpush.msrb.mxu3 %v4027_v30  ;;  %v4021_v30 = vld [vmem:[%s13757_s3 + $0x68] sm:$0xff] }
 0x7d3   : > { %v3581_v13 = vmax.f32 %v2718_v18, %v3359_v60 }
 0x7d5   : > { %v11309_v3 = vadd.f32 %v10845_v0, %v3581_v13  ;;  %v4025_v13 = vld [vmem:[%s13757_s3 + $0x88] sm:$0xff] }
 0x7d6   : > { %4688 = vmatpush.msrb.mxu3 %v4025_v13 }
 0x7d7   : > { %14485 = vst [vmem:[#allocation332_spill] sm:$0xff] %v11309_v3  ;;  %v14133_v42 = vmax.f32 %v11309_v3, 0.0 }
 0x7d8   : > { %4689 = vmatpush.msrb.mxu3 %v4023_v48  ;;  %v4017_v48 = vld [vmem:[%s13757_s3 + $0x48] sm:$0xff] }
 0x7d9   : > { %4659 = vmatmul.f32.gmra.mxu2 %v14133_v42 }
 0x7da   : > { %v2721_v18 = vpop.f32.mrf.mxu0  ;;  %v3362_v60 = vpop.f32.mrf.mxu1  ;;  %4690 = vmatpush.msrb.mxu3 %v4021_v30  ;;  %v4015_v30 = vld [vmem:[%s13757_s3 + $0x38] sm:$0xff] }
 0x7db   : > { %v3582_v24 = vmax.f32 %v2721_v18, %v3362_v60  ;;  %v11332_v18 = vpop.f32.mrf.mxu2 }
 0x7dc   : > { %14488 = vst [vmem:[#allocation335_spill] sm:$0xff] %v11332_v18  ;;  %v4011_v18 = vld [vmem:[%s13757_s3 + $0x18] sm:$0xff] }
 0x7dd   : > { %v11326_v6 = vadd.f32 %v10845_v0, %v3582_v24  ;;  %v4019_v24 = vld [vmem:[%s13757_s3 + $0x58] sm:$0xff] }
 0x7de   : > { %4691 = vmatpush.msrb.mxu3 %v4019_v24 }
 0x7df   : > { %14487 = vst [vmem:[#allocation334_spill] sm:$0xff] %v11326_v6  ;;  %v14136_v42 = vmax.f32 %v11326_v6, 0.0 }
 0x7e0   : > { %4692 = vmatpush.msrb.mxu3 %v4017_v48  ;;  %v4009_v48 = vld [vmem:[%s13757_s3 + $0x8] sm:$0xff] }
 0x7e1   : > { %4662 = vmatmul.f32.gmra.mxu2 %v14136_v42 }
 0x7e2   : > { %v2724_v60 = vpop.f32.mrf.mxu0  ;;  %v3365_v13 = vpop.f32.mrf.mxu1  ;;  %4693 = vmatpush.msrb.mxu3 %v4015_v30 }
 0x7e3   : > { %v3583_v3 = vmax.f32 %v2724_v60, %v3365_v13  ;;  %v4013_v60 = vld [vmem:[%s13757_s3 + $0x28] sm:$0xff] }
 0x7e4   : > { %4694 = vmatpush.msrb.mxu3 %v4013_v60  ;;  %v8101_v60 = vld [vmem:[%s13759_s5 + $0x1f8] sm:$0xff] }
 0x7e5   : > { %v11343_v54 = vadd.f32 %v10845_v0, %v3583_v3 }
 0x7e6   : > { %4695 = vmatpush.msrb.mxu3 %v4011_v18 }
 0x7e7   : > { %14489 = vst [vmem:[#allocation336_spill] sm:$0xff] %v11343_v54  ;;  %v14137_v42 = vmax.f32 %v11343_v54, 0.0 }
 0x7e8   : > { %4696 = vmatpush.msrb.mxu3 %v4009_v48 }
 0x7e9   : > { %4665 = vmatmul.f32.vlgmr.msra.gmra.mxu3 %v14137_v42 }
 0x7ea   : > { %v2727_v13 = vpop.f32.mrf.mxu0  ;;  %v3368_v24 = vpop.f32.mrf.mxu1  ;;  %6228 = vmatpush.msra.mxu3 %v8101_v60 }
 0x7eb   : > { %v3584_v3 = vmax.f32 %v2727_v13, %v3368_v24 }
 0x7ed   : > { %v11361_v30 = vadd.f32 %v10845_v0, %v3584_v3 }
 0x7ef   : > { %14490 = vst [vmem:[#allocation337_spill] sm:$0xff] %v11361_v30  ;;  %v14141_v42 = vmax.f32 %v11361_v30, 0.0 }
 0x7f1   : > { %4668 = vmatmul.f32.gmra.mxu3 %v14141_v42  ;;  %v8068_v42 = vld [vmem:[%s13759_s5 + $0xf0] sm:$0xff] }
 0x7f2   : > { %v2730_v13 = vpop.f32.mrf.mxu0  ;;  %v3371_v24 = vpop.f32.mrf.mxu1  ;;  %5984 = vmatpush.msrb.mxu0 %v8068_v42  ;;  %v5965_v42 = vld [vmem:[%s13759_s5 + $0x78] sm:$0xff] }
 0x7f3   : > { %v3585_v54 = vmax.f32 %v2730_v13, %v3371_v24  ;;  %6048 = vmatpush.msrb.mxu1 %v5965_v42  ;;  %v14500_v42 = vmax.f32 %v9221_v59, 0.0  ;;  %v5961_v59 = vld [vmem:[%s13759_s5 + $0x58] sm:$0xff] }
 0x7f5   : > { %v11370_v6 = vadd.f32 %v10845_v0, %v3585_v54 }
 0x7f7   : > { %v14143_v3 = vmax.f32 %v11370_v6, 0.0 }
 0x7f9   : > { %4671 = vmatmul.f32.gmra.mxu3 %v14143_v3 }
 0x7fa   : > { %v2733_v18 = vpop.f32.mrf.mxu0  ;;  %v3374_v48 = vpop.f32.mrf.mxu1 }
 0x7fb   : > { %v3586_v30 = vmax.f32 %v2733_v18, %v3374_v48  ;;  %v14492_v48 = vmax.f32 %v9149_v11, 0.0  ;;  %v14497_v11 = vmax.f32 %v9194_v41, 0.0  ;;  %v5963_v41 = vld [vmem:[%s13759_s5 + $0x68] sm:$0xff] }
 0x7fd   : > { %v11379_v12 = vadd.f32 %v10845_v0, %v3586_v30  ;;  %v14491_v30 = vmax.f32 %v9140_v5, 0.0  ;;  %v14496_v5 = vmax.f32 %v9185_v35, 0.0  ;;  %v5964_v35 = vld [vmem:[%s13759_s5 + $0x70] sm:$0xff] }
 0x7fe   : > { %6049 = vmatpush.msrb.mxu1 %v5964_v35  ;;  %v14504_v35 = vmax.f32 %v9257_v28, 0.0  ;;  %v14510_v28 = vmax.f32 %v9284_v56, 0.0 }
 0x7ff   : > { %v14145_v60 = vmax.f32 %v11379_v12, 0.0 }
 0x800   : > { %6050 = vmatpush.msrb.mxu1 %v5963_v41  ;;  %v5950_v41 = vld [vmem:[%s13759_s5] sm:$0xff] }
 0x801   : > { %4674 = vmatmul.f32.gmra.mxu3 %v14145_v60 }
 0x802   : > { %v2736_v54 = vpop.f32.mrf.mxu0  ;;  %v3377_v13 = vpop.f32.mrf.mxu1 }
 0x803   : > { %v3587_v24 = vmax.f32 %v2736_v54, %v3377_v13  ;;  %v14493_v54 = vmax.f32 %v9158_v17, 0.0  ;;  %v8085_v13 = vld [vmem:[%s13759_s5 + $0x178] sm:$0xff]  ;;  %v14498_v17 = vmax.f32 %v9203_v47, 0.0  ;;  %v14501_v47 = vmax.f32 %v9230_v2, 0.0  ;;  %v5959_v2 = vld [vmem:[%s13759_s5 + $0x48] sm:$0xff] }
 0x804   : > { %6130 = vmatpush.msrb.mxu2 %v8085_v13  ;;  %v5957_v13 = vld [vmem:[%s13759_s5 + $0x38] sm:$0xff] }
 0x805   : > { %v11385_v3 = vadd.f32 %v10845_v0, %v3587_v24  ;;  %v14494_v0 = vmax.f32 %v9167_v23, 0.0  ;;  %v14495_v24 = vmax.f32 %v9176_v29, 0.0  ;;  %v14499_v23 = vmax.f32 %v9212_v53, 0.0  ;;  %v8100_v29 = vld [vmem:[%s13759_s5 + $0x1f0] sm:$0xff]  ;;  %v5962_v53 = vld [vmem:[%s13759_s5 + $0x60] sm:$0xff] }
 0x806   : > { %6229 = vmatpush.msra.mxu3 %v8100_v29  ;;  %6051 = vmatpush.msrb.mxu1 %v5962_v53  ;;  %v5952_v29 = vld [vmem:[%s13759_s5 + $0x10] sm:$0xff]  ;;  %v14506_v53 = vmax.f32 %v9266_v38, 0.0 }
 0x807   : > { %v14144_v18 = vmax.f32 %v11385_v3, 0.0  ;;  %v8084_v38 = vld [vmem:[%s13759_s5 + $0x170] sm:$0xff] }
 0x808   : > { %6052 = vmatpush.msrb.mxu1 %v5961_v59  ;;  %6131 = vmatpush.msrb.mxu2 %v8084_v38 }
 0x809   : > { %4677 = vmatmul.f32.gmra.mxu3 %v14144_v18  ;;  %v14718_v18 = vld [vmem:[#allocation130_spill] sm:$0xff] }
 0x811   : > { %4697 = vmatmul.f32.vlgmr.msrb.gmra.mxu3 %v14491_v30  ;;  %v8067_v30 = vld [vmem:[%s13759_s5 + $0xe8] sm:$0xff] }
 0x812   : > { %5985 = vmatpush.msrb.mxu0 %v8067_v30  ;;  %v14508_v30 = vmax.f32 %v9275_v46, 0.0 }
 0x819   : > { %4700 = vmatmul.f32.gmra.mxu3 %v14492_v48  ;;  %v5960_v48 = vld [vmem:[%s13759_s5 + $0x50] sm:$0xff] }
 0x81a   : > { %6053 = vmatpush.msrb.mxu1 %v5960_v48 }
 0x81c   : > { %6054 = vmatpush.msrb.mxu1 %v5959_v2  ;;  %v11494_v2 = vld [vmem:[%s13758_s4] ss:$0 sm:$0xff] }
 0x821   : > { %4703 = vmatmul.f32.gmra.mxu3 %v14493_v54  ;;  %v14502_v54 = vmax.f32 %v9239_v10, 0.0  ;;  %v5955_v10 = vld [vmem:[%s13759_s5 + $0x28] sm:$0xff] }
 0x829   : > { %4706 = vmatmul.f32.gmra.mxu3 %v14494_v0  ;;  %v5958_v0 = vld [vmem:[%s13759_s5 + $0x40] sm:$0xff] }
 0x82a   : > { %6055 = vmatpush.msrb.mxu1 %v5958_v0 }
 0x82c   : > { %6056 = vmatpush.msrb.mxu1 %v5957_v13 }
 0x831   : > { %4709 = vmatmul.f32.gmra.mxu3 %v14495_v24 }
 0x839   : > { %4712 = vmatmul.f32.gmra.mxu3 %v14496_v5  ;;  %v5956_v5 = vld [vmem:[%s13759_s5 + $0x30] sm:$0xff] }
 0x83a   : > { %6057 = vmatpush.msrb.mxu1 %v5956_v5  ;;  %v14511_v5 = vmax.f32 %v9295_v4, 0.0 }
 0x83c   : > { %6058 = vmatpush.msrb.mxu1 %v5955_v10 }
 0x841   : > { %4715 = vmatmul.f32.gmra.mxu3 %v14497_v11  ;;  %v14503_v11 = vmax.f32 %v9248_v20, 0.0  ;;  %v5951_v20 = vld [vmem:[%s13759_s5 + $0x8] sm:$0xff] }
 0x849   : > { %4718 = vmatmul.f32.gmra.mxu3 %v14498_v17  ;;  %v5954_v17 = vld [vmem:[%s13759_s5 + $0x20] sm:$0xff] }
 0x84a   : > { %6059 = vmatpush.msrb.mxu1 %v5954_v17  ;;  %v14512_v17 = vmax.f32 %v9306_v19, 0.0  ;;  %v14514_v19 = vmax.f32 %v9328_v51, 0.0  ;;  %v14516_v51 = vmax.f32 %v9350_v32, 0.0 }
 0x851   : > { %4721 = vmatmul.f32.gmra.mxu3 %v14499_v23  ;;  %v5953_v23 = vld [vmem:[%s13759_s5 + $0x18] sm:$0xff] }
 0x852   : > { %6060 = vmatpush.msrb.mxu1 %v5953_v23 }
 0x854   : > { %6061 = vmatpush.msrb.mxu1 %v5952_v29 }
 0x856   : > { %6062 = vmatpush.msrb.mxu1 %v5951_v20 }
 0x858   : > { %6063 = vmatpush.msrb.mxu1 %v5950_v41 }
 0x859   : > { %4724 = vmatmul.f32.gmra.mxu3 %v14500_v42 }
 0x861   : > { %4727 = vmatmul.f32.gmra.mxu3 %v14501_v47 }
 0x869   : > { %4730 = vmatmul.f32.gmra.mxu3 %v14502_v54 }
 0x86c   : > { %v11450_v24 = vpop.f32.mrf.mxu3 }
 0x871   : > { %4733 = vmatmul.f32.gmra.mxu3 %v14503_v11 }
 0x874   : > { %v11466_v42 = vpop.f32.mrf.mxu3 }
 0x879   : > { %4736 = vmatmul.f32.gmra.mxu3 %v14504_v35  ;;  %v14513_v35 = vmax.f32 %v9317_v34, 0.0  ;;  %v14515_v34 = vmax.f32 %v9339_v8, 0.0 }
 0x87c   : > { %v11479_v47 = vpop.f32.mrf.mxu3 }
 0x87d   : > { %14505 = vst [vmem:[#allocation338_spill] sm:$0xff] %v11479_v47 }
 0x881   : > { %4739 = vmatmul.f32.gmra.mxu3 %v14506_v53 }
 0x884   : > { %v11483_v59 = vpop.f32.mrf.mxu3 }
 0x885   : > { %14507 = vst [vmem:[#allocation339_spill] sm:$0xff] %v11483_v59  ;;  %v14728_v59 = vld [vmem:[#allocation136_spill] sm:$0xff] }
 0x889   : > { %4742 = vmatmul.f32.gmra.mxu3 %v14508_v30 }
 0x88c   : > { %v11487_v48 = vpop.f32.mrf.mxu3 }
 0x88d   : > { %14509 = vst [vmem:[#allocation340_spill] sm:$0xff] %v11487_v48 }
 0x891   : > { %4745 = vmatmul.f32.gmra.mxu3 %v14510_v28 }
 0x894   : > { %v4698_v54 = vpop.f32.mrf.mxu3 }
 0x895   : > { %v5322_v0 = vmax.f32 %v9290_v1, %v4698_v54 }
 0x897   : > { %v5534_v46 = vadd.f32 %v11494_v2, %v5322_v0 }
 0x899   : > { %v5742_v13 = vmax.f32 %v5534_v46, 0.0  ;;  %4748 = vmatmul.f32.gmra.mxu3 %v14511_v5 }
 0x89b   : > { %6064 = vmatmul.f32.vlgmr.msrb.gmra.mxu1 %v5742_v13 }
 0x89c   : > { %v4701_v56 = vpop.f32.mrf.mxu3 }
 0x89d   : > { %v5323_v10 = vmax.f32 %v9301_v16, %v4701_v56 }
 0x89f   : > { %v5535_v11 = vadd.f32 %v11494_v2, %v5323_v10  ;;  %v14517_v10 = vmax.f32 %v9361_v61, 0.0 }
 0x8a1   : > { %4751 = vmatmul.f32.gmra.mxu3 %v14512_v17  ;;  %v5743_v23 = vmax.f32 %v5535_v11, 0.0 }
 0x8a3   : > { %6067 = vmatmul.f32.gmra.mxu1 %v5743_v23  ;;  %v8066_v23 = vld [vmem:[%s13759_s5 + $0xe0] sm:$0xff] }
 0x8a4   : > { %v4704_v29 = vpop.f32.mrf.mxu3  ;;  %5986 = vmatpush.msrb.mxu0 %v8066_v23 }
 0x8a5   : > { %v5324_v1 = vmax.f32 %v9312_v33, %v4704_v29  ;;  %v14518_v29 = vmax.f32 %v9370_v44, 0.0  ;;  %v14520_v44 = vmax.f32 %v9392_v55, 0.0  ;;  %v8063_v55 = vld [vmem:[%s13759_s5 + $0xc8] sm:$0xff] }
 0x8a7   : > { %v5536_v20 = vadd.f32 %v11494_v2, %v5324_v1 }
 0x8a9   : > { %4754 = vmatmul.f32.gmra.mxu3 %v14513_v35  ;;  %v5744_v4 = vmax.f32 %v5536_v20, 0.0  ;;  %v14519_v35 = vmax.f32 %v9381_v15, 0.0 }
 0x8ab   : > { %6070 = vmatmul.f32.gmra.mxu1 %v5744_v4 }
 0x8ac   : > { %v4707_v41 = vpop.f32.mrf.mxu3 }
 0x8ad   : > { %v5325_v16 = vmax.f32 %v9323_v50, %v4707_v41 }
 0x8af   : > { %v5537_v53 = vadd.f32 %v11494_v2, %v5325_v16 }
 0x8b1   : > { %4757 = vmatmul.f32.gmra.mxu3 %v14514_v19  ;;  %v5745_v30 = vmax.f32 %v5537_v53, 0.0 }
 0x8b3   : > { %6073 = vmatmul.f32.gmra.mxu1 %v5745_v30  ;;  %v8064_v30 = vld [vmem:[%s13759_s5 + $0xd0] sm:$0xff] }
 0x8b4   : > { %v4710_v28 = vpop.f32.mrf.mxu3 }
 0x8b5   : > { %v5326_v33 = vmax.f32 %v9334_v63, %v4710_v28  ;;  %v8099_v63 = vld [vmem:[%s13759_s5 + $0x1e8] sm:$0xff]  ;;  %v14521_v28 = vmax.f32 %v9403_v26, 0.0  ;;  %v8060_v26 = vld [vmem:[%s13759_s5 + $0xb0] sm:$0xff] }
 0x8b6   : > { %6230 = vmatpush.msra.mxu3 %v8099_v63 }
 0x8b7   : > { %v5538_v38 = vadd.f32 %v11494_v2, %v5326_v33 }
 0x8b9   : > { %4760 = vmatmul.f32.gmra.mxu3 %v14515_v34  ;;  %v5746_v54 = vmax.f32 %v5538_v38, 0.0  ;;  %v8061_v38 = vld [vmem:[%s13759_s5 + $0xb8] sm:$0xff] }
 0x8bb   : > { %6076 = vmatmul.f32.gmra.mxu1 %v5746_v54 }
 0x8bc   : > { %v4713_v0 = vpop.f32.mrf.mxu3 }
 0x8bd   : > { %v5327_v50 = vmax.f32 %v9345_v27, %v4713_v0 }
 0x8bf   : > { %v5539_v46 = vadd.f32 %v11494_v2, %v5327_v50  ;;  %v8059_v50 = vld [vmem:[%s13759_s5 + $0xa8] sm:$0xff] }
 0x8c1   : > { %4763 = vmatmul.f32.gmra.mxu3 %v14516_v51  ;;  %v5747_v13 = vmax.f32 %v5539_v46, 0.0  ;;  %v14522_v46 = vmax.f32 %v9414_v40, 0.0  ;;  %v8056_v40 = vld [vmem:[%s13759_s5 + $0x90] sm:$0xff] }
 0x8c3   : > { %6079 = vmatmul.f32.gmra.mxu1 %v5747_v13  ;;  %v8057_v13 = vld [vmem:[%s13759_s5 + $0x98] sm:$0xff] }
 0x8c4   : > { %v4716_v5 = vpop.f32.mrf.mxu3 }
 0x8c5   : > { %v5328_v8 = vmax.f32 %v9356_v58, %v4716_v5 }
 0x8c7   : > { %v5540_v56 = vadd.f32 %v11494_v2, %v5328_v8 }
 0x8c9   : > { %4766 = vmatmul.f32.gmra.mxu3 %v14517_v10  ;;  %v5748_v27 = vmax.f32 %v5540_v56, 0.0  ;;  %v8055_v56 = vld [vmem:[%s13759_s5 + $0x88] sm:$0xff]  ;;  %v14523_v10 = vmax.f32 %v9425_v52, 0.0  ;;  %v14524_v52 = vmax.f32 %v9436_v22, 0.0  ;;  %v14526_v22 = vmax.f32 %v9458_v39, 0.0 }
 0x8cb   : > { %6082 = vmatmul.f32.gmra.mxu1 %v5748_v27 }
 0x8cc   : > { %v4719_v11 = vpop.f32.mrf.mxu3 }
 0x8cd   : > { %v5329_v32 = vmax.f32 %v9367_v43, %v4719_v11  ;;  %v8054_v11 = vld [vmem:[%s13759_s5 + $0x80] sm:$0xff] }
 0x8cf   : > { %v5541_v17 = vadd.f32 %v11494_v2, %v5329_v32 }
 0x8d1   : > { %4769 = vmatmul.f32.gmra.mxu3 %v14518_v29  ;;  %v5749_v58 = vmax.f32 %v5541_v17, 0.0 }
 0x8d3   : > { %6085 = vmatmul.f32.gmra.mxu1 %v5749_v58 }
 0x8d4   : > { %v4722_v1 = vpop.f32.mrf.mxu3 }
 0x8d5   : > { %v5330_v61 = vmax.f32 %v9378_v14, %v4722_v1  ;;  %v8065_v14 = vld [vmem:[%s13759_s5 + $0xd8] sm:$0xff] }
 0x8d6   : > { %5987 = vmatpush.msrb.mxu0 %v8065_v14 }
 0x8d7   : > { %v5542_v20 = vadd.f32 %v11494_v2, %v5330_v61 }
 0x8d8   : > { %5988 = vmatpush.msrb.mxu0 %v8064_v30  ;;  %v14529_v30 = vld [vmem:[#allocation7_spill] sm:$0xff] }
 0x8d9   : > { %4772 = vmatmul.f32.gmra.mxu3 %v14519_v35  ;;  %v5750_v43 = vmax.f32 %v5542_v20, 0.0  ;;  %v14525_v20 = vmax.f32 %v9447_v57, 0.0  ;;  %v14527_v57 = vmax.f32 %v9469_v21, 0.0  ;;  %v14530_v39 = vmax.f32 %v14529_v30, 0.0 }
 0x8da   : > { %5989 = vmatpush.msrb.mxu0 %v8063_v55 }
 0x8db   : > { %6088 = vmatmul.f32.gmra.mxu1 %v5750_v43 }
 0x8dc   : > { %v4725_v4 = vpop.f32.mrf.mxu3 }
 0x8dd   : > { %v5331_v41 = vmax.f32 %v9389_v62, %v4725_v4 }
 0x8df   : > { %v5543_v16 = vadd.f32 %v11494_v2, %v5331_v41 }
 0x8e1   : > { %4775 = vmatmul.f32.gmra.mxu3 %v14520_v44  ;;  %v5751_v53 = vmax.f32 %v5543_v16, 0.0 }
 0x8e3   : > { %6091 = vmatmul.f32.gmra.mxu1 %v5751_v53 }
 0x8e4   : > { %v4728_v19 = vpop.f32.mrf.mxu3 }
 0x8e5   : > { %v5332_v15 = vmax.f32 %v9400_v45, %v4728_v19  ;;  %v8062_v45 = vld [vmem:[%s13759_s5 + $0xc0] sm:$0xff] }
 0x8e6   : > { %5990 = vmatpush.msrb.mxu0 %v8062_v45  ;;  %v14528_v19 = vld [vmem:[#allocation6_spill] sm:$0xff]  ;;  %v14532_v45 = vld [vmem:[#allocation9_spill] sm:$0xff] }
 0x8e7   : > { %v5544_v62 = vadd.f32 %v11494_v2, %v5332_v15 }
 0x8e8   : > { %5991 = vmatpush.msrb.mxu0 %v8061_v38  ;;  %v14533_v38 = vmax.f32 %v14532_v45, 0.0 }
 0x8e9   : > { %4778 = vmatmul.f32.gmra.mxu3 %v14521_v28  ;;  %v5752_v33 = vmax.f32 %v5544_v62, 0.0  ;;  %v14531_v28 = vld [vmem:[#allocation8_spill] sm:$0xff] }
 0x8ea   : > { %5992 = vmatpush.msrb.mxu0 %v8060_v26  ;;  %v14534_v26 = vld [vmem:[#allocation10_spill] sm:$0xff] }
 0x8eb   : > { %6094 = vmatmul.f32.gmra.mxu1 %v5752_v33 }
 0x8ec   : > { %v4731_v34 = vpop.f32.mrf.mxu3  ;;  %5993 = vmatpush.msrb.mxu0 %v8059_v50 }
 0x8ed   : > { %v5333_v54 = vmax.f32 %v9411_v25, %v4731_v34  ;;  %v8058_v25 = vld [vmem:[%s13759_s5 + $0xa0] sm:$0xff] }
 0x8ee   : > { %5994 = vmatpush.msrb.mxu0 %v8058_v25  ;;  %v8098_v34 = vld [vmem:[%s13759_s5 + $0x1e0] sm:$0xff] }
 0x8ef   : > { %v5545_v0 = vadd.f32 %v11494_v2, %v5333_v54  ;;  %6231 = vmatpush.msra.mxu3 %v8098_v34 }
 0x8f0   : > { %5995 = vmatpush.msrb.mxu0 %v8057_v13 }
 0x8f1   : > { %4781 = vmatmul.f32.gmra.mxu3 %v14522_v46  ;;  %v5753_v51 = vmax.f32 %v5545_v0, 0.0  ;;  %v14535_v46 = vld [vmem:[#allocation11_spill] sm:$0xff] }
 0x8f2   : > { %5996 = vmatpush.msrb.mxu0 %v8056_v40 }
 0x8f3   : > { %6097 = vmatmul.f32.gmra.mxu1 %v5753_v51  ;;  %v14536_v51 = vmax.f32 %v14535_v46, 0.0  ;;  %v8079_v46 = vld [vmem:[%s13759_s5 + $0x148] sm:$0xff] }
 0x8f4   : > { %v4734_v63 = vpop.f32.mrf.mxu3  ;;  %5997 = vmatpush.msrb.mxu0 %v8055_v56 }
 0x8f5   : > { %v5334_v5 = vmax.f32 %v9422_v9, %v4734_v63  ;;  %v8083_v9 = vld [vmem:[%s13759_s5 + $0x168] sm:$0xff]  ;;  %v14537_v63 = vld [vmem:[#allocation12_spill] sm:$0xff] }
 0x8f6   : > { %6132 = vmatpush.msrb.mxu2 %v8083_v9  ;;  %5998 = vmatpush.msrb.mxu0 %v8054_v11  ;;  %v14540_v9 = vld [vmem:[#allocation14_spill] sm:$0xff] }
 0x8f7   : > { %v5546_v8 = vadd.f32 %v11494_v2, %v5334_v5 }
 0x8f9   : > { %4784 = vmatmul.f32.gmra.mxu3 %v14523_v10  ;;  %v5754_v27 = vmax.f32 %v5546_v8, 0.0  ;;  %v14538_v8 = vld [vmem:[#allocation13_spill] sm:$0xff] }
 0x8fa   : > { %v14539_v56 = vmax.f32 %v14538_v8, 0.0  ;;  %v14558_v8 = vld [vmem:[#allocation26_spill] sm:$0xff] }
 0x8fb   : > { %6100 = vmatmul.f32.gmra.mxu1 %v5754_v27 }
 0x8fc   : > { %v4737_v32 = vpop.f32.mrf.mxu3 }
 0x8fd   : > { %v5335_v17 = vmax.f32 %v9433_v37, %v4737_v32 }
 0x8ff   : > { %v5547_v23 = vadd.f32 %v11494_v2, %v5335_v17  ;;  %v14541_v17 = vld [vmem:[#allocation15_spill] sm:$0xff] }
 0x901   : > { %4787 = vmatmul.f32.gmra.mxu3 %v14524_v52  ;;  %v5755_v29 = vmax.f32 %v5547_v23, 0.0  ;;  %v14542_v23 = vmax.f32 %v14541_v17, 0.0 }
 0x903   : > { %6103 = vmatmul.f32.gmra.mxu1 %v5755_v29 }
 0x904   : > { %v4740_v58 = vpop.f32.mrf.mxu3 }
 0x905   : > { %v5336_v1 = vmax.f32 %v9444_v7, %v4740_v58  ;;  %v14543_v58 = vld [vmem:[#allocation16_spill] sm:$0xff] }
 0x907   : > { %v5548_v61 = vadd.f32 %v11494_v2, %v5336_v1 }
 0x909   : > { %4790 = vmatmul.f32.gmra.mxu3 %v14525_v20  ;;  %v5756_v35 = vmax.f32 %v5548_v61, 0.0  ;;  %v14544_v20 = vld [vmem:[#allocation17_spill] sm:$0xff] }
 0x90b   : > { %6106 = vmatmul.f32.gmra.mxu1 %v5756_v35  ;;  %v14545_v35 = vmax.f32 %v14544_v20, 0.0 }
 0x90c   : > { %v4743_v43 = vpop.f32.mrf.mxu3 }
 0x90d   : > { %v5337_v37 = vmax.f32 %v9455_v49, %v4743_v43 }
 0x90f   : > { %v5549_v4 = vadd.f32 %v11494_v2, %v5337_v37 }
 0x911   : > { %4793 = vmatmul.f32.gmra.mxu3 %v14526_v22  ;;  %v5757_v41 = vmax.f32 %v5549_v4, 0.0  ;;  %v14546_v4 = vld [vmem:[#allocation18_spill] sm:$0xff] }
 0x913   : > { %6109 = vmatmul.f32.gmra.mxu1 %v5757_v41 }
 0x914   : > { %v4746_v16 = vpop.f32.mrf.mxu3 }
 0x915   : > { %v5338_v7 = vmax.f32 %v9466_v31, %v4746_v16  ;;  %v14547_v16 = vld [vmem:[#allocation19_spill] sm:$0xff] }
 0x917   : > { %v5550_v44 = vadd.f32 %v11494_v2, %v5338_v7  ;;  %v14548_v7 = vmax.f32 %v14547_v16, 0.0  ;;  %v11702_v16 = vpop.f32.mrf.mxu2 }
 0x918   : > { %14564 = vst [vmem:[#allocation6_spill] sm:$0xff] %v11702_v16  ;;  %v14850_v16 = vld [vmem:[#allocation213_spill] sm:$0xff] }
 0x919   : > { %v5758_v53 = vmax.f32 %v5550_v44, 0.0  ;;  %4796 = vmatmul.f32.gmra.mxu3 %v14527_v57  ;;  %v14549_v57 = vld [vmem:[#allocation20_spill] sm:$0xff] }
 0x91b   : > { %5999 = vmatmul.f32.vlgmr.msrb.gmra.mxu0 %v5758_v53 }
 0x91c   : > { %v4749_v14 = vpop.f32.mrf.mxu3 }
 0x91d   : > { %v5339_v49 = vmax.f32 %v14528_v19, %v4749_v14 }
 0x91f   : > { %v5551_v15 = vadd.f32 %v11494_v2, %v5339_v49  ;;  %v14550_v49 = vld [vmem:[#allocation21_spill] sm:$0xff] }
 0x921   : > { %4799 = vmatmul.f32.gmra.mxu3 %v14530_v39  ;;  %v5759_v62 = vmax.f32 %v5551_v15, 0.0  ;;  %v14551_v15 = vmax.f32 %v14550_v49, 0.0 }
 0x923   : > { %6002 = vmatmul.f32.gmra.mxu0 %v5759_v62  ;;  %v14552_v62 = vld [vmem:[#allocation22_spill] sm:$0xff] }
 0x924   : > { %v4752_v55 = vpop.f32.mrf.mxu3 }
 0x925   : > { %v5340_v31 = vmax.f32 %v14531_v28, %v4752_v55 }
 0x927   : > { %v5552_v33 = vadd.f32 %v11494_v2, %v5340_v31  ;;  %v8082_v31 = vld [vmem:[%s13759_s5 + $0x160] sm:$0xff] }
 0x928   : > { %6133 = vmatpush.msrb.mxu2 %v8082_v31 }
 0x929   : > { %4802 = vmatmul.f32.gmra.mxu3 %v14533_v38  ;;  %v5760_v21 = vmax.f32 %v5552_v33, 0.0  ;;  %v14553_v33 = vld [vmem:[#allocation23_spill] sm:$0xff] }
 0x92a   : > { %v14554_v45 = vmax.f32 %v14553_v33, 0.0 }
 0x92b   : > { %6005 = vmatmul.f32.gmra.mxu0 %v5760_v21  ;;  %v8081_v21 = vld [vmem:[%s13759_s5 + $0x158] sm:$0xff] }
 0x92c   : > { %v4755_v54 = vpop.f32.mrf.mxu3  ;;  %6134 = vmatpush.msrb.mxu2 %v8081_v21 }
 0x92d   : > { %v5341_v0 = vmax.f32 %v14534_v26, %v4755_v54  ;;  %v14555_v54 = vld [vmem:[#allocation24_spill] sm:$0xff] }
 0x92f   : > { %v5553_v50 = vadd.f32 %v11494_v2, %v5341_v0  ;;  %v8080_v0 = vld [vmem:[%s13759_s5 + $0x150] sm:$0xff] }
 0x930   : > { %6135 = vmatpush.msrb.mxu2 %v8080_v0 }
 0x931   : > { %4805 = vmatmul.f32.gmra.mxu3 %v14536_v51  ;;  %v5761_v25 = vmax.f32 %v5553_v50, 0.0  ;;  %v14556_v51 = vld [vmem:[#allocation25_spill] sm:$0xff] }
 0x932   : > { %6136 = vmatpush.msrb.mxu2 %v8079_v46 }
 0x933   : > { %6008 = vmatmul.f32.gmra.mxu0 %v5761_v25  ;;  %v14557_v25 = vmax.f32 %v14556_v51, 0.0  ;;  %v14576_v51 = vld [vmem:[#allocation36_spill] sm:$0xff] }
 0x934   : > { %v4758_v13 = vpop.f32.mrf.mxu3 }
 0x935   : > { %v5342_v5 = vmax.f32 %v14537_v63, %v4758_v13  ;;  %v8078_v63 = vld [vmem:[%s13759_s5 + $0x140] sm:$0xff] }
 0x936   : > { %6137 = vmatpush.msrb.mxu2 %v8078_v63 }
 0x937   : > { %v5554_v40 = vadd.f32 %v11494_v2, %v5342_v5  ;;  %v8077_v5 = vld [vmem:[%s13759_s5 + $0x138] sm:$0xff] }
 0x938   : > { %6138 = vmatpush.msrb.mxu2 %v8077_v5  ;;  %v14577_v5 = vld [vmem:[#allocation37_spill] sm:$0xff] }
 0x939   : > { %4808 = vmatmul.f32.gmra.mxu3 %v14539_v56  ;;  %v5762_v10 = vmax.f32 %v5554_v40, 0.0 }
 0x93b   : > { %6011 = vmatmul.f32.gmra.mxu0 %v5762_v10  ;;  %v8076_v10 = vld [vmem:[%s13759_s5 + $0x130] sm:$0xff] }
 0x93c   : > { %v4761_v27 = vpop.f32.mrf.mxu3  ;;  %6139 = vmatpush.msrb.mxu2 %v8076_v10  ;;  %v14580_v10 = vld [vmem:[#allocation38_spill] sm:$0xff] }
 0x93d   : > { %v5343_v11 = vmax.f32 %v14540_v9, %v4761_v27  ;;  %v8075_v9 = vld [vmem:[%s13759_s5 + $0x128] sm:$0xff] }
 0x93e   : > { %6140 = vmatpush.msrb.mxu2 %v8075_v9 }
 0x93f   : > { %v5555_v32 = vadd.f32 %v11494_v2, %v5343_v11  ;;  %v14559_v11 = vld [vmem:[#allocation27_spill] sm:$0xff] }
 0x941   : > { %4811 = vmatmul.f32.gmra.mxu3 %v14542_v23  ;;  %v5763_v52 = vmax.f32 %v5555_v32, 0.0  ;;  %v14560_v32 = vmax.f32 %v14559_v11, 0.0  ;;  %v8074_v23 = vld [vmem:[%s13759_s5 + $0x120] sm:$0xff]  ;;  %v14581_v11 = vld [vmem:[#allocation39_spill] sm:$0xff] }
 0x942   : > { %6141 = vmatpush.msrb.mxu2 %v8074_v23 }
 0x943   : > { %6014 = vmatmul.f32.gmra.mxu0 %v5763_v52  ;;  %v8073_v52 = vld [vmem:[%s13759_s5 + $0x118] sm:$0xff] }
 0x944   : > { %v4764_v29 = vpop.f32.mrf.mxu3  ;;  %6142 = vmatpush.msrb.mxu2 %v8073_v52 }
 0x945   : > { %v5344_v1 = vmax.f32 %v14543_v58, %v4764_v29  ;;  %v14561_v58 = vld [vmem:[#allocation28_spill] sm:$0xff] }
 0x947   : > { %v5556_v61 = vadd.f32 %v11494_v2, %v5344_v1 }
 0x949   : > { %4814 = vmatmul.f32.gmra.mxu3 %v14545_v35  ;;  %v5764_v43 = vmax.f32 %v5556_v61, 0.0  ;;  %v8072_v61 = vld [vmem:[%s13759_s5 + $0x110] sm:$0xff]  ;;  %v8071_v35 = vld [vmem:[%s13759_s5 + $0x108] sm:$0xff] }
 0x94a   : > { %6143 = vmatpush.msrb.mxu2 %v8072_v61  ;;  %v14585_v61 = vld [vmem:[#allocation41_spill] sm:$0xff] }
 0x94b   : > { %6017 = vmatmul.f32.gmra.mxu0 %v5764_v43  ;;  %v14562_v43 = vld [vmem:[#allocation29_spill] sm:$0xff] }
 0x94c   : > { %v4767_v37 = vpop.f32.mrf.mxu3  ;;  %6144 = vmatpush.msrb.mxu2 %v8071_v35 }
 0x94d   : > { %v5345_v22 = vmax.f32 %v14546_v4, %v4767_v37  ;;  %v14563_v37 = vmax.f32 %v14562_v43, 0.0 }
 0x94f   : > { %v5557_v41 = vadd.f32 %v11494_v2, %v5345_v22  ;;  %v8070_v22 = vld [vmem:[%s13759_s5 + $0x100] sm:$0xff] }
 0x950   : > { %6145 = vmatpush.msrb.mxu2 %v8070_v22 }
 0x951   : > { %4817 = vmatmul.f32.gmra.mxu3 %v14548_v7  ;;  %v5765_v44 = vmax.f32 %v5557_v41, 0.0  ;;  %v14565_v7 = vld [vmem:[#allocation30_spill] sm:$0xff] }
 0x953   : > { %6020 = vmatmul.f32.gmra.mxu0 %v5765_v44 }
 0x954   : > { %v4770_v53 = vpop.f32.mrf.mxu3 }
 0x955   : > { %v5346_v14 = vmax.f32 %v14549_v57, %v4770_v53  ;;  %v14566_v57 = vld [vmem:[#allocation31_spill] sm:$0xff] }
 0x957   : > { %v5558_v19 = vadd.f32 %v11494_v2, %v5346_v14  ;;  %v14567_v14 = vmax.f32 %v14566_v57, 0.0 }
 0x959   : > { %4820 = vmatmul.f32.gmra.mxu3 %v14551_v15  ;;  %v5766_v30 = vmax.f32 %v5558_v19, 0.0  ;;  %v14568_v15 = vld [vmem:[#allocation32_spill] sm:$0xff] }
 0x95b   : > { %6023 = vmatmul.f32.gmra.mxu0 %v5766_v30 }
 0x95c   : > { %v4773_v39 = vpop.f32.mrf.mxu3 }
 0x95d   : > { %v5347_v55 = vmax.f32 %v14552_v62, %v4773_v39  ;;  %v11709_v39 = vpop.f32.mrf.mxu2 }
 0x95e   : > { %14569 = vst [vmem:[#allocation7_spill] sm:$0xff] %v11709_v39 }
 0x95f   : > { %v5559_v28 = vadd.f32 %v11494_v2, %v5347_v55  ;;  %v14570_v55 = vld [vmem:[#allocation33_spill] sm:$0xff] }
 0x961   : > { %4823 = vmatmul.f32.gmra.mxu3 %v14554_v45  ;;  %v5767_v38 = vmax.f32 %v5559_v28, 0.0  ;;  %v14571_v28 = vmax.f32 %v14570_v55, 0.0  ;;  %v14572_v45 = vld [vmem:[#allocation34_spill] sm:$0xff] }
 0x963   : > { %6026 = vmatmul.f32.gmra.mxu0 %v5767_v38 }
 0x964   : > { %v4776_v34 = vpop.f32.mrf.mxu3 }
 0x965   : > { %v5348_v26 = vmax.f32 %v14555_v54, %v4776_v34  ;;  %v11716_v34 = vpop.f32.mrf.mxu2  ;;  %v14574_v54 = vld [vmem:[#allocation35_spill] sm:$0xff] }
 0x966   : > { %14573 = vst [vmem:[#allocation8_spill] sm:$0xff] %v11716_v34 }
 0x967   : > { %v5560_v50 = vadd.f32 %v11494_v2, %v5348_v26  ;;  %v14575_v26 = vmax.f32 %v14574_v54, 0.0 }
 0x969   : > { %4826 = vmatmul.f32.gmra.mxu3 %v14557_v25  ;;  %v5768_v13 = vmax.f32 %v5560_v50, 0.0  ;;  %v8097_v50 = vld [vmem:[%s13759_s5 + $0x1d8] sm:$0xff] }
 0x96a   : > { %6232 = vmatpush.msra.mxu3 %v8097_v50  ;;  %v14599_v50 = vld [vmem:[#allocation48_spill] sm:$0xff] }
 0x96b   : > { %6029 = vmatmul.f32.gmra.mxu0 %v5768_v13 }
 0x96c   : > { %v4779_v40 = vpop.f32.mrf.mxu3 }
 0x96d   : > { %v5349_v56 = vmax.f32 %v14558_v8, %v4779_v40  ;;  %v14578_v40 = vmax.f32 %v14577_v5, 0.0  ;;  %v11727_v8 = vpop.f32.mrf.mxu2 }
 0x96e   : > { %14579 = vst [vmem:[#allocation9_spill] sm:$0xff] %v11727_v8 }
 0x96f   : > { %v5561_v27 = vadd.f32 %v11494_v2, %v5349_v56 }
 0x971   : > { %4829 = vmatmul.f32.gmra.mxu3 %v14560_v32  ;;  %v5769_v17 = vmax.f32 %v5561_v27, 0.0  ;;  %v14582_v32 = vmax.f32 %v14581_v11, 0.0 }
 0x973   : > { %6032 = vmatmul.f32.gmra.mxu0 %v5769_v17 }
 0x974   : > { %v4782_v29 = vpop.f32.mrf.mxu3 }
 0x975   : > { %v5350_v1 = vmax.f32 %v14561_v58, %v4782_v29  ;;  %v11733_v52 = vpop.f32.mrf.mxu2  ;;  %v14584_v29 = vld [vmem:[#allocation40_spill] sm:$0xff] }
 0x976   : > { %14583 = vst [vmem:[#allocation10_spill] sm:$0xff] %v11733_v52 }
 0x977   : > { %v5562_v20 = vadd.f32 %v11494_v2, %v5350_v1 }
 0x979   : > { %4832 = vmatmul.f32.gmra.mxu3 %v14563_v37  ;;  %v5770_v4 = vmax.f32 %v5562_v20, 0.0  ;;  %v14586_v20 = vmax.f32 %v14585_v61, 0.0  ;;  %v14587_v37 = vld [vmem:[#allocation42_spill] sm:$0xff]  ;;  %v14608_v61 = vld [vmem:[#allocation53_spill] sm:$0xff] }
 0x97b   : > { %6035 = vmatmul.f32.gmra.mxu0 %v5770_v4 }
 0x97c   : > { %v4785_v41 = vpop.f32.mrf.mxu3 }
 0x97d   : > { %v5351_v44 = vmax.f32 %v14565_v7, %v4785_v41  ;;  %v11740_v22 = vpop.f32.mrf.mxu2  ;;  %v14589_v7 = vld [vmem:[#allocation43_spill] sm:$0xff] }
 0x97e   : > { %14588 = vst [vmem:[#allocation11_spill] sm:$0xff] %v11740_v22 }
 0x97f   : > { %v5563_v53 = vadd.f32 %v11494_v2, %v5351_v44  ;;  %v14590_v44 = vmax.f32 %v14589_v7, 0.0 }
 0x981   : > { %4835 = vmatmul.f32.gmra.mxu3 %v14567_v14  ;;  %v5771_v19 = vmax.f32 %v5563_v53, 0.0  ;;  %v14591_v14 = vld [vmem:[#allocation44_spill] sm:$0xff] }
 0x983   : > { %6038 = vmatmul.f32.gmra.mxu0 %v5771_v19 }
 0x984   : > { %v4788_v49 = vpop.f32.mrf.mxu3 }
 0x985   : > { %v5352_v30 = vmax.f32 %v14568_v15, %v4788_v49  ;;  %v11747_v15 = vpop.f32.mrf.mxu2 }
 0x986   : > { %14592 = vst [vmem:[#allocation12_spill] sm:$0xff] %v11747_v15  ;;  %v14778_v15 = vld [vmem:[#allocation164_spill] sm:$0xff] }
 0x987   : > { %v5564_v62 = vadd.f32 %v11494_v2, %v5352_v30  ;;  %v14593_v30 = vld [vmem:[#allocation45_spill] sm:$0xff] }
 0x989   : > { %4838 = vmatmul.f32.gmra.mxu3 %v14571_v28  ;;  %v5772_v31 = vmax.f32 %v5564_v62, 0.0  ;;  %v14594_v62 = vmax.f32 %v14593_v30, 0.0 }
 0x98b   : > { %6041 = vmatmul.f32.gmra.mxu0 %v5772_v31  ;;  %v14595_v31 = vld [vmem:[#allocation46_spill] sm:$0xff] }
 0x98c   : > { %v4791_v33 = vpop.f32.mrf.mxu3 }
 0x98d   : > { %v5353_v38 = vmax.f32 %v14572_v45, %v4791_v33 }
 0x98f   : > { %v5565_v21 = vadd.f32 %v11494_v2, %v5353_v38  ;;  %v14596_v38 = vld [vmem:[#allocation47_spill] sm:$0xff] }
 0x991   : > { %4841 = vmatmul.f32.gmra.mxu3 %v14575_v26  ;;  %v5773_v0 = vmax.f32 %v5565_v21, 0.0  ;;  %v14597_v21 = vmax.f32 %v14596_v38, 0.0  ;;  %v11755_v26 = vpop.f32.mrf.mxu2 }
 0x992   : > { %14598 = vst [vmem:[#allocation13_spill] sm:$0xff] %v11755_v26 }
 0x993   : > { %6044 = vmatmul.f32.gmra.mxu0 %v5773_v0 }
 0x994   : > { %v4794_v46 = vpop.f32.mrf.mxu3 }
 0x995   : > { %v5354_v25 = vmax.f32 %v14576_v51, %v4794_v46 }
 0x997   : > { %v5566_v13 = vadd.f32 %v11494_v2, %v5354_v25  ;;  %v14600_v25 = vld [vmem:[#allocation49_spill] sm:$0xff] }
 0x999   : > { %v5774_v63 = vmax.f32 %v5566_v13, 0.0  ;;  %4844 = vmatmul.f32.gmra.mxu3 %v14578_v40  ;;  %v14601_v13 = vmax.f32 %v14600_v25, 0.0  ;;  %v11761_v40 = vpop.f32.mrf.mxu2  ;;  %v14622_v25 = vld [vmem:[#allocation60_spill] sm:$0xff] }
 0x99a   : > { %14602 = vst [vmem:[#allocation14_spill] sm:$0xff] %v11761_v40  ;;  %v14774_v40 = vld [vmem:[#allocation162_spill] sm:$0xff] }
 0x99b   : > { %6146 = vmatmul.f32.vlgmr.msrb.gmra.mxu2 %v5774_v63 }
 0x99c   : > { %v4797_v56 = vpop.f32.mrf.mxu3 }
 0x99d   : > { %v5355_v27 = vmax.f32 %v14580_v10, %v4797_v56  ;;  %v14603_v56 = vld [vmem:[#allocation50_spill] sm:$0xff] }
 0x99f   : > { %v5567_v9 = vadd.f32 %v11494_v2, %v5355_v27 }
 0x9a1   : > { %4847 = vmatmul.f32.gmra.mxu3 %v14582_v32  ;;  %v5775_v17 = vmax.f32 %v5567_v9, 0.0  ;;  %v14604_v9 = vld [vmem:[#allocation51_spill] sm:$0xff] }
 0x9a2   : > { %v14605_v11 = vmax.f32 %v14604_v9, 0.0 }
 0x9a3   : > { %6149 = vmatmul.f32.gmra.mxu2 %v5775_v17 }
 0x9a4   : > { %v4800_v23 = vpop.f32.mrf.mxu3 }
 0x9a5   : > { %v5356_v58 = vmax.f32 %v14584_v29, %v4800_v23  ;;  %v14606_v23 = vld [vmem:[#allocation52_spill] sm:$0xff] }
 0x9a7   : > { %v5568_v1 = vadd.f32 %v11494_v2, %v5356_v58  ;;  %v11768_v58 = vpop.f32.mrf.mxu2 }
 0x9a8   : > { %14607 = vst [vmem:[#allocation15_spill] sm:$0xff] %v11768_v58 }
 0x9a9   : > { %4850 = vmatmul.f32.gmra.mxu3 %v14586_v20  ;;  %v5776_v35 = vmax.f32 %v5568_v1, 0.0  ;;  %v14609_v20 = vmax.f32 %v14608_v61, 0.0 }
 0x9ab   : > { %6152 = vmatmul.f32.gmra.mxu2 %v5776_v35 }
 0x9ac   : > { %v4803_v43 = vpop.f32.mrf.mxu3 }
 0x9ad   : > { %v5357_v4 = vmax.f32 %v14587_v37, %v4803_v43  ;;  %v14610_v37 = vld [vmem:[#allocation54_spill] sm:$0xff] }
 0x9af   : > { %v5569_v41 = vadd.f32 %v11494_v2, %v5357_v4  ;;  %v11775_v7 = vpop.f32.mrf.mxu2 }
 0x9b0   : > { %14611 = vst [vmem:[#allocation16_spill] sm:$0xff] %v11775_v7 }
 0x9b1   : > { %4853 = vmatmul.f32.gmra.mxu3 %v14590_v44  ;;  %v5777_v53 = vmax.f32 %v5569_v41, 0.0  ;;  %v14612_v44 = vld [vmem:[#allocation55_spill] sm:$0xff] }
 0x9b3   : > { %6155 = vmatmul.f32.gmra.mxu2 %v5777_v53  ;;  %v14613_v53 = vmax.f32 %v14612_v44, 0.0 }
 0x9b4   : > { %v4806_v57 = vpop.f32.mrf.mxu3 }
 0x9b5   : > { %v5358_v19 = vmax.f32 %v14591_v14, %v4806_v57 }
 0x9b7   : > { %v5570_v49 = vadd.f32 %v11494_v2, %v5358_v19  ;;  %v14614_v19 = vld [vmem:[#allocation56_spill] sm:$0xff] }
 0x9b9   : > { %4856 = vmatmul.f32.gmra.mxu3 %v14594_v62  ;;  %v5778_v55 = vmax.f32 %v5570_v49, 0.0  ;;  %v14615_v62 = vld [vmem:[#allocation57_spill] sm:$0xff] }
 0x9bb   : > { %6158 = vmatmul.f32.gmra.mxu2 %v5778_v55  ;;  %v14616_v55 = vmax.f32 %v14615_v62, 0.0 }
 0x9bc   : > { %v4809_v28 = vpop.f32.mrf.mxu3 }
 0x9bd   : > { %v5359_v33 = vmax.f32 %v14595_v31, %v4809_v28  ;;  %v11783_v31 = vpop.f32.mrf.mxu2 }
 0x9be   : > { %14617 = vst [vmem:[#allocation17_spill] sm:$0xff] %v11783_v31 }
 0x9bf   : > { %v5571_v45 = vadd.f32 %v11494_v2, %v5359_v33 }
 0x9c1   : > { %4859 = vmatmul.f32.gmra.mxu3 %v14597_v21  ;;  %v5779_v54 = vmax.f32 %v5571_v45, 0.0  ;;  %v14618_v45 = vld [vmem:[#allocation58_spill] sm:$0xff] }
 0x9c3   : > { %6161 = vmatmul.f32.gmra.mxu2 %v5779_v54  ;;  %v14619_v54 = vld [vmem:[#allocation59_spill] sm:$0xff] }
 0x9c4   : > { %v4812_v0 = vpop.f32.mrf.mxu3 }
 0x9c5   : > { %v5360_v46 = vmax.f32 %v14599_v50, %v4812_v0  ;;  %v14620_v0 = vmax.f32 %v14619_v54, 0.0  ;;  %v14636_v54 = vld [vmem:[#allocation71_spill] sm:$0xff] }
 0x9c7   : > { %v5572_v51 = vadd.f32 %v11494_v2, %v5360_v46 }
 0x9c9   : > { %4862 = vmatmul.f32.gmra.mxu3 %v14601_v13  ;;  %v5780_v63 = vmax.f32 %v5572_v51, 0.0  ;;  %v11789_v51 = vpop.f32.mrf.mxu2 }
 0x9ca   : > { %14621 = vst [vmem:[#allocation18_spill] sm:$0xff] %v11789_v51 }
 0x9cb   : > { %6164 = vmatmul.f32.gmra.mxu2 %v5780_v63 }
 0x9cc   : > { %v4815_v5 = vpop.f32.mrf.mxu3 }
 0x9cd   : > { %v5361_v10 = vmax.f32 %v14603_v56, %v4815_v5  ;;  %v14623_v5 = vld [vmem:[#allocation61_spill] sm:$0xff] }
 0x9ce   : > { %v14624_v56 = vmax.f32 %v14623_v5, 0.0 }
 0x9cf   : > { %v5573_v27 = vadd.f32 %v11494_v2, %v5361_v10 }
 0x9d1   : > { %4865 = vmatmul.f32.gmra.mxu3 %v14605_v11  ;;  %v5781_v32 = vmax.f32 %v5573_v27, 0.0  ;;  %v8096_v27 = vld [vmem:[%s13759_s5 + $0x1d0] sm:$0xff]  ;;  %v14625_v11 = vld [vmem:[#allocation62_spill] sm:$0xff] }
 0x9d2   : > { %6233 = vmatpush.msra.mxu3 %v8096_v27 }
 0x9d3   : > { %6167 = vmatmul.f32.gmra.mxu2 %v5781_v32 }
 0x9d4   : > { %v4818_v17 = vpop.f32.mrf.mxu3 }
 0x9d5   : > { %v5362_v29 = vmax.f32 %v14606_v23, %v4818_v17  ;;  %v11799_v17 = vpop.f32.mrf.mxu2 }
 0x9d7   : > { %v5574_v1 = vadd.f32 %v11494_v2, %v5362_v29  ;;  %v14626_v29 = vld [vmem:[#allocation63_spill] sm:$0xff] }
 0x9d9   : > { %4868 = vmatmul.f32.gmra.mxu3 %v14609_v20  ;;  %v5782_v35 = vmax.f32 %v5574_v1, 0.0  ;;  %v14627_v1 = vmax.f32 %v14626_v29, 0.0  ;;  %v14646_v29 = vld [vmem:[#allocation81_spill] sm:$0xff] }
 0x9db   : > { %6170 = vmatmul.f32.gmra.mxu2 %v5782_v35  ;;  %v14628_v35 = vld [vmem:[#allocation64_spill] sm:$0xff] }
 0x9dc   : > { %v4821_v43 = vpop.f32.mrf.mxu3 }
 0x9dd   : > { %v5363_v4 = vmax.f32 %v14610_v37, %v4821_v43 }
 0x9df   : > { %v5575_v41 = vadd.f32 %v11494_v2, %v5363_v4  ;;  %v11806_v4 = vpop.f32.mrf.mxu2 }
 0x9e1   : > { %4871 = vmatmul.f32.gmra.mxu3 %v14613_v53  ;;  %v5783_v57 = vmax.f32 %v5575_v41, 0.0  ;;  %v14629_v41 = vld [vmem:[#allocation65_spill] sm:$0xff] }
 0x9e2   : > { %v14630_v44 = vmax.f32 %v14629_v41, 0.0 }
 0x9e3   : > { %6173 = vmatmul.f32.gmra.mxu2 %v5783_v57 }
 0x9e4   : > { %v4824_v14 = vpop.f32.mrf.mxu3 }
 0x9e5   : > { %v5364_v49 = vmax.f32 %v14614_v19, %v4824_v14  ;;  %v14631_v14 = vld [vmem:[#allocation66_spill] sm:$0xff] }
 0x9e7   : > { %v5576_v30 = vadd.f32 %v11494_v2, %v5364_v49 }
 0x9e9   : > { %4874 = vmatmul.f32.gmra.mxu3 %v14616_v55  ;;  %v5784_v28 = vmax.f32 %v5576_v30, 0.0  ;;  %v14632_v30 = vld [vmem:[#allocation67_spill] sm:$0xff] }
 0x9ea   : > { %v14633_v62 = vmax.f32 %v14632_v30, 0.0  ;;  %v8095_v30 = vld [vmem:[%s13759_s5 + $0x1c8] sm:$0xff] }
 0x9eb   : > { %6176 = vmatmul.f32.gmra.mxu2 %v5784_v28  ;;  %v11814_v28 = vpop.f32.mrf.mxu2  ;;  %6234 = vmatpush.msra.mxu3 %v8095_v30 }
 0x9ec   : > { %v4827_v33 = vpop.f32.mrf.mxu3 }
 0x9ed   : > { %v5365_v38 = vmax.f32 %v14618_v45, %v4827_v33  ;;  %v14634_v45 = vld [vmem:[#allocation69_spill] sm:$0xff] }
 0x9ef   : > { %v5577_v21 = vadd.f32 %v11494_v2, %v5365_v38  ;;  %v14635_v38 = vmax.f32 %v14634_v45, 0.0 }
 0x9f1   : > { %4877 = vmatmul.f32.gmra.mxu3 %v14620_v0  ;;  %v5785_v50 = vmax.f32 %v5577_v21, 0.0  ;;  %v14637_v0 = vmax.f32 %v14636_v54, 0.0  ;;  %v8111_v54 = vld [vmem:[%s13759_s5 + $0x248] sm:$0xff] }
 0x9f3   : > { %6179 = vmatmul.f32.gmra.mxu2 %v5785_v50 }
 0x9f4   : > { %v4830_v46 = vpop.f32.mrf.mxu3 }
 0x9f5   : > { %v5366_v13 = vmax.f32 %v14622_v25, %v4830_v46  ;;  %v14638_v46 = vld [vmem:[#allocation73_spill] sm:$0xff] }
 0x9f6   : > { %v14639_v25 = vmax.f32 %v14638_v46, 0.0 }
 0x9f7   : > { %v5578_v63 = vadd.f32 %v11494_v2, %v5366_v13 }
 0x9f9   : > { %4880 = vmatmul.f32.gmra.mxu3 %v14624_v56  ;;  %v5786_v10 = vmax.f32 %v5578_v63, 0.0  ;;  %v14640_v63 = vld [vmem:[#allocation75_spill] sm:$0xff] }
 0x9fa   : > { %v14641_v5 = vmax.f32 %v14640_v63, 0.0  ;;  %v8109_v63 = vld [vmem:[%s13759_s5 + $0x238] sm:$0xff] }
 0x9fb   : > { %6182 = vmatmul.f32.gmra.mxu2 %v5786_v10  ;;  %v14642_v10 = vld [vmem:[#allocation77_spill] sm:$0xff] }
 0x9fc   : > { %v4833_v9 = vpop.f32.mrf.mxu3  ;;  %v14643_v27 = vmax.f32 %v14642_v10, 0.0  ;;  %v8108_v10 = vld [vmem:[%s13759_s5 + $0x230] sm:$0xff] }
 0x9fd   : > { %v5367_v32 = vmax.f32 %v14625_v11, %v4833_v9  ;;  %v14644_v11 = vld [vmem:[#allocation79_spill] sm:$0xff] }
 0x9ff   : > { %v5579_v23 = vadd.f32 %v11494_v2, %v5367_v32  ;;  %v14645_v32 = vmax.f32 %v14644_v11, 0.0  ;;  %v14656_v11 = vld [vmem:[#allocation91_spill] sm:$0xff] }
 0xa01   : > { %4883 = vmatmul.f32.gmra.mxu3 %v14627_v1  ;;  %v5787_v61 = vmax.f32 %v5579_v23, 0.0  ;;  %v14647_v1 = vmax.f32 %v14646_v29, 0.0  ;;  %v8106_v29 = vld [vmem:[%s13759_s5 + $0x220] sm:$0xff] }
 0xa03   : > { %6185 = vmatmul.f32.gmra.mxu2 %v5787_v61 }
 0xa04   : > { %v4836_v20 = vpop.f32.mrf.mxu3 }
 0xa05   : > { %v5368_v43 = vmax.f32 %v14628_v35, %v4836_v20  ;;  %v14648_v20 = vld [vmem:[#allocation83_spill] sm:$0xff] }
 0xa06   : > { %v14649_v35 = vmax.f32 %v14648_v20, 0.0 }
 0xa07   : > { %v5580_v37 = vadd.f32 %v11494_v2, %v5368_v43 }
 0xa09   : > { %4886 = vmatmul.f32.gmra.mxu3 %v14630_v44  ;;  %v5788_v53 = vmax.f32 %v5580_v37, 0.0  ;;  %v14650_v37 = vld [vmem:[#allocation85_spill] sm:$0xff] }
 0xa0a   : > { %v14651_v41 = vmax.f32 %v14650_v37, 0.0  ;;  %v8117_v44 = vld [vmem:[%s13759_s5 + $0x278] sm:$0xff]  ;;  %v8103_v37 = vld [vmem:[%s13759_s5 + $0x208] sm:$0xff] }
 0xa0b   : > { %6188 = vmatmul.f32.gmra.mxu2 %v5788_v53  ;;  %6326 = vmatpush.msra.mxu0 %v8117_v44 }
 0xa0c   : > { %v4839_v57 = vpop.f32.mrf.mxu3 }
 0xa0d   : > { %v5369_v19 = vmax.f32 %v14631_v14, %v4839_v57  ;;  %v8116_v57 = vld [vmem:[%s13759_s5 + $0x270] sm:$0xff]  ;;  %v8115_v14 = vld [vmem:[%s13759_s5 + $0x268] sm:$0xff] }
 0xa0e   : > { %6327 = vmatpush.msra.mxu0 %v8116_v57  ;;  %v8102_v57 = vld [vmem:[%s13759_s5 + $0x200] sm:$0xff] }
 0xa0f   : > { %v5581_v49 = vadd.f32 %v11494_v2, %v5369_v19  ;;  %v14652_v19 = vld [vmem:[#allocation87_spill] sm:$0xff] }
 0xa10   : > { %6328 = vmatpush.msra.mxu0 %v8115_v14 }
 0xa11   : > { %4889 = vmatmul.f32.gmra.mxu3 %v14633_v62  ;;  %v5789_v55 = vmax.f32 %v5581_v49, 0.0  ;;  %v14653_v49 = vmax.f32 %v14652_v19, 0.0  ;;  %v8114_v62 = vld [vmem:[%s13759_s5 + $0x260] sm:$0xff]  ;;  %v14660_v19 = vld [vmem:[#allocation95_spill] sm:$0xff] }
 0xa12   : > { %6329 = vmatpush.msra.mxu0 %v8114_v62  ;;  %v14662_v62 = vld [vmem:[#allocation97_spill] sm:$0xff] }
 0xa13   : > { %6191 = vmatmul.f32.gmra.mxu2 %v5789_v55  ;;  %v8113_v55 = vld [vmem:[%s13759_s5 + $0x258] sm:$0xff] }
 0xa14   : > { %v11816_v33 = vpop.f32.mrf.mxu3  ;;  %6330 = vmatpush.msra.mxu0 %v8113_v55  ;;  %v14663_v55 = vmax.f32 %v14662_v62, 0.0 }
 0xa19   : > { %4892 = vmatmul.f32.gmra.mxu3 %v14635_v38  ;;  %v8112_v38 = vld [vmem:[%s13759_s5 + $0x250] sm:$0xff] }
 0xa1a   : > { %6331 = vmatpush.msra.mxu0 %v8112_v38 }
 0xa1c   : > { %v11820_v21 = vpop.f32.mrf.mxu3  ;;  %6332 = vmatpush.msra.mxu0 %v8111_v54  ;;  %v14664_v54 = vld [vmem:[#allocation99_spill] sm:$0xff] }
 0xa21   : > { %4895 = vmatmul.f32.gmra.mxu3 %v14637_v0  ;;  %v14654_v0 = vld [vmem:[#allocation89_spill] sm:$0xff] }
 0xa22   : > { %v14655_v46 = vmax.f32 %v14654_v0, 0.0  ;;  %v14665_v0 = vmax.f32 %v14664_v54, 0.0  ;;  %v14673_v54 = vld [vmem:[#allocation105_spill] sm:$0xff] }
 0xa24   : > { %v11824_v50 = vpop.f32.mrf.mxu3 }
 0xa29   : > { %4898 = vmatmul.f32.gmra.mxu3 %v14639_v25  ;;  %v8110_v25 = vld [vmem:[%s13759_s5 + $0x240] sm:$0xff] }
 0xa2a   : > { %6333 = vmatpush.msra.mxu0 %v8110_v25  ;;  %v14666_v25 = vld [vmem:[#allocation100_spill] sm:$0xff] }
 0xa2c   : > { %v11828_v13 = vpop.f32.mrf.mxu3  ;;  %6334 = vmatpush.msra.mxu0 %v8109_v63 }
 0xa2e   : > { %6335 = vmatpush.msra.mxu0 %v8108_v10 }
 0xa31   : > { %4901 = vmatmul.f32.gmra.mxu3 %v14641_v5 }
 0xa34   : > { %v11832_v56 = vpop.f32.mrf.mxu3 }
 0xa39   : > { %4904 = vmatmul.f32.gmra.mxu3 %v14643_v27  ;;  %v8107_v27 = vld [vmem:[%s13759_s5 + $0x228] sm:$0xff] }
 0xa3a   : > { %6336 = vmatpush.msra.mxu0 %v8107_v27 }
 0xa3c   : > { %v11836_v9 = vpop.f32.mrf.mxu3  ;;  %6337 = vmatpush.msra.mxu0 %v8106_v29 }
 0xa41   : > { %4907 = vmatmul.f32.gmra.mxu3 %v14645_v32  ;;  %v14657_v32 = vmax.f32 %v14656_v11, 0.0  ;;  %v14667_v11 = vld [vmem:[#allocation101_spill] sm:$0xff] }
 0xa44   : > { %v11840_v23 = vpop.f32.mrf.mxu3 }
 0xa49   : > { %4910 = vmatmul.f32.gmra.mxu3 %v14647_v1  ;;  %v8105_v1 = vld [vmem:[%s13759_s5 + $0x218] sm:$0xff] }
 0xa4a   : > { %6338 = vmatpush.msra.mxu0 %v8105_v1  ;;  %v14669_v1 = vld [vmem:[#allocation102_spill] sm:$0xff] }
 0xa4c   : > { %v11844_v61 = vpop.f32.mrf.mxu3 }
 0xa51   : > { %4913 = vmatmul.f32.gmra.mxu3 %v14649_v35  ;;  %v8104_v35 = vld [vmem:[%s13759_s5 + $0x210] sm:$0xff] }
 0xa52   : > { %6339 = vmatpush.msra.mxu0 %v8104_v35 }
 0xa54   : > { %v11848_v43 = vpop.f32.mrf.mxu3  ;;  %6340 = vmatpush.msra.mxu0 %v8103_v37 }
 0xa56   : > { %6341 = vmatpush.msra.mxu0 %v8102_v57 }
 0xa59   : > { %4916 = vmatmul.f32.gmra.mxu3 %v14651_v41  ;;  %v14658_v41 = vld [vmem:[#allocation93_spill] sm:$0xff] }
 0xa5a   : > { %v14659_v44 = vmax.f32 %v14658_v41, 0.0  ;;  %v14670_v41 = vld [vmem:[#allocation103_spill] sm:$0xff] }
 0xa5c   : > { %v11855_v53 = vpop.f32.mrf.mxu3 }
 0xa61   : > { %4919 = vmatmul.f32.gmra.mxu3 %v14653_v49  ;;  %v14661_v49 = vmax.f32 %v14660_v19, 0.0 }
 0xa64   : > { %v11874_v45 = vpop.f32.mrf.mxu3 }
 0xa69   : > { %4922 = vmatmul.f32.gmra.mxu3 %v14655_v46 }
 0xa6c   : > { %v11890_v5 = vpop.f32.mrf.mxu3 }
 0xa71   : > { %4925 = vmatmul.f32.gmra.mxu3 %v14657_v32  ;;  %v14668_v32 = vmax.f32 %v14667_v11, 0.0  ;;  %v14676_v11 = vld [vmem:[#allocation107_spill] sm:$0xff] }
 0xa74   : > { %v11906_v20 = vpop.f32.mrf.mxu3 }
 0xa79   : > { %4928 = vmatmul.f32.gmra.mxu3 %v14659_v44  ;;  %v14671_v44 = vmax.f32 %v14670_v41, 0.0 }
 0xa7c   : > { %v11919_v14 = vpop.f32.mrf.mxu3 }
 0xa81   : > { %4931 = vmatmul.f32.gmra.mxu3 %v14661_v49  ;;  %v14672_v49 = vld [vmem:[#allocation104_spill] sm:$0xff] }
 0xa84   : > { %v11923_v30 = vpop.f32.mrf.mxu3 }
 0xa89   : > { %4934 = vmatmul.f32.gmra.mxu3 %v14663_v55 }
 0xa8c   : > { %v11927_v38 = vpop.f32.mrf.mxu3 }
 0xa91   : > { %4937 = vmatmul.f32.gmra.mxu3 %v14665_v0  ;;  %v14674_v0 = vmax.f32 %v14673_v54, 0.0 }
 0xa94   : > { %v4890_v46 = vpop.f32.mrf.mxu3 }
 0xa95   : > { %v5386_v63 = vmax.f32 %v14666_v25, %v4890_v46 }
 0xa97   : > { %v5598_v10 = vadd.f32 %v11494_v2, %v5386_v63  ;;  %v14675_v63 = vld [vmem:[#allocation106_spill] sm:$0xff] }
 0xa99   : > { %v5806_v27 = vmax.f32 %v5598_v10, 0.0  ;;  %4940 = vmatmul.f32.gmra.mxu3 %v14668_v32  ;;  %v14677_v32 = vmax.f32 %v14676_v11, 0.0 }
 0xa9b   : > { %6342 = vmatmul.f32.vlgmr.msra.gmra.mxu0 %v5806_v27 }
 0xa9c   : > { %v4893_v29 = vpop.f32.mrf.mxu3 }
 0xa9d   : > { %v5387_v35 = vmax.f32 %v14669_v1, %v4893_v29 }
 0xa9f   : > { %v5599_v37 = vadd.f32 %v11494_v2, %v5387_v35  ;;  %v14678_v35 = vld [vmem:[#allocation108_spill] sm:$0xff] }
 0xaa1   : > { %4943 = vmatmul.f32.gmra.mxu3 %v14671_v44  ;;  %v5807_v57 = vmax.f32 %v5599_v37, 0.0  ;;  %v14679_v44 = vld [vmem:[#allocation109_spill] sm:$0xff] }
 0xaa3   : > { %6345 = vmatmul.f32.gmra.mxu0 %v5807_v57  ;;  %v14680_v57 = vmax.f32 %v14679_v44, 0.0  ;;  %v14688_v44 = vld [vmem:[#allocation114_spill] sm:$0xff] }
 0xaa4   : > { %v4896_v19 = vpop.f32.mrf.mxu3 }
 0xaa5   : > { %v5388_v62 = vmax.f32 %v14672_v49, %v4896_v19 }
 0xaa7   : > { %v5600_v55 = vadd.f32 %v11494_v2, %v5388_v62  ;;  %v14681_v62 = vld [vmem:[#allocation110_spill] sm:$0xff] }
 0xaa9   : > { %4946 = vmatmul.f32.gmra.mxu3 %v14674_v0  ;;  %v5808_v46 = vmax.f32 %v5600_v55, 0.0  ;;  %v14682_v0 = vld [vmem:[#allocation111_spill] sm:$0xff] }
 0xaab   : > { %6348 = vmatmul.f32.gmra.mxu0 %v5808_v46  ;;  %v14683_v46 = vmax.f32 %v14682_v0, 0.0  ;;  %v14691_v0 = vld [vmem:[#allocation116_spill] sm:$0xff] }
 0xaac   : > { %v4899_v25 = vpop.f32.mrf.mxu3 }
 0xaad   : > { %v5389_v10 = vmax.f32 %v14675_v63, %v4899_v25 }
 0xaaf   : > { %v5601_v27 = vadd.f32 %v11494_v2, %v5389_v10  ;;  %v14684_v10 = vld [vmem:[#allocation112_spill] sm:$0xff] }
 0xab1   : > { %4949 = vmatmul.f32.gmra.mxu3 %v14677_v32  ;;  %v5809_v29 = vmax.f32 %v5601_v27, 0.0  ;;  %v14685_v32 = vld [vmem:[#allocation113_spill] sm:$0xff] }
 0xab3   : > { %6351 = vmatmul.f32.gmra.mxu0 %v5809_v29  ;;  %v14686_v29 = vmax.f32 %v14685_v32, 0.0  ;;  %v8133_v32 = vld [vmem:[%s13759_s5 + $0x2f8] sm:$0xff] }
 0xab4   : > { %v4902_v1 = vpop.f32.mrf.mxu3  ;;  %6424 = vmatpush.msra.mxu1 %v8133_v32  ;;  %v8127_v32 = vld [vmem:[%s13759_s5 + $0x2c8] sm:$0xff] }
 0xab5   : > { %v5390_v37 = vmax.f32 %v14678_v35, %v4902_v1  ;;  %v8094_v35 = vld [vmem:[%s13759_s5 + $0x1c0] sm:$0xff] }
 0xab6   : > { %6235 = vmatpush.msra.mxu3 %v8094_v35 }
 0xab7   : > { %v5602_v41 = vadd.f32 %v11494_v2, %v5390_v37 }
 0xab9   : > { %4952 = vmatmul.f32.gmra.mxu3 %v14680_v57  ;;  %v5810_v19 = vmax.f32 %v5602_v41, 0.0  ;;  %v11962_v41 = vpop.f32.mrf.mxu0 }
 0xaba   : > { %14687 = vst [vmem:[#allocation19_spill] sm:$0xff] %v11962_v41 }
 0xabb   : > { %6354 = vmatmul.f32.gmra.mxu0 %v5810_v19 }
 0xabc   : > { %v4905_v49 = vpop.f32.mrf.mxu3 }
 0xabd   : > { %v5391_v55 = vmax.f32 %v14681_v62, %v4905_v49  ;;  %v14689_v49 = vld [vmem:[#allocation115_spill] sm:$0xff] }
 0xabe   : > { %v14690_v62 = vmax.f32 %v14689_v49, 0.0  ;;  %v14697_v49 = vld [vmem:[#allocation119_spill] sm:$0xff] }
 0xabf   : > { %v5603_v54 = vadd.f32 %v11494_v2, %v5391_v55 }
 0xac1   : > { %4955 = vmatmul.f32.gmra.mxu3 %v14683_v46  ;;  %v5811_v25 = vmax.f32 %v5603_v54, 0.0 }
 0xac3   : > { %6357 = vmatmul.f32.gmra.mxu0 %v5811_v25  ;;  %v11969_v25 = vpop.f32.mrf.mxu0 }
 0xac4   : > { %v4908_v63 = vpop.f32.mrf.mxu3  ;;  %14692 = vst [vmem:[#allocation20_spill] sm:$0xff] %v11969_v25  ;;  %v14871_v25 = vld [vmem:[#allocation228_spill] sm:$0xff] }
 0xac5   : > { %v5392_v27 = vmax.f32 %v14684_v10, %v4908_v63  ;;  %v14693_v10 = vld [vmem:[#allocation117_spill] sm:$0xff] }
 0xac7   : > { %v5604_v11 = vadd.f32 %v11494_v2, %v5392_v27  ;;  %v14694_v27 = vmax.f32 %v14693_v10, 0.0  ;;  %v8128_v10 = vld [vmem:[%s13759_s5 + $0x2d0] sm:$0xff] }
 0xac9   : > { %4958 = vmatmul.f32.gmra.mxu3 %v14686_v29  ;;  %v5812_v1 = vmax.f32 %v5604_v11, 0.0 }
 0xacb   : > { %6360 = vmatmul.f32.gmra.mxu0 %v5812_v1  ;;  %v14695_v1 = vld [vmem:[#allocation118_spill] sm:$0xff] }
 0xacc   : > { %v4911_v37 = vpop.f32.mrf.mxu3 }
 0xacd   : > { %v5393_v57 = vmax.f32 %v14688_v44, %v4911_v37  ;;  %v8132_v37 = vld [vmem:[%s13759_s5 + $0x2f0] sm:$0xff] }
 0xace   : > { %6425 = vmatpush.msra.mxu1 %v8132_v37  ;;  %v8126_v37 = vld [vmem:[%s13759_s5 + $0x2c0] sm:$0xff] }
 0xacf   : > { %v5605_v19 = vadd.f32 %v11494_v2, %v5393_v57  ;;  %v8131_v57 = vld [vmem:[%s13759_s5 + $0x2e8] sm:$0xff] }
 0xad0   : > { %6426 = vmatpush.msra.mxu1 %v8131_v57  ;;  %v8125_v57 = vld [vmem:[%s13759_s5 + $0x2b8] sm:$0xff] }
 0xad1   : > { %4961 = vmatmul.f32.gmra.mxu3 %v14690_v62  ;;  %v5813_v55 = vmax.f32 %v5605_v19, 0.0  ;;  %v11985_v19 = vpop.f32.mrf.mxu0  ;;  %v14698_v62 = vmax.f32 %v14697_v49, 0.0 }
 0xad2   : > { %14696 = vst [vmem:[#allocation21_spill] sm:$0xff] %v11985_v19 }
 0xad3   : > { %6363 = vmatmul.f32.gmra.mxu0 %v5813_v55 }
 0xad4   : > { %v4914_v54 = vpop.f32.mrf.mxu3 }
 0xad5   : > { %v5394_v46 = vmax.f32 %v14691_v0, %v4914_v54  ;;  %v8130_v54 = vld [vmem:[%s13759_s5 + $0x2e0] sm:$0xff] }
 0xad6   : > { %6427 = vmatpush.msra.mxu1 %v8130_v54  ;;  %v8124_v54 = vld [vmem:[%s13759_s5 + $0x2b0] sm:$0xff] }
 0xad7   : > { %v5606_v63 = vadd.f32 %v11494_v2, %v5394_v46  ;;  %v14699_v46 = vld [vmem:[#allocation120_spill] sm:$0xff] }
 0xad9   : > { %4964 = vmatmul.f32.gmra.mxu3 %v14694_v27  ;;  %v5814_v11 = vmax.f32 %v5606_v63, 0.0  ;;  %v12002_v27 = vld [vmem:[%s13758_s4] ss:$0 sm:$0xff] }
 0xadb   : > { %6366 = vmatmul.f32.gmra.mxu0 %v5814_v11 }
 0xadc   : > { %v4917_v29 = vpop.f32.mrf.mxu3 }
 0xadd   : > { %v5395_v35 = vmax.f32 %v14695_v1, %v4917_v29  ;;  %v14700_v29 = vld [vmem:[#allocation121_spill] sm:$0xff] }
 0xade   : > { %v14701_v1 = vmax.f32 %v14700_v29, 0.0 }
 0xadf   : > { %v5607_v44 = vadd.f32 %v11494_v2, %v5395_v35  ;;  %v8129_v2 = vld [vmem:[%s13759_s5 + $0x2d8] sm:$0xff] }
 0xae0   : > { %6428 = vmatpush.msra.mxu1 %v8129_v2 }
 0xae1   : > { %4967 = vmatmul.f32.gmra.mxu3 %v14698_v62  ;;  %v5815_v55 = vmax.f32 %v5607_v44, 0.0  ;;  %v12013_v44 = vpop.f32.mrf.mxu0  ;;  %v14703_v62 = vld [vmem:[#allocation122_spill] sm:$0xff] }
 0xae2   : > { %6429 = vmatpush.msra.mxu1 %v8128_v10  ;;  %14702 = vst [vmem:[#allocation22_spill] sm:$0xff] %v12013_v44  ;;  %v14861_v44 = vld [vmem:[#allocation223_spill] sm:$0xff] }
 0xae3   : > { %6369 = vmatmul.f32.gmra.mxu0 %v5815_v55 }
 0xae4   : > { %v4920_v0 = vpop.f32.mrf.mxu3  ;;  %6430 = vmatpush.msra.mxu1 %v8127_v32  ;;  %v8121_v32 = vld [vmem:[%s13759_s5 + $0x298] sm:$0xff] }
 0xae5   : > { %v5396_v63 = vmax.f32 %v14699_v46, %v4920_v0  ;;  %v8123_v0 = vld [vmem:[%s13759_s5 + $0x2a8] sm:$0xff] }
 0xae6   : > { %6431 = vmatpush.msra.mxu1 %v8126_v37  ;;  %v14704_v46 = vld [vmem:[#allocation123_spill] sm:$0xff] }
 0xae7   : > { %v5608_v11 = vadd.f32 %v12002_v27, %v5396_v63  ;;  %v14705_v63 = vmax.f32 %v14704_v46, 0.0 }
 0xae8   : > { %6432 = vmatpush.msra.mxu1 %v8125_v57  ;;  %v8120_v57 = vld [vmem:[%s13759_s5 + $0x290] sm:$0xff] }
 0xae9   : > { %4970 = vmatmul.f32.gmra.mxu3 %v14701_v1  ;;  %v5816_v35 = vmax.f32 %v5608_v11, 0.0  ;;  %v8122_v11 = vld [vmem:[%s13759_s5 + $0x2a0] sm:$0xff]  ;;  %v12034_v1 = vpop.f32.mrf.mxu0 }
 0xaea   : > { %6433 = vmatpush.msra.mxu1 %v8124_v54  ;;  %14706 = vst [vmem:[#allocation23_spill] sm:$0xff] %v12034_v1  ;;  %v14848_v1 = vld [vmem:[#allocation211_spill] sm:$0xff] }
 0xaeb   : > { %6372 = vmatmul.f32.gmra.mxu0 %v5816_v35  ;;  %v14707_v35 = vld [vmem:[#allocation124_spill] sm:$0xff] }
 0xaec   : > { %v4923_v49 = vpop.f32.mrf.mxu3  ;;  %6434 = vmatpush.msra.mxu1 %v8123_v0  ;;  %v8118_v0 = vld [vmem:[%s13759_s5 + $0x280] sm:$0xff] }
 0xaed   : > { %v5397_v55 = vmax.f32 %v14703_v62, %v4923_v49  ;;  %v8119_v62 = vld [vmem:[%s13759_s5 + $0x288] sm:$0xff] }
 0xaee   : > { %6435 = vmatpush.msra.mxu1 %v8122_v11 }
 0xaef   : > { %v5609_v2 = vadd.f32 %v12002_v27, %v5397_v55  ;;  %v14708_v55 = vld [vmem:[#allocation125_spill] sm:$0xff] }
 0xaf0   : > { %6436 = vmatpush.msra.mxu1 %v8121_v32  ;;  %v14709_v54 = vmax.f32 %v14708_v55, 0.0 }
 0xaf1   : > { %4973 = vmatmul.f32.gmra.mxu3 %v14705_v63  ;;  %v5817_v10 = vmax.f32 %v5609_v2, 0.0  ;;  %v14710_v63 = vld [vmem:[#allocation126_spill] sm:$0xff]  ;;  %v12050_v11 = vpop.f32.mrf.mxu0 }
 0xaf2   : > { %6437 = vmatpush.msra.mxu1 %v8120_v57  ;;  %14711 = vst [vmem:[#allocation24_spill] sm:$0xff] %v12050_v11 }
 0xaf3   : > { %6375 = vmatmul.f32.gmra.mxu0 %v5817_v10 }
 0xaf4   : > { %v4926_v29 = vpop.f32.mrf.mxu3  ;;  %6438 = vmatpush.msra.mxu1 %v8119_v62 }
 0xaf5   : > { %v5398_v37 = vmax.f32 %v14707_v35, %v4926_v29  ;;  %v14712_v29 = vld [vmem:[#allocation127_spill] sm:$0xff] }
 0xaf6   : > { %6439 = vmatpush.msra.mxu1 %v8118_v0  ;;  %v14713_v35 = vmax.f32 %v14712_v29, 0.0 }
 0xaf7   : > { %v5610_v49 = vadd.f32 %v12002_v27, %v5398_v37 }
 0xaf9   : > { %4976 = vmatmul.f32.gmra.mxu3 %v14709_v54  ;;  %v5818_v2 = vmax.f32 %v5610_v49, 0.0  ;;  %v14714_v49 = vld [vmem:[#allocation128_spill] sm:$0xff]  ;;  %v12057_v54 = vpop.f32.mrf.mxu0 }
 0xafa   : > { %14715 = vst [vmem:[#allocation25_spill] sm:$0xff] %v12057_v54 }
 0xafb   : > { %6378 = vmatmul.f32.gmra.mxu0 %v5818_v2  ;;  %v14716_v2 = vld [vmem:[#allocation129_spill] sm:$0xff] }
 0xafc   : > { %v4929_v46 = vpop.f32.mrf.mxu3  ;;  %v14717_v0 = vmax.f32 %v14716_v2, 0.0 }
 0xafd   : > { %v5399_v10 = vmax.f32 %v14710_v63, %v4929_v46 }
 0xaff   : > { %v5611_v32 = vadd.f32 %v12002_v27, %v5399_v10 }
 0xb01   : > { %4979 = vmatmul.f32.gmra.mxu3 %v14713_v35  ;;  %v5819_v37 = vmax.f32 %v5611_v32, 0.0  ;;  %v14719_v35 = vld [vmem:[#allocation131_spill] sm:$0xff]  ;;  %v12065_v60 = vpop.f32.mrf.mxu0 }
 0xb02   : > { %v14720_v32 = vmax.f32 %v14719_v35, 0.0  ;;  %14721 = vst [vmem:[#allocation26_spill] sm:$0xff] %v12065_v60  ;;  %v14790_v60 = vld [vmem:[#allocation172_spill] sm:$0xff] }
 0xb03   : > { %6381 = vmatmul.f32.gmra.mxu0 %v5819_v37 }
 0xb04   : > { %v4932_v57 = vpop.f32.mrf.mxu3 }
 0xb05   : > { %v5400_v62 = vmax.f32 %v14714_v49, %v4932_v57  ;;  %v14722_v49 = vld [vmem:[#allocation132_spill] sm:$0xff] }
 0xb07   : > { %v5612_v55 = vadd.f32 %v12002_v27, %v5400_v62 }
 0xb09   : > { %4982 = vmatmul.f32.gmra.mxu3 %v14717_v0  ;;  %v5820_v46 = vmax.f32 %v5612_v55, 0.0  ;;  %v14723_v55 = vld [vmem:[#allocation133_spill] sm:$0xff] }
 0xb0b   : > { %6384 = vmatmul.f32.gmra.mxu0 %v5820_v46  ;;  %v14724_v46 = vmax.f32 %v14723_v55, 0.0 }
 0xb0c   : > { %v4935_v63 = vpop.f32.mrf.mxu3 }
 0xb0d   : > { %v5401_v10 = vmax.f32 %v14718_v18, %v4935_v63  ;;  %v14725_v63 = vld [vmem:[#allocation134_spill] sm:$0xff] }
 0xb0f   : > { %v5613_v29 = vadd.f32 %v12002_v27, %v5401_v10 }
 0xb11   : > { %4985 = vmatmul.f32.gmra.mxu3 %v14720_v32  ;;  %v5821_v37 = vmax.f32 %v5613_v29, 0.0  ;;  %v14726_v32 = vld [vmem:[#allocation135_spill] sm:$0xff] }
 0xb12   : > { %v14727_v29 = vmax.f32 %v14726_v32, 0.0 }
 0xb13   : > { %6387 = vmatmul.f32.gmra.mxu0 %v5821_v37 }
 0xb14   : > { %v4938_v57 = vpop.f32.mrf.mxu3 }
 0xb15   : > { %v5402_v62 = vmax.f32 %v14722_v49, %v4938_v57 }
 0xb17   : > { %v5614_v2 = vadd.f32 %v12002_v27, %v5402_v62  ;;  %v14729_v62 = vld [vmem:[#allocation137_spill] sm:$0xff] }
 0xb19   : > { %v5822_v0 = vmax.f32 %v5614_v2, 0.0  ;;  %4988 = vmatmul.f32.gmra.mxu3 %v14724_v46  ;;  %v14730_v2 = vmax.f32 %v14729_v62, 0.0  ;;  %v14731_v46 = vld [vmem:[#allocation138_spill] sm:$0xff] }
 0xb1b   : > { %6440 = vmatmul.f32.vlgmr.msra.gmra.mxu1 %v5822_v0 }
 0xb1c   : > { %v4941_v18 = vpop.f32.mrf.mxu3 }
 0xb1d   : > { %v5403_v10 = vmax.f32 %v14725_v63, %v4941_v18 }
 0xb1f   : > { %v5615_v35 = vadd.f32 %v12002_v27, %v5403_v10  ;;  %v14732_v10 = vld [vmem:[#allocation139_spill] sm:$0xff] }
 0xb20   : > { %v14733_v32 = vmax.f32 %v14732_v10, 0.0 }
 0xb21   : > { %4991 = vmatmul.f32.gmra.mxu3 %v14727_v29  ;;  %v5823_v48 = vmax.f32 %v5615_v35, 0.0  ;;  %v14734_v29 = vld [vmem:[#allocation140_spill] sm:$0xff] }
 0xb23   : > { %6443 = vmatmul.f32.gmra.mxu1 %v5823_v48 }
 0xb24   : > { %v4944_v37 = vpop.f32.mrf.mxu3 }
 0xb25   : > { %v5404_v57 = vmax.f32 %v14728_v59, %v4944_v37  ;;  %v8093_v59 = vld [vmem:[%s13759_s5 + $0x1b8] sm:$0xff] }
 0xb26   : > { %6236 = vmatpush.msra.mxu3 %v8093_v59  ;;  %v14740_v59 = vld [vmem:[#allocation144_spill] sm:$0xff] }
 0xb27   : > { %v5616_v49 = vadd.f32 %v12002_v27, %v5404_v57 }
 0xb29   : > { %4994 = vmatmul.f32.gmra.mxu3 %v14730_v2  ;;  %v5824_v55 = vmax.f32 %v5616_v49, 0.0  ;;  %v14735_v49 = vld [vmem:[#allocation141_spill] sm:$0xff] }
 0xb2a   : > { %v14736_v62 = vmax.f32 %v14735_v49, 0.0 }
 0xb2b   : > { %6446 = vmatmul.f32.gmra.mxu1 %v5824_v55 }
 0xb2c   : > { %v4947_v0 = vpop.f32.mrf.mxu3 }
 0xb2d   : > { %v5405_v18 = vmax.f32 %v14731_v46, %v4947_v0  ;;  %v14737_v0 = vld [vmem:[#allocation142_spill] sm:$0xff] }
 0xb2f   : > { %v5617_v63 = vadd.f32 %v12002_v27, %v5405_v18 }
 0xb31   : > { %4997 = vmatmul.f32.gmra.mxu3 %v14733_v32  ;;  %v5825_v35 = vmax.f32 %v5617_v63, 0.0  ;;  %v14738_v63 = vld [vmem:[#allocation143_spill] sm:$0xff] }
 0xb32   : > { %v14739_v10 = vmax.f32 %v14738_v63, 0.0  ;;  %v14745_v63 = vld [vmem:[#allocation147_spill] sm:$0xff] }
 0xb33   : > { %6449 = vmatmul.f32.gmra.mxu1 %v5825_v35 }
 0xb34   : > { %v4950_v48 = vpop.f32.mrf.mxu3 }
 0xb35   : > { %v5406_v37 = vmax.f32 %v14734_v29, %v4950_v48 }
 0xb37   : > { %v5618_v57 = vadd.f32 %v12002_v27, %v5406_v37  ;;  %v14741_v37 = vld [vmem:[#allocation145_spill] sm:$0xff] }
 0xb38   : > { %v14742_v49 = vmax.f32 %v14741_v37, 0.0  ;;  %v14749_v37 = vld [vmem:[#allocation149_spill] sm:$0xff] }
 0xb39   : > { %5000 = vmatmul.f32.gmra.mxu3 %v14736_v62  ;;  %v5826_v2 = vmax.f32 %v5618_v57, 0.0 }
 0xb3b   : > { %6452 = vmatmul.f32.gmra.mxu1 %v5826_v2  ;;  %v12098_v2 = vpop.f32.mrf.mxu1 }
 0xb3c   : > { %v4953_v55 = vpop.f32.mrf.mxu3  ;;  %14743 = vst [vmem:[#allocation27_spill] sm:$0xff] %v12098_v2 }
 0xb3d   : > { %v5407_v46 = vmax.f32 %v14737_v0, %v4953_v55  ;;  %v14744_v55 = vld [vmem:[#allocation146_spill] sm:$0xff] }
 0xb3f   : > { %v5619_v18 = vadd.f32 %v12002_v27, %v5407_v46 }
 0xb41   : > { %5003 = vmatmul.f32.gmra.mxu3 %v14739_v10  ;;  %v5827_v32 = vmax.f32 %v5619_v18, 0.0  ;;  %v14746_v18 = vmax.f32 %v14745_v63, 0.0  ;;  %v8148_v63 = vld [vmem:[%s13759_s5 + $0x370] sm:$0xff] }
 0xb43   : > { %6455 = vmatmul.f32.gmra.mxu1 %v5827_v32 }
 0xb44   : > { %v4956_v35 = vpop.f32.mrf.mxu3 }
 0xb45   : > { %v5408_v48 = vmax.f32 %v14740_v59, %v4956_v35  ;;  %v14747_v35 = vld [vmem:[#allocation148_spill] sm:$0xff] }
 0xb47   : > { %v5620_v29 = vadd.f32 %v12002_v27, %v5408_v48  ;;  %v12105_v48 = vpop.f32.mrf.mxu1 }
 0xb48   : > { %14748 = vst [vmem:[#allocation28_spill] sm:$0xff] %v12105_v48 }
 0xb49   : > { %5006 = vmatmul.f32.gmra.mxu3 %v14742_v49  ;;  %v5828_v57 = vmax.f32 %v5620_v29, 0.0  ;;  %v14750_v49 = vmax.f32 %v14749_v37, 0.0  ;;  %v8146_v37 = vld [vmem:[%s13759_s5 + $0x360] sm:$0xff] }
 0xb4b   : > { %6458 = vmatmul.f32.gmra.mxu1 %v5828_v57 }
 0xb4c   : > { %v4959_v62 = vpop.f32.mrf.mxu3 }
 0xb4d   : > { %v5409_v0 = vmax.f32 %v14744_v55, %v4959_v62  ;;  %v8149_v62 = vld [vmem:[%s13759_s5 + $0x378] sm:$0xff] }
 0xb4e   : > { %6522 = vmatpush.msra.mxu2 %v8149_v62  ;;  %v14755_v62 = vld [vmem:[#allocation152_spill] sm:$0xff] }
 0xb4f   : > { %v5621_v46 = vadd.f32 %v12002_v27, %v5409_v0  ;;  %v14751_v0 = vld [vmem:[#allocation150_spill] sm:$0xff] }
 0xb50   : > { %6523 = vmatpush.msra.mxu2 %v8148_v63  ;;  %v8143_v63 = vld [vmem:[%s13759_s5 + $0x348] sm:$0xff] }
 0xb51   : > { %5009 = vmatmul.f32.gmra.mxu3 %v14746_v18  ;;  %v5829_v10 = vmax.f32 %v5621_v46, 0.0 }
 0xb53   : > { %6461 = vmatmul.f32.gmra.mxu1 %v5829_v10  ;;  %v8147_v10 = vld [vmem:[%s13759_s5 + $0x368] sm:$0xff] }
 0xb54   : > { %v4962_v32 = vpop.f32.mrf.mxu3  ;;  %6524 = vmatpush.msra.mxu2 %v8147_v10 }
 0xb55   : > { %v5410_v59 = vmax.f32 %v14747_v35, %v4962_v32  ;;  %v12121_v32 = vpop.f32.mrf.mxu1  ;;  %v14753_v35 = vld [vmem:[#allocation151_spill] sm:$0xff] }
 0xb56   : > { %14752 = vst [vmem:[#allocation29_spill] sm:$0xff] %v12121_v32  ;;  %6525 = vmatpush.msra.mxu2 %v8146_v37  ;;  %v8141_v37 = vld [vmem:[%s13759_s5 + $0x338] sm:$0xff] }
 0xb57   : > { %v5622_v29 = vadd.f32 %v12002_v27, %v5410_v59  ;;  %v14754_v59 = vmax.f32 %v14753_v35, 0.0 }
 0xb59   : > { %5012 = vmatmul.f32.gmra.mxu3 %v14750_v49  ;;  %v5830_v57 = vmax.f32 %v5622_v29, 0.0  ;;  %v8145_v49 = vld [vmem:[%s13759_s5 + $0x358] sm:$0xff] }
 0xb5a   : > { %6526 = vmatpush.msra.mxu2 %v8145_v49 }
 0xb5b   : > { %6464 = vmatmul.f32.gmra.mxu1 %v5830_v57 }
 0xb5c   : > { %v4965_v55 = vpop.f32.mrf.mxu3 }
 0xb5d   : > { %v5411_v46 = vmax.f32 %v14751_v0, %v4965_v55  ;;  %v8144_v0 = vld [vmem:[%s13759_s5 + $0x350] sm:$0xff] }
 0xb5e   : > { %6527 = vmatpush.msra.mxu2 %v8144_v0 }
 0xb5f   : > { %v5623_v18 = vadd.f32 %v12002_v27, %v5411_v46 }
 0xb60   : > { %6528 = vmatpush.msra.mxu2 %v8143_v63  ;;  %v14760_v63 = vld [vmem:[#allocation155_spill] sm:$0xff] }
 0xb61   : > { %5015 = vmatmul.f32.gmra.mxu3 %v14754_v59  ;;  %v5831_v29 = vmax.f32 %v5623_v18, 0.0  ;;  %v14756_v18 = vld [vmem:[#allocation153_spill] sm:$0xff] }
 0xb62   : > { %v14757_v10 = vmax.f32 %v14756_v18, 0.0  ;;  %v8142_v59 = vld [vmem:[%s13759_s5 + $0x340] sm:$0xff]  ;;  %v14761_v18 = vmax.f32 %v14760_v63, 0.0 }
 0xb63   : > { %6467 = vmatmul.f32.gmra.mxu1 %v5831_v29  ;;  %6529 = vmatpush.msra.mxu2 %v8142_v59  ;;  %v12144_v29 = vpop.f32.mrf.mxu1  ;;  %v8137_v59 = vld [vmem:[%s13759_s5 + $0x318] sm:$0xff] }
 0xb64   : > { %v4968_v57 = vpop.f32.mrf.mxu3  ;;  %14758 = vst [vmem:[#allocation30_spill] sm:$0xff] %v12144_v29  ;;  %v14764_v63 = vld [vmem:[#allocation157_spill] sm:$0xff] }
 0xb65   : > { %v5412_v55 = vmax.f32 %v14755_v62, %v4968_v57  ;;  %6530 = vmatpush.msra.mxu2 %v8141_v37  ;;  %v14759_v57 = vld [vmem:[#allocation154_spill] sm:$0xff] }
 0xb67   : > { %v5624_v46 = vadd.f32 %v12002_v27, %v5412_v55  ;;  %v8140_v55 = vld [vmem:[%s13759_s5 + $0x330] sm:$0xff] }
 0xb68   : > { %6531 = vmatpush.msra.mxu2 %v8140_v55  ;;  %v8136_v55 = vld [vmem:[%s13759_s5 + $0x310] sm:$0xff] }
 0xb69   : > { %5018 = vmatmul.f32.gmra.mxu3 %v14757_v10  ;;  %v5832_v35 = vmax.f32 %v5624_v46, 0.0  ;;  %v8139_v46 = vld [vmem:[%s13759_s5 + $0x328] sm:$0xff] }
 0xb6a   : > { %6532 = vmatpush.msra.mxu2 %v8139_v46  ;;  %v8135_v46 = vld [vmem:[%s13759_s5 + $0x308] sm:$0xff] }
 0xb6b   : > { %6470 = vmatmul.f32.gmra.mxu1 %v5832_v35  ;;  %v8138_v35 = vld [vmem:[%s13759_s5 + $0x320] sm:$0xff] }
 0xb6c   : > { %v4971_v49 = vpop.f32.mrf.mxu3  ;;  %6533 = vmatpush.msra.mxu2 %v8138_v35  ;;  %v8134_v35 = vld [vmem:[%s13759_s5 + $0x300] sm:$0xff] }
 0xb6d   : > { %v5413_v62 = vmax.f32 %v14759_v57, %v4971_v49  ;;  %v12165_v49 = vpop.f32.mrf.mxu1  ;;  %v14763_v57 = vld [vmem:[#allocation156_spill] sm:$0xff] }
 0xb6e   : > { %6534 = vmatpush.msra.mxu2 %v8137_v59  ;;  %14762 = vst [vmem:[#allocation31_spill] sm:$0xff] %v12165_v49 }
 0xb6f   : > { %v5625_v0 = vadd.f32 %v12002_v27, %v5413_v62 }
 0xb70   : > { %6535 = vmatpush.msra.mxu2 %v8136_v55  ;;  %v12181_v55 = vpop.f32.mrf.mxu2 }
 0xb71   : > { %5021 = vmatmul.f32.gmra.mxu3 %v14761_v18  ;;  %v5833_v10 = vmax.f32 %v5625_v0, 0.0  ;;  %v14765_v18 = vmax.f32 %v14764_v63, 0.0 }
 0xb72   : > { %6536 = vmatpush.msra.mxu2 %v8135_v46  ;;  %v14768_v46 = vld [vmem:[#allocation159_spill] sm:$0xff] }
 0xb73   : > { %6473 = vmatmul.f32.gmra.mxu1 %v5833_v10  ;;  %v14769_v51 = vmax.f32 %v14768_v46, 0.0 }
 0xb74   : > { %v4974_v37 = vpop.f32.mrf.mxu3  ;;  %6537 = vmatpush.msra.mxu2 %v8134_v35 }
 0xb75   : > { %v5414_v62 = vmax.f32 %v14763_v57, %v4974_v37  ;;  %v14766_v37 = vld [vmem:[#allocation158_spill] sm:$0xff] }
 0xb77   : > { %v5626_v0 = vadd.f32 %v12002_v27, %v5414_v62  ;;  %v12183_v62 = vpop.f32.mrf.mxu1 }
 0xb78   : > { %14767 = vst [vmem:[#allocation32_spill] sm:$0xff] %v12183_v62  ;;  %v14811_v62 = vld [vmem:[#allocation184_spill] sm:$0xff] }
 0xb79   : > { %5024 = vmatmul.f32.gmra.mxu3 %v14765_v18  ;;  %v5834_v10 = vmax.f32 %v5626_v0, 0.0  ;;  %v14770_v18 = vld [vmem:[#allocation160_spill] sm:$0xff] }
 0xb7b   : > { %6476 = vmatmul.f32.gmra.mxu1 %v5834_v10  ;;  %v12190_v10 = vpop.f32.mrf.mxu2 }
 0xb7c   : > { %v4977_v59 = vpop.f32.mrf.mxu3 }
 0xb7d   : > { %v5415_v57 = vmax.f32 %v14766_v37, %v4977_v59  ;;  %v14772_v59 = vld [vmem:[#allocation161_spill] sm:$0xff] }
 0xb7e   : > { %v14773_v37 = vmax.f32 %v14772_v59, 0.0 }
 0xb7f   : > { %v5627_v47 = vadd.f32 %v12002_v27, %v5415_v57  ;;  %v12192_v7 = vpop.f32.mrf.mxu1 }
 0xb80   : > { %14771 = vst [vmem:[#allocation33_spill] sm:$0xff] %v12192_v7 }
 0xb81   : > { %5027 = vmatmul.f32.gmra.mxu3 %v14769_v51  ;;  %v5835_v63 = vmax.f32 %v5627_v47, 0.0  ;;  %v14775_v51 = vld [vmem:[#allocation163_spill] sm:$0xff] }
 0xb83   : > { %6479 = vmatmul.f32.gmra.mxu1 %v5835_v63  ;;  %v14776_v63 = vmax.f32 %v14775_v51, 0.0 }
 0xb84   : > { %v4980_v0 = vpop.f32.mrf.mxu3 }
 0xb85   : > { %v5416_v31 = vmax.f32 %v14770_v18, %v4980_v0  ;;  %v12200_v18 = vpop.f32.mrf.mxu2 }
 0xb87   : > { %v5628_v35 = vadd.f32 %v12002_v27, %v5416_v31  ;;  %v12202_v31 = vpop.f32.mrf.mxu1 }
 0xb88   : > { %14777 = vst [vmem:[#allocation34_spill] sm:$0xff] %v12202_v31 }
 0xb89   : > { %5030 = vmatmul.f32.gmra.mxu3 %v14773_v37  ;;  %v5836_v58 = vmax.f32 %v5628_v35, 0.0  ;;  %v14779_v37 = vld [vmem:[#allocation165_spill] sm:$0xff] }
 0xb8a   : > { %v14780_v22 = vmax.f32 %v14779_v37, 0.0 }
 0xb8b   : > { %6482 = vmatmul.f32.gmra.mxu1 %v5836_v58 }
 0xb8c   : > { %v4983_v57 = vpop.f32.mrf.mxu3 }
 0xb8d   : > { %v5417_v46 = vmax.f32 %v14774_v40, %v4983_v57  ;;  %v8092_v40 = vld [vmem:[%s13759_s5 + $0x1b0] sm:$0xff] }
 0xb8e   : > { %6237 = vmatpush.msra.mxu3 %v8092_v40 }
 0xb8f   : > { %v5629_v47 = vadd.f32 %v12002_v27, %v5417_v46  ;;  %v12211_v46 = vpop.f32.mrf.mxu2 }
 0xb91   : > { %5033 = vmatmul.f32.gmra.mxu3 %v14776_v63  ;;  %v5837_v0 = vmax.f32 %v5629_v47, 0.0  ;;  %v14781_v47 = vld [vmem:[#allocation166_spill] sm:$0xff] }
 0xb93   : > { %6485 = vmatmul.f32.gmra.mxu1 %v5837_v0 }
 0xb94   : > { %v4986_v26 = vpop.f32.mrf.mxu3 }
 0xb95   : > { %v5418_v59 = vmax.f32 %v14778_v15, %v4986_v26  ;;  %v14782_v15 = vld [vmem:[#allocation167_spill] sm:$0xff] }
 0xb96   : > { %v14783_v26 = vmax.f32 %v14782_v15, 0.0 }
 0xb97   : > { %v5630_v35 = vadd.f32 %v12002_v27, %v5418_v59  ;;  %v12218_v37 = vpop.f32.mrf.mxu2 }
 0xb99   : > { %v5838_v58 = vmax.f32 %v5630_v35, 0.0  ;;  %5036 = vmatmul.f32.gmra.mxu3 %v14780_v22  ;;  %v14784_v22 = vld [vmem:[#allocation168_spill] sm:$0xff] }
 0xb9b   : > { %6538 = vmatmul.f32.vlgmr.msra.gmra.mxu2 %v5838_v58  ;;  %v14785_v58 = vld [vmem:[#allocation169_spill] sm:$0xff] }
 0xb9c   : > { %v4989_v57 = vpop.f32.mrf.mxu3  ;;  %v14786_v52 = vmax.f32 %v14785_v58, 0.0 }
 0xb9d   : > { %v5419_v51 = vmax.f32 %v14781_v47, %v4989_v57  ;;  %v14787_v47 = vld [vmem:[#allocation170_spill] sm:$0xff] }
 0xb9f   : > { %v5631_v63 = vadd.f32 %v12002_v27, %v5419_v51 }
 0xba1   : > { %5039 = vmatmul.f32.gmra.mxu3 %v14783_v26  ;;  %v5839_v0 = vmax.f32 %v5631_v63, 0.0  ;;  %v12225_v26 = vpop.f32.mrf.mxu2  ;;  %v14788_v63 = vld [vmem:[#allocation171_spill] sm:$0xff] }
 0xba3   : > { %6541 = vmatmul.f32.gmra.mxu2 %v5839_v0  ;;  %v14789_v0 = vmax.f32 %v14788_v63, 0.0 }
 0xba4   : > { %v4992_v59 = vpop.f32.mrf.mxu3 }
 0xba5   : > { %v5420_v35 = vmax.f32 %v14784_v22, %v4992_v59 }
 0xba7   : > { %v5632_v40 = vadd.f32 %v12002_v27, %v5420_v35 }
 0xba9   : > { %5042 = vmatmul.f32.gmra.mxu3 %v14786_v52  ;;  %v5840_v31 = vmax.f32 %v5632_v40, 0.0  ;;  %v14791_v52 = vld [vmem:[#allocation173_spill] sm:$0xff]  ;;  %v12233_v8 = vpop.f32.mrf.mxu2 }
 0xbaa   : > { %v14792_v40 = vmax.f32 %v14791_v52, 0.0 }
 0xbab   : > { %6544 = vmatmul.f32.gmra.mxu2 %v5840_v31 }
 0xbac   : > { %v4995_v57 = vpop.f32.mrf.mxu3 }
 0xbad   : > { %v5421_v51 = vmax.f32 %v14787_v47, %v4995_v57  ;;  %v14793_v47 = vld [vmem:[#allocation174_spill] sm:$0xff] }
 0xbaf   : > { %v5633_v15 = vadd.f32 %v12002_v27, %v5421_v51 }
 0xbb1   : > { %5045 = vmatmul.f32.gmra.mxu3 %v14789_v0  ;;  %v5841_v59 = vmax.f32 %v5633_v15, 0.0  ;;  %v14794_v0 = vld [vmem:[#allocation175_spill] sm:$0xff] }
 0xbb2   : > { %v14795_v15 = vmax.f32 %v14794_v0, 0.0 }
 0xbb3   : > { %6547 = vmatmul.f32.gmra.mxu2 %v5841_v59 }
 0xbb4   : > { %v4998_v22 = vpop.f32.mrf.mxu3 }
 0xbb5   : > { %v5422_v35 = vmax.f32 %v14790_v60, %v4998_v22  ;;  %v12239_v22 = vpop.f32.mrf.mxu2 }
 0xbb7   : > { %v5634_v58 = vadd.f32 %v12002_v27, %v5422_v35  ;;  %v14796_v35 = vld [vmem:[#allocation176_spill] sm:$0xff] }
 0xbb9   : > { %5048 = vmatmul.f32.gmra.mxu3 %v14792_v40  ;;  %v5842_v31 = vmax.f32 %v5634_v58, 0.0  ;;  %v14797_v40 = vld [vmem:[#allocation177_spill] sm:$0xff] }
 0xbba   : > { %v14798_v7 = vmax.f32 %v14797_v40, 0.0 }
 0xbbb   : > { %6550 = vmatmul.f32.gmra.mxu2 %v5842_v31 }
 0xbbc   : > { %v5001_v57 = vpop.f32.mrf.mxu3 }
 0xbbd   : > { %v5423_v51 = vmax.f32 %v14793_v47, %v5001_v57  ;;  %v12245_v47 = vpop.f32.mrf.mxu2 }
 0xbbe   : > { %14799 = vst [vmem:[#allocation35_spill] sm:$0xff] %v12245_v47  ;;  %v14872_v47 = vld [vmem:[#allocation229_spill] sm:$0xff] }
 0xbbf   : > { %v5635_v63 = vadd.f32 %v12002_v27, %v5423_v51  ;;  %v14800_v51 = vld [vmem:[#allocation178_spill] sm:$0xff]  ;;  %v14873_v2 = vmax.f32 %v14872_v47, 0.0  ;;  %v14880_v47 = vld [vmem:[#allocation233_spill] sm:$0xff] }
 0xbc1   : > { %5051 = vmatmul.f32.gmra.mxu3 %v14795_v15  ;;  %v5843_v59 = vmax.f32 %v5635_v63, 0.0  ;;  %v14801_v15 = vld [vmem:[#allocation179_spill] sm:$0xff] }
 0xbc3   : > { %6553 = vmatmul.f32.gmra.mxu2 %v5843_v59  ;;  %v14802_v59 = vmax.f32 %v14801_v15, 0.0 }
 0xbc4   : > { %v5004_v60 = vpop.f32.mrf.mxu3 }
 0xbc5   : > { %v5424_v52 = vmax.f32 %v14796_v35, %v5004_v60  ;;  %v14803_v35 = vld [vmem:[#allocation180_spill] sm:$0xff]  ;;  %v12252_v34 = vpop.f32.mrf.mxu2 }
 0xbc6   : > { %14804 = vst [vmem:[#allocation36_spill] sm:$0xff] %v12252_v34 }
 0xbc7   : > { %v5636_v58 = vadd.f32 %v12002_v27, %v5424_v52 }
 0xbc9   : > { %5054 = vmatmul.f32.gmra.mxu3 %v14798_v7  ;;  %v5844_v31 = vmax.f32 %v5636_v58, 0.0  ;;  %v14805_v58 = vld [vmem:[#allocation181_spill] sm:$0xff] }
 0xbca   : > { %v14806_v40 = vmax.f32 %v14805_v58, 0.0 }
 0xbcb   : > { %6556 = vmatmul.f32.gmra.mxu2 %v5844_v31 }
 0xbcc   : > { %v5007_v57 = vpop.f32.mrf.mxu3 }
 0xbcd   : > { %v5425_v0 = vmax.f32 %v14800_v51, %v5007_v57  ;;  %v14807_v51 = vld [vmem:[#allocation182_spill] sm:$0xff] }
 0xbcf   : > { %v5637_v63 = vadd.f32 %v12002_v27, %v5425_v0 }
 0xbd1   : > { %5057 = vmatmul.f32.gmra.mxu3 %v14802_v59  ;;  %v5845_v54 = vmax.f32 %v5637_v63, 0.0  ;;  %v12259_v59 = vpop.f32.mrf.mxu2 }
 0xbd2   : > { %14808 = vst [vmem:[#allocation37_spill] sm:$0xff] %v12259_v59  ;;  %v14862_v59 = vmax.f32 %v14861_v44, 0.0 }
 0xbd3   : > { %6559 = vmatmul.f32.gmra.mxu2 %v5845_v54  ;;  %v14809_v54 = vld [vmem:[#allocation183_spill] sm:$0xff] }
 0xbd4   : > { %v5010_v60 = vpop.f32.mrf.mxu3  ;;  %v14810_v63 = vmax.f32 %v14809_v54, 0.0 }
 0xbd5   : > { %v5426_v52 = vmax.f32 %v14803_v35, %v5010_v60 }
 0xbd7   : > { %v5638_v7 = vadd.f32 %v12002_v27, %v5426_v52 }
 0xbd9   : > { %5060 = vmatmul.f32.gmra.mxu3 %v14806_v40  ;;  %v5846_v31 = vmax.f32 %v5638_v7, 0.0  ;;  %v14812_v40 = vld [vmem:[#allocation185_spill] sm:$0xff]  ;;  %v12267_v11 = vpop.f32.mrf.mxu2 }
 0xbda   : > { %v14813_v7 = vmax.f32 %v14812_v40, 0.0  ;;  %14814 = vst [vmem:[#allocation38_spill] sm:$0xff] %v12267_v11 }
 0xbdb   : > { %6562 = vmatmul.f32.gmra.mxu2 %v5846_v31 }
 0xbdc   : > { %v5013_v57 = vpop.f32.mrf.mxu3 }
 0xbdd   : > { %v5427_v0 = vmax.f32 %v14807_v51, %v5013_v57  ;;  %v14815_v51 = vld [vmem:[#allocation186_spill] sm:$0xff] }
 0xbdf   : > { %v5639_v15 = vadd.f32 %v12002_v27, %v5427_v0 }
 0xbe1   : > { %5063 = vmatmul.f32.gmra.mxu3 %v14810_v63  ;;  %v5847_v60 = vmax.f32 %v5639_v15, 0.0  ;;  %v14816_v63 = vld [vmem:[#allocation187_spill] sm:$0xff] }
 0xbe2   : > { %v14817_v15 = vmax.f32 %v14816_v63, 0.0  ;;  %v14824_v63 = vld [vmem:[#allocation191_spill] sm:$0xff] }
 0xbe3   : > { %6565 = vmatmul.f32.gmra.mxu2 %v5847_v60 }
 0xbe4   : > { %v5016_v35 = vpop.f32.mrf.mxu3 }
 0xbe5   : > { %v5428_v52 = vmax.f32 %v14811_v62, %v5016_v35  ;;  %v12273_v35 = vpop.f32.mrf.mxu2 }
 0xbe6   : > { %14818 = vst [vmem:[#allocation39_spill] sm:$0xff] %v12273_v35 }
 0xbe7   : > { %v5640_v58 = vadd.f32 %v12002_v27, %v5428_v52  ;;  %v14819_v52 = vld [vmem:[#allocation188_spill] sm:$0xff] }
 0xbe9   : > { %5066 = vmatmul.f32.gmra.mxu3 %v14813_v7  ;;  %v5848_v31 = vmax.f32 %v5640_v58, 0.0  ;;  %v14820_v7 = vld [vmem:[#allocation189_spill] sm:$0xff] }
 0xbea   : > { %v14821_v39 = vmax.f32 %v14820_v7, 0.0 }
 0xbeb   : > { %6568 = vmatmul.f32.gmra.mxu2 %v5848_v31 }
 0xbec   : > { %v5019_v57 = vpop.f32.mrf.mxu3 }
 0xbed   : > { %v5429_v0 = vmax.f32 %v14815_v51, %v5019_v57  ;;  %v14822_v51 = vld [vmem:[#allocation190_spill] sm:$0xff]  ;;  %v12280_v49 = vpop.f32.mrf.mxu2 }
 0xbee   : > { %14823 = vst [vmem:[#allocation40_spill] sm:$0xff] %v12280_v49  ;;  %v14831_v49 = vld [vmem:[#allocation195_spill] sm:$0xff] }
 0xbef   : > { %v5641_v54 = vadd.f32 %v12002_v27, %v5429_v0 }
 0xbf1   : > { %5069 = vmatmul.f32.gmra.mxu3 %v14817_v15  ;;  %v5849_v60 = vmax.f32 %v5641_v54, 0.0  ;;  %v14825_v15 = vmax.f32 %v14824_v63, 0.0 }
 0xbf3   : > { %6571 = vmatmul.f32.gmra.mxu2 %v5849_v60 }
 0xbf4   : > { %v5022_v62 = vpop.f32.mrf.mxu3 }
 0xbf5   : > { %v5430_v40 = vmax.f32 %v14819_v52, %v5022_v62  ;;  %v8091_v62 = vld [vmem:[%s13759_s5 + $0x1a8] sm:$0xff]  ;;  %v14826_v52 = vld [vmem:[#allocation192_spill] sm:$0xff]  ;;  %v12290_v7 = vpop.f32.mrf.mxu2 }
 0xbf6   : > { %6238 = vmatpush.msra.mxu3 %v8091_v62  ;;  %14827 = vst [vmem:[#allocation41_spill] sm:$0xff] %v12290_v7  ;;  %v14832_v62 = vmax.f32 %v14831_v49, 0.0  ;;  %v14846_v7 = vld [vmem:[#allocation209_spill] sm:$0xff] }
 0xbf7   : > { %v5642_v58 = vadd.f32 %v12002_v27, %v5430_v40 }
 0xbf9   : > { %5072 = vmatmul.f32.gmra.mxu3 %v14821_v39  ;;  %v5850_v31 = vmax.f32 %v5642_v58, 0.0 }
 0xbfb   : > { %6574 = vmatmul.f32.gmra.mxu2 %v5850_v31  ;;  %v14828_v31 = vld [vmem:[#allocation193_spill] sm:$0xff] }
 0xbfc   : > { %v5025_v57 = vpop.f32.mrf.mxu3 }
 0xbfd   : > { %v5431_v0 = vmax.f32 %v14822_v51, %v5025_v57  ;;  %v14829_v57 = vmax.f32 %v14828_v31, 0.0  ;;  %v12298_v35 = vpop.f32.mrf.mxu2 }
 0xbfe   : > { %14833 = vst [vmem:[#allocation42_spill] sm:$0xff] %v12298_v35  ;;  %v14844_v35 = vld [vmem:[#allocation207_spill] sm:$0xff] }
 0xbff   : > { %v5643_v54 = vadd.f32 %v12002_v27, %v5431_v0 }
 0xc01   : > { %5075 = vmatmul.f32.gmra.mxu3 %v14825_v15  ;;  %v5851_v60 = vmax.f32 %v5643_v54, 0.0  ;;  %v14830_v54 = vld [vmem:[#allocation194_spill] sm:$0xff] }
 0xc03   : > { %6577 = vmatmul.f32.gmra.mxu2 %v5851_v60 }
 0xc04   : > { %v5028_v39 = vpop.f32.mrf.mxu3 }
 0xc05   : > { %v5432_v40 = vmax.f32 %v14826_v52, %v5028_v39  ;;  %v14834_v52 = vld [vmem:[#allocation197_spill] sm:$0xff] }
 0xc07   : > { %v5644_v58 = vadd.f32 %v12002_v27, %v5432_v40  ;;  %v14835_v40 = vmax.f32 %v14834_v52, 0.0 }
 0xc09   : > { %5078 = vmatmul.f32.gmra.mxu3 %v14829_v57  ;;  %v5852_v51 = vmax.f32 %v5644_v58, 0.0  ;;  %v14836_v58 = vld [vmem:[#allocation199_spill] sm:$0xff] }
 0xc0a   : > { %v14837_v57 = vmax.f32 %v14836_v58, 0.0  ;;  %v14845_v58 = vmax.f32 %v14844_v35, 0.0  ;;  %v8181_v35 = vld [vmem:[%s13759_s5 + $0x478] sm:$0xff] }
 0xc0b   : > { %6580 = vmatmul.f32.gmra.mxu2 %v5852_v51  ;;  %6718 = vmatpush.msrb.mxu0 %v8181_v35  ;;  %v8176_v35 = vld [vmem:[%s13759_s5 + $0x450] sm:$0xff] }
 0xc0c   : > { %v5031_v0 = vpop.f32.mrf.mxu3 }
 0xc0d   : > { %v5433_v63 = vmax.f32 %v14830_v54, %v5031_v0  ;;  %v14838_v0 = vld [vmem:[#allocation201_spill] sm:$0xff] }
 0xc0e   : > { %v14839_v54 = vmax.f32 %v14838_v0, 0.0  ;;  %v14847_v0 = vmax.f32 %v14846_v7, 0.0  ;;  %v8180_v7 = vld [vmem:[%s13759_s5 + $0x470] sm:$0xff] }
 0xc0f   : > { %v5645_v15 = vadd.f32 %v12002_v27, %v5433_v63  ;;  %v14840_v63 = vld [vmem:[#allocation203_spill] sm:$0xff]  ;;  %6719 = vmatpush.msrb.mxu0 %v8180_v7 }
 0xc10   : > { %v8175_v7 = vld [vmem:[%s13759_s5 + $0x448] sm:$0xff] }
 0xc11   : > { %5081 = vmatmul.f32.gmra.mxu3 %v14832_v62  ;;  %v5853_v60 = vmax.f32 %v5645_v15, 0.0  ;;  %v14841_v15 = vmax.f32 %v14840_v63, 0.0  ;;  %v14849_v63 = vmax.f32 %v14848_v1, 0.0  ;;  %v8179_v1 = vld [vmem:[%s13759_s5 + $0x468] sm:$0xff] }
 0xc12   : > { %6720 = vmatpush.msrb.mxu0 %v8179_v1  ;;  %v14854_v1 = vld [vmem:[#allocation217_spill] sm:$0xff] }
 0xc13   : > { %6583 = vmatmul.f32.gmra.mxu2 %v5853_v60  ;;  %v14842_v60 = vld [vmem:[#allocation205_spill] sm:$0xff] }
 0xc14   : > { %v12300_v39 = vpop.f32.mrf.mxu3  ;;  %v14843_v52 = vmax.f32 %v14842_v60, 0.0  ;;  %v14851_v60 = vmax.f32 %v14850_v16, 0.0 }
 0xc19   : > { %5084 = vmatmul.f32.gmra.mxu3 %v14835_v40 }
 0xc1c   : > { %v12304_v31 = vpop.f32.mrf.mxu3 }
 0xc21   : > { %5087 = vmatmul.f32.gmra.mxu3 %v14837_v57 }
 0xc24   : > { %v12308_v51 = vpop.f32.mrf.mxu3 }
 0xc29   : > { %5090 = vmatmul.f32.gmra.mxu3 %v14839_v54 }
 0xc2c   : > { %v12312_v49 = vpop.f32.mrf.mxu3 }
 0xc31   : > { %5093 = vmatmul.f32.gmra.mxu3 %v14841_v15 }
 0xc34   : > { %v12316_v62 = vpop.f32.mrf.mxu3 }
 0xc39   : > { %5096 = vmatmul.f32.gmra.mxu3 %v14843_v52 }
 0xc3c   : > { %v12320_v40 = vpop.f32.mrf.mxu3 }
 0xc41   : > { %5099 = vmatmul.f32.gmra.mxu3 %v14845_v58  ;;  %v14852_v58 = vld [vmem:[#allocation215_spill] sm:$0xff] }
 0xc42   : > { %v14853_v16 = vmax.f32 %v14852_v58, 0.0  ;;  %v14855_v58 = vmax.f32 %v14854_v1, 0.0  ;;  %v8171_v1 = vld [vmem:[%s13759_s5 + $0x428] sm:$0xff] }
 0xc44   : > { %v12324_v57 = vpop.f32.mrf.mxu3 }
 0xc49   : > { %5102 = vmatmul.f32.gmra.mxu3 %v14847_v0  ;;  %v8178_v0 = vld [vmem:[%s13759_s5 + $0x460] sm:$0xff] }
 0xc4a   : > { %6721 = vmatpush.msrb.mxu0 %v8178_v0  ;;  %v8174_v0 = vld [vmem:[%s13759_s5 + $0x440] sm:$0xff] }
 0xc4c   : > { %v12328_v54 = vpop.f32.mrf.mxu3 }
 0xc51   : > { %5105 = vmatmul.f32.gmra.mxu3 %v14849_v63  ;;  %v8177_v63 = vld [vmem:[%s13759_s5 + $0x458] sm:$0xff] }
 0xc52   : > { %6722 = vmatpush.msrb.mxu0 %v8177_v63  ;;  %v8173_v63 = vld [vmem:[%s13759_s5 + $0x438] sm:$0xff] }
 0xc54   : > { %v12332_v15 = vpop.f32.mrf.mxu3  ;;  %6723 = vmatpush.msrb.mxu0 %v8176_v35 }
 0xc56   : > { %6724 = vmatpush.msrb.mxu0 %v8175_v7  ;;  %v8172_v7 = vld [vmem:[%s13759_s5 + $0x430] sm:$0xff] }
 0xc58   : > { %6725 = vmatpush.msrb.mxu0 %v8174_v0  ;;  %v8170_v0 = vld [vmem:[%s13759_s5 + $0x420] sm:$0xff] }
 0xc59   : > { %5108 = vmatmul.f32.gmra.mxu3 %v14851_v60 }
 0xc5a   : > { %6726 = vmatpush.msrb.mxu0 %v8173_v63  ;;  %v8169_v63 = vld [vmem:[%s13759_s5 + $0x418] sm:$0xff] }
 0xc5c   : > { %v12339_v52 = vpop.f32.mrf.mxu3  ;;  %6727 = vmatpush.msrb.mxu0 %v8172_v7  ;;  %v8168_v7 = vld [vmem:[%s13759_s5 + $0x410] sm:$0xff] }
 0xc5e   : > { %6728 = vmatpush.msrb.mxu0 %v8171_v1  ;;  %v8167_v1 = vld [vmem:[%s13759_s5 + $0x408] sm:$0xff] }
 0xc60   : > { %6729 = vmatpush.msrb.mxu0 %v8170_v0  ;;  %v8166_v0 = vld [vmem:[%s13759_s5 + $0x400] sm:$0xff] }
 0xc61   : > { %5111 = vmatmul.f32.gmra.mxu3 %v14853_v16  ;;  %v8090_v16 = vld [vmem:[%s13759_s5 + $0x1a0] sm:$0xff] }
 0xc62   : > { %6239 = vmatpush.msra.mxu3 %v8090_v16  ;;  %6730 = vmatpush.msrb.mxu0 %v8169_v63  ;;  %v12405_v63 = vpop.f32.mrf.mxu0 }
 0xc63   : > { %14860 = vst [vmem:[#allocation43_spill] sm:$0xff] %v12405_v63 }
 0xc64   : > { %v12355_v60 = vpop.f32.mrf.mxu3  ;;  %6731 = vmatpush.msrb.mxu0 %v8168_v7 }
 0xc66   : > { %6732 = vmatpush.msrb.mxu0 %v8167_v1  ;;  %v14865_v1 = vld [vmem:[#allocation225_spill] sm:$0xff] }
 0xc67   : > { %v14866_v19 = vmax.f32 %v14865_v1, 0.0 }
 0xc68   : > { %6733 = vmatpush.msrb.mxu0 %v8166_v0 }
 0xc69   : > { %5114 = vmatmul.f32.gmra.mxu3 %v14855_v58  ;;  %v14856_v58 = vld [vmem:[#allocation219_spill] sm:$0xff] }
 0xc6a   : > { %v14857_v16 = vmax.f32 %v14856_v58, 0.0  ;;  %v14858_v58 = vld [vmem:[#allocation221_spill] sm:$0xff]  ;;  %v12411_v32 = vpop.f32.mrf.mxu0 }
 0xc6b   : > { %14864 = vst [vmem:[#allocation45_spill] sm:$0xff] %v12411_v32 }
 0xc6c   : > { %v12374_v35 = vpop.f32.mrf.mxu3 }
 0xc71   : > { %5117 = vmatmul.f32.gmra.mxu3 %v14857_v16  ;;  %v14859_v16 = vmax.f32 %v14858_v58, 0.0 }
 0xc72   : > { %v12419_v0 = vpop.f32.mrf.mxu0 }
 0xc73   : > { %14870 = vst [vmem:[#allocation47_spill] sm:$0xff] %v12419_v0 }
 0xc74   : > { %v12390_v11 = vpop.f32.mrf.mxu3 }
 0xc79   : > { %5120 = vmatmul.f32.gmra.mxu3 %v14859_v16  ;;  %v14868_v16 = vld [vmem:[#allocation227_spill] sm:$0xff] }
 0xc7a   : > { %v14869_v34 = vmax.f32 %v14868_v16, 0.0  ;;  %v12425_v1 = vpop.f32.mrf.mxu0 }
 0xc7b   : > { %14874 = vst [vmem:[#allocation48_spill] sm:$0xff] %v12425_v1 }
 0xc7c   : > { %v12403_v29 = vpop.f32.mrf.mxu3 }
 0xc81   : > { %5123 = vmatmul.f32.gmra.mxu3 %v14862_v59 }
 0xc84   : > { %v12409_v7 = vpop.f32.mrf.mxu3 }
 0xc85   : > { %14863 = vst [vmem:[#allocation44_spill] sm:$0xff] %v12409_v7 }
 0xc89   : > { %5126 = vmatmul.f32.gmra.mxu3 %v14866_v19  ;;  %v14875_v19 = vld [vmem:[#allocation230_spill] sm:$0xff] }
 0xc8c   : > { %v12415_v58 = vpop.f32.mrf.mxu3 }
 0xc8d   : > { %14867 = vst [vmem:[#allocation46_spill] sm:$0xff] %v12415_v58 }
 0xc91   : > { %5129 = vmatmul.f32.gmra.mxu3 %v14869_v34  ;;  %v14876_v34 = vld [vmem:[#allocation231_spill] sm:$0xff] }
 0xc92   : > { %v14877_v58 = vmax.f32 %v14876_v34, 0.0 }
 0xc94   : > { %v5082_v48 = vpop.f32.mrf.mxu3 }
 0xc95   : > { %v5450_v63 = vmax.f32 %v14871_v25, %v5082_v48  ;;  %v14878_v48 = vld [vmem:[#allocation232_spill] sm:$0xff] }
 0xc97   : > { %v5662_v44 = vadd.f32 %v12002_v27, %v5450_v63 }
 0xc99   : > { %v5870_v59 = vmax.f32 %v5662_v44, 0.0  ;;  %5132 = vmatmul.f32.gmra.mxu3 %v14873_v2  ;;  %v12432_v44 = vpop.f32.mrf.mxu0 }
 0xc9a   : > { %14879 = vst [vmem:[#allocation49_spill] sm:$0xff] %v12432_v44  ;;  %v14886_v44 = vld [vmem:[#allocation236_spill] sm:$0xff] }
 0xc9b   : > { %6734 = vmatmul.f32.vlgmr.msrb.gmra.mxu0 %v5870_v59  ;;  %v14881_v59 = vmax.f32 %v14880_v47, 0.0 }
 0xc9c   : > { %v5085_v32 = vpop.f32.mrf.mxu3 }
 0xc9d   : > { %v5451_v41 = vmax.f32 %v14875_v19, %v5085_v32  ;;  %v14882_v19 = vld [vmem:[#allocation234_spill] sm:$0xff] }
 0xc9f   : > { %v5663_v16 = vadd.f32 %v12002_v27, %v5451_v41 }
 0xca1   : > { %5135 = vmatmul.f32.gmra.mxu3 %v14877_v58  ;;  %v5871_v0 = vmax.f32 %v5663_v16, 0.0  ;;  %v12439_v58 = vpop.f32.mrf.mxu0 }
 0xca2   : > { %14883 = vst [vmem:[#allocation50_spill] sm:$0xff] %v12439_v58  ;;  %v12545_v58 = vpop.f32.mrf.mxu1 }
 0xca3   : > { %6737 = vmatmul.f32.gmra.mxu0 %v5871_v0  ;;  %v14884_v0 = vld [vmem:[#allocation235_spill] sm:$0xff]  ;;  %14921 = vst [vmem:[#allocation58_spill] sm:$0xff] %v12545_v58 }
 0xca4   : > { %v5088_v25 = vpop.f32.mrf.mxu3  ;;  %v14885_v16 = vmax.f32 %v14884_v0, 0.0 }
 0xca5   : > { %v5452_v63 = vmax.f32 %v14878_v48, %v5088_v25 }
 0xca7   : > { %v5664_v2 = vadd.f32 %v12002_v27, %v5452_v63 }
 0xca9   : > { %5138 = vmatmul.f32.gmra.mxu3 %v14881_v59  ;;  %v5872_v1 = vmax.f32 %v5664_v2, 0.0  ;;  %v14887_v59 = vld [vmem:[#allocation237_spill] sm:$0xff]  ;;  %v12447_v7 = vpop.f32.mrf.mxu0 }
 0xcaa   : > { %v14888_v2 = vmax.f32 %v14887_v59, 0.0  ;;  %14889 = vst [vmem:[#allocation51_spill] sm:$0xff] %v12447_v7 }
 0xcab   : > { %6740 = vmatmul.f32.gmra.mxu0 %v5872_v1 }
 0xcac   : > { %v5091_v32 = vpop.f32.mrf.mxu3 }
 0xcad   : > { %v5453_v41 = vmax.f32 %v14882_v19, %v5091_v32  ;;  %v14890_v19 = vld [vmem:[#allocation238_spill] sm:$0xff] }
 0xcaf   : > { %v5665_v34 = vadd.f32 %v12002_v27, %v5453_v41 }
 0xcb1   : > { %5141 = vmatmul.f32.gmra.mxu3 %v14885_v16  ;;  %v5873_v25 = vmax.f32 %v5665_v34, 0.0  ;;  %v14891_v16 = vld [vmem:[#allocation239_spill] sm:$0xff] }
 0xcb2   : > { %v14892_v34 = vmax.f32 %v14891_v16, 0.0 }
 0xcb3   : > { %6743 = vmatmul.f32.gmra.mxu0 %v5873_v25 }
 0xcb4   : > { %v5094_v48 = vpop.f32.mrf.mxu3 }
 0xcb5   : > { %v5454_v63 = vmax.f32 %v14886_v44, %v5094_v48  ;;  %v12453_v48 = vpop.f32.mrf.mxu0 }
 0xcb6   : > { %14893 = vst [vmem:[#allocation52_spill] sm:$0xff] %v12453_v48 }
 0xcb7   : > { %v5666_v47 = vadd.f32 %v12002_v27, %v5454_v63  ;;  %v14894_v63 = vld [vmem:[#allocation240_spill] sm:$0xff] }
 0xcb9   : > { %5144 = vmatmul.f32.gmra.mxu3 %v14888_v2  ;;  %v5874_v1 = vmax.f32 %v5666_v47, 0.0  ;;  %v14895_v2 = vld [vmem:[#allocation241_spill] sm:$0xff] }
 0xcba   : > { %v14896_v7 = vmax.f32 %v14895_v2, 0.0 }
 0xcbb   : > { %6746 = vmatmul.f32.gmra.mxu0 %v5874_v1 }
 0xcbc   : > { %v5097_v32 = vpop.f32.mrf.mxu3 }
 0xcbd   : > { %v5455_v41 = vmax.f32 %v14890_v19, %v5097_v32  ;;  %v12459_v19 = vpop.f32.mrf.mxu0 }
 0xcbe   : > { %14897 = vst [vmem:[#allocation53_spill] sm:$0xff] %v12459_v19 }
 0xcbf   : > { %v5667_v0 = vadd.f32 %v12002_v27, %v5455_v41  ;;  %v14898_v41 = vld [vmem:[#allocation242_spill] sm:$0xff] }
 0xcc1   : > { %5147 = vmatmul.f32.gmra.mxu3 %v14892_v34  ;;  %v5875_v25 = vmax.f32 %v5667_v0, 0.0  ;;  %v14899_v34 = vld [vmem:[#allocation243_spill] sm:$0xff] }
 0xcc3   : > { %6749 = vmatmul.f32.gmra.mxu0 %v5875_v25  ;;  %v14900_v25 = vmax.f32 %v14899_v34, 0.0  ;;  %v14905_v34 = vld [vmem:[#allocation246_spill] sm:$0xff] }
 0xcc4   : > { %v5100_v44 = vpop.f32.mrf.mxu3 }
 0xcc5   : > { %v5456_v59 = vmax.f32 %v14894_v63, %v5100_v44  ;;  %v8089_v44 = vld [vmem:[%s13759_s5 + $0x198] sm:$0xff] }
 0xcc6   : > { %6240 = vmatpush.msra.mxu3 %v8089_v44  ;;  %v14901_v63 = vld [vmem:[#allocation244_spill] sm:$0xff] }
 0xcc7   : > { %v5668_v47 = vadd.f32 %v12002_v27, %v5456_v59 }
 0xcc9   : > { %5150 = vmatmul.f32.gmra.mxu3 %v14896_v7  ;;  %v5876_v1 = vmax.f32 %v5668_v47, 0.0  ;;  %v12469_v47 = vpop.f32.mrf.mxu0 }
 0xcca   : > { %14902 = vst [vmem:[#allocation54_spill] sm:$0xff] %v12469_v47 }
 0xccb   : > { %6752 = vmatmul.f32.gmra.mxu0 %v5876_v1  ;;  %v14903_v1 = vld [vmem:[#allocation245_spill] sm:$0xff] }
 0xccc   : > { %v5103_v32 = vpop.f32.mrf.mxu3 }
 0xccd   : > { %v5457_v16 = vmax.f32 %v14898_v41, %v5103_v32  ;;  %v14904_v32 = vmax.f32 %v14903_v1, 0.0 }
 0xccf   : > { %v5669_v0 = vadd.f32 %v12002_v27, %v5457_v16  ;;  %v8197_v16 = vld [vmem:[%s13759_s5 + $0x4f8] sm:$0xff] }
 0xcd0   : > { %6816 = vmatpush.msrb.mxu1 %v8197_v16 }
 0xcd1   : > { %5153 = vmatmul.f32.gmra.mxu3 %v14900_v25  ;;  %v5877_v48 = vmax.f32 %v5669_v0, 0.0  ;;  %v8196_v25 = vld [vmem:[%s13759_s5 + $0x4f0] sm:$0xff] }
 0xcd2   : > { %6817 = vmatpush.msrb.mxu1 %v8196_v25 }
 0xcd3   : > { %6755 = vmatmul.f32.gmra.mxu0 %v5877_v48 }
 0xcd4   : > { %v5106_v7 = vpop.f32.mrf.mxu3 }
 0xcd5   : > { %v5458_v59 = vmax.f32 %v14901_v63, %v5106_v7  ;;  %v8195_v7 = vld [vmem:[%s13759_s5 + $0x4e8] sm:$0xff]  ;;  %v12485_v63 = vpop.f32.mrf.mxu0 }
 0xcd6   : > { %6818 = vmatpush.msrb.mxu1 %v8195_v7  ;;  %14906 = vst [vmem:[#allocation55_spill] sm:$0xff] %v12485_v63  ;;  %v14910_v7 = vld [vmem:[#allocation249_spill] sm:$0xff] }
 0xcd7   : > { %v5670_v2 = vadd.f32 %v12002_v27, %v5458_v59  ;;  %v14907_v59 = vld [vmem:[#allocation247_spill] sm:$0xff] }
 0xcd9   : > { %5156 = vmatmul.f32.gmra.mxu3 %v14904_v32  ;;  %v5878_v41 = vmax.f32 %v5670_v2, 0.0  ;;  %v14908_v2 = vmax.f32 %v14907_v59, 0.0  ;;  %v8194_v32 = vld [vmem:[%s13759_s5 + $0x4e0] sm:$0xff]  ;;  %v14911_v59 = vmax.f32 %v14910_v7, 0.0  ;;  %v14914_v7 = vld [vmem:[#allocation251_spill] sm:$0xff] }
 0xcda   : > { %6819 = vmatpush.msrb.mxu1 %v8194_v32 }
 0xcdb   : > { %6758 = vmatmul.f32.gmra.mxu0 %v5878_v41  ;;  %v8193_v41 = vld [vmem:[%s13759_s5 + $0x4d8] sm:$0xff] }
 0xcdc   : > { %v5109_v0 = vpop.f32.mrf.mxu3  ;;  %6820 = vmatpush.msrb.mxu1 %v8193_v41  ;;  %v8189_v41 = vld [vmem:[%s13759_s5 + $0x4b8] sm:$0xff] }
 0xcdd   : > { %v5459_v48 = vmax.f32 %v14905_v34, %v5109_v0  ;;  %v14909_v0 = vld [vmem:[#allocation248_spill] sm:$0xff]  ;;  %v12508_v32 = vpop.f32.mrf.mxu0 }
 0xcde   : > { %14912 = vst [vmem:[#allocation56_spill] sm:$0xff] %v12508_v32 }
 0xcdf   : > { %v5671_v44 = vadd.f32 %v12002_v27, %v5459_v48  ;;  %v8192_v48 = vld [vmem:[%s13759_s5 + $0x4d0] sm:$0xff] }
 0xce0   : > { %6821 = vmatpush.msrb.mxu1 %v8192_v48  ;;  %v8188_v48 = vld [vmem:[%s13759_s5 + $0x4b0] sm:$0xff] }
 0xce1   : > { %5159 = vmatmul.f32.gmra.mxu3 %v14908_v2  ;;  %v5879_v1 = vmax.f32 %v5671_v44, 0.0  ;;  %v8191_v44 = vld [vmem:[%s13759_s5 + $0x4c8] sm:$0xff] }
 0xce2   : > { %6822 = vmatpush.msrb.mxu1 %v8191_v44  ;;  %v8187_v44 = vld [vmem:[%s13759_s5 + $0x4a8] sm:$0xff] }
 0xce3   : > { %6761 = vmatmul.f32.gmra.mxu0 %v5879_v1  ;;  %v8190_v1 = vld [vmem:[%s13759_s5 + $0x4c0] sm:$0xff] }
 0xce4   : > { %v5112_v16 = vpop.f32.mrf.mxu3  ;;  %6823 = vmatpush.msrb.mxu1 %v8190_v1  ;;  %v8186_v1 = vld [vmem:[%s13759_s5 + $0x4a0] sm:$0xff] }
 0xce5   : > { %v5460_v34 = vmax.f32 %v14909_v0, %v5112_v16  ;;  %v14913_v0 = vld [vmem:[#allocation250_spill] sm:$0xff] }
 0xce6   : > { %6824 = vmatpush.msrb.mxu1 %v8189_v41  ;;  %v8185_v41 = vld [vmem:[%s13759_s5 + $0x498] sm:$0xff] }
 0xce7   : > { %v5672_v25 = vadd.f32 %v12002_v27, %v5460_v34 }
 0xce8   : > { %6825 = vmatpush.msrb.mxu1 %v8188_v48 }
 0xce9   : > { %5162 = vmatmul.f32.gmra.mxu3 %v14911_v59  ;;  %v5880_v2 = vmax.f32 %v5672_v25, 0.0  ;;  %v14915_v59 = vmax.f32 %v14914_v7, 0.0  ;;  %v8183_v7 = vld [vmem:[%s13759_s5 + $0x488] sm:$0xff] }
 0xcea   : > { %6826 = vmatpush.msrb.mxu1 %v8187_v44 }
 0xceb   : > { %6764 = vmatmul.f32.gmra.mxu0 %v5880_v2 }
 0xcec   : > { %v5115_v16 = vpop.f32.mrf.mxu3  ;;  %6827 = vmatpush.msrb.mxu1 %v8186_v1 }
 0xced   : > { %v5461_v34 = vmax.f32 %v14913_v0, %v5115_v16  ;;  %v12529_v0 = vpop.f32.mrf.mxu0 }
 0xcee   : > { %6828 = vmatpush.msrb.mxu1 %v8185_v41  ;;  %14916 = vst [vmem:[#allocation57_spill] sm:$0xff] %v12529_v0  ;;  %v8182_v41 = vld [vmem:[%s13759_s5 + $0x480] sm:$0xff] }
 0xcef   : > { %v5673_v25 = vadd.f32 %v12002_v27, %v5461_v34  ;;  %v14917_v34 = vld [vmem:[#allocation252_spill] sm:$0xff] }
 0xcf1   : > { %5165 = vmatmul.f32.gmra.mxu3 %v14915_v59  ;;  %v5881_v2 = vmax.f32 %v5673_v25, 0.0  ;;  %v8184_v25 = vld [vmem:[%s13759_s5 + $0x490] sm:$0xff]  ;;  %v14918_v59 = vld [vmem:[#allocation253_spill] sm:$0xff] }
 0xcf2   : > { %6829 = vmatpush.msrb.mxu1 %v8184_v25 }
 0xcf3   : > { %6767 = vmatmul.f32.gmra.mxu0 %v5881_v2  ;;  %v14919_v2 = vmax.f32 %v14918_v59, 0.0 }
 0xcf4   : > { %v5118_v16 = vpop.f32.mrf.mxu3  ;;  %6830 = vmatpush.msrb.mxu1 %v8183_v7  ;;  %v14923_v7 = vld [vmem:[#allocation255_spill] sm:$0xff] }
 0xcf5   : > { %v5462_v48 = vmax.f32 %v14917_v34, %v5118_v16  ;;  %v14920_v34 = vld [vmem:[#allocation254_spill] sm:$0xff]  ;;  %v14924_v32 = vmax.f32 %v14923_v7, 0.0 }
 0xcf6   : > { %6831 = vmatpush.msrb.mxu1 %v8182_v41  ;;  %v14930_v7 = vld [vmem:[#allocation258_spill] sm:$0xff] }
 0xcf7   : > { %v5674_v44 = vadd.f32 %v12002_v27, %v5462_v48  ;;  %v12547_v48 = vpop.f32.mrf.mxu0 }
 0xcf8   : > { %14922 = vst [vmem:[#allocation59_spill] sm:$0xff] %v12547_v48 }
 0xcf9   : > { %5168 = vmatmul.f32.gmra.mxu3 %v14919_v2  ;;  %v5882_v1 = vmax.f32 %v5674_v44, 0.0  ;;  %v14925_v2 = vld [vmem:[#allocation256_spill] sm:$0xff] }
 0xcfb   : > { %6770 = vmatmul.f32.gmra.mxu0 %v5882_v1  ;;  %v12556_v1 = vld [vmem:[%s13758_s4] ss:$0 sm:$0xff] }
 0xcfc   : > { %v5121_v16 = vpop.f32.mrf.mxu3 }
 0xcfd   : > { %v5463_v25 = vmax.f32 %v14920_v34, %v5121_v16  ;;  %v12559_v16 = vpop.f32.mrf.mxu1 }
 0xcfe   : > { %14926 = vst [vmem:[#allocation60_spill] sm:$0xff] %v12559_v16 }
 0xcff   : > { %v5675_v0 = vadd.f32 %v12002_v27, %v5463_v25  ;;  %v12561_v34 = vpop.f32.mrf.mxu0  ;;  %v14928_v27 = vld [vmem:[#allocation257_spill] sm:$0xff] }
 0xd00   : > { %14927 = vst [vmem:[#allocation61_spill] sm:$0xff] %v12561_v34  ;;  %v14929_v25 = vmax.f32 %v14928_v27, 0.0  ;;  %v14935_v34 = vld [vmem:[#allocation260_spill] sm:$0xff] }
 0xd01   : > { %5171 = vmatmul.f32.gmra.mxu3 %v14924_v32  ;;  %v5883_v59 = vmax.f32 %v5675_v0, 0.0 }
 0xd03   : > { %6773 = vmatmul.f32.gmra.mxu0 %v5883_v59 }
 0xd04   : > { %v5124_v44 = vpop.f32.mrf.mxu3 }
 0xd05   : > { %v5464_v63 = vmax.f32 %v14925_v2, %v5124_v44  ;;  %v14931_v2 = vld [vmem:[#allocation259_spill] sm:$0xff]  ;;  %v12569_v47 = vpop.f32.mrf.mxu1 }
 0xd06   : > { %v14932_v58 = vmax.f32 %v14931_v2, 0.0  ;;  %14933 = vst [vmem:[#allocation62_spill] sm:$0xff] %v12569_v47  ;;  %v14940_v2 = vld [vmem:[#allocation263_spill] sm:$0xff] }
 0xd07   : > { %v5676_v41 = vadd.f32 %v12556_v1, %v5464_v63  ;;  %v12571_v63 = vpop.f32.mrf.mxu0  ;;  %v14941_v47 = vmax.f32 %v14940_v2, 0.0 }
 0xd08   : > { %14934 = vst [vmem:[#allocation63_spill] sm:$0xff] %v12571_v63 }
 0xd09   : > { %5174 = vmatmul.f32.gmra.mxu3 %v14929_v25  ;;  %v5884_v32 = vmax.f32 %v5676_v41, 0.0 }
 0xd0b   : > { %6776 = vmatmul.f32.gmra.mxu0 %v5884_v32  ;;  %v14936_v32 = vld [vmem:[#allocation261_spill] sm:$0xff] }
 0xd0c   : > { %v5127_v0 = vpop.f32.mrf.mxu3  ;;  %v14937_v19 = vmax.f32 %v14936_v32, 0.0 }
 0xd0d   : > { %v5465_v59 = vmax.f32 %v14930_v7, %v5127_v0  ;;  %v12577_v7 = vpop.f32.mrf.mxu1 }
 0xd0e   : > { %14938 = vst [vmem:[#allocation64_spill] sm:$0xff] %v12577_v7 }
 0xd0f   : > { %v5677_v44 = vadd.f32 %v12556_v1, %v5465_v59 }
 0xd11   : > { %5177 = vmatmul.f32.gmra.mxu3 %v14932_v58  ;;  %v5885_v48 = vmax.f32 %v5677_v44, 0.0  ;;  %v14939_v58 = vld [vmem:[#allocation262_spill] sm:$0xff] }
 0xd13   : > { %6779 = vmatmul.f32.gmra.mxu0 %v5885_v48 }
 0xd14   : > { %v5130_v16 = vpop.f32.mrf.mxu3 }
 0xd15   : > { %v5466_v27 = vmax.f32 %v14935_v34, %v5130_v16  ;;  %v14942_v34 = vld [vmem:[#allocation264_spill] sm:$0xff] }
 0xd17   : > { %v5678_v41 = vadd.f32 %v12556_v1, %v5466_v27 }
 0xd19   : > { %v5886_v25 = vmax.f32 %v5678_v41, 0.0  ;;  %5180 = vmatmul.f32.gmra.mxu3 %v14937_v19  ;;  %v12584_v41 = vpop.f32.mrf.mxu1 }
 0xd1a   : > { %14943 = vst [vmem:[#allocation65_spill] sm:$0xff] %v12584_v41  ;;  %v14950_v41 = vld [vmem:[#allocation269_spill] sm:$0xff] }
 0xd1b   : > { %6832 = vmatmul.f32.vlgmr.msrb.gmra.mxu1 %v5886_v25  ;;  %v14944_v25 = vld [vmem:[#allocation265_spill] sm:$0xff] }
 0xd1c   : > { %v5133_v0 = vpop.f32.mrf.mxu3  ;;  %v14945_v32 = vmax.f32 %v14944_v25, 0.0 }
 0xd1d   : > { %v5467_v59 = vmax.f32 %v14939_v58, %v5133_v0  ;;  %v14946_v58 = vld [vmem:[#allocation266_spill] sm:$0xff] }
 0xd1f   : > { %v5679_v44 = vadd.f32 %v12556_v1, %v5467_v59 }
 0xd21   : > { %5183 = vmatmul.f32.gmra.mxu3 %v14941_v47  ;;  %v5887_v48 = vmax.f32 %v5679_v44, 0.0  ;;  %v12591_v47 = vpop.f32.mrf.mxu1  ;;  %v14948_v44 = vld [vmem:[#allocation267_spill] sm:$0xff] }
 0xd22   : > { %14947 = vst [vmem:[#allocation66_spill] sm:$0xff] %v12591_v47  ;;  %v14959_v47 = vld [vmem:[#allocation272_spill] sm:$0xff] }
 0xd23   : > { %6835 = vmatmul.f32.gmra.mxu1 %v5887_v48  ;;  %v14949_v48 = vmax.f32 %v14948_v44, 0.0 }
 0xd24   : > { %v5136_v16 = vpop.f32.mrf.mxu3 }
 0xd25   : > { %v5468_v27 = vmax.f32 %v14942_v34, %v5136_v16 }
 0xd27   : > { %v5680_v19 = vadd.f32 %v12556_v1, %v5468_v27 }
 0xd29   : > { %5186 = vmatmul.f32.gmra.mxu3 %v14945_v32  ;;  %v5888_v7 = vmax.f32 %v5680_v19, 0.0  ;;  %v14951_v32 = vld [vmem:[#allocation268_spill] sm:$0xff] }
 0xd2a   : > { %v14952_v19 = vmax.f32 %v14951_v32, 0.0  ;;  %v14958_v32 = vld [vmem:[#allocation273_spill] sm:$0xff] }
 0xd2b   : > { %6838 = vmatmul.f32.gmra.mxu1 %v5888_v7 }
 0xd2c   : > { %v5139_v0 = vpop.f32.mrf.mxu3 }
 0xd2d   : > { %v5469_v59 = vmax.f32 %v14946_v58, %v5139_v0  ;;  %v8088_v0 = vld [vmem:[%s13759_s5 + $0x190] sm:$0xff]  ;;  %v12602_v58 = vpop.f32.mrf.mxu1 }
 0xd2e   : > { %6241 = vmatpush.msra.mxu3 %v8088_v0  ;;  %14953 = vst [vmem:[#allocation67_spill] sm:$0xff] %v12602_v58  ;;  %v14960_v58 = vmax.f32 %v14959_v47, 0.0 }
 0xd2f   : > { %v5681_v2 = vadd.f32 %v12556_v1, %v5469_v59 }
 0xd31   : > { %5189 = vmatmul.f32.gmra.mxu3 %v14949_v48  ;;  %v5889_v16 = vmax.f32 %v5681_v2, 0.0  ;;  %v14954_v2 = vld [vmem:[#allocation271_spill] sm:$0xff] }
 0xd33   : > { %6841 = vmatmul.f32.gmra.mxu1 %v5889_v16 }
 0xd34   : > { %v5142_v34 = vpop.f32.mrf.mxu3 }
 0xd35   : > { %v5470_v27 = vmax.f32 %v14950_v41, %v5142_v34  ;;  %v14955_v41 = vld [vmem:[#allocation270_spill] sm:$0xff] }
 0xd36   : > { %v14956_v16 = vmax.f32 %v14955_v41, 0.0 }
 0xd37   : > { %v5682_v25 = vadd.f32 %v12556_v1, %v5470_v27 }
 0xd39   : > { %5192 = vmatmul.f32.gmra.mxu3 %v14952_v19  ;;  %v5890_v7 = vmax.f32 %v5682_v25, 0.0  ;;  %v12608_v25 = vpop.f32.mrf.mxu1 }
 0xd3a   : > { %14957 = vst [vmem:[#allocation69_spill] sm:$0xff] %v12608_v25 }
 0xd3b   : > { %6844 = vmatmul.f32.gmra.mxu1 %v5890_v7 }
 0xd3c   : > { %v5145_v59 = vpop.f32.mrf.mxu3 }
 0xd3d   : > { %v5471_v44 = vmax.f32 %v14954_v2, %v5145_v59 }
 0xd3f   : > { %v5683_v48 = vadd.f32 %v12556_v1, %v5471_v44  ;;  %v14962_v44 = vld [vmem:[#allocation275_spill] sm:$0xff] }
 0xd41   : > { %5195 = vmatmul.f32.gmra.mxu3 %v14956_v16  ;;  %v5891_v34 = vmax.f32 %v5683_v48, 0.0  ;;  %v12614_v2 = vpop.f32.mrf.mxu1  ;;  %v14963_v16 = vld [vmem:[#allocation274_spill] sm:$0xff] }
 0xd42   : > { %14961 = vst [vmem:[#allocation71_spill] sm:$0xff] %v12614_v2 }
 0xd43   : > { %6847 = vmatmul.f32.gmra.mxu1 %v5891_v34  ;;  %v14964_v34 = vmax.f32 %v14963_v16, 0.0 }
 0xd44   : > { %v5148_v27 = vpop.f32.mrf.mxu3 }
 0xd45   : > { %v5472_v19 = vmax.f32 %v14958_v32, %v5148_v27  ;;  %v14965_v32 = vld [vmem:[#allocation277_spill] sm:$0xff] }
 0xd47   : > { %v5684_v0 = vadd.f32 %v12556_v1, %v5472_v19 }
 0xd49   : > { %5198 = vmatmul.f32.gmra.mxu3 %v14960_v58  ;;  %v5892_v7 = vmax.f32 %v5684_v0, 0.0  ;;  %v12621_v63 = vpop.f32.mrf.mxu1  ;;  %v14967_v58 = vld [vmem:[#allocation276_spill] sm:$0xff] }
 0xd4a   : > { %14966 = vst [vmem:[#allocation73_spill] sm:$0xff] %v12621_v63  ;;  %v14968_v0 = vmax.f32 %v14967_v58, 0.0  ;;  %v8210_v58 = vld [vmem:[%s13759_s5 + $0x560] sm:$0xff] }
 0xd4b   : > { %6850 = vmatmul.f32.gmra.mxu1 %v5892_v7 }
 0xd4c   : > { %v5151_v59 = vpop.f32.mrf.mxu3 }
 0xd4d   : > { %v5473_v41 = vmax.f32 %v14962_v44, %v5151_v59  ;;  %v8213_v59 = vld [vmem:[%s13759_s5 + $0x578] sm:$0xff] }
 0xd4e   : > { %6914 = vmatpush.msrb.mxu2 %v8213_v59  ;;  %v14973_v59 = vld [vmem:[#allocation282_spill] sm:$0xff] }
 0xd4f   : > { %v5685_v48 = vadd.f32 %v12556_v1, %v5473_v41  ;;  %v14969_v41 = vld [vmem:[#allocation280_spill] sm:$0xff] }
 0xd51   : > { %5201 = vmatmul.f32.gmra.mxu3 %v14964_v34  ;;  %v5893_v25 = vmax.f32 %v5685_v48, 0.0  ;;  %v8212_v48 = vld [vmem:[%s13759_s5 + $0x570] sm:$0xff]  ;;  %v8211_v34 = vld [vmem:[%s13759_s5 + $0x568] sm:$0xff] }
 0xd52   : > { %6915 = vmatpush.msrb.mxu2 %v8212_v48  ;;  %v8207_v48 = vld [vmem:[%s13759_s5 + $0x548] sm:$0xff] }
 0xd53   : > { %6853 = vmatmul.f32.gmra.mxu1 %v5893_v25 }
 0xd54   : > { %v5154_v27 = vpop.f32.mrf.mxu3  ;;  %6916 = vmatpush.msrb.mxu2 %v8211_v34 }
 0xd55   : > { %v5474_v19 = vmax.f32 %v14965_v32, %v5154_v27  ;;  %v12637_v27 = vpop.f32.mrf.mxu1  ;;  %v14971_v32 = vld [vmem:[#allocation278_spill] sm:$0xff] }
 0xd56   : > { %14970 = vst [vmem:[#allocation75_spill] sm:$0xff] %v12637_v27  ;;  %6917 = vmatpush.msrb.mxu2 %v8210_v58  ;;  %v8205_v58 = vld [vmem:[%s13759_s5 + $0x538] sm:$0xff] }
 0xd57   : > { %v5686_v47 = vadd.f32 %v12556_v1, %v5474_v19  ;;  %v14972_v19 = vmax.f32 %v14971_v32, 0.0 }
 0xd59   : > { %5204 = vmatmul.f32.gmra.mxu3 %v14968_v0  ;;  %v5894_v7 = vmax.f32 %v5686_v47, 0.0  ;;  %v8209_v0 = vld [vmem:[%s13759_s5 + $0x558] sm:$0xff] }
 0xd5a   : > { %6918 = vmatpush.msrb.mxu2 %v8209_v0 }
 0xd5b   : > { %6856 = vmatmul.f32.gmra.mxu1 %v5894_v7 }
 0xd5c   : > { %v5157_v44 = vpop.f32.mrf.mxu3 }
 0xd5d   : > { %v5475_v25 = vmax.f32 %v14969_v41, %v5157_v44  ;;  %v8208_v41 = vld [vmem:[%s13759_s5 + $0x550] sm:$0xff] }
 0xd5e   : > { %6919 = vmatpush.msrb.mxu2 %v8208_v41 }
 0xd5f   : > { %v5687_v16 = vadd.f32 %v12556_v1, %v5475_v25 }
 0xd60   : > { %6920 = vmatpush.msrb.mxu2 %v8207_v48  ;;  %v14978_v48 = vld [vmem:[#allocation281_spill] sm:$0xff] }
 0xd61   : > { %5207 = vmatmul.f32.gmra.mxu3 %v14972_v19  ;;  %v5895_v47 = vmax.f32 %v5687_v16, 0.0  ;;  %v14974_v16 = vld [vmem:[#allocation279_spill] sm:$0xff]  ;;  %v8206_v19 = vld [vmem:[%s13759_s5 + $0x540] sm:$0xff] }
 0xd62   : > { %v14975_v34 = vmax.f32 %v14974_v16, 0.0  ;;  %6921 = vmatpush.msrb.mxu2 %v8206_v19  ;;  %v14979_v16 = vmax.f32 %v14978_v48, 0.0  ;;  %v8201_v19 = vld [vmem:[%s13759_s5 + $0x518] sm:$0xff]  ;;  %v14982_v48 = vld [vmem:[#allocation283_spill] sm:$0xff] }
 0xd63   : > { %6859 = vmatmul.f32.gmra.mxu1 %v5895_v47  ;;  %v12660_v47 = vpop.f32.mrf.mxu1 }
 0xd64   : > { %v5160_v7 = vpop.f32.mrf.mxu3  ;;  %14976 = vst [vmem:[#allocation77_spill] sm:$0xff] %v12660_v47  ;;  %6922 = vmatpush.msrb.mxu2 %v8205_v58 }
 0xd65   : > { %v5476_v44 = vmax.f32 %v14973_v59, %v5160_v7  ;;  %v14977_v7 = vld [vmem:[#allocation284_spill] sm:$0xff] }
 0xd67   : > { %v5688_v25 = vadd.f32 %v12556_v1, %v5476_v44  ;;  %v8204_v44 = vld [vmem:[%s13759_s5 + $0x530] sm:$0xff] }
 0xd68   : > { %6923 = vmatpush.msrb.mxu2 %v8204_v44  ;;  %v8200_v44 = vld [vmem:[%s13759_s5 + $0x510] sm:$0xff] }
 0xd69   : > { %5210 = vmatmul.f32.gmra.mxu3 %v14975_v34  ;;  %v5896_v32 = vmax.f32 %v5688_v25, 0.0  ;;  %v8203_v25 = vld [vmem:[%s13759_s5 + $0x528] sm:$0xff] }
 0xd6a   : > { %6924 = vmatpush.msrb.mxu2 %v8203_v25  ;;  %v8199_v25 = vld [vmem:[%s13759_s5 + $0x508] sm:$0xff] }
 0xd6b   : > { %6862 = vmatmul.f32.gmra.mxu1 %v5896_v32  ;;  %v8202_v32 = vld [vmem:[%s13759_s5 + $0x520] sm:$0xff] }
 0xd6c   : > { %v5163_v0 = vpop.f32.mrf.mxu3  ;;  %6925 = vmatpush.msrb.mxu2 %v8202_v32  ;;  %v8198_v32 = vld [vmem:[%s13759_s5 + $0x500] sm:$0xff] }
 0xd6d   : > { %v5477_v59 = vmax.f32 %v14977_v7, %v5163_v0  ;;  %v12681_v0 = vpop.f32.mrf.mxu1  ;;  %v14981_v7 = vld [vmem:[#allocation286_spill] sm:$0xff] }
 0xd6e   : > { %6926 = vmatpush.msrb.mxu2 %v8201_v19  ;;  %14980 = vst [vmem:[#allocation79_spill] sm:$0xff] %v12681_v0 }
 0xd6f   : > { %v5689_v41 = vadd.f32 %v12556_v1, %v5477_v59 }
 0xd70   : > { %6927 = vmatpush.msrb.mxu2 %v8200_v44  ;;  %v12697_v44 = vpop.f32.mrf.mxu2 }
 0xd71   : > { %5213 = vmatmul.f32.gmra.mxu3 %v14979_v16  ;;  %v5897_v34 = vmax.f32 %v5689_v41, 0.0  ;;  %v14983_v16 = vmax.f32 %v14982_v48, 0.0  ;;  %14985 = vst [vmem:[#allocation81_spill] sm:$0xff] %v12697_v44 }
 0xd72   : > { %6928 = vmatpush.msrb.mxu2 %v8199_v25  ;;  %v14987_v25 = vld [vmem:[#allocation285_spill] sm:$0xff] }
 0xd73   : > { %6865 = vmatmul.f32.gmra.mxu1 %v5897_v34  ;;  %v14988_v47 = vmax.f32 %v14987_v25, 0.0 }
 0xd74   : > { %v5166_v58 = vpop.f32.mrf.mxu3  ;;  %6929 = vmatpush.msrb.mxu2 %v8198_v32 }
 0xd75   : > { %v5478_v59 = vmax.f32 %v14981_v7, %v5166_v58  ;;  %v14984_v58 = vld [vmem:[#allocation289_spill] sm:$0xff] }
 0xd77   : > { %v5690_v41 = vadd.f32 %v12556_v1, %v5478_v59  ;;  %v12699_v59 = vpop.f32.mrf.mxu1 }
 0xd78   : > { %14986 = vst [vmem:[#allocation83_spill] sm:$0xff] %v12699_v59  ;;  %v14994_v59 = vld [vmem:[#allocation293_spill] sm:$0xff] }
 0xd79   : > { %5216 = vmatmul.f32.gmra.mxu3 %v14983_v16  ;;  %v5898_v34 = vmax.f32 %v5690_v41, 0.0  ;;  %v14989_v16 = vld [vmem:[#allocation291_spill] sm:$0xff] }
 0xd7b   : > { %6868 = vmatmul.f32.gmra.mxu1 %v5898_v34  ;;  %v12706_v34 = vpop.f32.mrf.mxu2 }
 0xd7c   : > { %v5169_v19 = vpop.f32.mrf.mxu3  ;;  %14990 = vst [vmem:[#allocation85_spill] sm:$0xff] %v12706_v34 }
 0xd7d   : > { %v5479_v7 = vmax.f32 %v14984_v58, %v5169_v19  ;;  %v14992_v19 = vld [vmem:[#allocation287_spill] sm:$0xff] }
 0xd7e   : > { %v14993_v58 = vmax.f32 %v14992_v19, 0.0 }
 0xd7f   : > { %v5691_v0 = vadd.f32 %v12556_v1, %v5479_v7  ;;  %v12708_v63 = vpop.f32.mrf.mxu1 }
 0xd80   : > { %14991 = vst [vmem:[#allocation87_spill] sm:$0xff] %v12708_v63  ;;  %v14999_v63 = vld [vmem:[#allocation295_spill] sm:$0xff] }
 0xd81   : > { %5219 = vmatmul.f32.gmra.mxu3 %v14988_v47  ;;  %v5899_v48 = vmax.f32 %v5691_v0, 0.0  ;;  %v14995_v0 = vld [vmem:[#allocation288_spill] sm:$0xff] }
 0xd83   : > { %6871 = vmatmul.f32.gmra.mxu1 %v5899_v48  ;;  %v14996_v48 = vmax.f32 %v14995_v0, 0.0 }
 0xd84   : > { %v5172_v41 = vpop.f32.mrf.mxu3 }
 0xd85   : > { %v5480_v27 = vmax.f32 %v14989_v16, %v5172_v41  ;;  %v12716_v16 = vpop.f32.mrf.mxu2 }
 0xd86   : > { %14997 = vst [vmem:[#allocation89_spill] sm:$0xff] %v12716_v16 }
 0xd87   : > { %v5692_v32 = vadd.f32 %v12556_v1, %v5480_v27  ;;  %v12718_v27 = vpop.f32.mrf.mxu1 }
 0xd88   : > { %14998 = vst [vmem:[#allocation91_spill] sm:$0xff] %v12718_v27 }
 0xd89   : > { %5222 = vmatmul.f32.gmra.mxu3 %v14993_v58  ;;  %v5900_v44 = vmax.f32 %v5692_v32, 0.0  ;;  %v15000_v58 = vld [vmem:[#allocation290_spill] sm:$0xff] }
 0xd8a   : > { %v15001_v2 = vmax.f32 %v15000_v58, 0.0  ;;  %v15008_v58 = vld [vmem:[#allocation294_spill] sm:$0xff] }
 0xd8b   : > { %6874 = vmatmul.f32.gmra.mxu1 %v5900_v44 }
 0xd8c   : > { %v5175_v7 = vpop.f32.mrf.mxu3 }
 0xd8d   : > { %v5481_v25 = vmax.f32 %v14994_v59, %v5175_v7  ;;  %v12724_v7 = vpop.f32.mrf.mxu2 }
 0xd8e   : > { %15002 = vst [vmem:[#allocation93_spill] sm:$0xff] %v12724_v7 }
 0xd8f   : > { %v5693_v47 = vadd.f32 %v12556_v1, %v5481_v25  ;;  %v15003_v25 = vld [vmem:[#allocation298_spill] sm:$0xff] }
 0xd91   : > { %5225 = vmatmul.f32.gmra.mxu3 %v14996_v48  ;;  %v5901_v41 = vmax.f32 %v5693_v47, 0.0  ;;  %v15004_v48 = vld [vmem:[#allocation292_spill] sm:$0xff] }
 0xd92   : > { %v15005_v16 = vmax.f32 %v15004_v48, 0.0 }
 0xd93   : > { %6877 = vmatmul.f32.gmra.mxu1 %v5901_v41 }
 0xd94   : > { %v5178_v34 = vpop.f32.mrf.mxu3 }
 0xd95   : > { %v5482_v19 = vmax.f32 %v14999_v63, %v5178_v34  ;;  %v8087_v63 = vld [vmem:[%s13759_s5 + $0x188] sm:$0xff] }
 0xd96   : > { %6242 = vmatpush.msra.mxu3 %v8087_v63 }
 0xd97   : > { %v5694_v32 = vadd.f32 %v12556_v1, %v5482_v19 }
 0xd99   : > { %v5902_v44 = vmax.f32 %v5694_v32, 0.0  ;;  %5228 = vmatmul.f32.gmra.mxu3 %v15001_v2  ;;  %v15006_v2 = vld [vmem:[#allocation300_spill] sm:$0xff]  ;;  %v12734_v32 = vpop.f32.mrf.mxu2 }
 0xd9a   : > { %15007 = vst [vmem:[#allocation95_spill] sm:$0xff] %v12734_v32  ;;  %v15014_v32 = vld [vmem:[#allocation304_spill] sm:$0xff] }
 0xd9b   : > { %6930 = vmatmul.f32.vlgmr.msrb.gmra.mxu2 %v5902_v44 }
 0xd9c   : > { %v5181_v59 = vpop.f32.mrf.mxu3 }
 0xd9d   : > { %v5483_v47 = vmax.f32 %v15003_v25, %v5181_v59  ;;  %v15009_v59 = vmax.f32 %v15008_v58, 0.0 }
 0xd9f   : > { %v5695_v0 = vadd.f32 %v12556_v1, %v5483_v47  ;;  %v15010_v47 = vld [vmem:[#allocation302_spill] sm:$0xff] }
 0xda1   : > { %5231 = vmatmul.f32.gmra.mxu3 %v15005_v16  ;;  %v5903_v41 = vmax.f32 %v5695_v0, 0.0  ;;  %v12741_v7 = vpop.f32.mrf.mxu2 }
 0xda2   : > { %15011 = vst [vmem:[#allocation97_spill] sm:$0xff] %v12741_v7 }
 0xda3   : > { %6933 = vmatmul.f32.gmra.mxu2 %v5903_v41  ;;  %v15012_v41 = vld [vmem:[#allocation296_spill] sm:$0xff] }
 0xda4   : > { %v5184_v34 = vpop.f32.mrf.mxu3  ;;  %v15013_v63 = vmax.f32 %v15012_v41, 0.0 }
 0xda5   : > { %v5484_v19 = vmax.f32 %v15006_v2, %v5184_v34 }
 0xda7   : > { %v5696_v44 = vadd.f32 %v12556_v1, %v5484_v19 }
 0xda9   : > { %5234 = vmatmul.f32.gmra.mxu3 %v15009_v59  ;;  %v5904_v25 = vmax.f32 %v5696_v44, 0.0  ;;  %v15015_v59 = vld [vmem:[#allocation297_spill] sm:$0xff]  ;;  %v12749_v27 = vpop.f32.mrf.mxu2 }
 0xdaa   : > { %v15016_v44 = vmax.f32 %v15015_v59, 0.0  ;;  %15017 = vst [vmem:[#allocation99_spill] sm:$0xff] %v12749_v27 }
 0xdab   : > { %6936 = vmatmul.f32.gmra.mxu2 %v5904_v25 }
 0xdac   : > { %v5187_v16 = vpop.f32.mrf.mxu3 }
 0xdad   : > { %v5485_v0 = vmax.f32 %v15010_v47, %v5187_v16  ;;  %v15018_v47 = vld [vmem:[#allocation307_spill] sm:$0xff] }
 0xdaf   : > { %v5697_v48 = vadd.f32 %v12556_v1, %v5485_v0 }
 0xdb1   : > { %5237 = vmatmul.f32.gmra.mxu3 %v15013_v63  ;;  %v5905_v34 = vmax.f32 %v5697_v48, 0.0  ;;  %v15019_v63 = vld [vmem:[#allocation299_spill] sm:$0xff] }
 0xdb2   : > { %v15020_v48 = vmax.f32 %v15019_v63, 0.0 }
 0xdb3   : > { %6939 = vmatmul.f32.gmra.mxu2 %v5905_v34 }
 0xdb4   : > { %v5190_v2 = vpop.f32.mrf.mxu3 }
 0xdb5   : > { %v5486_v19 = vmax.f32 %v15014_v32, %v5190_v2  ;;  %v12755_v2 = vpop.f32.mrf.mxu2 }
 0xdb6   : > { %15021 = vst [vmem:[#allocation100_spill] sm:$0xff] %v12755_v2 }
 0xdb7   : > { %v5698_v58 = vadd.f32 %v12556_v1, %v5486_v19  ;;  %v15022_v19 = vld [vmem:[#allocation309_spill] sm:$0xff] }
 0xdb9   : > { %5240 = vmatmul.f32.gmra.mxu3 %v15016_v44  ;;  %v5906_v25 = vmax.f32 %v5698_v58, 0.0  ;;  %v15023_v44 = vld [vmem:[#allocation301_spill] sm:$0xff] }
 0xdba   : > { %v15024_v27 = vmax.f32 %v15023_v44, 0.0 }
 0xdbb   : > { %6942 = vmatmul.f32.gmra.mxu2 %v5906_v25 }
 0xdbc   : > { %v5193_v16 = vpop.f32.mrf.mxu3 }
 0xdbd   : > { %v5487_v0 = vmax.f32 %v15018_v47, %v5193_v16  ;;  %v12761_v47 = vpop.f32.mrf.mxu2 }
 0xdbe   : > { %15025 = vst [vmem:[#allocation101_spill] sm:$0xff] %v12761_v47 }
 0xdbf   : > { %v5699_v41 = vadd.f32 %v12556_v1, %v5487_v0  ;;  %v15026_v0 = vld [vmem:[#allocation311_spill] sm:$0xff] }
 0xdc1   : > { %5243 = vmatmul.f32.gmra.mxu3 %v15020_v48  ;;  %v5907_v34 = vmax.f32 %v5699_v41, 0.0  ;;  %v15027_v48 = vld [vmem:[#allocation303_spill] sm:$0xff] }
 0xdc3   : > { %6945 = vmatmul.f32.gmra.mxu2 %v5907_v34  ;;  %v15028_v34 = vmax.f32 %v15027_v48, 0.0 }
 0xdc4   : > { %v5196_v32 = vpop.f32.mrf.mxu3 }
 0xdc5   : > { %v5488_v59 = vmax.f32 %v15022_v19, %v5196_v32  ;;  %v15029_v19 = vld [vmem:[#allocation313_spill] sm:$0xff]  ;;  %v12768_v7 = vpop.f32.mrf.mxu2 }
 0xdc6   : > { %15030 = vst [vmem:[#allocation102_spill] sm:$0xff] %v12768_v7  ;;  %v15037_v7 = vld [vmem:[#allocation318_spill] sm:$0xff] }
 0xdc7   : > { %v5700_v58 = vadd.f32 %v12556_v1, %v5488_v59 }
 0xdc9   : > { %5246 = vmatmul.f32.gmra.mxu3 %v15024_v27  ;;  %v5908_v25 = vmax.f32 %v5700_v58, 0.0  ;;  %v15031_v58 = vld [vmem:[#allocation305_spill] sm:$0xff] }
 0xdca   : > { %v15032_v44 = vmax.f32 %v15031_v58, 0.0 }
 0xdcb   : > { %6948 = vmatmul.f32.gmra.mxu2 %v5908_v25 }
 0xdcc   : > { %v5199_v16 = vpop.f32.mrf.mxu3 }
 0xdcd   : > { %v5489_v63 = vmax.f32 %v15026_v0, %v5199_v16  ;;  %v15033_v0 = vld [vmem:[#allocation316_spill] sm:$0xff] }
 0xdcf   : > { %v5701_v41 = vadd.f32 %v12556_v1, %v5489_v63 }
 0xdd1   : > { %5249 = vmatmul.f32.gmra.mxu3 %v15028_v34  ;;  %v5909_v2 = vmax.f32 %v5701_v41, 0.0  ;;  %v12775_v34 = vpop.f32.mrf.mxu2 }
 0xdd2   : > { %15034 = vst [vmem:[#allocation103_spill] sm:$0xff] %v12775_v34 }
 0xdd3   : > { %6951 = vmatmul.f32.gmra.mxu2 %v5909_v2  ;;  %v15035_v2 = vld [vmem:[#allocation306_spill] sm:$0xff] }
 0xdd4   : > { %v5202_v32 = vpop.f32.mrf.mxu3  ;;  %v15036_v41 = vmax.f32 %v15035_v2, 0.0 }
 0xdd5   : > { %v5490_v59 = vmax.f32 %v15029_v19, %v5202_v32 }
 0xdd7   : > { %v5702_v27 = vadd.f32 %v12556_v1, %v5490_v59 }
 0xdd9   : > { %5252 = vmatmul.f32.gmra.mxu3 %v15032_v44  ;;  %v5910_v25 = vmax.f32 %v5702_v27, 0.0  ;;  %v15038_v44 = vld [vmem:[#allocation308_spill] sm:$0xff]  ;;  %v12783_v47 = vpop.f32.mrf.mxu2 }
 0xdda   : > { %v15039_v27 = vmax.f32 %v15038_v44, 0.0  ;;  %15040 = vst [vmem:[#allocation104_spill] sm:$0xff] %v12783_v47 }
 0xddb   : > { %6954 = vmatmul.f32.gmra.mxu2 %v5910_v25 }
 0xddc   : > { %v5205_v16 = vpop.f32.mrf.mxu3 }
 0xddd   : > { %v5491_v63 = vmax.f32 %v15033_v0, %v5205_v16  ;;  %v15041_v0 = vld [vmem:[#allocation320_spill] sm:$0xff] }
 0xddf   : > { %v5703_v48 = vadd.f32 %v12556_v1, %v5491_v63 }
 0xde1   : > { %5255 = vmatmul.f32.gmra.mxu3 %v15036_v41  ;;  %v5911_v32 = vmax.f32 %v5703_v48, 0.0  ;;  %v15042_v41 = vld [vmem:[#allocation310_spill] sm:$0xff] }
 0xde2   : > { %v15043_v48 = vmax.f32 %v15042_v41, 0.0  ;;  %v15050_v41 = vld [vmem:[#allocation314_spill] sm:$0xff] }
 0xde3   : > { %6957 = vmatmul.f32.gmra.mxu2 %v5911_v32 }
 0xde4   : > { %v5208_v19 = vpop.f32.mrf.mxu3 }
 0xde5   : > { %v5492_v59 = vmax.f32 %v15037_v7, %v5208_v19  ;;  %v12789_v19 = vpop.f32.mrf.mxu2 }
 0xde6   : > { %15044 = vst [vmem:[#allocation105_spill] sm:$0xff] %v12789_v19  ;;  %v15081_v19 = vld [vmem:[#allocation331_spill] sm:$0xff] }
 0xde7   : > { %v5704_v58 = vadd.f32 %v12556_v1, %v5492_v59  ;;  %v15045_v59 = vld [vmem:[#allocation322_spill] sm:$0xff] }
 0xde9   : > { %5258 = vmatmul.f32.gmra.mxu3 %v15039_v27  ;;  %v5912_v25 = vmax.f32 %v5704_v58, 0.0  ;;  %v15046_v27 = vld [vmem:[#allocation312_spill] sm:$0xff] }
 0xdea   : > { %v15047_v47 = vmax.f32 %v15046_v27, 0.0 }
 0xdeb   : > { %6960 = vmatmul.f32.gmra.mxu2 %v5912_v25 }
 0xdec   : > { %v5211_v16 = vpop.f32.mrf.mxu3 }
 0xded   : > { %v5493_v63 = vmax.f32 %v15041_v0, %v5211_v16  ;;  %v15048_v0 = vld [vmem:[#allocation325_spill] sm:$0xff]  ;;  %v12796_v34 = vpop.f32.mrf.mxu2 }
 0xdee   : > { %15049 = vst [vmem:[#allocation106_spill] sm:$0xff] %v12796_v34  ;;  %v15078_v34 = vld [vmem:[#allocation329_spill] sm:$0xff] }
 0xdef   : > { %v5705_v2 = vadd.f32 %v12556_v1, %v5493_v63 }
 0xdf1   : > { %5261 = vmatmul.f32.gmra.mxu3 %v15043_v48  ;;  %v5913_v32 = vmax.f32 %v5705_v2, 0.0  ;;  %v15051_v48 = vmax.f32 %v15050_v41, 0.0 }
 0xdf3   : > { %6963 = vmatmul.f32.gmra.mxu2 %v5913_v32 }
 0xdf4   : > { %v5214_v7 = vpop.f32.mrf.mxu3 }
 0xdf5   : > { %v5494_v44 = vmax.f32 %v15045_v59, %v5214_v7  ;;  %v15052_v59 = vld [vmem:[#allocation327_spill] sm:$0xff] }
 0xdf7   : > { %v5706_v58 = vadd.f32 %v12556_v1, %v5494_v44 }
 0xdf9   : > { %5264 = vmatmul.f32.gmra.mxu3 %v15047_v47  ;;  %v5914_v25 = vmax.f32 %v5706_v58, 0.0  ;;  %v12803_v47 = vpop.f32.mrf.mxu2  ;;  %v15054_v58 = vld [vmem:[#allocation315_spill] sm:$0xff] }
 0xdfa   : > { %15053 = vst [vmem:[#allocation107_spill] sm:$0xff] %v12803_v47  ;;  %v15075_v47 = vld [vmem:[#allocation328_spill] sm:$0xff] }
 0xdfb   : > { %6966 = vmatmul.f32.gmra.mxu2 %v5914_v25  ;;  %v15055_v25 = vmax.f32 %v15054_v58, 0.0 }
 0xdfc   : > { %v5217_v16 = vpop.f32.mrf.mxu3 }
 0xdfd   : > { %v5495_v63 = vmax.f32 %v15048_v0, %v5217_v16  ;;  %v8086_v0 = vld [vmem:[%s13759_s5 + $0x180] sm:$0xff] }
 0xdfe   : > { %6243 = vmatpush.msra.mxu3 %v8086_v0 }
 0xdff   : > { %v5707_v2 = vadd.f32 %v12556_v1, %v5495_v63 }
 0xe01   : > { %5267 = vmatmul.f32.gmra.mxu3 %v15051_v48  ;;  %v5915_v32 = vmax.f32 %v5707_v2, 0.0  ;;  %v15056_v48 = vld [vmem:[#allocation317_spill] sm:$0xff] }
 0xe03   : > { %6969 = vmatmul.f32.gmra.mxu2 %v5915_v32  ;;  %v15057_v32 = vmax.f32 %v15056_v48, 0.0 }
 0xe04   : > { %v5220_v7 = vpop.f32.mrf.mxu3 }
 0xe05   : > { %v5496_v44 = vmax.f32 %v15052_v59, %v5220_v7  ;;  %v12814_v59 = vpop.f32.mrf.mxu2 }
 0xe06   : > { %15058 = vst [vmem:[#allocation108_spill] sm:$0xff] %v12814_v59  ;;  %v15072_v59 = vld [vmem:[#allocation326_spill] sm:$0xff] }
 0xe07   : > { %v5708_v27 = vadd.f32 %v12556_v1, %v5496_v44 }
 0xe09   : > { %5270 = vmatmul.f32.gmra.mxu3 %v15055_v25  ;;  %v5916_v16 = vmax.f32 %v5708_v27, 0.0  ;;  %v15060_v27 = vld [vmem:[#allocation319_spill] sm:$0xff] }
 0xe0a   : > { %v15061_v58 = vmax.f32 %v15060_v27, 0.0  ;;  %v15073_v27 = vmax.f32 %v15072_v59, 0.0 }
 0xe0b   : > { %6972 = vmatmul.f32.gmra.mxu2 %v5916_v16  ;;  %v15063_v16 = vld [vmem:[#allocation321_spill] sm:$0xff] }
 0xe0c   : > { %v5223_v63 = vpop.f32.mrf.mxu3  ;;  %v15064_v0 = vmax.f32 %v15063_v16, 0.0  ;;  %v15076_v16 = vmax.f32 %v15075_v47, 0.0  ;;  %v12855_v47 = vld [vmem:[%s13759_s5 + $0x678] sm:$0xff] }
 0xe0d   : > { %v5497_v2 = vmax.f32 %v11274_v36, %v5223_v63  ;;  %v15066_v63 = vld [vmem:[#allocation323_spill] sm:$0xff]  ;;  %7110 = vmatpush.msra.mxu0 %v12855_v47 }
 0xe0f   : > { %v5709_v41 = vadd.f32 %v12556_v1, %v5497_v2  ;;  %v15067_v2 = vmax.f32 %v15066_v63, 0.0  ;;  %v15079_v63 = vmax.f32 %v15078_v34, 0.0  ;;  %v12863_v34 = vld [vmem:[%s13759_s5 + $0x670] sm:$0xff] }
 0xe10   : > { %7111 = vmatpush.msra.mxu0 %v12863_v34 }
 0xe11   : > { %5273 = vmatmul.f32.gmra.mxu3 %v15057_v32  ;;  %v5917_v7 = vmax.f32 %v5709_v41, 0.0  ;;  %v15069_v41 = vld [vmem:[#allocation324_spill] sm:$0xff] }
 0xe12   : > { %v15070_v32 = vmax.f32 %v15069_v41, 0.0  ;;  %v15082_v41 = vmax.f32 %v15081_v19, 0.0  ;;  %v12869_v19 = vld [vmem:[%s13759_s5 + $0x668] sm:$0xff] }
 0xe13   : > { %6975 = vmatmul.f32.gmra.mxu2 %v5917_v7  ;;  %7112 = vmatpush.msra.mxu0 %v12869_v19 }
 0xe14   : > { %v12816_v44 = vpop.f32.mrf.mxu3 }
 0xe15   : > { %15059 = vst [vmem:[#allocation109_spill] sm:$0xff] %v12816_v44 }
 0xe19   : > { %5276 = vmatmul.f32.gmra.mxu3 %v15061_v58 }
 0xe1c   : > { %v12820_v25 = vpop.f32.mrf.mxu3 }
 0xe1d   : > { %15062 = vst [vmem:[#allocation110_spill] sm:$0xff] %v12820_v25  ;;  %v12942_v25 = vld [vmem:[%s13759_s5 + $0x618] sm:$0xff] }
 0xe1e   : > { %15098 = vst [vmem:[#allocation124_spill] sm:$0xff] %v12942_v25 }
 0xe21   : > { %5279 = vmatmul.f32.gmra.mxu3 %v15064_v0 }
 0xe24   : > { %v12824_v36 = vpop.f32.mrf.mxu3 }
 0xe25   : > { %15065 = vst [vmem:[#allocation111_spill] sm:$0xff] %v12824_v36  ;;  %v12936_v36 = vld [vmem:[%s13759_s5 + $0x620] sm:$0xff] }
 0xe26   : > { %15097 = vst [vmem:[#allocation123_spill] sm:$0xff] %v12936_v36 }
 0xe29   : > { %5282 = vmatmul.f32.gmra.mxu3 %v15067_v2 }
 0xe2c   : > { %v12828_v48 = vpop.f32.mrf.mxu3 }
 0xe2d   : > { %15068 = vst [vmem:[#allocation112_spill] sm:$0xff] %v12828_v48 }
 0xe31   : > { %5285 = vmatmul.f32.gmra.mxu3 %v15070_v32 }
 0xe34   : > { %v12832_v7 = vpop.f32.mrf.mxu3 }
 0xe35   : > { %15071 = vst [vmem:[#allocation113_spill] sm:$0xff] %v12832_v7  ;;  %v15084_v7 = vld [vmem:[#allocation332_spill] sm:$0xff] }
 0xe36   : > { %v15085_v59 = vmax.f32 %v15084_v7, 0.0  ;;  %v15087_v7 = vld [vmem:[#allocation334_spill] sm:$0xff] }
 0xe39   : > { %5288 = vmatmul.f32.gmra.mxu3 %v15073_v27 }
 0xe3c   : > { %v12836_v58 = vpop.f32.mrf.mxu3 }
 0xe3d   : > { %15074 = vst [vmem:[#allocation114_spill] sm:$0xff] %v12836_v58  ;;  %v15095_v58 = vld [vmem:[#allocation337_spill] sm:$0xff] }
 0xe3e   : > { %v15096_v48 = vmax.f32 %v15095_v58, 0.0  ;;  %v12956_v58 = vld [vmem:[%s13759_s5 + $0x608] sm:$0xff] }
 0xe3f   : > { %15101 = vst [vmem:[#allocation127_spill] sm:$0xff] %v12956_v58 }
 0xe41   : > { %5291 = vmatmul.f32.gmra.mxu3 %v15076_v16  ;;  %v15088_v16 = vmax.f32 %v15087_v7, 0.0  ;;  %v12891_v7 = vld [vmem:[%s13759_s5 + $0x650] sm:$0xff] }
 0xe44   : > { %v12840_v0 = vpop.f32.mrf.mxu3 }
 0xe45   : > { %15077 = vst [vmem:[#allocation115_spill] sm:$0xff] %v12840_v0 }
 0xe49   : > { %5294 = vmatmul.f32.gmra.mxu3 %v15079_v63  ;;  %v12877_v63 = vld [vmem:[%s13759_s5 + $0x660] sm:$0xff] }
 0xe4a   : > { %7113 = vmatpush.msra.mxu0 %v12877_v63 }
 0xe4c   : > { %v12844_v2 = vpop.f32.mrf.mxu3 }
 0xe4d   : > { %15080 = vst [vmem:[#allocation116_spill] sm:$0xff] %v12844_v2  ;;  %v12911_v2 = vld [vmem:[%s13759_s5 + $0x638] sm:$0xff] }
 0xe51   : > { %5297 = vmatmul.f32.gmra.mxu3 %v15082_v41  ;;  %v12883_v41 = vld [vmem:[%s13759_s5 + $0x658] sm:$0xff] }
 0xe52   : > { %7114 = vmatpush.msra.mxu0 %v12883_v41 }
 0xe54   : > { %v12848_v32 = vpop.f32.mrf.mxu3  ;;  %7115 = vmatpush.msra.mxu0 %v12891_v7 }
 0xe55   : > { %15083 = vst [vmem:[#allocation117_spill] sm:$0xff] %v12848_v32 }
 0xe59   : > { %5300 = vmatmul.f32.gmra.mxu3 %v15085_v59 }
 0xe5c   : > { %v12857_v27 = vpop.f32.mrf.mxu3 }
 0xe5d   : > { %15086 = vst [vmem:[#allocation118_spill] sm:$0xff] %v12857_v27  ;;  %v15090_v27 = vld [vmem:[#allocation336_spill] sm:$0xff] }
 0xe5e   : > { %v15091_v32 = vmax.f32 %v15090_v27, 0.0  ;;  %v12925_v27 = vld [vmem:[%s13759_s5 + $0x628] sm:$0xff] }
 0xe5f   : > { %15094 = vst [vmem:[#allocation122_spill] sm:$0xff] %v12925_v27 }
 0xe61   : > { %5303 = vmatmul.f32.gmra.mxu3 %v15088_v16  ;;  %v12897_v16 = vld [vmem:[%s13759_s5 + $0x648] sm:$0xff] }
 0xe62   : > { %7116 = vmatpush.msra.mxu0 %v12897_v16 }
 0xe64   : > { %v12885_v59 = vpop.f32.mrf.mxu3 }
 0xe65   : > { %15089 = vst [vmem:[#allocation119_spill] sm:$0xff] %v12885_v59  ;;  %v12905_v59 = vld [vmem:[%s13759_s5 + $0x640] sm:$0xff] }
 0xe66   : > { %7117 = vmatpush.msra.mxu0 %v12905_v59 }
 0xe68   : > { %7118 = vmatpush.msra.mxu0 %v12911_v2 }
 0xe69   : > { %5306 = vmatmul.f32.gmra.mxu3 %v15091_v32  ;;  %v12919_v32 = vld [vmem:[%s13759_s5 + $0x630] sm:$0xff] }
 0xe6a   : > { %15093 = vst [vmem:[#allocation121_spill] sm:$0xff] %v12919_v32  ;;  %7119 = vmatpush.msra.mxu0 %v12919_v32 }
 0xe6c   : > { %v12913_v0 = vpop.f32.mrf.mxu3  ;;  %7120 = vmatpush.msra.mxu0 %v12925_v27  ;;  %v15108_v27 = vld [vmem:[#allocation68_spill] sm:$0xff] }
 0xe6d   : > { %15092 = vst [vmem:[#allocation120_spill] sm:$0xff] %v12913_v0  ;;  %v8165_v0 = vld [vmem:[%s13759_s5 + $0x3f8] sm:$0xff]  ;;  %v5370_v32 = vmax.f32 %v15108_v27, %v11816_v33 }
 0xe6e   : > { %6620 = vmatpush.msrb.mxu3 %v8165_v0  ;;  %7121 = vmatpush.msra.mxu0 %v12936_v36  ;;  %v15102_v0 = vmax.f32 %v11370_v6, 0.0  ;;  %v15105_v36 = vmax.f32 %v11379_v12, 0.0  ;;  %v8163_v6 = vld [vmem:[%s13759_s5 + $0x3e8] sm:$0xff]  ;;  %v8162_v12 = vld [vmem:[%s13759_s5 + $0x3e0] sm:$0xff] }
 0xe70   : > { %7122 = vmatpush.msra.mxu0 %v12942_v25  ;;  %v12967_v25 = vld [vmem:[%s13759_s5 + $0x600] sm:$0xff] }
 0xe71   : > { %5309 = vmatmul.f32.gmra.mxu3 %v15096_v48  ;;  %v12950_v48 = vld [vmem:[%s13759_s5 + $0x610] sm:$0xff]  ;;  %15103 = vst [vmem:[#allocation128_spill] sm:$0xff] %v12967_v25 }
 0xe72   : > { %15100 = vst [vmem:[#allocation126_spill] sm:$0xff] %v12950_v48  ;;  %7123 = vmatpush.msra.mxu0 %v12950_v48 }
 0xe74   : > { %v12944_v44 = vpop.f32.mrf.mxu3  ;;  %7124 = vmatpush.msra.mxu0 %v12956_v58  ;;  %v12979_v58 = vpop.f32.mrf.mxu0 }
 0xe75   : > { %15099 = vst [vmem:[#allocation125_spill] sm:$0xff] %v12944_v44  ;;  %v8164_v44 = vld [vmem:[%s13759_s5 + $0x3f0] sm:$0xff] }
 0xe76   : > { %6621 = vmatpush.msrb.mxu3 %v8164_v44  ;;  %7125 = vmatpush.msra.mxu0 %v12967_v25  ;;  %15107 = vst [vmem:[#allocation131_spill] sm:$0xff] %v12979_v58  ;;  %v15109_v44 = vmax.f32 %v11385_v3, 0.0  ;;  %v8161_v3 = vld [vmem:[%s13759_s5 + $0x3d8] sm:$0xff] }
 0xe78   : > { %6622 = vmatpush.msrb.mxu3 %v8163_v6 }
 0xe79   : > { %5312 = vmatmul.f32.gmra.mxu3 %v15102_v0 }
 0xe7a   : > { %6623 = vmatpush.msrb.mxu3 %v8162_v12 }
 0xe7c   : > { %v12970_v48 = vpop.f32.mrf.mxu3  ;;  %v12993_v58 = vpop.f32.mrf.mxu0  ;;  %6624 = vmatpush.msrb.mxu3 %v8161_v3 }
 0xe7d   : > { %15104 = vst [vmem:[#allocation129_spill] sm:$0xff] %v12970_v48 }
 0xe81   : > { %5315 = vmatmul.f32.gmra.mxu3 %v15105_v36  ;;  %v5582_v36 = vadd.f32 %v12556_v1, %v5370_v32  ;;  %v15112_v32 = vld [vmem:[#allocation72_spill] sm:$0xff] }
 0xe82   : > { %v5372_v12 = vmax.f32 %v15112_v32, %v11824_v50  ;;  %v15113_v50 = vld [vmem:[#allocation74_spill] sm:$0xff] }
 0xe83   : > { %v5790_v6 = vmax.f32 %v5582_v36, 0.0 }
 0xe84   : > { %v12977_v0 = vpop.f32.mrf.mxu3 }
 0xe85   : > { %15106 = vst [vmem:[#allocation130_spill] sm:$0xff] %v12977_v0  ;;  %v15111_v0 = vld [vmem:[#allocation70_spill] sm:$0xff] }
 0xe86   : > { %v5371_v25 = vmax.f32 %v15111_v0, %v11820_v21  ;;  %v13003_v21 = vpop.f32.mrf.mxu0 }
 0xe88   : > { %v5583_v33 = vadd.f32 %v12556_v1, %v5371_v25  ;;  %v5584_v25 = vadd.f32 %v12556_v1, %v5372_v12 }
 0xe89   : > { %5318 = vmatmul.f32.gmra.mxu3 %v15109_v44 }
 0xe8c   : > { %v12989_v48 = vpop.f32.mrf.mxu3 }
 0xe8d   : > { %15110 = vst [vmem:[#allocation132_spill] sm:$0xff] %v12989_v48  ;;  %v5791_v48 = vmax.f32 %v5583_v33, 0.0 }
 0xe8e   : > { %v13017_v12 = vpop.f32.mrf.mxu0 }
 0xe91   : > { %6244 = vmatmul.f32.vlgmr.msra.gmra.mxu3 %v5790_v6  ;;  %v8160_v6 = vld [vmem:[%s13759_s5 + $0x3d0] sm:$0xff] }
 0xe92   : > { %6625 = vmatpush.msrb.mxu3 %v8160_v6 }
 0xe94   : > { %v5274_v27 = vpop.f32.mrf.mxu3 }
 0xe95   : > { %v5514_v44 = vmax.f32 %v11799_v17, %v5274_v27  ;;  %v5373_v27 = vmax.f32 %v15113_v50, %v11828_v13  ;;  %v15114_v13 = vld [vmem:[#allocation76_spill] sm:$0xff]  ;;  %v8158_v50 = vld [vmem:[%s13759_s5 + $0x3c0] sm:$0xff] }
 0xe96   : > { %v5374_v6 = vmax.f32 %v15114_v13, %v11832_v56  ;;  %v15115_v56 = vld [vmem:[#allocation78_spill] sm:$0xff] }
 0xe97   : > { %v5726_v36 = vadd.f32 %v12556_v1, %v5514_v44  ;;  %v5792_v44 = vmax.f32 %v5584_v25, 0.0 }
 0xe99   : > { %v5934_v0 = vmax.f32 %v5726_v36, 0.0  ;;  %6247 = vmatmul.f32.gmra.mxu3 %v5791_v48  ;;  %v8159_v48 = vld [vmem:[%s13759_s5 + $0x3c8] sm:$0xff]  ;;  %v5585_v36 = vadd.f32 %v12556_v1, %v5373_v27  ;;  %v5586_v27 = vadd.f32 %v12556_v1, %v5374_v6 }
 0xe9a   : > { %6626 = vmatpush.msrb.mxu3 %v8159_v48 }
 0xe9b   : > { %7126 = vmatmul.f32.vlgmr.msra.gmra.mxu0 %v5934_v0 }
 0xe9c   : > { %v5277_v3 = vpop.f32.mrf.mxu3  ;;  %6627 = vmatpush.msrb.mxu3 %v8158_v50 }
 0xe9d   : > { %v5515_v17 = vmax.f32 %v11806_v4, %v5277_v3  ;;  %v5793_v3 = vmax.f32 %v5585_v36, 0.0  ;;  %v5794_v36 = vmax.f32 %v5586_v27, 0.0 }
 0xe9f   : > { %v5727_v33 = vadd.f32 %v12556_v1, %v5515_v17 }
 0xea1   : > { %6250 = vmatmul.f32.gmra.mxu3 %v5792_v44  ;;  %v5935_v32 = vmax.f32 %v5727_v33, 0.0  ;;  %v13027_v44 = vpop.f32.mrf.mxu0 }
 0xea3   : > { %7129 = vmatmul.f32.gmra.mxu0 %v5935_v32  ;;  %v5375_v32 = vmax.f32 %v15115_v56, %v11836_v9 }
 0xea4   : > { %v5280_v0 = vpop.f32.mrf.mxu3 }
 0xea5   : > { %v5516_v4 = vmax.f32 %v11814_v28, %v5280_v0  ;;  %v5587_v13 = vadd.f32 %v12556_v1, %v5375_v32 }
 0xea7   : > { %v5728_v25 = vadd.f32 %v12556_v1, %v5516_v4  ;;  %v8157_v4 = vld [vmem:[%s13759_s5 + $0x3b8] sm:$0xff]  ;;  %v5795_v50 = vmax.f32 %v5587_v13, 0.0  ;;  %v8155_v13 = vld [vmem:[%s13759_s5 + $0x3a8] sm:$0xff] }
 0xea8   : > { %6628 = vmatpush.msrb.mxu3 %v8157_v4 }
 0xea9   : > { %6253 = vmatmul.f32.gmra.mxu3 %v5793_v3  ;;  %v5936_v17 = vmax.f32 %v5728_v25, 0.0  ;;  %v13040_v9 = vpop.f32.mrf.mxu0 }
 0xeab   : > { %7132 = vmatmul.f32.gmra.mxu0 %v5936_v17 }
 0xeac   : > { %v5283_v33 = vpop.f32.mrf.mxu3 }
 0xead   : > { %v5517_v28 = vmax.f32 %v12181_v55, %v5283_v33  ;;  %v15116_v55 = vld [vmem:[#allocation80_spill] sm:$0xff] }
 0xeae   : > { %v5376_v3 = vmax.f32 %v15116_v55, %v11840_v23  ;;  %v8156_v33 = vld [vmem:[%s13759_s5 + $0x3b0] sm:$0xff]  ;;  %v15117_v23 = vld [vmem:[#allocation82_spill] sm:$0xff] }
 0xeaf   : > { %v5729_v48 = vadd.f32 %v12556_v1, %v5517_v28  ;;  %6629 = vmatpush.msrb.mxu3 %v8156_v33  ;;  %v5377_v32 = vmax.f32 %v15117_v23, %v11844_v61  ;;  %v15118_v61 = vld [vmem:[#allocation84_spill] sm:$0xff] }
 0xeb0   : > { %v5588_v28 = vadd.f32 %v12556_v1, %v5376_v3  ;;  %v5378_v55 = vmax.f32 %v15118_v61, %v11848_v43  ;;  %v15119_v43 = vld [vmem:[#allocation86_spill] sm:$0xff] }
 0xeb1   : > { %6256 = vmatmul.f32.gmra.mxu3 %v5794_v36  ;;  %v5937_v0 = vmax.f32 %v5729_v48, 0.0 }
 0xeb2   : > { %v5796_v36 = vmax.f32 %v5588_v28, 0.0  ;;  %6630 = vmatpush.msrb.mxu3 %v8155_v13  ;;  %v5590_v33 = vadd.f32 %v12556_v1, %v5378_v55 }
 0xeb3   : > { %7135 = vmatmul.f32.gmra.mxu0 %v5937_v0  ;;  %v13051_v0 = vpop.f32.mrf.mxu0 }
 0xeb4   : > { %v5286_v6 = vpop.f32.mrf.mxu3 }
 0xeb5   : > { %v5518_v25 = vmax.f32 %v12190_v10, %v5286_v6  ;;  %v5589_v6 = vadd.f32 %v12556_v1, %v5377_v32  ;;  %v5798_v32 = vmax.f32 %v5590_v33, 0.0 }
 0xeb7   : > { %v5730_v17 = vadd.f32 %v12556_v1, %v5518_v25 }
 0xeb9   : > { %6259 = vmatmul.f32.gmra.mxu3 %v5795_v50  ;;  %v5938_v27 = vmax.f32 %v5730_v17, 0.0  ;;  %v5797_v17 = vmax.f32 %v5589_v6, 0.0 }
 0xebb   : > { %7138 = vmatmul.f32.gmra.mxu0 %v5938_v27  ;;  %v8154_v27 = vld [vmem:[%s13759_s5 + $0x3a0] sm:$0xff]  ;;  %v13065_v28 = vpop.f32.mrf.mxu0 }
 0xebc   : > { %v5289_v56 = vpop.f32.mrf.mxu3  ;;  %6631 = vmatpush.msrb.mxu3 %v8154_v27 }
 0xebd   : > { %v5519_v10 = vmax.f32 %v12200_v18, %v5289_v56 }
 0xebf   : > { %v5731_v48 = vadd.f32 %v12556_v1, %v5519_v10  ;;  %v5379_v10 = vmax.f32 %v15119_v43, %v11855_v53  ;;  %v15120_v53 = vld [vmem:[#allocation88_spill] sm:$0xff] }
 0xec1   : > { %6262 = vmatmul.f32.gmra.mxu3 %v5796_v36  ;;  %v5939_v4 = vmax.f32 %v5731_v48, 0.0  ;;  %v8153_v36 = vld [vmem:[%s13759_s5 + $0x398] sm:$0xff] }
 0xec2   : > { %6632 = vmatpush.msrb.mxu3 %v8153_v36 }
 0xec3   : > { %7141 = vmatmul.f32.gmra.mxu0 %v5939_v4  ;;  %v5591_v4 = vadd.f32 %v12556_v1, %v5379_v10  ;;  %v13075_v13 = vpop.f32.mrf.mxu0  ;;  %v8151_v10 = vld [vmem:[%s13759_s5 + $0x388] sm:$0xff] }
 0xec4   : > { %v5292_v25 = vpop.f32.mrf.mxu3 }
 0xec5   : > { %v5520_v18 = vmax.f32 %v12211_v46, %v5292_v25  ;;  %v5380_v25 = vmax.f32 %v15120_v53, %v11874_v45  ;;  %v5799_v61 = vmax.f32 %v5591_v4, 0.0  ;;  %v15121_v45 = vld [vmem:[#allocation90_spill] sm:$0xff] }
 0xec6   : > { %v5381_v33 = vmax.f32 %v15121_v45, %v11890_v5  ;;  %v8150_v53 = vld [vmem:[%s13759_s5 + $0x380] sm:$0xff] }
 0xec7   : > { %v5732_v3 = vadd.f32 %v12556_v1, %v5520_v18 }
 0xec9   : > { %6265 = vmatmul.f32.gmra.mxu3 %v5797_v17  ;;  %v5940_v50 = vmax.f32 %v5732_v3, 0.0  ;;  %v8152_v3 = vld [vmem:[%s13759_s5 + $0x390] sm:$0xff]  ;;  %v5592_v17 = vadd.f32 %v12556_v1, %v5380_v25 }
 0xeca   : > { %6633 = vmatpush.msrb.mxu3 %v8152_v3 }
 0xecb   : > { %7144 = vmatmul.f32.gmra.mxu0 %v5940_v50  ;;  %v13085_v27 = vpop.f32.mrf.mxu0 }
 0xecc   : > { %v5295_v56 = vpop.f32.mrf.mxu3  ;;  %6634 = vmatpush.msrb.mxu3 %v8151_v10 }
 0xecd   : > { %v5521_v46 = vmax.f32 %v12218_v37, %v5295_v56 }
 0xece   : > { %6635 = vmatpush.msrb.mxu3 %v8150_v53  ;;  %v15126_v53 = vld [vmem:[#allocation196_spill] sm:$0xff] }
 0xecf   : > { %v5733_v23 = vadd.f32 %v12556_v1, %v5521_v46  ;;  %v5800_v46 = vmax.f32 %v5592_v17, 0.0 }
 0xed1   : > { %6268 = vmatmul.f32.gmra.mxu3 %v5798_v32  ;;  %v5941_v48 = vmax.f32 %v5733_v23, 0.0  ;;  %v5593_v23 = vadd.f32 %v12556_v1, %v5381_v33 }
 0xed3   : > { %7147 = vmatmul.f32.gmra.mxu0 %v5941_v48  ;;  %v13098_v5 = vpop.f32.mrf.mxu0 }
 0xed4   : > { %v5298_v6 = vpop.f32.mrf.mxu3 }
 0xed5   : > { %v5522_v37 = vmax.f32 %v12225_v26, %v5298_v6  ;;  %v5801_v6 = vmax.f32 %v5593_v23, 0.0  ;;  %v8228_v23 = vld [vmem:[%s13759_s5 + $0x5f0] sm:$0xff] }
 0xed7   : > { %v5734_v18 = vadd.f32 %v12556_v1, %v5522_v37 }
 0xed9   : > { %6271 = vmatmul.f32.gmra.mxu3 %v5799_v61  ;;  %v5942_v55 = vmax.f32 %v5734_v18, 0.0 }
 0xedb   : > { %7150 = vmatmul.f32.gmra.mxu0 %v5942_v55  ;;  %v13109_v17 = vpop.f32.mrf.mxu0 }
 0xedc   : > { %v5301_v50 = vpop.f32.mrf.mxu3 }
 0xedd   : > { %v5523_v26 = vmax.f32 %v12233_v8, %v5301_v50  ;;  %v15122_v8 = vld [vmem:[#allocation92_spill] sm:$0xff] }
 0xede   : > { %v5382_v36 = vmax.f32 %v15122_v8, %v11906_v20  ;;  %v15123_v20 = vld [vmem:[#allocation94_spill] sm:$0xff] }
 0xedf   : > { %v5735_v56 = vadd.f32 %v12556_v1, %v5523_v26  ;;  %v5383_v61 = vmax.f32 %v15123_v20, %v11919_v14  ;;  %v8229_v26 = vld [vmem:[%s13759_s5 + $0x5f8] sm:$0xff] }
 0xee0   : > { %v5594_v25 = vadd.f32 %v12556_v1, %v5382_v36  ;;  %7012 = vmatpush.msra.mxu3 %v8229_v26  ;;  %v15124_v14 = vld [vmem:[#allocation96_spill] sm:$0xff] }
 0xee1   : > { %6274 = vmatmul.f32.gmra.mxu3 %v5800_v46  ;;  %v5943_v43 = vmax.f32 %v5735_v56, 0.0  ;;  %v5595_v45 = vadd.f32 %v12556_v1, %v5383_v61  ;;  %v5384_v56 = vmax.f32 %v15124_v14, %v11923_v30  ;;  %v8224_v14 = vld [vmem:[%s13759_s5 + $0x5d0] sm:$0xff] }
 0xee2   : > { %v5802_v3 = vmax.f32 %v5594_v25, 0.0  ;;  %7013 = vmatpush.msra.mxu3 %v8228_v23  ;;  %v5434_v25 = vmax.f32 %v15126_v53, %v12300_v39  ;;  %v8225_v39 = vld [vmem:[%s13759_s5 + $0x5d8] sm:$0xff]  ;;  %v15131_v53 = vld [vmem:[#allocation206_spill] sm:$0xff] }
 0xee3   : > { %7153 = vmatmul.f32.gmra.mxu0 %v5943_v43  ;;  %v5803_v43 = vmax.f32 %v5595_v45, 0.0  ;;  %v15128_v45 = vld [vmem:[#allocation200_spill] sm:$0xff] }
 0xee4   : > { %v5304_v32 = vpop.f32.mrf.mxu3 }
 0xee5   : > { %v5524_v48 = vmax.f32 %v12239_v22, %v5304_v32  ;;  %v5596_v32 = vadd.f32 %v12556_v1, %v5384_v56 }
 0xee7   : > { %v5736_v4 = vadd.f32 %v12556_v1, %v5524_v48  ;;  %v13123_v48 = vpop.f32.mrf.mxu0  ;;  %v5804_v36 = vmax.f32 %v5596_v32, 0.0 }
 0xee9   : > { %6277 = vmatmul.f32.gmra.mxu3 %v5801_v6  ;;  %v5944_v37 = vmax.f32 %v5736_v4, 0.0  ;;  %v8227_v4 = vld [vmem:[%s13759_s5 + $0x5e8] sm:$0xff]  ;;  %v13135_v6 = vld [vmem:[%s13758_s4] ss:$0 sm:$0xff] }
 0xeea   : > { %7014 = vmatpush.msra.mxu3 %v8227_v4 }
 0xeeb   : > { %7156 = vmatmul.f32.gmra.mxu0 %v5944_v37 }
 0xeec   : > { %v5307_v18 = vpop.f32.mrf.mxu3 }
 0xeed   : > { %v5525_v22 = vmax.f32 %v11450_v24, %v5307_v18  ;;  %v8226_v18 = vld [vmem:[%s13759_s5 + $0x5e0] sm:$0xff] }
 0xeee   : > { %7015 = vmatpush.msra.mxu3 %v8226_v18 }
 0xeef   : > { %v5737_v55 = vadd.f32 %v12556_v1, %v5525_v22  ;;  %v5646_v22 = vadd.f32 %v13135_v6, %v5434_v25  ;;  %v5439_v25 = vmax.f32 %v15131_v53, %v12320_v40  ;;  %v8220_v40 = vld [vmem:[%s13759_s5 + $0x5b0] sm:$0xff] }
 0xef0   : > { %7016 = vmatpush.msra.mxu3 %v8225_v39  ;;  %v15136_v53 = vld [vmem:[#allocation216_spill] sm:$0xff] }
 0xef1   : > { %6280 = vmatmul.f32.gmra.mxu3 %v5802_v3  ;;  %v5945_v50 = vmax.f32 %v5737_v55, 0.0  ;;  %v5854_v61 = vmax.f32 %v5646_v22, 0.0  ;;  %v15127_v55 = vld [vmem:[#allocation198_spill] sm:$0xff]  ;;  %v5651_v18 = vadd.f32 %v13135_v6, %v5439_v25  ;;  %v5444_v25 = vmax.f32 %v15136_v53, %v12355_v60  ;;  %v15148_v53 = vld [vmem:[#allocation27_spill] sm:$0xff] }
 0xef2   : > { %v5435_v3 = vmax.f32 %v15127_v55, %v12304_v31  ;;  %7017 = vmatpush.msra.mxu3 %v8224_v14  ;;  %v8215_v60 = vld [vmem:[%s13759_s5 + $0x588] sm:$0xff] }
 0xef3   : > { %7159 = vmatmul.f32.gmra.mxu0 %v5945_v50 }
 0xef4   : > { %v5310_v33 = vpop.f32.mrf.mxu3  ;;  %v5647_v50 = vadd.f32 %v13135_v6, %v5435_v3  ;;  %v5859_v3 = vmax.f32 %v5651_v18, 0.0 }
 0xef5   : > { %v5526_v24 = vmax.f32 %v11466_v42, %v5310_v33  ;;  %v15125_v42 = vld [vmem:[#allocation98_spill] sm:$0xff]  ;;  %v5436_v33 = vmax.f32 %v15128_v45, %v12308_v51 }
 0xef6   : > { %v5385_v30 = vmax.f32 %v15125_v42, %v11927_v38  ;;  %v8223_v51 = vld [vmem:[%s13759_s5 + $0x5c8] sm:$0xff]  ;;  %v15130_v42 = vld [vmem:[#allocation204_spill] sm:$0xff] }
 0xef7   : > { %v5738_v46 = vadd.f32 %v12556_v1, %v5526_v24  ;;  %v5855_v24 = vmax.f32 %v5647_v50, 0.0  ;;  %v5648_v31 = vadd.f32 %v13135_v6, %v5436_v33  ;;  %7018 = vmatpush.msra.mxu3 %v8223_v51  ;;  %v15133_v45 = vld [vmem:[#allocation210_spill] sm:$0xff] }
 0xef8   : > { %v5597_v1 = vadd.f32 %v13135_v6, %v5385_v30  ;;  %v5438_v30 = vmax.f32 %v15130_v42, %v12316_v62  ;;  %v8221_v62 = vld [vmem:[%s13759_s5 + $0x5b8] sm:$0xff]  ;;  %v5441_v33 = vmax.f32 %v15133_v45, %v12328_v54  ;;  %v8218_v54 = vld [vmem:[%s13759_s5 + $0x5a0] sm:$0xff] }
 0xef9   : > { %6283 = vmatmul.f32.gmra.mxu3 %v5803_v43  ;;  %v5946_v10 = vmax.f32 %v5738_v46, 0.0  ;;  %v15129_v46 = vld [vmem:[#allocation202_spill] sm:$0xff]  ;;  %v15138_v45 = vld [vmem:[#allocation220_spill] sm:$0xff] }
 0xefa   : > { %v5805_v38 = vmax.f32 %v5597_v1, 0.0  ;;  %v5437_v43 = vmax.f32 %v15129_v46, %v12312_v49  ;;  %v8222_v49 = vld [vmem:[%s13759_s5 + $0x5c0] sm:$0xff]  ;;  %v5650_v4 = vadd.f32 %v13135_v6, %v5438_v30  ;;  %v5653_v14 = vadd.f32 %v13135_v6, %v5441_v33  ;;  %v15134_v46 = vld [vmem:[#allocation212_spill] sm:$0xff] }
 0xefb   : > { %7162 = vmatmul.f32.gmra.mxu0 %v5946_v10  ;;  %v5856_v10 = vmax.f32 %v5648_v31, 0.0  ;;  %7019 = vmatpush.msra.mxu3 %v8222_v49  ;;  %v15135_v42 = vld [vmem:[#allocation214_spill] sm:$0xff]  ;;  %v5446_v33 = vmax.f32 %v15138_v45, %v12390_v11 }
 0xefc   : > { %v13125_v8 = vpop.f32.mrf.mxu3  ;;  %v5649_v23 = vadd.f32 %v13135_v6, %v5437_v43  ;;  %v5442_v43 = vmax.f32 %v15134_v46, %v12332_v15  ;;  %v5443_v30 = vmax.f32 %v15135_v42, %v12339_v52  ;;  %v8217_v15 = vld [vmem:[%s13759_s5 + $0x598] sm:$0xff]  ;;  %v8216_v52 = vld [vmem:[%s13759_s5 + $0x590] sm:$0xff]  ;;  %v15139_v46 = vld [vmem:[#allocation222_spill] sm:$0xff] }
 0xefd   : > { %7020 = vmatpush.msra.mxu3 %v8221_v62  ;;  %v5656_v62 = vadd.f32 %v13135_v6, %v5444_v25 }
 0xefe   : > { %v5654_v51 = vadd.f32 %v13135_v6, %v5442_v43  ;;  %v5655_v49 = vadd.f32 %v13135_v6, %v5443_v30  ;;  %v5447_v43 = vmax.f32 %v15139_v46, %v12403_v29  ;;  %v15144_v30 = vld [vmem:[#allocation226_spill] sm:$0xff] }
 0xeff   : > { %7021 = vmatpush.msra.mxu3 %v8220_v40 }
 0xf00   : > { %v5659_v11 = vadd.f32 %v13135_v6, %v5447_v43 }
 0xf01   : > { %6286 = vmatmul.f32.gmra.mxu3 %v5804_v36  ;;  %v5857_v36 = vmax.f32 %v5649_v23, 0.0 }
 0xf02   : > { %v5867_v42 = vmax.f32 %v5659_v11, 0.0 }
 0xf04   : > { %v13138_v37 = vpop.f32.mrf.mxu3 }
 0xf09   : > { %6289 = vmatmul.f32.gmra.mxu3 %v5805_v38  ;;  %v5858_v38 = vmax.f32 %v5650_v4, 0.0 }
 0xf0c   : > { %v13146_v20 = vpop.f32.mrf.mxu3 }
 0xf11   : > { %6636 = vmatmul.f32.vlgmr.msrb.gmra.mxu3 %v5854_v61  ;;  %v15132_v61 = vld [vmem:[#allocation208_spill] sm:$0xff] }
 0xf12   : > { %v5440_v55 = vmax.f32 %v15132_v61, %v12324_v57  ;;  %v8219_v57 = vld [vmem:[%s13759_s5 + $0x5a8] sm:$0xff] }
 0xf13   : > { %7022 = vmatpush.msra.mxu3 %v8219_v57  ;;  %v15137_v61 = vld [vmem:[#allocation218_spill] sm:$0xff]  ;;  %v5658_v57 = vadd.f32 %v13135_v6, %v5446_v33  ;;  %v15154_v33 = vld [vmem:[#allocation127_spill] sm:$0xff] }
 0xf14   : > { %v13154_v26 = vpop.f32.mrf.mxu3  ;;  %v5652_v39 = vadd.f32 %v13135_v6, %v5440_v55  ;;  %v5445_v55 = vmax.f32 %v15137_v61, %v12374_v35  ;;  %v8214_v35 = vld [vmem:[%s13759_s5 + $0x580] sm:$0xff] }
 0xf15   : > { %7023 = vmatpush.msra.mxu3 %v8218_v54  ;;  %v15151_v61 = vld [vmem:[#allocation126_spill] sm:$0xff] }
 0xf16   : > { %v5657_v40 = vadd.f32 %v13135_v6, %v5445_v55  ;;  %v15152_v55 = vld [vmem:[#allocation109_spill] sm:$0xff] }
 0xf17   : > { %7024 = vmatpush.msra.mxu3 %v8217_v15  ;;  %v15145_v15 = vld [vmem:[#allocation122_spill] sm:$0xff] }
 0xf19   : > { %6639 = vmatmul.f32.gmra.mxu3 %v5855_v24  ;;  %v5860_v24 = vmax.f32 %v5652_v39, 0.0 }
 0xf1a   : > { %7025 = vmatpush.msra.mxu3 %v8216_v52  ;;  %v15149_v52 = vld [vmem:[#allocation124_spill] sm:$0xff] }
 0xf1c   : > { %v13162_v56 = vpop.f32.mrf.mxu3  ;;  %7026 = vmatpush.msra.mxu3 %v8215_v60 }
 0xf1e   : > { %7027 = vmatpush.msra.mxu3 %v8214_v35  ;;  %v15156_v35 = vld [vmem:[#allocation20_spill] sm:$0xff] }
 0xf20   : > { %8298 = vmatpush.msrb.mxu3 %v12855_v47  ;;  %v15140_v47 = vld [vmem:[#allocation44_spill] sm:$0xff] }
 0xf21   : > { %6642 = vmatmul.f32.gmra.mxu3 %v5856_v10  ;;  %v5861_v10 = vmax.f32 %v5653_v14, 0.0 }
 0xf22   : > { %8299 = vmatpush.msrb.mxu3 %v12863_v34 }
 0xf24   : > { %v13170_v32 = vpop.f32.mrf.mxu3  ;;  %8300 = vmatpush.msrb.mxu3 %v12869_v19 }
 0xf26   : > { %8301 = vmatpush.msrb.mxu3 %v12877_v63  ;;  %v15142_v63 = vld [vmem:[#allocation121_spill] sm:$0xff] }
 0xf28   : > { %8302 = vmatpush.msrb.mxu3 %v12883_v41  ;;  %v15143_v41 = vld [vmem:[#allocation46_spill] sm:$0xff] }
 0xf29   : > { %6645 = vmatmul.f32.gmra.mxu3 %v5857_v36  ;;  %v5862_v36 = vmax.f32 %v5654_v51, 0.0  ;;  %v15141_v51 = vld [vmem:[#allocation224_spill] sm:$0xff] }
 0xf2a   : > { %8303 = vmatpush.msrb.mxu3 %v12891_v7  ;;  %v5448_v34 = vmax.f32 %v15141_v51, %v15140_v47  ;;  %v5449_v7 = vmax.f32 %v15144_v30, %v15143_v41  ;;  %v15159_v51 = vld [vmem:[#allocation36_spill] sm:$0xff]  ;;  %v15162_v30 = vld [vmem:[#allocation71_spill] sm:$0xff] }
 0xf2c   : > { %v13178_v1 = vpop.f32.mrf.mxu3  ;;  %8304 = vmatpush.msrb.mxu3 %v12897_v16  ;;  %v5660_v29 = vadd.f32 %v13135_v6, %v5448_v34  ;;  %v15147_v16 = vld [vmem:[#allocation19_spill] sm:$0xff]  ;;  %v5661_v25 = vadd.f32 %v13135_v6, %v5449_v7 }
 0xf2e   : > { %8305 = vmatpush.msrb.mxu3 %v12905_v59  ;;  %v6066_v59 = vadd.f32 %v15148_v53, %v15147_v16  ;;  %v5869_v45 = vmax.f32 %v5661_v25, 0.0 }
 0xf30   : > { %8306 = vmatpush.msrb.mxu3 %v12911_v2  ;;  %v15150_v2 = vld [vmem:[#allocation35_spill] sm:$0xff] }
 0xf31   : > { %6648 = vmatmul.f32.gmra.mxu3 %v5858_v38  ;;  %v5863_v38 = vmax.f32 %v5655_v49, 0.0  ;;  %v15146_v49 = vld [vmem:[#allocation123_spill] sm:$0xff] }
 0xf32   : > { %8307 = vmatpush.msrb.mxu3 %v15142_v63 }
 0xf34   : > { %v13186_v22 = vpop.f32.mrf.mxu3  ;;  %8308 = vmatpush.msrb.mxu3 %v15145_v15  ;;  %v15163_v15 = vld [vmem:[#allocation21_spill] sm:$0xff] }
 0xf36   : > { %8309 = vmatpush.msrb.mxu3 %v15146_v49  ;;  %v15164_v49 = vld [vmem:[#allocation29_spill] sm:$0xff] }
 0xf37   : > { %v6072_v16 = vadd.f32 %v15164_v49, %v15163_v15  ;;  %v15177_v15 = vld [vmem:[#allocation6_spill] sm:$0xff] }
 0xf38   : > { %8310 = vmatpush.msrb.mxu3 %v15149_v52  ;;  %v15166_v52 = vld [vmem:[#allocation101_spill] sm:$0xff] }
 0xf39   : > { %6651 = vmatmul.f32.gmra.mxu3 %v5859_v3  ;;  %v5864_v3 = vmax.f32 %v5656_v62, 0.0  ;;  %v6195_v62 = vadd.f32 %v15150_v2, %v6066_v59  ;;  %v15165_v59 = vld [vmem:[#allocation54_spill] sm:$0xff] }
 0xf3a   : > { %8311 = vmatpush.msrb.mxu3 %v15151_v61  ;;  %v15167_v61 = vld [vmem:[#allocation37_spill] sm:$0xff] }
 0xf3c   : > { %v13194_v50 = vpop.f32.mrf.mxu3  ;;  %8312 = vmatpush.msrb.mxu3 %v15154_v33 }
 0xf41   : > { %6654 = vmatmul.f32.gmra.mxu3 %v5860_v24  ;;  %v5865_v24 = vmax.f32 %v5657_v40, 0.0  ;;  %v6293_v40 = vadd.f32 %v13154_v26, %v6195_v62  ;;  %v15161_v26 = vld [vmem:[#allocation333_spill] sm:$0xff] }
 0xf44   : > { %v13202_v31 = vpop.f32.mrf.mxu3 }
 0xf49   : > { %6657 = vmatmul.f32.gmra.mxu3 %v5861_v10  ;;  %v5866_v10 = vmax.f32 %v5658_v57, 0.0  ;;  %v15157_v57 = vld [vmem:[#allocation28_spill] sm:$0xff] }
 0xf4a   : > { %v6069_v46 = vadd.f32 %v15157_v57, %v15156_v35  ;;  %v7241_v57 = vld [vmem:[%s13761_s7 + $0x70] sm:$0xff] }
 0xf4b   : > { %7296 = vmatpush.msra.mxu1 %v7241_v57 }
 0xf4c   : > { %v13210_v23 = vpop.f32.mrf.mxu3  ;;  %v6196_v34 = vadd.f32 %v15159_v51, %v6069_v46  ;;  %v15171_v46 = vld [vmem:[#allocation22_spill] sm:$0xff]  ;;  %v15173_v51 = vld [vmem:[#allocation55_spill] sm:$0xff] }
 0xf4e   : > { %v6294_v41 = vadd.f32 %v13162_v56, %v6196_v34  ;;  %v15168_v56 = vld [vmem:[#allocation111_spill] sm:$0xff] }
 0xf50   : > { %v6392_v25 = vadd.f32 %v15165_v59, %v6294_v41  ;;  %v15178_v59 = vld [vmem:[#allocation75_spill] sm:$0xff] }
 0xf51   : > { %6660 = vmatmul.f32.gmra.mxu3 %v5862_v36  ;;  %v5868_v36 = vmax.f32 %v5660_v29, 0.0  ;;  %v15160_v29 = vld [vmem:[#allocation110_spill] sm:$0xff] }
 0xf52   : > { %v5499_v63 = vmax.f32 %v15161_v26, %v15160_v29 }
 0xf54   : > { %v13218_v4 = vpop.f32.mrf.mxu3  ;;  %v5711_v53 = vadd.f32 %v13135_v6, %v5499_v63  ;;  %v15175_v63 = vld [vmem:[#allocation38_spill] sm:$0xff] }
 0xf56   : > { %v5919_v33 = vmax.f32 %v5711_v53, 0.0 }
 0xf59   : > { %6663 = vmatmul.f32.gmra.mxu3 %v5863_v38 }
 0xf5c   : > { %v13226_v18 = vpop.f32.mrf.mxu3 }
 0xf61   : > { %6666 = vmatmul.f32.gmra.mxu3 %v5864_v3  ;;  %v15153_v3 = vld [vmem:[#allocation330_spill] sm:$0xff] }
 0xf62   : > { %v5498_v60 = vmax.f32 %v15153_v3, %v15152_v55  ;;  %v6197_v55 = vadd.f32 %v15167_v61, %v6072_v16 }
 0xf64   : > { %v13234_v39 = vpop.f32.mrf.mxu3  ;;  %v5710_v43 = vadd.f32 %v13135_v6, %v5498_v60  ;;  %v15169_v60 = vld [vmem:[#allocation335_spill] sm:$0xff] }
 0xf69   : > { %6669 = vmatmul.f32.gmra.mxu3 %v5865_v24  ;;  %v15155_v24 = vld [vmem:[#allocation128_spill] sm:$0xff] }
 0xf6a   : > { %8313 = vmatpush.msrb.mxu3 %v15155_v24  ;;  %v15170_v24 = vld [vmem:[#allocation73_spill] sm:$0xff] }
 0xf6b   : > { %v6490_v35 = vadd.f32 %v15170_v24, %v6392_v25 }
 0xf6c   : > { %v13243_v14 = vpop.f32.mrf.mxu3 }
 0xf71   : > { %6672 = vmatmul.f32.gmra.mxu3 %v5866_v10  ;;  %v15158_v10 = vld [vmem:[#allocation53_spill] sm:$0xff] }
 0xf72   : > { %v6391_v11 = vadd.f32 %v15158_v10, %v6293_v40  ;;  %v5500_v40 = vmax.f32 %v15169_v60, %v15168_v56  ;;  %v15181_v56 = vld [vmem:[#allocation56_spill] sm:$0xff] }
 0xf74   : > { %v13251_v54 = vpop.f32.mrf.mxu3  ;;  %v6489_v7 = vadd.f32 %v15162_v30, %v6391_v11  ;;  %v5712_v11 = vadd.f32 %v13135_v6, %v5500_v40  ;;  %v15182_v40 = vld [vmem:[#allocation103_spill] sm:$0xff] }
 0xf76   : > { %v6587_v2 = vadd.f32 %v15166_v52, %v6489_v7  ;;  %v15176_v7 = vld [vmem:[#allocation112_spill] sm:$0xff]  ;;  %v5920_v53 = vmax.f32 %v5712_v11, 0.0  ;;  %v7240_v52 = vld [vmem:[%s13761_s7 + $0x68] sm:$0xff] }
 0xf77   : > { %v5501_v49 = vmax.f32 %v15177_v15, %v15176_v7  ;;  %7297 = vmatpush.msra.mxu1 %v7240_v52 }
 0xf79   : > { %6675 = vmatmul.f32.gmra.mxu3 %v5867_v42  ;;  %v5918_v42 = vmax.f32 %v5710_v43, 0.0  ;;  %v15172_v43 = vld [vmem:[#allocation30_spill] sm:$0xff] }
 0xf7a   : > { %v6075_v10 = vadd.f32 %v15172_v43, %v15171_v46  ;;  %v15184_v46 = vld [vmem:[#allocation113_spill] sm:$0xff]  ;;  %v15185_v43 = vld [vmem:[#allocation7_spill] sm:$0xff] }
 0xf7c   : > { %v13260_v19 = vpop.f32.mrf.mxu3  ;;  %v6198_v41 = vadd.f32 %v15175_v63, %v6075_v10  ;;  %v5502_v10 = vmax.f32 %v15185_v43, %v15184_v46  ;;  %v15187_v63 = vld [vmem:[#allocation24_spill] sm:$0xff]  ;;  %v15195_v43 = vld [vmem:[#allocation25_spill] sm:$0xff] }
 0xf7e   : > { %v6296_v16 = vadd.f32 %v13178_v1, %v6198_v41  ;;  %v15188_v41 = vld [vmem:[#allocation32_spill] sm:$0xff]  ;;  %v5714_v15 = vadd.f32 %v13135_v6, %v5502_v10  ;;  %v15196_v10 = vld [vmem:[#allocation33_spill] sm:$0xff] }
 0xf7f   : > { %v6081_v7 = vadd.f32 %v15188_v41, %v15187_v63  ;;  %v15199_v41 = vld [vmem:[#allocation41_spill] sm:$0xff] }
 0xf80   : > { %v6394_v60 = vadd.f32 %v15181_v56, %v6296_v16 }
 0xf81   : > { %6678 = vmatmul.f32.gmra.mxu3 %v5868_v36  ;;  %v13292_v36 = vpop.f32.mrf.mxu0 }
 0xf84   : > { %v13271_v38 = vpop.f32.mrf.mxu3 }
 0xf89   : > { %6681 = vmatmul.f32.gmra.mxu3 %v5869_v45  ;;  %v6295_v45 = vadd.f32 %v13170_v32, %v6197_v55  ;;  %v13314_v32 = vpop.f32.mrf.mxu0  ;;  %v5713_v55 = vadd.f32 %v13135_v6, %v5501_v49  ;;  %v15189_v49 = vld [vmem:[#allocation57_spill] sm:$0xff] }
 0xf8b   : > { %v6393_v34 = vadd.f32 %v15173_v51, %v6295_v45  ;;  %v5921_v51 = vmax.f32 %v5713_v55, 0.0  ;;  %v15193_v55 = vld [vmem:[#allocation8_spill] sm:$0xff] }
 0xf8c   : > { %v13285_v47 = vpop.f32.mrf.mxu3 }
 0xf8d   : > { %v6491_v25 = vadd.f32 %v15178_v59, %v6393_v34  ;;  %v15186_v34 = vld [vmem:[#allocation77_spill] sm:$0xff]  ;;  %v13350_v59 = vpop.f32.mrf.mxu2 }
 0xf8f   : > { %v6589_v45 = vadd.f32 %v15182_v40, %v6491_v25  ;;  %v5922_v40 = vmax.f32 %v5714_v15, 0.0 }
 0xf91   : > { %7028 = vmatmul.f32.vlgmr.msra.gmra.mxu3 %v5918_v42  ;;  %v15174_v42 = vld [vmem:[#allocation102_spill] sm:$0xff] }
 0xf92   : > { %8314 = vmatpush.msra.mxu3 %v7241_v57  ;;  %v6588_v29 = vadd.f32 %v15174_v42, %v6490_v35  ;;  %v13334_v57 = vpop.f32.mrf.mxu0  ;;  %v6492_v42 = vadd.f32 %v15186_v34, %v6394_v60 }
 0xf94   : > { %v6637_v62 = vpop.f32.mrf.mxu3  ;;  %8315 = vmatpush.msra.mxu3 %v7240_v52  ;;  %v15191_v52 = vld [vmem:[#allocation40_spill] sm:$0xff] }
 0xf95   : > { %v13300_v3 = vadd.f32 %v6637_v62, %v6587_v2  ;;  %v15179_v2 = vld [vmem:[#allocation23_spill] sm:$0xff] }
 0xf96   : > { %v15180_v62 = vld [vmem:[#allocation31_spill] sm:$0xff] }
 0xf97   : > { %v6078_v61 = vadd.f32 %v15180_v62, %v15179_v2  ;;  %v6200_v2 = vadd.f32 %v15191_v52, %v6081_v7 }
 0xf99   : > { %7031 = vmatmul.f32.gmra.mxu3 %v5919_v33  ;;  %v15183_v33 = vld [vmem:[#allocation39_spill] sm:$0xff]  ;;  %v6298_v60 = vadd.f32 %v13194_v50, %v6200_v2 }
 0xf9a   : > { %v6199_v24 = vadd.f32 %v15183_v33, %v6078_v61  ;;  %v15192_v61 = vld [vmem:[#allocation114_spill] sm:$0xff]  ;;  %v13359_v33 = vpop.f32.mrf.mxu0  ;;  %v15197_v50 = vld [vmem:[#allocation59_spill] sm:$0xff] }
 0xf9b   : > { %v5503_v56 = vmax.f32 %v15193_v55, %v15192_v61  ;;  %v6396_v34 = vadd.f32 %v15197_v50, %v6298_v60  ;;  %v15202_v2 = vld [vmem:[#allocation83_spill] sm:$0xff]  ;;  %v15204_v60 = vld [vmem:[#allocation34_spill] sm:$0xff] }
 0xf9c   : > { %v6640_v26 = vpop.f32.mrf.mxu3  ;;  %v6297_v11 = vadd.f32 %v13186_v22, %v6199_v24  ;;  %v15190_v22 = vld [vmem:[#allocation104_spill] sm:$0xff] }
 0xf9d   : > { %v13317_v30 = vadd.f32 %v6640_v26, %v6588_v29  ;;  %v13340_v29 = vpop.f32.mrf.mxu1  ;;  %v7239_v26 = vld [vmem:[%s13761_s7 + $0x60] sm:$0xff]  ;;  %v7238_v24 = vld [vmem:[%s13761_s7 + $0x58] sm:$0xff]  ;;  %v6494_v61 = vadd.f32 %v15202_v2, %v6396_v34 }
 0xf9e   : > { %7298 = vmatpush.msra.mxu1 %v7239_v26  ;;  %8316 = vmatpush.msra.mxu3 %v7239_v26  ;;  %v6395_v16 = vadd.f32 %v15189_v49, %v6297_v11  ;;  %v6084_v11 = vadd.f32 %v15196_v10, %v15195_v43  ;;  %v13374_v49 = vpop.f32.mrf.mxu2  ;;  %v15206_v43 = vld [vmem:[#allocation106_spill] sm:$0xff]  ;;  %v15208_v34 = vld [vmem:[#allocation116_spill] sm:$0xff] }
 0xf9f   : > { %v6592_v10 = vadd.f32 %v15206_v43, %v6494_v61  ;;  %v15212_v2 = vld [vmem:[#allocation58_spill] sm:$0xff]  ;;  %v15215_v43 = vld [vmem:[#allocation81_spill] sm:$0xff] }
 0xfa0   : > { %7299 = vmatpush.msra.mxu1 %v7238_v24  ;;  %8317 = vmatpush.msra.mxu3 %v7238_v24  ;;  %v6201_v7 = vadd.f32 %v15199_v41, %v6084_v11 }
 0xfa1   : > { %7034 = vmatmul.f32.gmra.mxu3 %v5920_v53  ;;  %v6590_v53 = vadd.f32 %v15190_v22, %v6492_v42  ;;  %v15198_v42 = vld [vmem:[#allocation105_spill] sm:$0xff] }
 0xfa2   : > { %v15201_v22 = vld [vmem:[#allocation9_spill] sm:$0xff]  ;;  %v13380_v55 = vpop.f32.mrf.mxu0 }
 0xfa4   : > { %v6643_v1 = vpop.f32.mrf.mxu3 }
 0xfa5   : > { %v13332_v35 = vadd.f32 %v6643_v1, %v6589_v45  ;;  %v15194_v45 = vld [vmem:[#allocation79_spill] sm:$0xff]  ;;  %v13364_v46 = vpop.f32.mrf.mxu1 }
 0xfa6   : > { %v6493_v1 = vadd.f32 %v15194_v45, %v6395_v16  ;;  %v15200_v16 = vld [vmem:[#allocation115_spill] sm:$0xff] }
 0xfa8   : > { %v6591_v26 = vadd.f32 %v15198_v42, %v6493_v1  ;;  %v15205_v1 = vld [vmem:[#allocation61_spill] sm:$0xff]  ;;  %v15207_v42 = vld [vmem:[#allocation42_spill] sm:$0xff] }
 0xfa9   : > { %7037 = vmatmul.f32.gmra.mxu3 %v5921_v51  ;;  %v5715_v51 = vadd.f32 %v13135_v6, %v5503_v56  ;;  %v15203_v56 = vld [vmem:[#allocation26_spill] sm:$0xff] }
 0xfab   : > { %v5923_v52 = vmax.f32 %v5715_v51, 0.0 }
 0xfac   : > { %v6646_v25 = vpop.f32.mrf.mxu3 }
 0xfad   : > { %v13353_v62 = vadd.f32 %v6646_v25, %v6590_v53  ;;  %v5504_v53 = vmax.f32 %v15201_v22, %v15200_v16  ;;  %v6299_v25 = vadd.f32 %v13202_v31, %v6201_v7  ;;  %v13387_v11 = vpop.f32.mrf.mxu1  ;;  %v15210_v16 = vld [vmem:[#allocation87_spill] sm:$0xff] }
 0xfaf   : > { %v5716_v45 = vadd.f32 %v13135_v6, %v5504_v53  ;;  %v6397_v24 = vadd.f32 %v15205_v1, %v6299_v25  ;;  %v7237_v53 = vld [vmem:[%s13761_s7 + $0x50] sm:$0xff]  ;;  %v13399_v25 = vpop.f32.mrf.mxu2  ;;  %v13406_v1 = vpop.f32.mrf.mxu0 }
 0xfb0   : > { %7300 = vmatpush.msra.mxu1 %v7237_v53  ;;  %8318 = vmatpush.msra.mxu3 %v7237_v53 }
 0xfb1   : > { %7040 = vmatmul.f32.gmra.mxu3 %v5922_v40  ;;  %v6087_v40 = vadd.f32 %v15204_v60, %v15203_v56  ;;  %v5924_v7 = vmax.f32 %v5716_v45, 0.0  ;;  %v6495_v22 = vadd.f32 %v15210_v16, %v6397_v24  ;;  %v15213_v60 = vld [vmem:[#allocation63_spill] sm:$0xff] }
 0xfb3   : > { %v6202_v31 = vadd.f32 %v15207_v42, %v6087_v40 }
 0xfb4   : > { %v6649_v63 = vpop.f32.mrf.mxu3 }
 0xfb5   : > { %v13372_v15 = vadd.f32 %v6649_v63, %v6591_v26  ;;  %v15209_v26 = vld [vmem:[#allocation10_spill] sm:$0xff]  ;;  %v6300_v41 = vadd.f32 %v13210_v23, %v6202_v31  ;;  %v15214_v23 = vld [vmem:[#allocation107_spill] sm:$0xff]  ;;  %v13411_v42 = vpop.f32.mrf.mxu1  ;;  %v15216_v31 = vld [vmem:[#allocation117_spill] sm:$0xff] }
 0xfb6   : > { %v5505_v63 = vmax.f32 %v15209_v26, %v15208_v34  ;;  %v6593_v45 = vadd.f32 %v15214_v23, %v6495_v22  ;;  %v15217_v34 = vld [vmem:[#allocation11_spill] sm:$0xff] }
 0xfb7   : > { %v6398_v40 = vadd.f32 %v15213_v60, %v6300_v41  ;;  %v5506_v26 = vmax.f32 %v15217_v34, %v15216_v31  ;;  %v7236_v41 = vld [vmem:[%s13761_s7 + $0x48] sm:$0xff]  ;;  %v13420_v22 = vpop.f32.mrf.mxu2  ;;  %v13430_v31 = vpop.f32.mrf.mxu0 }
 0xfb8   : > { %v5717_v56 = vadd.f32 %v13135_v6, %v5505_v63  ;;  %v15218_v63 = vld [vmem:[#allocation91_spill] sm:$0xff]  ;;  %7301 = vmatpush.msra.mxu1 %v7236_v41  ;;  %8319 = vmatpush.msra.mxu3 %v7236_v41  ;;  %15219 = vst [vmem:[#allocation133_spill] sm:$0xff] %v13420_v22  ;;  %v15225_v34 = vld [vmem:[#allocation118_spill] sm:$0xff] }
 0xfb9   : > { %7043 = vmatmul.f32.gmra.mxu3 %v5923_v52  ;;  %v15211_v52 = vld [vmem:[#allocation43_spill] sm:$0xff]  ;;  %v6496_v53 = vadd.f32 %v15218_v63, %v6398_v40  ;;  %v5718_v60 = vadd.f32 %v13135_v6, %v5506_v26  ;;  %v15224_v40 = vld [vmem:[#allocation85_spill] sm:$0xff] }
 0xfba   : > { %v6090_v61 = vadd.f32 %v15212_v2, %v15211_v52  ;;  %v5925_v16 = vmax.f32 %v5717_v56, 0.0  ;;  %v15220_v52 = vld [vmem:[#allocation45_spill] sm:$0xff]  ;;  %v15221_v2 = vld [vmem:[#allocation60_spill] sm:$0xff]  ;;  %v15222_v23 = vld [vmem:[#allocation131_spill] sm:$0xff] }
 0xfbb   : > { %v5926_v22 = vmax.f32 %v5718_v60, 0.0  ;;  %v7235_v26 = vld [vmem:[%s13761_s7 + $0x40] sm:$0xff] }
 0xfbc   : > { %v6652_v50 = vpop.f32.mrf.mxu3  ;;  %7302 = vmatpush.msra.mxu1 %v7235_v26  ;;  %8320 = vmatpush.msra.mxu3 %v7235_v26 }
 0xfbd   : > { %v13390_v51 = vadd.f32 %v6652_v50, %v6592_v10  ;;  %v6203_v10 = vadd.f32 %v15215_v43, %v6090_v61  ;;  %v6093_v61 = vadd.f32 %v15221_v2, %v15220_v52  ;;  %v15228_v2 = vld [vmem:[#allocation62_spill] sm:$0xff] }
 0xfbf   : > { %v6204_v43 = vadd.f32 %v15224_v40, %v6093_v61  ;;  %v13446_v60 = vpop.f32.mrf.mxu2  ;;  %v15230_v40 = vld [vmem:[#allocation119_spill] sm:$0xff] }
 0xfc1   : > { %7046 = vmatmul.f32.gmra.mxu3 %v5924_v7  ;;  %v6301_v7 = vadd.f32 %v13218_v4, %v6203_v10  ;;  %v15223_v4 = vld [vmem:[#allocation108_spill] sm:$0xff]  ;;  %v6302_v41 = vadd.f32 %v13226_v18, %v6204_v43  ;;  %v15231_v43 = vld [vmem:[#allocation13_spill] sm:$0xff] }
 0xfc2   : > { %v6594_v56 = vadd.f32 %v15223_v4, %v6496_v53  ;;  %v15227_v53 = vld [vmem:[#allocation47_spill] sm:$0xff] }
 0xfc3   : > { %v6096_v61 = vadd.f32 %v15228_v2, %v15227_v53  ;;  %v6400_v4 = vadd.f32 %v12993_v58, %v6302_v41  ;;  %v7234_v58 = vld [vmem:[%s13761_s7 + $0x38] sm:$0xff] }
 0xfc4   : > { %v6655_v24 = vpop.f32.mrf.mxu3  ;;  %7303 = vmatpush.msra.mxu1 %v7234_v58  ;;  %8321 = vmatpush.msra.mxu3 %v7234_v58  ;;  %v7232_v58 = vld [vmem:[%s13761_s7 + $0x28] sm:$0xff] }
 0xfc5   : > { %v13409_v50 = vadd.f32 %v6655_v24, %v6593_v45  ;;  %v6399_v45 = vadd.f32 %v15222_v23, %v6301_v7  ;;  %v13439_v7 = vpop.f32.mrf.mxu1  ;;  %v6498_v26 = vadd.f32 %v13364_v46, %v6400_v4 }
 0xfc7   : > { %v6497_v52 = vadd.f32 %v13340_v29, %v6399_v45  ;;  %v15229_v45 = vld [vmem:[#allocation89_spill] sm:$0xff]  ;;  %v6596_v53 = vadd.f32 %v13374_v49, %v6498_v26  ;;  %v6578_v46 = vpop.f32.mrf.mxu2 }
 0xfc9   : > { %7049 = vmatmul.f32.gmra.mxu3 %v5925_v16  ;;  %v15226_v16 = vld [vmem:[#allocation12_spill] sm:$0xff]  ;;  %v6595_v18 = vadd.f32 %v13350_v59, %v6497_v52  ;;  %v13458_v59 = vpop.f32.mrf.mxu0 }
 0xfca   : > { %v5507_v63 = vmax.f32 %v15226_v16, %v15225_v34  ;;  %v5508_v34 = vmax.f32 %v15231_v43, %v15230_v40  ;;  %15232 = vst [vmem:[#allocation134_spill] sm:$0xff] %v13458_v59 }
 0xfcc   : > { %v6658_v24 = vpop.f32.mrf.mxu3  ;;  %v5719_v23 = vadd.f32 %v13135_v6, %v5507_v63  ;;  %v5720_v41 = vadd.f32 %v13135_v6, %v5508_v34 }
 0xfcd   : > { %v13428_v10 = vadd.f32 %v6658_v24, %v6594_v56  ;;  %v6205_v56 = vadd.f32 %v15229_v45, %v6096_v61  ;;  %v6480_v63 = vpop.f32.mrf.mxu1  ;;  %v15233_v61 = vld [vmem:[#allocation120_spill] sm:$0xff] }
 0xfce   : > { %v5927_v16 = vmax.f32 %v5719_v23, 0.0  ;;  %v15234_v23 = vld [vmem:[#allocation14_spill] sm:$0xff]  ;;  %v7233_v45 = vld [vmem:[%s13761_s7 + $0x30] sm:$0xff] }
 0xfcf   : > { %v5509_v4 = vmax.f32 %v15234_v23, %v15233_v61  ;;  %7304 = vmatpush.msra.mxu1 %v7233_v45  ;;  %8322 = vmatpush.msra.mxu3 %v7233_v45  ;;  %v15242_v45 = vld [vmem:[#allocation129_spill] sm:$0xff] }
 0xfd1   : > { %7052 = vmatmul.f32.gmra.mxu3 %v5926_v22  ;;  %v6303_v22 = vadd.f32 %v13234_v39, %v6205_v56  ;;  %v5721_v49 = vadd.f32 %v13135_v6, %v5509_v4  ;;  %7305 = vmatpush.msra.mxu1 %v7232_v58  ;;  %v15241_v4 = vld [vmem:[#allocation97_spill] sm:$0xff] }
 0xfd2   : > { %8323 = vmatpush.msra.mxu3 %v7232_v58  ;;  %v15245_v58 = vld [vmem:[#allocation67_spill] sm:$0xff] }
 0xfd3   : > { %v6401_v52 = vadd.f32 %v13003_v21, %v6303_v22  ;;  %v13471_v21 = vpop.f32.mrf.mxu0  ;;  %v15236_v22 = vld [vmem:[#allocation125_spill] sm:$0xff]  ;;  %v5929_v26 = vmax.f32 %v5721_v49, 0.0  ;;  %v15243_v49 = vld [vmem:[#allocation16_spill] sm:$0xff] }
 0xfd4   : > { %v6661_v29 = vpop.f32.mrf.mxu3  ;;  %15235 = vst [vmem:[#allocation135_spill] sm:$0xff] %v13471_v21  ;;  %v15255_v21 = vld [vmem:[#allocation18_spill] sm:$0xff] }
 0xfd5   : > { %v13449_v24 = vadd.f32 %v6661_v29, %v6595_v18  ;;  %v5928_v18 = vmax.f32 %v5720_v41, 0.0  ;;  %v6499_v29 = vadd.f32 %v13387_v11, %v6401_v52  ;;  %v6483_v40 = vpop.f32.mrf.mxu1  ;;  %v6581_v41 = vpop.f32.mrf.mxu2  ;;  %v15238_v52 = vld [vmem:[#allocation50_spill] sm:$0xff] }
 0xfd7   : > { %v6597_v56 = vadd.f32 %v13399_v25, %v6499_v29 }
 0xfd9   : > { %7055 = vmatmul.f32.gmra.mxu3 %v5927_v16  ;;  %v15237_v16 = vld [vmem:[#allocation15_spill] sm:$0xff] }
 0xfda   : > { %v5510_v11 = vmax.f32 %v15237_v16, %v15236_v22  ;;  %v7231_v16 = vld [vmem:[%s13761_s7 + $0x20] sm:$0xff] }
 0xfdb   : > { %v13485_v61 = vpop.f32.mrf.mxu0  ;;  %7306 = vmatpush.msra.mxu1 %v7231_v16  ;;  %8324 = vmatpush.msra.mxu3 %v7231_v16  ;;  %v15250_v16 = vld [vmem:[#allocation17_spill] sm:$0xff] }
 0xfdc   : > { %v6664_v39 = vpop.f32.mrf.mxu3  ;;  %v5722_v25 = vadd.f32 %v13135_v6, %v5510_v11  ;;  %15240 = vst [vmem:[#allocation136_spill] sm:$0xff] %v13485_v61  ;;  %v15254_v61 = vld [vmem:[#allocation132_spill] sm:$0xff] }
 0xfdd   : > { %v13463_v2 = vadd.f32 %v6664_v39, %v6596_v53  ;;  %v15239_v53 = vld [vmem:[#allocation66_spill] sm:$0xff]  ;;  %v6486_v29 = vpop.f32.mrf.mxu1  ;;  %v6584_v11 = vpop.f32.mrf.mxu2 }
 0xfde   : > { %v6105_v39 = vadd.f32 %v15239_v53, %v15238_v52  ;;  %v5930_v22 = vmax.f32 %v5722_v25, 0.0  ;;  %v7230_v25 = vld [vmem:[%s13761_s7 + $0x18] sm:$0xff] }
 0xfdf   : > { %7307 = vmatpush.msra.mxu1 %v7230_v25  ;;  %8325 = vmatpush.msra.mxu3 %v7230_v25  ;;  %v15251_v25 = vld [vmem:[#allocation52_spill] sm:$0xff] }
 0xfe1   : > { %7058 = vmatmul.f32.gmra.mxu3 %v5928_v18  ;;  %v6208_v18 = vadd.f32 %v15241_v4, %v6105_v39 }
 0xfe4   : > { %v6667_v43 = vpop.f32.mrf.mxu3 }
 0xfe5   : > { %v13475_v34 = vadd.f32 %v6667_v43, %v6597_v56  ;;  %v5511_v56 = vmax.f32 %v15243_v49, %v15242_v45  ;;  %v6306_v43 = vadd.f32 %v13260_v19, %v6208_v18  ;;  %v15247_v45 = vld [vmem:[#allocation99_spill] sm:$0xff]  ;;  %v13506_v18 = vpop.f32.mrf.mxu0  ;;  %v6833_v49 = vpop.f32.mrf.mxu1 }
 0xfe6   : > { %15248 = vst [vmem:[#allocation138_spill] sm:$0xff] %v13506_v18 }
 0xfe7   : > { %v5723_v53 = vadd.f32 %v13135_v6, %v5511_v56  ;;  %v6404_v39 = vadd.f32 %v13040_v9, %v6306_v43  ;;  %v7229_v43 = vld [vmem:[%s13761_s7 + $0x10] sm:$0xff] }
 0xfe8   : > { %7308 = vmatpush.msra.mxu1 %v7229_v43  ;;  %8326 = vmatpush.msra.mxu3 %v7229_v43 }
 0xfe9   : > { %7061 = vmatmul.f32.gmra.mxu3 %v5929_v26  ;;  %v15244_v26 = vld [vmem:[#allocation51_spill] sm:$0xff]  ;;  %v6502_v9 = vadd.f32 %v6480_v63, %v6404_v39  ;;  %v7227_v39 = vld [vmem:[%s13761_s7] sm:$0xff] }
 0xfea   : > { %v6108_v52 = vadd.f32 %v15245_v58, %v15244_v26  ;;  %v5931_v58 = vmax.f32 %v5723_v53, 0.0 }
 0xfeb   : > { %v6600_v53 = vadd.f32 %v6578_v46, %v6502_v9 }
 0xfec   : > { %v13487_v23 = vpop.f32.mrf.mxu3  ;;  %v6209_v19 = vadd.f32 %v15247_v45, %v6108_v52  ;;  %v7228_v52 = vld [vmem:[%s13761_s7 + $0x8] sm:$0xff]  ;;  %v6931_v45 = vpop.f32.mrf.mxu2 }
 0xfed   : > { %7309 = vmatpush.msra.mxu1 %v7228_v52  ;;  %8327 = vmatpush.msra.mxu3 %v7228_v52  ;;  %v7127_v52 = vpop.f32.mrf.mxu0  ;;  %v6836_v46 = vpop.f32.mrf.mxu1 }
 0xfee   : > { %v6307_v56 = vadd.f32 %v13271_v38, %v6209_v19 }
 0xfef   : > { %7310 = vmatpush.msra.mxu1 %v7227_v39  ;;  %8328 = vmatpush.msra.mxu3 %v7227_v39 }
 0xff0   : > { %v6405_v63 = vadd.f32 %v13051_v0, %v6307_v56 }
 0xff1   : > { %7064 = vmatmul.f32.gmra.mxu3 %v5930_v22  ;;  %v15249_v22 = vld [vmem:[#allocation130_spill] sm:$0xff] }
 0xff2   : > { %v5512_v26 = vmax.f32 %v15250_v16, %v15249_v22  ;;  %v15252_v22 = vld [vmem:[#allocation69_spill] sm:$0xff]  ;;  %v6503_v0 = vadd.f32 %v6483_v40, %v6405_v63 }
 0xff3   : > { %v6111_v16 = vadd.f32 %v15252_v22, %v15251_v25  ;;  %v5513_v25 = vmax.f32 %v15255_v21, %v15254_v61 }
 0xff4   : > { %v13500_v4 = vpop.f32.mrf.mxu3  ;;  %v5724_v38 = vadd.f32 %v13135_v6, %v5512_v26  ;;  %v6601_v59 = vadd.f32 %v6581_v41, %v6503_v0  ;;  %v6934_v39 = vpop.f32.mrf.mxu2 }
 0xff5   : > { %15246 = vst [vmem:[#allocation137_spill] sm:$0xff] %v13500_v4  ;;  %v5725_v56 = vadd.f32 %v13135_v6, %v5513_v25  ;;  %v7130_v61 = vpop.f32.mrf.mxu0 }
 0xff6   : > { %v5932_v22 = vmax.f32 %v5724_v38, 0.0  ;;  %v6783_v38 = vadd.f32 %v13075_v13, %v13300_v3 }
 0xff9   : > { %7067 = vmatmul.f32.gmra.mxu3 %v5931_v58  ;;  %v15253_v58 = vld [vmem:[#allocation100_spill] sm:$0xff] }
 0xffa   : > { %v6210_v43 = vadd.f32 %v15253_v58, %v6111_v16  ;;  %v5933_v58 = vmax.f32 %v5725_v56, 0.0 }
 0xffc   : > { %v6676_v19 = vpop.f32.mrf.mxu3  ;;  %v6308_v26 = vadd.f32 %v13285_v47, %v6210_v43  ;;  %v6839_v47 = vpop.f32.mrf.mxu1 }
 0xffd   : > { %v13525_v18 = vadd.f32 %v6676_v19, %v6600_v53  ;;  %v15256_v53 = vld [vmem:[#allocation338_spill] sm:$0xff]  ;;  %v6937_v43 = vpop.f32.mrf.mxu2 }
 0xffe   : > { %v6406_v9 = vadd.f32 %v13065_v28, %v6308_v26  ;;  %v5527_v19 = vmax.f32 %v15256_v53, %v13125_v8  ;;  %v6881_v8 = vadd.f32 %v6833_v49, %v6783_v38  ;;  %v7386_v38 = vld [vmem:[%s13763_s9 + $0x50] sm:$0xf] }
 0xfff   : > { %8262 = vmatpush.msk.msra.mxu2 %vm7440_vm2, %v7386_v38 }
0x1000   : > { %v6504_v21 = vadd.f32 %v6486_v29, %v6406_v9  ;;  %v5739_v40 = vadd.f32 %v13135_v6, %v5527_v19  ;;  %v7133_v29 = vpop.f32.mrf.mxu0  ;;  %v6979_v0 = vadd.f32 %v6931_v45, %v6881_v8  ;;  %v15258_v9 = vld [vmem:[#allocation340_spill] sm:$0xff] }
0x1001   : > { %7070 = vmatmul.f32.gmra.mxu3 %v5932_v22  ;;  %v6784_v22 = vadd.f32 %v13085_v27, %v13317_v30  ;;  %v6785_v30 = vadd.f32 %v13098_v5, %v13332_v35  ;;  %v6786_v35 = vadd.f32 %v13109_v17, %v13353_v62  ;;  %v7385_v17 = vld [vmem:[%s13763_s9 + $0x48] sm:$0xff] }
0x1002   : > { %v6602_v63 = vadd.f32 %v6584_v11, %v6504_v21  ;;  %v13549_v11 = vld [vmem:[%s13760_s6] ss:$0 sm:$0xff]  ;;  %7450 = vmatpush.msra.mxu2 %v7385_v17  ;;  %v7382_v17 = vld [vmem:[%s13763_s9 + $0x30] sm:$0xff] }
0x1003   : > { %v6882_v19 = vadd.f32 %v6836_v46, %v6784_v22 }
0x1004   : > { %v6679_v4 = vpop.f32.mrf.mxu3  ;;  %v6842_v56 = vpop.f32.mrf.mxu1 }
0x1005   : > { %v13532_v16 = vadd.f32 %v6679_v4, %v6601_v59  ;;  %v5947_v59 = vmax.f32 %v5739_v40, 0.0  ;;  %v15257_v4 = vld [vmem:[#allocation339_spill] sm:$0xff]  ;;  %v6980_v40 = vadd.f32 %v6934_v39, %v6882_v19 }
0x1006   : > { %v5528_v25 = vmax.f32 %v15257_v4, %v13138_v37  ;;  %v5529_v37 = vmax.f32 %v15258_v9, %v13146_v20 }
0x1008   : > { %v5740_v26 = vadd.f32 %v13135_v6, %v5528_v25  ;;  %v5741_v27 = vadd.f32 %v13135_v6, %v5529_v37  ;;  %v7136_v20 = vpop.f32.mrf.mxu0 }
0x1009   : > { %7073 = vmatmul.f32.gmra.mxu3 %v5933_v58  ;;  %v6940_v58 = vpop.f32.mrf.mxu2 }
0x100a   : > { %v5948_v53 = vmax.f32 %v5740_v26, 0.0  ;;  %v5949_v6 = vmax.f32 %v5741_v27, 0.0  ;;  %v7384_v27 = vld [vmem:[%s13763_s9 + $0x40] sm:$0xff] }
0x100b   : > { %7451 = vmatpush.msra.mxu2 %v7384_v27  ;;  %v6792_v27 = vadd.f32 %v13380_v55, %v13463_v2 }
0x100c   : > { %v6682_v28 = vpop.f32.mrf.mxu3 }
0x100d   : > { %v13539_v41 = vadd.f32 %v6682_v28, %v6602_v63  ;;  %v6845_v63 = vpop.f32.mrf.mxu1 }
0x1010   : > { %v7139_v22 = vpop.f32.mrf.mxu0 }
0x1011   : > { %7165 = vmatmul.f32.vlgmr.msrb.gmra.mxu3 %v5947_v59  ;;  %v6883_v59 = vadd.f32 %v6839_v47, %v6785_v30  ;;  %v6943_v5 = vpop.f32.mrf.mxu2  ;;  %v6787_v47 = vadd.f32 %v13123_v48, %v13372_v15  ;;  %v6788_v48 = vadd.f32 %v13292_v36, %v13390_v51  ;;  %v6789_v36 = vadd.f32 %v13314_v32, %v13409_v50  ;;  %v7383_v32 = vld [vmem:[%s13763_s9 + $0x38] sm:$0xff] }
0x1012   : > { %7452 = vmatpush.msra.mxu2 %v7383_v32  ;;  %v15265_v32 = vld [vmem:[#allocation133_spill] sm:$0xff] }
0x1013   : > { %v6981_v25 = vadd.f32 %v6937_v43, %v6883_v59 }
0x1014   : > { %v7029_v13 = vpop.f32.mrf.mxu3  ;;  %7453 = vmatpush.msra.mxu2 %v7382_v17 }
0x1015   : > { %v7077_v3 = vadd.f32 %v7029_v13, %v6979_v0  ;;  %v6884_v13 = vadd.f32 %v6842_v56, %v6786_v35  ;;  %v6885_v56 = vadd.f32 %v6845_v63, %v6787_v47 }
0x1017   : > { %v7175_v49 = vadd.f32 %v7127_v52, %v7077_v3  ;;  %v6848_v3 = vpop.f32.mrf.mxu1  ;;  %v6982_v37 = vadd.f32 %v6940_v58, %v6884_v13  ;;  %v6983_v58 = vadd.f32 %v6943_v5, %v6885_v56 }
0x1019   : > { %v7195_v21 = vadd.f32 %v13549_v11, %v7175_v49  ;;  %7168 = vmatmul.f32.gmra.mxu3 %v5948_v53  ;;  %v6946_v62 = vpop.f32.mrf.mxu2  ;;  %v7142_v53 = vpop.f32.mrf.mxu0 }
0x101b   : > { %v7211_v45 = vmax.f32 %v7195_v21, 0.0 }
0x101c   : > { %v7032_v52 = vpop.f32.mrf.mxu3 }
0x101d   : > { %v7078_v46 = vadd.f32 %v7032_v52, %v6980_v40  ;;  %8246 = vmatmul.msk.f32.vlgmr.msra.gmra.mxu1 %vm7246_vm1, %v7211_v45 }
0x101f   : > { %v7176_v28 = vadd.f32 %v7130_v61, %v7078_v46  ;;  %v6851_v21 = vpop.f32.mrf.mxu1 }
0x1020   : > { %v6887_v5 = vadd.f32 %v6851_v21, %v6789_v36 }
0x1021   : > { %v7196_v4 = vadd.f32 %v13549_v11, %v7176_v28  ;;  %7171 = vmatmul.f32.gmra.mxu3 %v5949_v6  ;;  %v6949_v40 = vpop.f32.mrf.mxu2  ;;  %v7145_v46 = vpop.f32.mrf.mxu0 }
0x1023   : > { %v7212_v39 = vmax.f32 %v7196_v4, 0.0 }
0x1024   : > { %v7035_v8 = vpop.f32.mrf.mxu3 }
0x1025   : > { %v7079_v26 = vadd.f32 %v7035_v8, %v6981_v25  ;;  %8247 = vmatmul.msk.f32.gmra.mxu1 %vm7246_vm1, %v7212_v39  ;;  %v6790_v25 = vadd.f32 %v13334_v57, %v13428_v10  ;;  %v6791_v57 = vadd.f32 %v13359_v33, %v13449_v24 }
0x1027   : > { %v7177_v0 = vadd.f32 %v7133_v29, %v7079_v26  ;;  %v6854_v28 = vpop.f32.mrf.mxu1  ;;  %v6985_v26 = vadd.f32 %v6949_v40, %v6887_v5 }
0x1029   : > { %v7197_v61 = vadd.f32 %v13549_v11, %v7177_v0  ;;  %v6952_v35 = vpop.f32.mrf.mxu2  ;;  %v7148_v50 = vpop.f32.mrf.mxu0 }
0x102b   : > { %v7213_v9 = vmax.f32 %v7197_v61, 0.0  ;;  %v6888_v61 = vadd.f32 %v6854_v28, %v6790_v25  ;;  %v7381_v25 = vld [vmem:[%s13763_s9 + $0x28] sm:$0xff] }
0x102c   : > { %v7038_v43 = vpop.f32.mrf.mxu3  ;;  %7454 = vmatpush.msra.mxu2 %v7381_v25  ;;  %v15269_v25 = vld [vmem:[#allocation136_spill] sm:$0xff] }
0x102d   : > { %v7080_v49 = vadd.f32 %v7038_v43, %v6982_v37  ;;  %8248 = vmatmul.msk.f32.gmra.mxu1 %vm7246_vm1, %v7213_v9  ;;  %v6986_v37 = vadd.f32 %v6952_v35, %v6888_v61  ;;  %v15259_v43 = vld [vmem:[#allocation48_spill] sm:$0xff]  ;;  %v6793_v35 = vadd.f32 %v13406_v1, %v13475_v34 }
0x102f   : > { %v7178_v29 = vadd.f32 %v7136_v20, %v7080_v49  ;;  %v6886_v20 = vadd.f32 %v6848_v3, %v6788_v48  ;;  %v6857_v13 = vpop.f32.mrf.mxu1  ;;  %v15260_v49 = vld [vmem:[#allocation64_spill] sm:$0xff] }
0x1031   : > { %v7198_v19 = vadd.f32 %v13549_v11, %v7178_v29  ;;  %v6984_v63 = vadd.f32 %v6946_v62, %v6886_v20  ;;  %v6955_v9 = vpop.f32.mrf.mxu2  ;;  %v6099_v29 = vadd.f32 %v15260_v49, %v15259_v43  ;;  %v15262_v20 = vld [vmem:[#allocation49_spill] sm:$0xff] }
0x1033   : > { %v7214_v15 = vmax.f32 %v7198_v19, 0.0  ;;  %v15261_v19 = vld [vmem:[#allocation93_spill] sm:$0xff] }
0x1034   : > { %v7041_v30 = vpop.f32.mrf.mxu3  ;;  %v6206_v21 = vadd.f32 %v15261_v19, %v6099_v29 }
0x1035   : > { %v7081_v45 = vadd.f32 %v7041_v30, %v6983_v58  ;;  %8249 = vmatmul.msk.f32.gmra.mxu1 %vm7246_vm1, %v7214_v15  ;;  %v6889_v15 = vadd.f32 %v6857_v13, %v6791_v57 }
0x1036   : > { %v6304_v24 = vadd.f32 %v13243_v14, %v6206_v21 }
0x1037   : > { %v7179_v38 = vadd.f32 %v7139_v22, %v7081_v45  ;;  %v6860_v33 = vpop.f32.mrf.mxu1  ;;  %v6987_v45 = vadd.f32 %v6955_v9, %v6889_v15 }
0x1038   : > { %v6402_v36 = vadd.f32 %v13017_v12, %v6304_v24 }
0x1039   : > { %v7199_v52 = vadd.f32 %v13549_v11, %v7179_v38  ;;  %v6958_v40 = vpop.f32.mrf.mxu2 }
0x103a   : > { %v6500_v55 = vadd.f32 %v13411_v42, %v6402_v36  ;;  %v7380_v42 = vld [vmem:[%s13763_s9 + $0x20] sm:$0xff] }
0x103b   : > { %v7215_v51 = vmax.f32 %v7199_v52, 0.0  ;;  %v15263_v52 = vld [vmem:[#allocation65_spill] sm:$0xff]  ;;  %7455 = vmatpush.msra.mxu2 %v7380_v42 }
0x103c   : > { %v7044_v6 = vpop.f32.mrf.mxu3 }
0x103d   : > { %v7082_v59 = vadd.f32 %v7044_v6, %v6984_v63  ;;  %8250 = vmatmul.msk.f32.gmra.mxu1 %vm7246_vm1, %v7215_v51  ;;  %v15264_v63 = vld [vmem:[#allocation95_spill] sm:$0xff]  ;;  %v6890_v6 = vadd.f32 %v6860_v33, %v6792_v27 }
0x103f   : > { %v7180_v4 = vadd.f32 %v7142_v53, %v7082_v59  ;;  %v7151_v53 = vpop.f32.mrf.mxu0  ;;  %v6863_v5 = vpop.f32.mrf.mxu1  ;;  %v6988_v12 = vadd.f32 %v6958_v40, %v6890_v6  ;;  %v7376_v6 = vld [vmem:[%s13763_s9] sm:$0xff] }
0x1041   : > { %v7200_v39 = vadd.f32 %v13549_v11, %v7180_v4  ;;  %v6961_v1 = vpop.f32.mrf.mxu2 }
0x1043   : > { %v7216_v8 = vmax.f32 %v7200_v39, 0.0 }
0x1044   : > { %v7047_v22 = vpop.f32.mrf.mxu3 }
0x1045   : > { %v7083_v0 = vadd.f32 %v7047_v22, %v6985_v26  ;;  %8251 = vmatmul.msk.f32.gmra.mxu1 %vm7246_vm1, %v7216_v8 }
0x1047   : > { %v7181_v3 = vadd.f32 %v7145_v46, %v7083_v0  ;;  %v6102_v46 = vadd.f32 %v15263_v52, %v15262_v20  ;;  %v7154_v59 = vpop.f32.mrf.mxu0  ;;  %v6891_v0 = vadd.f32 %v6863_v5, %v6793_v35  ;;  %v6866_v57 = vpop.f32.mrf.mxu1 }
0x1049   : > { %v7201_v47 = vadd.f32 %v13549_v11, %v7181_v3  ;;  %v6207_v28 = vadd.f32 %v15264_v63, %v6102_v46  ;;  %v6989_v9 = vadd.f32 %v6961_v1, %v6891_v0  ;;  %v6964_v29 = vpop.f32.mrf.mxu2  ;;  %v13657_v0 = vld [vmem:[%s13762_s8] ss:$0 sm:$0xff] }
0x104b   : > { %v7217_v10 = vmax.f32 %v7201_v47, 0.0  ;;  %v6305_v4 = vadd.f32 %v13251_v54, %v6207_v28  ;;  %v6598_v54 = vadd.f32 %v15265_v32, %v6500_v55  ;;  %v7377_v28 = vld [vmem:[%s13763_s9 + $0x8] sm:$0xff] }
0x104c   : > { %v7050_v62 = vpop.f32.mrf.mxu3 }
0x104d   : > { %v7084_v56 = vadd.f32 %v7050_v62, %v6986_v37  ;;  %8252 = vmatmul.msk.f32.gmra.mxu1 %vm7246_vm1, %v7217_v10  ;;  %v6403_v26 = vadd.f32 %v13027_v44, %v6305_v4  ;;  %v6696_v34 = vadd.f32 %v13487_v23, %v6598_v54  ;;  %v15266_v62 = vld [vmem:[#allocation137_spill] sm:$0xff] }
0x104f   : > { %v7182_v48 = vadd.f32 %v7148_v50, %v7084_v56  ;;  %v6501_v13 = vadd.f32 %v13439_v7, %v6403_v26  ;;  %v7157_v44 = vpop.f32.mrf.mxu0  ;;  %v6794_v61 = vadd.f32 %v13430_v31, %v6696_v34  ;;  %v15267_v56 = vld [vmem:[#allocation134_spill] sm:$0xff]  ;;  %v6869_v33 = vpop.f32.mrf.mxu1 }
0x1051   : > { %v7202_v58 = vadd.f32 %v13549_v11, %v7182_v48  ;;  %v6599_v37 = vadd.f32 %v13446_v60, %v6501_v13  ;;  %v6892_v49 = vadd.f32 %v6866_v57, %v6794_v61  ;;  %v7379_v60 = vld [vmem:[%s13763_s9 + $0x18] sm:$0xff] }
0x1052   : > { %7456 = vmatpush.msra.mxu2 %v7379_v60 }
0x1053   : > { %v7218_v30 = vmax.f32 %v7202_v58, 0.0  ;;  %v6697_v23 = vadd.f32 %v15266_v62, %v6599_v37  ;;  %v6990_v31 = vadd.f32 %v6964_v29, %v6892_v49 }
0x1054   : > { %v7053_v38 = vpop.f32.mrf.mxu3 }
0x1055   : > { %v7085_v51 = vadd.f32 %v7053_v38, %v6987_v45  ;;  %8253 = vmatmul.msk.f32.gmra.mxu1 %vm7246_vm1, %v7218_v30  ;;  %v6967_v30 = vpop.f32.mrf.mxu2 }
0x1057   : > { %v7183_v14 = vadd.f32 %v7151_v53, %v7085_v51  ;;  %v6795_v53 = vadd.f32 %v15267_v56, %v6697_v23  ;;  %v7160_v21 = vpop.f32.mrf.mxu0  ;;  %v7378_v51 = vld [vmem:[%s13763_s9 + $0x10] sm:$0xff] }
0x1058   : > { %7457 = vmatpush.msra.mxu2 %v7378_v51 }
0x1059   : > { %v7203_v2 = vadd.f32 %v13549_v11, %v7183_v14  ;;  %v6893_v58 = vadd.f32 %v6869_v33, %v6795_v53 }
0x105a   : > { %7458 = vmatpush.msra.mxu2 %v7377_v28 }
0x105b   : > { %v7219_v39 = vmax.f32 %v7203_v2, 0.0  ;;  %v6991_v40 = vadd.f32 %v6967_v30, %v6893_v58  ;;  %v15268_v2 = vld [vmem:[#allocation135_spill] sm:$0xff] }
0x105c   : > { %v7056_v8 = vpop.f32.mrf.mxu3  ;;  %7459 = vmatpush.msra.mxu2 %v7376_v6  ;;  %v6796_v5 = vadd.f32 %v15268_v2, %v13525_v18  ;;  %v15270_v18 = vld [vmem:[#allocation138_spill] sm:$0xff] }
0x105d   : > { %v7086_v50 = vadd.f32 %v7056_v8, %v6988_v12  ;;  %8254 = vmatmul.msk.f32.gmra.mxu1 %vm7246_vm1, %v7219_v39  ;;  %v6970_v35 = vpop.f32.mrf.mxu2  ;;  %v6797_v8 = vadd.f32 %v15269_v25, %v13532_v16  ;;  %v6798_v13 = vadd.f32 %v15270_v18, %v13539_v41 }
0x105f   : > { %v7184_v22 = vadd.f32 %v7154_v59, %v7086_v50  ;;  %v7163_v52 = vpop.f32.mrf.mxu0  ;;  %v6872_v59 = vpop.f32.mrf.mxu1 }
0x1060   : > { %v6894_v12 = vadd.f32 %v6872_v59, %v6796_v5 }
0x1061   : > { %v7204_v3 = vadd.f32 %v13549_v11, %v7184_v22 }
0x1062   : > { %v6992_v26 = vadd.f32 %v6970_v35, %v6894_v12 }
0x1063   : > { %v7220_v47 = vmax.f32 %v7204_v3, 0.0 }
0x1064   : > { %v7059_v10 = vpop.f32.mrf.mxu3 }
0x1065   : > { %v7087_v17 = vadd.f32 %v7059_v10, %v6989_v9  ;;  %8255 = vmatmul.msk.f32.gmra.mxu1 %vm7246_vm1, %v7220_v47  ;;  %v6973_v34 = vpop.f32.mrf.mxu2 }
0x1067   : > { %v7185_v43 = vadd.f32 %v7157_v44, %v7087_v17  ;;  %v6875_v55 = vpop.f32.mrf.mxu1 }
0x1068   : > { %v6895_v42 = vadd.f32 %v6875_v55, %v6797_v8 }
0x1069   : > { %v7205_v7 = vadd.f32 %v13549_v11, %v7185_v43 }
0x106a   : > { %v6993_v3 = vadd.f32 %v6973_v34, %v6895_v42  ;;  %v13697_v42 = vld [vmem:[%s13764_s10] ss:$0 sm:$0xff] }
0x106b   : > { %v7221_v19 = vmax.f32 %v7205_v7, 0.0 }
0x106c   : > { %v7062_v48 = vpop.f32.mrf.mxu3 }
0x106d   : > { %v7088_v15 = vadd.f32 %v7062_v48, %v6990_v31  ;;  %8256 = vmatmul.msk.f32.gmra.mxu1 %vm7246_vm1, %v7221_v19  ;;  %v6976_v62 = vpop.f32.mrf.mxu2 }
0x106f   : > { %v7186_v24 = vadd.f32 %v7160_v21, %v7088_v15  ;;  %v6878_v32 = vpop.f32.mrf.mxu1 }
0x1070   : > { %v6896_v57 = vadd.f32 %v6878_v32, %v6798_v13 }
0x1071   : > { %v7206_v27 = vadd.f32 %v13549_v11, %v7186_v24 }
0x1072   : > { %v6994_v23 = vadd.f32 %v6976_v62, %v6896_v57 }
0x1073   : > { %v7222_v45 = vmax.f32 %v7206_v27, 0.0 }
0x1074   : > { %v7065_v38 = vpop.f32.mrf.mxu3 }
0x1075   : > { %v7089_v20 = vadd.f32 %v7065_v38, %v6991_v40  ;;  %8257 = vmatmul.msk.f32.gmra.mxu1 %vm7246_vm1, %v7222_v45 }
0x1077   : > { %v7187_v46 = vadd.f32 %v7163_v52, %v7089_v20 }
0x1079   : > { %v7207_v36 = vadd.f32 %v13549_v11, %v7187_v46 }
0x107b   : > { %v7223_v63 = vmax.f32 %v7207_v36, 0.0 }
0x107c   : > { %v7068_v14 = vpop.f32.mrf.mxu3 }
0x107d   : > { %8258 = vmatmul.msk.f32.gmra.mxu1 %vm7246_vm1, %v7223_v63  ;;  %v7090_v54 = vadd.f32 %v7068_v14, %v6992_v26 }
0x1084   : > { %v7071_v4 = vpop.f32.mrf.mxu3 }
0x1085   : > { %v7091_v61 = vadd.f32 %v7071_v4, %v6993_v3 }
0x108c   : > { %v7074_v39 = vpop.f32.mrf.mxu3 }
0x108d   : > { %v7092_v49 = vadd.f32 %v7074_v39, %v6994_v23 }
0x1094   : > { %v7166_v50 = vpop.f32.mrf.mxu3 }
0x1095   : > { %v7188_v1 = vadd.f32 %v7166_v50, %v7090_v54 }
0x1097   : > { %v7208_v22 = vadd.f32 %v13549_v11, %v7188_v1 }
0x1099   : > { %v7224_v44 = vmax.f32 %v7208_v22, 0.0 }
0x109a   : > { %v7312_v16 = vpop.f32.mrf.mxu1 }
0x109b   : > { %v7313_v47 = vadd.f32 %v13657_v0, %v7312_v16  ;;  %8259 = vmatmul.msk.f32.gmra.mxu1 %vm7246_vm1, %v7224_v44 }
0x109c   : > { %v7169_v9 = vpop.f32.mrf.mxu3 }
0x109d   : > { %v7360_v10 = vmax.f32 %v7313_v47, 0.0  ;;  %v7189_v37 = vadd.f32 %v7169_v9, %v7091_v61 }
0x109f   : > { %v7209_v17 = vadd.f32 %v13549_v11, %v7189_v37  ;;  %8263 = vmatmul.msk.f32.vlgmr.msra.gmra.mxu2 %vm7391_vm3, %v7360_v10 }
0x10a1   : > { %v7225_v41 = vmax.f32 %v7209_v17, 0.0 }
0x10a2   : > { %v7315_v43 = vpop.f32.mrf.mxu1 }
0x10a3   : > { %v7316_v29 = vadd.f32 %v13657_v0, %v7315_v43  ;;  %8260 = vmatmul.msk.f32.vlgmr.msra.gmra.mxu3 %vm7246_vm1, %v7225_v41 }
0x10a4   : > { %v7172_v7 = vpop.f32.mrf.mxu3 }
0x10a5   : > { %v7361_v56 = vmax.f32 %v7316_v29, 0.0  ;;  %v7190_v53 = vadd.f32 %v7172_v7, %v7092_v49 }
0x10a7   : > { %v7210_v19 = vadd.f32 %v13549_v11, %v7190_v53  ;;  %8264 = vmatmul.msk.f32.gmra.mxu2 %vm7391_vm3, %v7361_v56 }
0x10a9   : > { %v7226_v31 = vmax.f32 %v7210_v19, 0.0 }
0x10aa   : > { %v7318_v21 = vpop.f32.mrf.mxu1 }
0x10ab   : > { %v7319_v48 = vadd.f32 %v13657_v0, %v7318_v21  ;;  %8261 = vmatmul.msk.f32.gmra.mxu3 %vm7246_vm1, %v7226_v31 }
0x10ad   : > { %v7362_v15 = vmax.f32 %v7319_v48, 0.0 }
0x10af   : > { %8265 = vmatmul.msk.f32.gmra.mxu2 %vm7391_vm3, %v7362_v15 }
0x10b2   : > { %v7321_v60 = vpop.f32.mrf.mxu1 }
0x10b3   : > { %v7322_v33 = vadd.f32 %v13657_v0, %v7321_v60 }
0x10b5   : > { %v7363_v24 = vmax.f32 %v7322_v33, 0.0 }
0x10b7   : > { %8266 = vmatmul.msk.f32.gmra.mxu2 %vm7391_vm3, %v7363_v24 }
0x10ba   : > { %v7324_v58 = vpop.f32.mrf.mxu1 }
0x10bb   : > { %v7325_v11 = vadd.f32 %v13657_v0, %v7324_v58 }
0x10bd   : > { %v7364_v27 = vmax.f32 %v7325_v11, 0.0 }
0x10bf   : > { %8267 = vmatmul.msk.f32.gmra.mxu2 %vm7391_vm3, %v7364_v27 }
0x10c2   : > { %v7327_v30 = vpop.f32.mrf.mxu1 }
0x10c3   : > { %v7328_v45 = vadd.f32 %v13657_v0, %v7327_v30 }
0x10c5   : > { %v7365_v40 = vmax.f32 %v7328_v45, 0.0 }
0x10c7   : > { %8268 = vmatmul.msk.f32.gmra.mxu2 %vm7391_vm3, %v7365_v40 }
0x10ca   : > { %v7330_v38 = vpop.f32.mrf.mxu1 }
0x10cb   : > { %v7331_v20 = vadd.f32 %v13657_v0, %v7330_v38 }
0x10cd   : > { %v7366_v52 = vmax.f32 %v7331_v20, 0.0 }
0x10cf   : > { %8269 = vmatmul.msk.f32.gmra.mxu2 %vm7391_vm3, %v7366_v52 }
0x10d2   : > { %v7333_v46 = vpop.f32.mrf.mxu1 }
0x10d3   : > { %v7334_v36 = vadd.f32 %v13657_v0, %v7333_v46 }
0x10d5   : > { %v7367_v51 = vmax.f32 %v7334_v36, 0.0 }
0x10d7   : > { %8270 = vmatmul.msk.f32.gmra.mxu2 %vm7391_vm3, %v7367_v51 }
0x10da   : > { %v7336_v63 = vpop.f32.mrf.mxu1 }
0x10db   : > { %v7337_v28 = vadd.f32 %v13657_v0, %v7336_v63 }
0x10dd   : > { %v7368_v14 = vmax.f32 %v7337_v28, 0.0 }
0x10df   : > { %8271 = vmatmul.msk.f32.gmra.mxu2 %vm7391_vm3, %v7368_v14 }
0x10e2   : > { %v7339_v6 = vpop.f32.mrf.mxu1 }
0x10e3   : > { %v7340_v59 = vadd.f32 %v13657_v0, %v7339_v6 }
0x10e5   : > { %v7369_v4 = vmax.f32 %v7340_v59, 0.0 }
0x10e7   : > { %8272 = vmatmul.msk.f32.gmra.mxu2 %vm7391_vm3, %v7369_v4 }
0x10ea   : > { %v7342_v55 = vpop.f32.mrf.mxu1 }
0x10eb   : > { %v7343_v2 = vadd.f32 %v13657_v0, %v7342_v55 }
0x10ed   : > { %v7370_v5 = vmax.f32 %v7343_v2, 0.0 }
0x10ef   : > { %8273 = vmatmul.msk.f32.gmra.mxu2 %vm7391_vm3, %v7370_v5 }
0x10f2   : > { %v7345_v35 = vpop.f32.mrf.mxu1 }
0x10f3   : > { %v7346_v39 = vadd.f32 %v13657_v0, %v7345_v35 }
0x10f5   : > { %v7371_v12 = vmax.f32 %v7346_v39, 0.0 }
0x10f7   : > { %8274 = vmatmul.msk.f32.gmra.mxu2 %vm7391_vm3, %v7371_v12 }
0x10fa   : > { %v7348_v25 = vpop.f32.mrf.mxu1 }
0x10fb   : > { %v7349_v8 = vadd.f32 %v13657_v0, %v7348_v25 }
0x10fd   : > { %v7372_v26 = vmax.f32 %v7349_v8, 0.0 }
0x10ff   : > { %8275 = vmatmul.msk.f32.gmra.mxu2 %vm7391_vm3, %v7372_v26 }
0x1118   : > { %v7351_v32 = vpop.f32.mrf.mxu1 }
0x1119   : > { %v7352_v54 = vadd.f32 %v13657_v0, %v7351_v32 }
0x111b   : > { %v7373_v50 = vmax.f32 %v7352_v54, 0.0 }
0x111d   : > { %8276 = vmatmul.msk.f32.gmra.mxu2 %vm7391_vm3, %v7373_v50 }
0x1122   : > { %v7461_v1 = vpop.f32.mrf.mxu2 }
0x1123   : > { %v7462_v34 = vadd.f32 %v13697_v42, %v7461_v1 }
0x1125   : > { %v7509_v22 = vmax.f32 %v7462_v34, 0.0 }
0x1126   : > { %v7354_v18 = vpop.f32.mrf.mxu3 }
0x1127   : > { %v7355_v13 = vadd.f32 %v13657_v0, %v7354_v18  ;;  %7525 = vxpose.xlu0.b32.start [1/16] (narrow) %v7509_v22, 8 }
0x1129   : > { %v7374_v3 = vmax.f32 %v7355_v13, 0.0 }
0x112a   : > { %v7464_v44 = vpop.f32.mrf.mxu2 }
0x112b   : > { %v7465_v16 = vadd.f32 %v13697_v42, %v7464_v44  ;;  %8277 = vmatmul.msk.f32.gmra.mxu2 %vm7391_vm3, %v7374_v3 }
0x112d   : > { %v7510_v61 = vmax.f32 %v7465_v16, 0.0 }
0x112e   : > { %v7357_v47 = vpop.f32.mrf.mxu3 }
0x112f   : > { %v7358_v9 = vadd.f32 %v13657_v0, %v7357_v47  ;;  %7526 = vxpose.xlu0.b32.cont [2/16] (narrow) %v7510_v61, 8 }
0x1131   : > { %v7375_v57 = vmax.f32 %v7358_v9, 0.0 }
0x1132   : > { %v7467_v10 = vpop.f32.mrf.mxu2 }
0x1133   : > { %v7468_v37 = vadd.f32 %v13697_v42, %v7467_v10  ;;  %8278 = vmatmul.msk.f32.gmra.mxu2 %vm7391_vm3, %v7375_v57 }
0x1135   : > { %v7511_v17 = vmax.f32 %v7468_v37, 0.0 }
0x1137   : > { %7527 = vxpose.xlu0.b32.cont [3/16] (narrow) %v7511_v17, 8 }
0x113a   : > { %v7470_v62 = vpop.f32.mrf.mxu2 }
0x113b   : > { %v7471_v23 = vadd.f32 %v13697_v42, %v7470_v62 }
0x113d   : > { %v7512_v41 = vmax.f32 %v7471_v23, 0.0 }
0x113f   : > { %7528 = vxpose.xlu0.b32.cont [4/16] (narrow) %v7512_v41, 8 }
0x1142   : > { %v7473_v43 = vpop.f32.mrf.mxu2 }
0x1143   : > { %v7474_v49 = vadd.f32 %v13697_v42, %v7473_v43 }
0x1145   : > { %v7513_v29 = vmax.f32 %v7474_v49, 0.0 }
0x1147   : > { %7529 = vxpose.xlu0.b32.cont [5/16] (narrow) %v7513_v29, 8 }
0x114a   : > { %v7476_v0 = vpop.f32.mrf.mxu2 }
0x114b   : > { %v7477_v7 = vadd.f32 %v13697_v42, %v7476_v0 }
0x114d   : > { %v7514_v56 = vmax.f32 %v7477_v7, 0.0 }
0x114f   : > { %7530 = vxpose.xlu0.b32.cont [6/16] (narrow) %v7514_v56, 8 }
0x1152   : > { %v7479_v53 = vpop.f32.mrf.mxu2 }
0x1153   : > { %v7480_v19 = vadd.f32 %v13697_v42, %v7479_v53 }
0x1155   : > { %v7515_v31 = vmax.f32 %v7480_v19, 0.0 }
0x1157   : > { %7531 = vxpose.xlu0.b32.cont [7/16] (narrow) %v7515_v31, 8 }
0x115a   : > { %v7482_v21 = vpop.f32.mrf.mxu2 }
0x115b   : > { %v7483_v48 = vadd.f32 %v13697_v42, %v7482_v21 }
0x115d   : > { %v7516_v15 = vmax.f32 %v7483_v48, 0.0 }
0x115f   : > { %7532 = vxpose.xlu0.b32.cont [8/16] (narrow) %v7516_v15, 8 }
0x1162   : > { %v7485_v60 = vpop.f32.mrf.mxu2 }
0x1163   : > { %v7486_v33 = vadd.f32 %v13697_v42, %v7485_v60 }
0x1165   : > { %v7517_v24 = vmax.f32 %v7486_v33, 0.0 }
0x1167   : > { %7533 = vxpose.xlu0.b32.cont [9/16] (narrow) %v7517_v24, 8 }
0x116a   : > { %v7488_v58 = vpop.f32.mrf.mxu2 }
0x116b   : > { %v7489_v11 = vadd.f32 %v13697_v42, %v7488_v58 }
0x116d   : > { %v7518_v27 = vmax.f32 %v7489_v11, 0.0 }
0x116f   : > { %7534 = vxpose.xlu0.b32.cont [10/16] (narrow) %v7518_v27, 8 }
0x1172   : > { %v7491_v30 = vpop.f32.mrf.mxu2 }
0x1173   : > { %v7492_v45 = vadd.f32 %v13697_v42, %v7491_v30 }
0x1175   : > { %v7519_v40 = vmax.f32 %v7492_v45, 0.0 }
0x1177   : > { %7535 = vxpose.xlu0.b32.cont [11/16] (narrow) %v7519_v40, 8 }
0x117a   : > { %v7494_v38 = vpop.f32.mrf.mxu2 }
0x117b   : > { %v7495_v20 = vadd.f32 %v13697_v42, %v7494_v38 }
0x117d   : > { %v7520_v52 = vmax.f32 %v7495_v20, 0.0 }
0x117f   : > { %7536 = vxpose.xlu0.b32.cont [12/16] (narrow) %v7520_v52, 8 }
0x1182   : > { %v7497_v46 = vpop.f32.mrf.mxu2 }
0x1183   : > { %v7498_v36 = vadd.f32 %v13697_v42, %v7497_v46 }
0x1185   : > { %v7521_v51 = vmax.f32 %v7498_v36, 0.0 }
0x1187   : > { %7537 = vxpose.xlu0.b32.cont [13/16] (narrow) %v7521_v51, 8 }
0x11a0   : > { %v7500_v63 = vpop.f32.mrf.mxu2 }
0x11a1   : > { %v7501_v28 = vadd.f32 %v13697_v42, %v7500_v63 }
0x11a3   : > { %v7522_v14 = vmax.f32 %v7501_v28, 0.0 }
0x11a5   : > { %7538 = vxpose.xlu0.b32.cont [14/16] (narrow) %v7522_v14, 8 }
0x11ae   : > { %v7503_v6 = vpop.f32.mrf.mxu2 }
0x11af   : > { %v7504_v59 = vadd.f32 %v13697_v42, %v7503_v6 }
0x11b1   : > { %v7523_v4 = vmax.f32 %v7504_v59, 0.0 }
0x11b3   : > { %7539 = vxpose.xlu0.b32.cont [15/16] (narrow) %v7523_v4, 8 }
0x11b6   : > { %v7506_v55 = vpop.f32.mrf.mxu2 }
0x11b7   : > { %v7507_v2 = vadd.f32 %v13697_v42, %v7506_v55 }
0x11b9   : > { %v7524_v5 = vmax.f32 %v7507_v2, 0.0 }
0x11bb   : > { %7540 = vxpose.xlu0.b32.end [16/16] (narrow) %v7524_v5, 8 }
0x11e7   : > { %v7541_v35 = vpop.trf.xlu0 }
0x11e8   : > { %7557 = vst [vmem:[%s1247_s0] sm:$0x1] %v7541_v35 }
0x11e9   : > { %8408 = shalt.err (!%p8405_p5)
}
0x11ea   : > { %8331 = dma.vmem_to_hbm [thread:$0]  (%p8543_p6), %s7570_s24, 16, %s7572_s12, %s7559_s13  }
0x11eb PF: > { %s7583_s25 = sand.u32 1, %s8431_s17   ;;  %p8334_p7 = pnand %p7634_p9, %p8547_p8 }
0x11ec   : > { %s7584_s1 = scalar_lea.sflag [#allocation4], %s7583_s25 }
0x11ed   : > { %p8335_p10 = pneg %p8334_p7 }
0x11ef   : > { %8426 = dma.done.wait (%p8335_p10), %s7584_s1, 16  }
0x11f0   : > { %8428 = vsyncadd (%p8335_p10), %s7584_s1, 4294967280  ;;  %p21_p11 = scmp.ge.s32.totalorder %s8528_s23, 4   ;;  %s15272_s17 = smov %s8435_s18 }
0x11f1   : > { %s15273_s18 = smov %s8439_s19  ;;  %s15274_s19 = smov %s8541_s26 }
0x11f2   : > { %s15275_s20 = smov %s8528_s23  ;;  %23 = sbr.rel (!%p21_p11) target bundleno = 6 (0x6), region = 154 }
0x11f7   :  { %7589 = vsyncpa [#allocation4], 1 }
0x11f8   :  { %7591 = vsyncpa [#allocation4 + $0x1], 1 }

</bundles_post_ra>
